<compile_context>
chip_gen: v7x
topology: tpu7x:2x2x1
jax: 0.10.0
libtpu: 0.0.40
codegen_flags: <defaults>
</compile_context>

<pallas_src>
import jax
import jax.numpy as jnp
from jax.experimental import pallas as pl
from jax.experimental.pallas import tpu as pltpu


_SQRT_2_OVER_PI = 0.7978845608028654
_GELU_C = 0.044715


def _gelu_tanh(x):
    # tanh-approximate GELU, algebraically reduced to save VALU multiplies:
    #   0.5*x*(1 + tanh(k*(x + c*x^3))) == x*(0.5 + 0.5*tanh(k*x*(1 + c*x*x)))
    xx = x * x
    inner = (_SQRT_2_OVER_PI * x) * (1.0 + _GELU_C * xx)
    return x * (0.5 + 0.5 * jnp.tanh(inner))


# ----------------------------- generation probe ------------------------------ #

def _tpu_generation():
    """Best-effort TPU generation (5/6/7...).  Unknown -> treat as v6-class."""
    try:
        kind = jax.devices()[0].device_kind.lower()
    except Exception:
        return 6
    for g in (7, 6, 5, 4, 3, 2):
        if f"v{g}" in kind or (g == 7 and "7x" in kind):
            return g
    return 6


def _round_up(x, m):
    return (x + m - 1) // m * m


# ------------------------------- Pallas kernel ------------------------------ #

def _mlp_fused_kernel(x_ref, w1_ref, b1_ref, w2_ref, b2_ref, w3_ref, b3_ref,
                      o_ref):
    # x_ref: (tm, dim); w*: bf16 (in, out); b1/b2: (1, out) in the elementwise
    # dtype (bf16 on v6e/v7x, f32 on v5e); b3: (1, nh_pad) f32.
    x = x_ref[...].astype(jnp.bfloat16)                       # bf16 MXU operand
    h = jnp.dot(x, w1_ref[...], preferred_element_type=jnp.float32)
    h = _gelu_tanh(h.astype(b1_ref.dtype) + b1_ref[...])      # elementwise dtype
    h = jnp.dot(h.astype(jnp.bfloat16), w2_ref[...],
                preferred_element_type=jnp.float32)
    h = _gelu_tanh(h.astype(b2_ref.dtype) + b2_ref[...])
    out = jnp.dot(h.astype(jnp.bfloat16), w3_ref[...],
                  preferred_element_type=jnp.float32)
    o_ref[...] = (out + b3_ref[...]).astype(o_ref.dtype)


# --------------------------- one-time weight prep ---------------------------- #

def prepare_mlp_params(w1, b1, w2, b2, w3, b3, *, elem_dtype=None, lane=128):
    """Convert PyTorch-layout (out_features, in_features) weights to kernel
    layout ONCE at model init (hoisted out of the per-call forward path)."""
    hidden, dim = w1.shape
    internal = w2.shape[0]
    num_heads = w3.shape[0]
    assert w2.shape[1] == hidden and w3.shape[1] == internal

    if elem_dtype is None:
        # bf16 elementwise (bias add + GELU) on v6e/v7x; f32 on v5e and older.
        elem_dtype = jnp.bfloat16 if _tpu_generation() >= 6 else jnp.float32

    # Lane-dense final projection: pad output columns to a multiple of 128 so
    # the kernel emits unmasked 128-lane stores.
    nh_pad = _round_up(num_heads, lane)

    w1t = jnp.asarray(w1).T.astype(jnp.bfloat16)                  # (dim, hidden)
    w2t = jnp.asarray(w2).T.astype(jnp.bfloat16)                  # (hidden, internal)
    w3t = jnp.zeros((internal, nh_pad), jnp.bfloat16)
    w3t = w3t.at[:, :num_heads].set(jnp.asarray(w3).T.astype(jnp.bfloat16))
    b1r = jnp.asarray(b1).reshape(1, hidden).astype(elem_dtype)
    b2r = jnp.asarray(b2).reshape(1, internal).astype(elem_dtype)
    b3r = jnp.zeros((1, nh_pad), jnp.float32)
    b3r = b3r.at[:, :num_heads].set(
        jnp.asarray(b3).reshape(1, num_heads).astype(jnp.float32))

    params = {"w1": w1t, "b1": b1r, "w2": w2t, "b2": b2r, "w3": w3t, "b3": b3r,
              "dims": (dim, hidden, internal, num_heads, nh_pad)}
    jax.block_until_ready([w1t, b1r, w2t, b2r, w3t, b3r])  # materialize at init
    return params


# ------------------------------ tiling heuristics ---------------------------- #

def _choose_tile_m(M, gen):
    """Generation-aware row tile: big tiles amortize per-step overhead; v7x
    gets an even number of grid steps so both TensorCores receive work; v5e is
    capped lower (f32 intermediates, single vector-store slot)."""
    cap = 256 if gen <= 5 else 512
    m8 = _round_up(max(M, 1), 8)
    if m8 <= cap:
        if gen >= 7 and m8 >= 128 and m8 % 16 == 0:
            return m8 // 2                       # split across the 2 TCs
        return m8
    cores = 2 if gen >= 7 else 1
    target_steps = max(2 * cores, pl.cdiv(m8, cap))
    if gen >= 7:
        target_steps = _round_up(target_steps, 2)
    tm = min(cap, _round_up(pl.cdiv(m8, target_steps), 8))
    return max(8, tm)


# ------------------------------ pallas_call wrapper --------------------------- #

def _run_pallas(x2, params, tm, m_pad, out_dtype, vmem_limit,
                single_buffer_weights):
    dim, hidden, internal, _, nh_pad = params["dims"]

    def wspec(shape):
        # Grid-invariant operands (weights/biases): single-buffer if supported.
        if single_buffer_weights:
            return pl.BlockSpec(shape, lambda i: (0, 0),
                                pipeline_mode=pl.Buffered(1))
        return pl.BlockSpec(shape, lambda i: (0, 0))

    return pl.pallas_call(
        _mlp_fused_kernel,
        out_shape=jax.ShapeDtypeStruct((m_pad, nh_pad), out_dtype),
        grid=(m_pad // tm,),
        in_specs=[
            pl.BlockSpec((tm, dim), lambda i: (i, 0)),   # x row tile
            wspec((dim, hidden)),                        # W1 (VMEM-resident)
            wspec((1, hidden)),                          # b1
            wspec((hidden, internal)),                   # W2
            wspec((1, internal)),                        # b2
            wspec((internal, nh_pad)),                   # W3 (lane-padded)
            wspec((1, nh_pad)),                          # b3 (lane-padded)
        ],
        out_specs=pl.BlockSpec((tm, nh_pad), lambda i: (i, 0)),
        compiler_params=pltpu.CompilerParams(
            dimension_semantics=("parallel",),
            vmem_limit_bytes=vmem_limit),
    )(x2, params["w1"], params["b1"], params["w2"], params["b2"],
      params["w3"], params["b3"])


def mlp_forward(x, params, *, out_dtype=jnp.float32, tile_m=None):
    """x: (..., dim); params from prepare_mlp_params.  Returns (..., num_heads)."""
    dim, hidden, internal, num_heads, nh_pad = params["dims"]
    lead = x.shape[:-1]
    x2 = x.reshape(-1, dim)
    if x2.dtype not in (jnp.dtype(jnp.float32), jnp.dtype(jnp.bfloat16)):
        x2 = x2.astype(jnp.float32)
    M = x2.shape[0]

    gen = _tpu_generation()
    tm = tile_m if tile_m is not None else _choose_tile_m(M, gen)
    tm = max(8, _round_up(min(tm, _round_up(M, 8)), 8))
    m_pad = _round_up(M, tm)
    if m_pad != M:
        x2 = jnp.pad(x2, ((0, m_pad - M), (0, 0)))

    # v7x has 64 MiB physical VMEM (keep <= ~48 MB); v5e/v6e can go higher.
    vmem_limit = (48 if gen >= 7 else 64) * 1024 * 1024

    try:
        out = _run_pallas(x2, params, tm, m_pad, out_dtype, vmem_limit,
                          single_buffer_weights=hasattr(pl, "Buffered"))
        out = jax.block_until_ready(out)
    except Exception:
        # Fallback: default double-buffered weight specs.
        out = _run_pallas(x2, params, tm, m_pad, out_dtype, vmem_limit,
                          single_buffer_weights=False)

    out = out[:M, :num_heads]
    return out.reshape(*lead, num_heads)


# --------------------------- pure-JAX f32 reference -------------------------- #

def reference_forward(x, w1, b1, w2, b2, w3, b3):
    h = _gelu_tanh(x @ w1.T + b1)          # Linear + GELU (Dropout(0) = id)
    h = _gelu_tanh(h @ w2.T + b2)          # Linear + GELU (Dropout(0) = id)
    return h @ w3.T + b3                   # Linear


# ----------------------------------- main ------------------------------------ #

if __name__ == "__main__":
    # Small but lane-dense shapes consistent with the module:
    #   dim=128, hidden_dim=256 -> internal_state_dim=128, num_heads=8
    # applied token-wise to x of shape (batch=2, seq=256, dim=128).
    B, N = 2, 256
    dim, hidden_dim, num_heads = 128, 256, 8
    internal = hidden_dim // 2

    key = jax.random.PRNGKey(0)
    kx, k1, k2, k3, kb1, kb2, kb3 = jax.random.split(key, 7)
    x = jax.random.normal(kx, (B, N, dim), dtype=jnp.float32)
    # PyTorch nn.Linear layout: (out_features, in_features), fan-in scaled.
    W1 = jax.random.normal(k1, (hidden_dim, dim), jnp.float32) / jnp.sqrt(dim)
    b1 = jax.random.normal(kb1, (hidden_dim,), jnp.float32) * 0.02
    W2 = jax.random.normal(k2, (internal, hidden_dim), jnp.float32) / jnp.sqrt(hidden_dim)
    b2 = jax.random.normal(kb2, (internal,), jnp.float32) * 0.02
    W3 = jax.random.normal(k3, (num_heads, internal), jnp.float32) / jnp.sqrt(internal)
    b3 = jax.random.normal(kb3, (num_heads,), jnp.float32) * 0.02

    # One-time weight prep (hoisted out of the forward path).
    params = prepare_mlp_params(W1, b1, W2, b2, W3, b3)

    out = mlp_forward(x, params)
    out = jax.block_until_ready(out)

    ref = reference_forward(x, W1, b1, W2, b2, W3, b3)
    ref = jax.block_until_ready(ref)

    assert out.shape == (B, N, num_heads), out.shape
    max_err = float(jnp.max(jnp.abs(out - ref)))
    # bf16 MXU operands + (on v6e/v7x) bf16 elementwise GELU vs f32 reference
    # -> loose tolerance; f32 accumulation keeps the error at the ~1e-2 level.
    assert jnp.allclose(out, ref, rtol=5e-2, atol=1e-1), max_err
    print("KERNEL_OK")
</pallas_src>

<mosaic_0001>
module attributes {stable_mosaic.version = 11 : i64} {
  func.func @_mlp_fused_kernel(%arg0: i32, %arg1: memref<512x128xf32, #tpu.memory_space<vmem>>, %arg2: memref<128x256xbf16, #tpu.memory_space<vmem>>, %arg3: memref<1x256xbf16, #tpu.memory_space<vmem>>, %arg4: memref<256x128xbf16, #tpu.memory_space<vmem>>, %arg5: memref<1x128xbf16, #tpu.memory_space<vmem>>, %arg6: memref<128x128xbf16, #tpu.memory_space<vmem>>, %arg7: memref<1x128xf32, #tpu.memory_space<vmem>>, %arg8: memref<512x128xf32, #tpu.memory_space<vmem>>) attributes {dimension_semantics = [#tpu.dimension_semantics<parallel>], iteration_bounds = array<i64: 1>, scalar_prefetch = 0 : i64, scratch_operands = 0 : i64, tpu.core_type = #tpu.core_type<tc>, window_params = [{transform_indices = @transform_0, window_bounds = array<i64: 512, 128>}, {pipeline_mode = #tpu.pipeline_mode<synchronous>, transform_indices = @transform_1, window_bounds = array<i64: 128, 256>}, {pipeline_mode = #tpu.pipeline_mode<synchronous>, transform_indices = @transform_2, window_bounds = array<i64: 1, 256>}, {pipeline_mode = #tpu.pipeline_mode<synchronous>, transform_indices = @transform_3, window_bounds = array<i64: 256, 128>}, {pipeline_mode = #tpu.pipeline_mode<synchronous>, transform_indices = @transform_4, window_bounds = array<i64: 1, 128>}, {pipeline_mode = #tpu.pipeline_mode<synchronous>, transform_indices = @transform_5, window_bounds = array<i64: 128, 128>}, {pipeline_mode = #tpu.pipeline_mode<synchronous>, transform_indices = @transform_6, window_bounds = array<i64: 1, 128>}, {transform_indices = @transform_7, window_bounds = array<i64: 512, 128>}]} {
    %c0 = arith.constant 0 : index
    %c0_0 = arith.constant 0 : index
    %0 = vector.load %arg1[%c0, %c0_0] : memref<512x128xf32, #tpu.memory_space<vmem>>, vector<512x128xf32>
    %1 = arith.truncf %0 : vector<512x128xf32> to vector<512x128xbf16>
    %c0_1 = arith.constant 0 : index
    %c0_2 = arith.constant 0 : index
    %2 = vector.load %arg2[%c0_1, %c0_2] : memref<128x256xbf16, #tpu.memory_space<vmem>>, vector<128x256xbf16>
    %cst = arith.constant dense<0.000000e+00> : vector<512x256xf32>
    %3 = tpu.matmul %1, %2, %cst {dimension_numbers = #tpu.dot_dimension_numbers<[1], [0], [0], [1], [0, 0, 1, 1], [], []>} : vector<512x128xbf16>, vector<128x256xbf16>, vector<512x256xf32> -> vector<512x256xf32>
    %4 = arith.truncf %3 : vector<512x256xf32> to vector<512x256xbf16>
    %c0_3 = arith.constant 0 : index
    %c0_4 = arith.constant 0 : index
    %5 = vector.load %arg3[%c0_3, %c0_4] : memref<1x256xbf16, #tpu.memory_space<vmem>>, vector<1x256xbf16>
    %6 = vector.broadcast %5 : vector<1x256xbf16> to vector<512x256xbf16>
    %7 = arith.addf %4, %6 : vector<512x256xbf16>
    %8 = arith.mulf %7, %7 : vector<512x256xbf16>
    %cst_5 = arith.constant 7.968750e-01 : bf16
    %9 = vector.broadcast %cst_5 : bf16 to vector<512x256xbf16>
    %10 = arith.mulf %9, %7 : vector<512x256xbf16>
    %cst_6 = arith.constant 4.467770e-02 : bf16
    %11 = vector.broadcast %cst_6 : bf16 to vector<512x256xbf16>
    %12 = arith.mulf %11, %8 : vector<512x256xbf16>
    %cst_7 = arith.constant 1.000000e+00 : bf16
    %13 = vector.broadcast %cst_7 : bf16 to vector<512x256xbf16>
    %14 = arith.addf %13, %12 : vector<512x256xbf16>
    %15 = arith.mulf %10, %14 : vector<512x256xbf16>
    %16 = math.tanh %15 : vector<512x256xbf16>
    %cst_8 = arith.constant 5.000000e-01 : bf16
    %17 = vector.broadcast %cst_8 : bf16 to vector<512x256xbf16>
    %18 = arith.mulf %17, %16 : vector<512x256xbf16>
    %cst_9 = arith.constant 5.000000e-01 : bf16
    %19 = vector.broadcast %cst_9 : bf16 to vector<512x256xbf16>
    %20 = arith.addf %19, %18 : vector<512x256xbf16>
    %21 = arith.mulf %7, %20 : vector<512x256xbf16>
    %c0_10 = arith.constant 0 : index
    %c0_11 = arith.constant 0 : index
    %22 = vector.load %arg4[%c0_10, %c0_11] : memref<256x128xbf16, #tpu.memory_space<vmem>>, vector<256x128xbf16>
    %cst_12 = arith.constant dense<0.000000e+00> : vector<512x128xf32>
    %23 = tpu.matmul %21, %22, %cst_12 {dimension_numbers = #tpu.dot_dimension_numbers<[1], [0], [0], [1], [0, 0, 1, 1], [], []>} : vector<512x256xbf16>, vector<256x128xbf16>, vector<512x128xf32> -> vector<512x128xf32>
    %24 = arith.truncf %23 : vector<512x128xf32> to vector<512x128xbf16>
    %c0_13 = arith.constant 0 : index
    %c0_14 = arith.constant 0 : index
    %25 = vector.load %arg5[%c0_13, %c0_14] : memref<1x128xbf16, #tpu.memory_space<vmem>>, vector<1x128xbf16>
    %26 = vector.broadcast %25 : vector<1x128xbf16> to vector<512x128xbf16>
    %27 = arith.addf %24, %26 : vector<512x128xbf16>
    %28 = arith.mulf %27, %27 : vector<512x128xbf16>
    %cst_15 = arith.constant 7.968750e-01 : bf16
    %29 = vector.broadcast %cst_15 : bf16 to vector<512x128xbf16>
    %30 = arith.mulf %29, %27 : vector<512x128xbf16>
    %cst_16 = arith.constant 4.467770e-02 : bf16
    %31 = vector.broadcast %cst_16 : bf16 to vector<512x128xbf16>
    %32 = arith.mulf %31, %28 : vector<512x128xbf16>
    %cst_17 = arith.constant 1.000000e+00 : bf16
    %33 = vector.broadcast %cst_17 : bf16 to vector<512x128xbf16>
    %34 = arith.addf %33, %32 : vector<512x128xbf16>
    %35 = arith.mulf %30, %34 : vector<512x128xbf16>
    %36 = math.tanh %35 : vector<512x128xbf16>
    %cst_18 = arith.constant 5.000000e-01 : bf16
    %37 = vector.broadcast %cst_18 : bf16 to vector<512x128xbf16>
    %38 = arith.mulf %37, %36 : vector<512x128xbf16>
    %cst_19 = arith.constant 5.000000e-01 : bf16
    %39 = vector.broadcast %cst_19 : bf16 to vector<512x128xbf16>
    %40 = arith.addf %39, %38 : vector<512x128xbf16>
    %41 = arith.mulf %27, %40 : vector<512x128xbf16>
    %c0_20 = arith.constant 0 : index
    %c0_21 = arith.constant 0 : index
    %42 = vector.load %arg6[%c0_20, %c0_21] : memref<128x128xbf16, #tpu.memory_space<vmem>>, vector<128x128xbf16>
    %cst_22 = arith.constant dense<0.000000e+00> : vector<512x128xf32>
    %43 = tpu.matmul %41, %42, %cst_22 {dimension_numbers = #tpu.dot_dimension_numbers<[1], [0], [0], [1], [0, 0, 1, 1], [], []>} : vector<512x128xbf16>, vector<128x128xbf16>, vector<512x128xf32> -> vector<512x128xf32>
    %c0_23 = arith.constant 0 : index
    %c0_24 = arith.constant 0 : index
    %44 = vector.load %arg7[%c0_23, %c0_24] : memref<1x128xf32, #tpu.memory_space<vmem>>, vector<1x128xf32>
    %45 = vector.broadcast %44 : vector<1x128xf32> to vector<512x128xf32>
    %46 = arith.addf %43, %45 : vector<512x128xf32>
    %c0_25 = arith.constant 0 : index
    %c0_26 = arith.constant 0 : index
    %47 = vector.load %arg8[%c0_25, %c0_26] : memref<512x128xf32, #tpu.memory_space<vmem>>, vector<512x128xf32>
    tpu.vector_store %arg8[%c0_25, %c0_26], %46 {strides = array<i32>} : memref<512x128xf32, #tpu.memory_space<vmem>>, vector<512x128xf32>,
    return
  }
  func.func @transform_0(%arg0: i32) -> (i32, i32) {
    %c0_i32 = arith.constant 0 : i32
    %c0_i32_0 = arith.constant 0 : i32
    return %arg0, %c0_i32 : i32, i32
  }
  func.func @transform_1(%arg0: i32) -> (i32, i32) {
    %c0_i32 = arith.constant 0 : i32
    %c0_i32_0 = arith.constant 0 : i32
    %c0_i32_1 = arith.constant 0 : i32
    return %c0_i32, %c0_i32_0 : i32, i32
  }
  func.func @transform_2(%arg0: i32) -> (i32, i32) {
    %c0_i32 = arith.constant 0 : i32
    %c0_i32_0 = arith.constant 0 : i32
    %c0_i32_1 = arith.constant 0 : i32
    return %c0_i32, %c0_i32_0 : i32, i32
  }
  func.func @transform_3(%arg0: i32) -> (i32, i32) {
    %c0_i32 = arith.constant 0 : i32
    %c0_i32_0 = arith.constant 0 : i32
    %c0_i32_1 = arith.constant 0 : i32
    return %c0_i32, %c0_i32_0 : i32, i32
  }
  func.func @transform_4(%arg0: i32) -> (i32, i32) {
    %c0_i32 = arith.constant 0 : i32
    %c0_i32_0 = arith.constant 0 : i32
    %c0_i32_1 = arith.constant 0 : i32
    return %c0_i32, %c0_i32_0 : i32, i32
  }
  func.func @transform_5(%arg0: i32) -> (i32, i32) {
    %c0_i32 = arith.constant 0 : i32
    %c0_i32_0 = arith.constant 0 : i32
    %c0_i32_1 = arith.constant 0 : i32
    return %c0_i32, %c0_i32_0 : i32, i32
  }
  func.func @transform_6(%arg0: i32) -> (i32, i32) {
    %c0_i32 = arith.constant 0 : i32
    %c0_i32_0 = arith.constant 0 : i32
    %c0_i32_1 = arith.constant 0 : i32
    return %c0_i32, %c0_i32_0 : i32, i32
  }
  func.func @transform_7(%arg0: i32) -> (i32, i32) {
    %c0_i32 = arith.constant 0 : i32
    %c0_i32_0 = arith.constant 0 : i32
    return %arg0, %c0_i32 : i32, i32
  }
}

module attributes {stable_mosaic.version = 11 : i64} {
  func.func @_mlp_fused_kernel(%arg0: i32, %arg1: memref<512x128xf32, #tpu.memory_space<vmem>>, %arg2: memref<128x256xbf16, #tpu.memory_space<vmem>>, %arg3: memref<1x256xbf16, #tpu.memory_space<vmem>>, %arg4: memref<256x128xbf16, #tpu.memory_space<vmem>>, %arg5: memref<1x128xbf16, #tpu.memory_space<vmem>>, %arg6: memref<128x128xbf16, #tpu.memory_space<vmem>>, %arg7: memref<1x128xf32, #tpu.memory_space<vmem>>, %arg8: memref<512x128xf32, #tpu.memory_space<vmem>>) attributes {dimension_semantics = [#tpu.dimension_semantics<parallel>], iteration_bounds = array<i64: 1>, scalar_prefetch = 0 : i64, scratch_operands = 0 : i64, tpu.core_type = #tpu.core_type<tc>, window_params = [{transform_indices = @transform_0, window_bounds = array<i64: 512, 128>}, {pipeline_mode = #tpu.pipeline_mode<synchronous>, transform_indices = @transform_1, window_bounds = array<i64: 128, 256>}, {pipeline_mode = #tpu.pipeline_mode<synchronous>, transform_indices = @transform_2, window_bounds = array<i64: 1, 256>}, {pipeline_mode = #tpu.pipeline_mode<synchronous>, transform_indices = @transform_3, window_bounds = array<i64: 256, 128>}, {pipeline_mode = #tpu.pipeline_mode<synchronous>, transform_indices = @transform_4, window_bounds = array<i64: 1, 128>}, {pipeline_mode = #tpu.pipeline_mode<synchronous>, transform_indices = @transform_5, window_bounds = array<i64: 128, 128>}, {pipeline_mode = #tpu.pipeline_mode<synchronous>, transform_indices = @transform_6, window_bounds = array<i64: 1, 128>}, {transform_indices = @transform_7, window_bounds = array<i64: 512, 128>}]} {
    %c0 = arith.constant 0 : index
    %c0_0 = arith.constant 0 : index
    %0 = vector.load %arg1[%c0, %c0_0] : memref<512x128xf32, #tpu.memory_space<vmem>>, vector<512x128xf32>
    %1 = arith.truncf %0 : vector<512x128xf32> to vector<512x128xbf16>
    %c0_1 = arith.constant 0 : index
    %c0_2 = arith.constant 0 : index
    %2 = vector.load %arg2[%c0_1, %c0_2] : memref<128x256xbf16, #tpu.memory_space<vmem>>, vector<128x256xbf16>
    %cst = arith.constant dense<0.000000e+00> : vector<512x256xf32>
    %3 = tpu.matmul %1, %2, %cst {dimension_numbers = #tpu.dot_dimension_numbers<[1], [0], [0], [1], [0, 0, 1, 1], [], []>} : vector<512x128xbf16>, vector<128x256xbf16>, vector<512x256xf32> -> vector<512x256xf32>
    %4 = arith.truncf %3 : vector<512x256xf32> to vector<512x256xbf16>
    %c0_3 = arith.constant 0 : index
    %c0_4 = arith.constant 0 : index
    %5 = vector.load %arg3[%c0_3, %c0_4] : memref<1x256xbf16, #tpu.memory_space<vmem>>, vector<1x256xbf16>
    %6 = vector.broadcast %5 : vector<1x256xbf16> to vector<512x256xbf16>
    %7 = arith.addf %4, %6 : vector<512x256xbf16>
    %8 = arith.mulf %7, %7 : vector<512x256xbf16>
    %cst_5 = arith.constant 7.968750e-01 : bf16
    %9 = vector.broadcast %cst_5 : bf16 to vector<512x256xbf16>
    %10 = arith.mulf %9, %7 : vector<512x256xbf16>
    %cst_6 = arith.constant 4.467770e-02 : bf16
    %11 = vector.broadcast %cst_6 : bf16 to vector<512x256xbf16>
    %12 = arith.mulf %11, %8 : vector<512x256xbf16>
    %cst_7 = arith.constant 1.000000e+00 : bf16
    %13 = vector.broadcast %cst_7 : bf16 to vector<512x256xbf16>
    %14 = arith.addf %13, %12 : vector<512x256xbf16>
    %15 = arith.mulf %10, %14 : vector<512x256xbf16>
    %16 = math.tanh %15 : vector<512x256xbf16>
    %cst_8 = arith.constant 5.000000e-01 : bf16
    %17 = vector.broadcast %cst_8 : bf16 to vector<512x256xbf16>
    %18 = arith.mulf %17, %16 : vector<512x256xbf16>
    %cst_9 = arith.constant 5.000000e-01 : bf16
    %19 = vector.broadcast %cst_9 : bf16 to vector<512x256xbf16>
    %20 = arith.addf %19, %18 : vector<512x256xbf16>
    %21 = arith.mulf %7, %20 : vector<512x256xbf16>
    %c0_10 = arith.constant 0 : index
    %c0_11 = arith.constant 0 : index
    %22 = vector.load %arg4[%c0_10, %c0_11] : memref<256x128xbf16, #tpu.memory_space<vmem>>, vector<256x128xbf16>
    %cst_12 = arith.constant dense<0.000000e+00> : vector<512x128xf32>
    %23 = tpu.matmul %21, %22, %cst_12 {dimension_numbers = #tpu.dot_dimension_numbers<[1], [0], [0], [1], [0, 0, 1, 1], [], []>} : vector<512x256xbf16>, vector<256x128xbf16>, vector<512x128xf32> -> vector<512x128xf32>
    %24 = arith.truncf %23 : vector<512x128xf32> to vector<512x128xbf16>
    %c0_13 = arith.constant 0 : index
    %c0_14 = arith.constant 0 : index
    %25 = vector.load %arg5[%c0_13, %c0_14] : memref<1x128xbf16, #tpu.memory_space<vmem>>, vector<1x128xbf16>
    %26 = vector.broadcast %25 : vector<1x128xbf16> to vector<512x128xbf16>
    %27 = arith.addf %24, %26 : vector<512x128xbf16>
    %28 = arith.mulf %27, %27 : vector<512x128xbf16>
    %cst_15 = arith.constant 7.968750e-01 : bf16
    %29 = vector.broadcast %cst_15 : bf16 to vector<512x128xbf16>
    %30 = arith.mulf %29, %27 : vector<512x128xbf16>
    %cst_16 = arith.constant 4.467770e-02 : bf16
    %31 = vector.broadcast %cst_16 : bf16 to vector<512x128xbf16>
    %32 = arith.mulf %31, %28 : vector<512x128xbf16>
    %cst_17 = arith.constant 1.000000e+00 : bf16
    %33 = vector.broadcast %cst_17 : bf16 to vector<512x128xbf16>
    %34 = arith.addf %33, %32 : vector<512x128xbf16>
    %35 = arith.mulf %30, %34 : vector<512x128xbf16>
    %36 = math.tanh %35 : vector<512x128xbf16>
    %cst_18 = arith.constant 5.000000e-01 : bf16
    %37 = vector.broadcast %cst_18 : bf16 to vector<512x128xbf16>
    %38 = arith.mulf %37, %36 : vector<512x128xbf16>
    %cst_19 = arith.constant 5.000000e-01 : bf16
    %39 = vector.broadcast %cst_19 : bf16 to vector<512x128xbf16>
    %40 = arith.addf %39, %38 : vector<512x128xbf16>
    %41 = arith.mulf %27, %40 : vector<512x128xbf16>
    %c0_20 = arith.constant 0 : index
    %c0_21 = arith.constant 0 : index
    %42 = vector.load %arg6[%c0_20, %c0_21] : memref<128x128xbf16, #tpu.memory_space<vmem>>, vector<128x128xbf16>
    %cst_22 = arith.constant dense<0.000000e+00> : vector<512x128xf32>
    %43 = tpu.matmul %41, %42, %cst_22 {dimension_numbers = #tpu.dot_dimension_numbers<[1], [0], [0], [1], [0, 0, 1, 1], [], []>} : vector<512x128xbf16>, vector<128x128xbf16>, vector<512x128xf32> -> vector<512x128xf32>
    %c0_23 = arith.constant 0 : index
    %c0_24 = arith.constant 0 : index
    %44 = vector.load %arg7[%c0_23, %c0_24] : memref<1x128xf32, #tpu.memory_space<vmem>>, vector<1x128xf32>
    %45 = vector.broadcast %44 : vector<1x128xf32> to vector<512x128xf32>
    %46 = arith.addf %43, %45 : vector<512x128xf32>
    %c0_25 = arith.constant 0 : index
    %c0_26 = arith.constant 0 : index
    %47 = vector.load %arg8[%c0_25, %c0_26] : memref<512x128xf32, #tpu.memory_space<vmem>>, vector<512x128xf32>
    tpu.vector_store %arg8[%c0_25, %c0_26], %46 {strides = array<i32>} : memref<512x128xf32, #tpu.memory_space<vmem>>, vector<512x128xf32>,
    return
  }
  func.func @transform_0(%arg0: i32) -> (i32, i32) {
    %c0_i32 = arith.constant 0 : i32
    %c0_i32_0 = arith.constant 0 : i32
    return %arg0, %c0_i32 : i32, i32
  }
  func.func @transform_1(%arg0: i32) -> (i32, i32) {
    %c0_i32 = arith.constant 0 : i32
    %c0_i32_0 = arith.constant 0 : i32
    %c0_i32_1 = arith.constant 0 : i32
    return %c0_i32, %c0_i32_0 : i32, i32
  }
  func.func @transform_2(%arg0: i32) -> (i32, i32) {
    %c0_i32 = arith.constant 0 : i32
    %c0_i32_0 = arith.constant 0 : i32
    %c0_i32_1 = arith.constant 0 : i32
    return %c0_i32, %c0_i32_0 : i32, i32
  }
  func.func @transform_3(%arg0: i32) -> (i32, i32) {
    %c0_i32 = arith.constant 0 : i32
    %c0_i32_0 = arith.constant 0 : i32
    %c0_i32_1 = arith.constant 0 : i32
    return %c0_i32, %c0_i32_0 : i32, i32
  }
  func.func @transform_4(%arg0: i32) -> (i32, i32) {
    %c0_i32 = arith.constant 0 : i32
    %c0_i32_0 = arith.constant 0 : i32
    %c0_i32_1 = arith.constant 0 : i32
    return %c0_i32, %c0_i32_0 : i32, i32
  }
  func.func @transform_5(%arg0: i32) -> (i32, i32) {
    %c0_i32 = arith.constant 0 : i32
    %c0_i32_0 = arith.constant 0 : i32
    %c0_i32_1 = arith.constant 0 : i32
    return %c0_i32, %c0_i32_0 : i32, i32
  }
  func.func @transform_6(%arg0: i32) -> (i32, i32) {
    %c0_i32 = arith.constant 0 : i32
    %c0_i32_0 = arith.constant 0 : i32
    %c0_i32_1 = arith.constant 0 : i32
    return %c0_i32, %c0_i32_0 : i32, i32
  }
  func.func @transform_7(%arg0: i32) -> (i32, i32) {
    %c0_i32 = arith.constant 0 : i32
    %c0_i32_0 = arith.constant 0 : i32
    return %arg0, %c0_i32 : i32, i32
  }
}

</mosaic_0001>

<bundles_post_ra>
// kernel: tpu_custom_call.1
= control target key start
LH: loop header
LB: loop body
LE: loop exit
PB: predicated region body
PF: predicated region fallthrough
CT: control target
= control target key end

     0   :  { %12 = vsyncpa [#allocation3], 0  ;;  %s4208_s0 = inlined_call_operand.hbm [shape: f32[512,128], index: 0, kind: input, shape index: {}]   ;;  %s4209_s1 = inlined_call_operand.hbm [shape: bf16[128,256], index: 1, kind: input, shape index: {}]   ;;  %s4210_s2 = inlined_call_operand.hbm [shape: bf16[1,256], index: 2, kind: input, shape index: {}]   ;;  %s4211_s3 = inlined_call_operand.hbm [shape: bf16[256,128], index: 3, kind: input, shape index: {}]   ;;  %s4212_s4 = inlined_call_operand.hbm [shape: bf16[1,128], index: 4, kind: input, shape index: {}]   ;;  %s4213_s5 = inlined_call_operand.hbm [shape: bf16[128,128], index: 5, kind: input, shape index: {}]   ;;  %s4214_s6 = inlined_call_operand.hbm [shape: f32[1,128], index: 6, kind: input, shape index: {}]   ;;  %s4215_s7 = inlined_call_operand.hbm [shape: f32[512,128], index: 7, kind: output, shape index: {}]  }
   0x1   :  { %13 = vsyncpa [#allocation6], 0 }
   0x2   :  { %14 = vsyncpa [#allocation9], 0 }
   0x3   :  { %15 = vsyncpa [#allocation12], 0 }
   0x4   :  { %16 = vsyncpa [#allocation4], 0  ;;  %s3247_s24 = smov [#allocation5]   ;;  %s3248_s26 = smov [#allocation8]  }
   0x5   :  { %s34_s25 = sshll.u32 %s3247_s24, 4  ;;  %s56_s27 = sshll.u32 %s3248_s26, 4  ;;  %s35_s25 = int_to_ptr.vmem [resolvable:$true] %s34_s25  ;;  %s3301_s27 = int_to_ptr.vmem [resolvable:$true] %s56_s27 }
   0x6   :  { %s3061_s30 = scalar_lea.hbm %s4209_s1, 2048 }
   0x7   :  { %p3062_p0 = scmp.ne.s32.totalorder %s4209_s1, %s3061_s30  ;;  %p3065_p1 = scmp.lt.u32.totalorder %s3061_s30, %s4209_s1 }
   0x9   :  { %p3067_p2 = pnand %p3065_p1, %p3062_p0 }
   0xb   :  { %3070 = shalt.err (!%p3067_p2)
}
   0xc   :  { %s3071_s12 = scalar_lea.vmem %s35_s25, 2048  ;;  %p3076_p4 = scmp.lt.s32.totalorder %s35_s25, %s35_s25 }
   0xd   :  { %p3072_p3 = scmp.ne.s32.totalorder %s35_s25, %s3071_s12  ;;  %p3077_p5 = scmp.lt.s32.totalorder %s3071_s12, %s3071_s12 }
   0xf   :  { %p3078_p6 = por %p3077_p5, %p3076_p4 }
  0x11   :  { %p3079_p7 = pnand %p3078_p6, %p3072_p3 }
  0x13   :  { %3082 = shalt.err (!%p3079_p7)
}
  0x14   :  { %s3249_s13 = smov 128   ;;  %s3250_s14 = smov 8  }
  0x15   :  { %40 = dma.hbm_to_vmem [thread:$0]  %s4209_s1, 2048, %s35_s25, [#allocation6], %s3249_s13, %s3249_s13, %s3250_s14  }
  0x16   :  { %s3083_s19 = scalar_lea.hbm %s4211_s3, 2048 }
  0x17   :  { %p3084_p8 = scmp.ne.s32.totalorder %s4211_s3, %s3083_s19  ;;  %p3087_p9 = scmp.lt.u32.totalorder %s3083_s19, %s4211_s3 }
  0x19   :  { %p3089_p10 = pnand %p3087_p9, %p3084_p8 }
  0x1b   :  { %3092 = shalt.err (!%p3089_p10)
}
  0x1c   :  { %s3093_s24 = scalar_lea.vmem %s3301_s27, 2048  ;;  %p3098_p12 = scmp.lt.s32.totalorder %s3301_s27, %s3301_s27 }
  0x1d   :  { %p3094_p11 = scmp.ne.s32.totalorder %s3301_s27, %s3093_s24  ;;  %p3099_p13 = scmp.lt.s32.totalorder %s3093_s24, %s3093_s24 }
  0x1f   :  { %p3100_p0 = por %p3099_p13, %p3098_p12 }
  0x21   :  { %p3101_p1 = pnand %p3100_p0, %p3094_p11 }
  0x23   :  { %3104 = shalt.err (!%p3101_p1)
}
  0x24   :  { %s3251_s1 = smov 64   ;;  %s3252_s25 = smov 4  }
  0x25   :  { %62 = dma.hbm_to_vmem [thread:$0]  %s4211_s3, 2048, %s3301_s27, [#allocation9], %s3251_s1, %s3251_s1, %s3252_s25  }
  0x26   :  { %s3253_s29 = smov [#allocation11]   ;;  %s3254_s8 = smov [#allocation2]  }
  0x27   :  { %s78_s30 = sshll.u32 %s3253_s29, 4  ;;  %s22_s9 = sshll.u32 %s3254_s8, 4  ;;  %s79_s30 = int_to_ptr.vmem [resolvable:$true] %s78_s30  ;;  %s3335_s9 = int_to_ptr.vmem [resolvable:$true] %s22_s9 }
  0x28   :  { %s3105_s12 = scalar_lea.hbm %s4213_s5, 1024 }
  0x29   :  { %p3106_p2 = scmp.ne.s32.totalorder %s4213_s5, %s3105_s12  ;;  %p3109_p3 = scmp.lt.u32.totalorder %s3105_s12, %s4213_s5 }
  0x2b   :  { %p3111_p4 = pnand %p3109_p3, %p3106_p2 }
  0x2d   :  { %3114 = shalt.err (!%p3111_p4)
}
  0x2e   :  { %s3115_s3 = scalar_lea.vmem %s79_s30, 1024  ;;  %p3120_p6 = scmp.lt.s32.totalorder %s79_s30, %s79_s30 }
  0x2f   :  { %p3116_p5 = scmp.ne.s32.totalorder %s79_s30, %s3115_s3  ;;  %p3121_p7 = scmp.lt.s32.totalorder %s3115_s3, %s3115_s3 }
  0x31   :  { %p3122_p8 = por %p3121_p7, %p3120_p6 }
  0x33   :  { %p3123_p9 = pnand %p3122_p8, %p3116_p5 }
  0x35   :  { %3126 = shalt.err (!%p3123_p9)
}
  0x36   :  { %84 = dma.hbm_to_vmem [thread:$0]  %s4213_s5, 1024, %s79_s30, [#allocation12], %s3251_s1, %s3251_s1, %s3252_s25  }
  0x37   :  { %s3127_s22 = scalar_lea.hbm %s4208_s0, 8192 }
  0x38   :  { %p3128_p10 = scmp.ne.s32.totalorder %s4208_s0, %s3127_s22  ;;  %p3131_p11 = scmp.lt.u32.totalorder %s3127_s22, %s4208_s0 }
  0x3a   :  { %p3133_p12 = pnand %p3131_p11, %p3128_p10 }
  0x3c   :  { %3136 = shalt.err (!%p3133_p12)
}
  0x3d   :  { %s3137_s29 = scalar_lea.vmem %s3335_s9, 8192  ;;  %p3142_p0 = scmp.lt.s32.totalorder %s3335_s9, %s3335_s9 }
  0x3e   :  { %p3138_p13 = scmp.ne.s32.totalorder %s3335_s9, %s3137_s29  ;;  %p3143_p1 = scmp.lt.s32.totalorder %s3137_s29, %s3137_s29 }
  0x40   :  { %p3144_p2 = por %p3143_p1, %p3142_p0 }
  0x42   :  { %p3145_p3 = pnand %p3144_p2, %p3138_p13 }
  0x44   :  { %3148 = shalt.err (!%p3145_p3)
}
  0x45   :  { %28 = dma.hbm_to_vmem [thread:$0]  %s4208_s0, 8192, %s3335_s9, [#allocation3], %s3249_s13, %s3249_s13, %s3250_s14  }
  0x46   :  { %s3255_s25 = smov [#allocation7]   ;;  %s3256_s8 = smov [#allocation10]  }
  0x47   :  { %s47_s30 = sshll.u32 %s3255_s25, 4  ;;  %s69_s10 = sshll.u32 %s3256_s8, 4  ;;  %s48_s30 = int_to_ptr.vmem [resolvable:$true] %s47_s30  ;;  %s70_s10 = int_to_ptr.vmem [resolvable:$true] %s69_s10 }
  0x48   :  { %s3149_s15 = scalar_lea.hbm %s4210_s2, 32 }
  0x49   :  { %p3150_p4 = scmp.ne.s32.totalorder %s4210_s2, %s3149_s15  ;;  %p3153_p5 = scmp.lt.u32.totalorder %s3149_s15, %s4210_s2 }
  0x4b   :  { %p3155_p6 = pnand %p3153_p5, %p3150_p4 }
  0x4d   :  { %3158 = shalt.err (!%p3155_p6)
}
  0x4e   :  { %s3159_s0 = scalar_lea.vmem %s48_s30, 32  ;;  %p3164_p8 = scmp.lt.s32.totalorder %s48_s30, %s48_s30 }
  0x4f   :  { %p3160_p7 = scmp.ne.s32.totalorder %s48_s30, %s3159_s0  ;;  %p3165_p9 = scmp.lt.s32.totalorder %s3159_s0, %s3159_s0 }
  0x51   :  { %p3166_p10 = por %p3165_p9, %p3164_p8 }
  0x53   :  { %p3167_p11 = pnand %p3166_p10, %p3160_p7 }
  0x55   :  { %3170 = shalt.err (!%p3167_p11)
}
  0x56   :  { %50 = dma.hbm_to_vmem [thread:$0]  %s4210_s2, 32, %s48_s30, [#allocation6]  }
  0x57   :  { %s3171_s21 = scalar_lea.hbm %s4212_s4, 16 }
  0x58   :  { %p3172_p12 = scmp.ne.s32.totalorder %s4212_s4, %s3171_s21  ;;  %p3175_p13 = scmp.lt.u32.totalorder %s3171_s21, %s4212_s4 }
  0x5a   :  { %p3177_p0 = pnand %p3175_p13, %p3172_p12 }
  0x5c   :  { %3180 = shalt.err (!%p3177_p0)
}
  0x5d   :  { %s3181_s28 = scalar_lea.vmem %s70_s10, 16  ;;  %s3185_s29 = scalar_lea.vmem %s70_s10, 32 }
  0x5e   :  { %p3182_p1 = scmp.ne.s32.totalorder %s70_s10, %s3181_s28  ;;  %p3186_p2 = scmp.lt.s32.totalorder %s70_s10, %s70_s10 }
  0x5f   :  { %p3187_p3 = scmp.lt.s32.totalorder %s3185_s29, %s3181_s28 }
  0x61   :  { %p3188_p4 = por %p3187_p3, %p3186_p2 }
  0x63   :  { %p3189_p5 = pnand %p3188_p4, %p3182_p1 }
  0x65   :  { %3192 = shalt.err (!%p3189_p5)
}
  0x66   :  { %72 = dma.hbm_to_vmem [thread:$0]  %s4212_s4, 16, %s70_s10, [#allocation9]  }
  0x67   :  { %s3257_s1 = smov [#allocation13]   ;;  %s3193_s11 = scalar_lea.hbm %s4214_s6, 16 }
  0x68   :  { %s91_s25 = sshll.u32 %s3257_s1, 4  ;;  %p3194_p6 = scmp.ne.s32.totalorder %s4214_s6, %s3193_s11  ;;  %s92_s25 = int_to_ptr.vmem [resolvable:$true] %s91_s25 }
  0x69   :  { %p3197_p7 = scmp.lt.u32.totalorder %s3193_s11, %s4214_s6 }
  0x6b   :  { %p3199_p8 = pnand %p3197_p7, %p3194_p6 }
  0x6d   :  { %3202 = shalt.err (!%p3199_p8)
}
  0x6e   :  { %s3203_s18 = scalar_lea.vmem %s92_s25, 16  ;;  %s3207_s4 = scalar_lea.vmem %s92_s25, 32 }
  0x6f   :  { %p3204_p9 = scmp.ne.s32.totalorder %s92_s25, %s3203_s18  ;;  %p3208_p10 = scmp.lt.s32.totalorder %s92_s25, %s92_s25 }
  0x70   :  { %p3209_p11 = scmp.lt.s32.totalorder %s3207_s4, %s3203_s18 }
  0x72   :  { %p3210_p12 = por %p3209_p11, %p3208_p10 }
  0x74   :  { %p3211_p13 = pnand %p3210_p12, %p3204_p9 }
  0x76   :  { %3214 = shalt.err (!%p3211_p13)
}
  0x77   :  { %94 = dma.hbm_to_vmem [thread:$0]  %s4214_s6, 16, %s92_s25, [#allocation12]  }
  0x78   :  { %3237 = dma.done.wait [#allocation3], 8192  }
  0x79   :  { %3238 = vsyncadd [#allocation3], 4294959104 }
  0x7a   :  { %3239 = dma.done.wait [#allocation6], 2080  }
  0x7b   :  { %3240 = vsyncadd [#allocation6], 4294965216 }
  0x7c   :  { %3241 = dma.done.wait [#allocation9], 2064  }
  0x7d   :  { %3242 = vsyncadd [#allocation9], 4294965232 }
  0x7e   :  { %3243 = dma.done.wait [#allocation12], 1040  }
  0x7f   :  { %3244 = vsyncadd [#allocation12], 4294966256  ;;  %v3258_v0 = vmov 0   ;;  %v2821_v1 = vld [vmem:[#allocation5 + $0x4] ss:$8 sps:$4 sm:$0xff]   ;;  %v123_v20 = vld [vmem:[#allocation2 + $0x10] sm:$0xff] }
  0x80   :  { %345 = vmatprep.mubr.bf16.mxu0 %v3258_v0  ;;  %585 = vmatprep.mubr.bf16.mxu1 %v3258_v0  ;;  %v2823_v2 = vld [vmem:[#allocation5] ss:$8 sps:$4 sm:$0xff]   ;;  %v2824_v3 = vld [vmem:[#allocation5 + $0x14] ss:$8 sps:$4 sm:$0xff]   ;;  %v2826_v4 = vld [vmem:[#allocation5 + $0x10] ss:$8 sps:$4 sm:$0xff]  }
  0x81   :  { %313 = vmatprep.subr.bf16.mxu0 %v2821_v1  ;;  %2791 = vmatprep.subr.bf16.mxu1 %v2821_v1  ;;  %v2827_v5 = vld [vmem:[#allocation5 + $0x24] ss:$8 sps:$4 sm:$0xff]   ;;  %v2829_v6 = vld [vmem:[#allocation5 + $0x20] ss:$8 sps:$4 sm:$0xff]   ;;  %v2830_v7 = vld [vmem:[#allocation5 + $0x34] ss:$8 sps:$4 sm:$0xff]  }
  0x82   :  { %314 = vmatpush1.bf16.msra.mxu0 %v2823_v2  ;;  %2799 = vmatpush1.bf16.msra.mxu1 %v2823_v2  ;;  %v2832_v8 = vld [vmem:[#allocation5 + $0x30] ss:$8 sps:$4 sm:$0xff]   ;;  %v2833_v9 = vld [vmem:[#allocation5 + $0x44] ss:$8 sps:$4 sm:$0xff]   ;;  %v2835_v10 = vld [vmem:[#allocation5 + $0x40] ss:$8 sps:$4 sm:$0xff]  }
  0x83   :  { %315 = vmatprep.subr.bf16.mxu0 %v2824_v3  ;;  %2792 = vmatprep.subr.bf16.mxu1 %v2824_v3  ;;  %v2836_v11 = vld [vmem:[#allocation5 + $0x54] ss:$8 sps:$4 sm:$0xff]   ;;  %v2838_v12 = vld [vmem:[#allocation5 + $0x50] ss:$8 sps:$4 sm:$0xff]   ;;  %v2839_v13 = vld [vmem:[#allocation5 + $0x64] ss:$8 sps:$4 sm:$0xff]  }
  0x84   :  { %v2841_v14 = vld [vmem:[#allocation5 + $0x60] ss:$8 sps:$4 sm:$0xff]   ;;  %v2842_v15 = vld [vmem:[#allocation5 + $0x74] ss:$8 sps:$4 sm:$0xff]   ;;  %v2844_v16 = vld [vmem:[#allocation5 + $0x70] ss:$8 sps:$4 sm:$0xff]  }
  0x85   :  { %v121_v17 = vld [vmem:[#allocation2] sm:$0xff]  ;;  %v122_v18 = vld [vmem:[#allocation2 + $0x8] sm:$0xff]  ;;  %v124_v21 = vld [vmem:[#allocation2 + $0x18] sm:$0xff]  ;;  %s3260_s6 = smov [#allocation14]  }
  0x86   :  { %316 = vmatpush1.bf16.msra.mxu0 %v2826_v4  ;;  %2800 = vmatpush1.bf16.msra.mxu1 %v2826_v4  ;;  %v185_v19 = vpack.c.bf16 %v122_v18, %v121_v17  ;;  %v186_v22 = vpack.c.bf16 %v124_v21, %v123_v20  ;;  %v125_v23 = vld [vmem:[#allocation2 + $0x20] sm:$0xff]  ;;  %v126_v24 = vld [vmem:[#allocation2 + $0x28] sm:$0xff]  ;;  %v127_v26 = vld [vmem:[#allocation2 + $0x30] sm:$0xff]  ;;  %s2614_s0 = sshll.u32 %s3260_s6, 4  ;;  %s2615_s0 = int_to_ptr.vmem [resolvable:$true] %s2614_s0 }
  0x87   :  { %317 = vmatprep.subr.bf16.mxu0 %v2827_v5  ;;  %2793 = vmatprep.subr.bf16.mxu1 %v2827_v5  ;;  %v187_v25 = vpack.c.bf16 %v126_v24, %v125_v23  ;;  %v128_v27 = vld [vmem:[#allocation2 + $0x38] sm:$0xff]  ;;  %v169_v29 = vld [vmem:[#allocation2 + $0x180] sm:$0xff]  ;;  %v170_v30 = vld [vmem:[#allocation2 + $0x188] sm:$0xff]  ;;  %s3215_s9 = scalar_lea.vmem %s2615_s0, 8192  ;;  %p3220_p1 = scmp.lt.s32.totalorder %s2615_s0, %s2615_s0 }
  0x88   :  { %v188_v28 = vpack.c.bf16 %v128_v27, %v127_v26  ;;  %v129_v31 = vld [vmem:[#allocation2 + $0x40] sm:$0xff]  ;;  %v130_v32 = vld [vmem:[#allocation2 + $0x48] sm:$0xff]  ;;  %v209_v33 = vpack.c.bf16 %v170_v30, %v169_v29  ;;  %v171_v35 = vld [vmem:[#allocation2 + $0x190] sm:$0xff]  ;;  %p3216_p0 = scmp.ne.s32.totalorder %s2615_s0, %s3215_s9  ;;  %p3221_p2 = scmp.lt.s32.totalorder %s3215_s9, %s3215_s9 }
  0x89   :  { %v189_v34 = vpack.c.bf16 %v130_v32, %v129_v31  ;;  %v172_v36 = vld [vmem:[#allocation2 + $0x198] sm:$0xff]  ;;  %v131_v37 = vld [vmem:[#allocation2 + $0x50] sm:$0xff]  ;;  %v173_v41 = vld [vmem:[#allocation2 + $0x1a0] sm:$0xff] }
  0x8a   :  { %318 = vmatpush1.bf16.msra.mxu0 %v2829_v6  ;;  %2801 = vmatpush1.bf16.msra.mxu1 %v2829_v6  ;;  %v132_v38 = vld [vmem:[#allocation2 + $0x58] sm:$0xff]  ;;  %v210_v39 = vpack.c.bf16 %v172_v36, %v171_v35  ;;  %v174_v42 = vld [vmem:[#allocation2 + $0x1a8] sm:$0xff]  ;;  %v133_v43 = vld [vmem:[#allocation2 + $0x60] sm:$0xff]  ;;  %p3222_p3 = por %p3221_p2, %p3220_p1 }
  0x8b   :  { %319 = vmatprep.subr.bf16.mxu0 %v2830_v7  ;;  %2794 = vmatprep.subr.bf16.mxu1 %v2830_v7  ;;  %v190_v40 = vpack.c.bf16 %v132_v38, %v131_v37  ;;  %v134_v44 = vld [vmem:[#allocation2 + $0x68] sm:$0xff]  ;;  %v211_v45 = vpack.c.bf16 %v174_v42, %v173_v41  ;;  %v175_v47 = vld [vmem:[#allocation2 + $0x1b0] sm:$0xff]  ;;  %v176_v48 = vld [vmem:[#allocation2 + $0x1b8] sm:$0xff] }
  0x8c   :  { %v191_v46 = vpack.c.bf16 %v134_v44, %v133_v43  ;;  %v2845_v49 = vld [vmem:[#allocation8] sm:$0xff]   ;;  %v135_v50 = vld [vmem:[#allocation2 + $0x70] sm:$0xff]  ;;  %v136_v51 = vld [vmem:[#allocation2 + $0x78] sm:$0xff]  ;;  %v212_v52 = vpack.c.bf16 %v176_v48, %v175_v47  ;;  %p3223_p4 = pnand %p3222_p3, %p3216_p0 }
  0x8d   :  { %v192_v53 = vpack.c.bf16 %v136_v51, %v135_v50  ;;  %v2846_v54 = vld [vmem:[#allocation8 + $0x8] sm:$0xff]   ;;  %v177_v55 = vld [vmem:[#allocation2 + $0x1c0] sm:$0xff]  ;;  %v2847_v60 = vld [vmem:[#allocation8 + $0x10] sm:$0xff]  }
  0x8e   :  { %320 = vmatpush1.bf16.msra.mxu0 %v2832_v8  ;;  %2802 = vmatpush1.bf16.msra.mxu1 %v2832_v8  ;;  %v178_v56 = vld [vmem:[#allocation2 + $0x1c8] sm:$0xff]  ;;  %v137_v57 = vld [vmem:[#allocation2 + $0x80] sm:$0xff]  ;;  %v179_v62 = vld [vmem:[#allocation2 + $0x1d0] sm:$0xff] }
  0x8f   :  { %321 = vmatprep.subr.bf16.mxu0 %v2833_v9  ;;  %2795 = vmatprep.subr.bf16.mxu1 %v2833_v9  ;;  %v138_v58 = vld [vmem:[#allocation2 + $0x88] sm:$0xff]  ;;  %v213_v59 = vpack.c.bf16 %v178_v56, %v177_v55  ;;  %v180_v63 = vld [vmem:[#allocation2 + $0x1d8] sm:$0xff]  ;;  %v139_v3 = vld [vmem:[#allocation2 + $0x90] sm:$0xff] }
  0x90   :  { %v193_v61 = vpack.c.bf16 %v138_v58, %v137_v57  ;;  %v2848_v1 = vld [vmem:[#allocation8 + $0x18] sm:$0xff]   ;;  %v214_v2 = vpack.c.bf16 %v180_v63, %v179_v62  ;;  %v2849_v5 = vld [vmem:[#allocation8 + $0x20] sm:$0xff]   ;;  %v2850_v9 = vld [vmem:[#allocation8 + $0x28] sm:$0xff]  }
  0x91   :  { %v140_v4 = vld [vmem:[#allocation2 + $0x98] sm:$0xff]  ;;  %v181_v7 = vld [vmem:[#allocation2 + $0x1e0] sm:$0xff]  ;;  %v182_v8 = vld [vmem:[#allocation2 + $0x1e8] sm:$0xff] }
  0x92   :  { %322 = vmatpush1.bf16.msra.mxu0 %v2835_v10  ;;  %2803 = vmatpush1.bf16.msra.mxu1 %v2835_v10  ;;  %v194_v6 = vpack.c.bf16 %v140_v4, %v139_v3  ;;  %v215_v10 = vpack.c.bf16 %v182_v8, %v181_v7  ;;  %v184_v17 = vld [vmem:[#allocation2 + $0x1f8] sm:$0xff]  ;;  %v143_v18 = vld [vmem:[#allocation2 + $0xb0] sm:$0xff]  ;;  %v145_v23 = vld [vmem:[#allocation2 + $0xc0] sm:$0xff]  ;;  %v3259_v3 = vmov 1966171168  }
  0x93   :  { %323 = vmatprep.subr.bf16.mxu0 %v2836_v11  ;;  %2796 = vmatprep.subr.bf16.mxu1 %v2836_v11  ;;  %v141_v11 = vld [vmem:[#allocation2 + $0xa0] sm:$0xff]  ;;  %v146_v24 = vld [vmem:[#allocation2 + $0xc8] sm:$0xff]  ;;  %v2855_v27 = vld [vmem:[#allocation8 + $0x50] sm:$0xff]   ;;  %v741_v4 = vunpack.c.l.s4 %v3259_v3 }
  0x94   :  { %v197_v26 = vpack.c.bf16 %v146_v24, %v145_v23  ;;  %v148_v29 = vld [vmem:[#allocation2 + $0xd8] sm:$0xff]  ;;  %v2857_v32 = vld [vmem:[#allocation8 + $0x60] sm:$0xff]   ;;  %v2858_v35 = vld [vmem:[#allocation8 + $0x68] sm:$0xff]  }
  0x95   :  { %v2856_v30 = vld [vmem:[#allocation8 + $0x58] sm:$0xff]   ;;  %v2859_v37 = vld [vmem:[#allocation8 + $0x70] sm:$0xff]   ;;  %v154_v43 = vld [vmem:[#allocation2 + $0x108] sm:$0xff] }
  0x96   :  { %324 = vmatpush1.bf16.msra.mxu0 %v2838_v12  ;;  %2804 = vmatpush1.bf16.msra.mxu1 %v2838_v12  ;;  %v142_v12 = vld [vmem:[#allocation2 + $0xa8] sm:$0xff]  ;;  %v151_v38 = vld [vmem:[#allocation2 + $0xf0] sm:$0xff]  ;;  %v153_v42 = vld [vmem:[#allocation2 + $0x100] sm:$0xff] }
  0x97   :  { %325 = vmatprep.subr.bf16.mxu0 %v2839_v13  ;;  %2797 = vmatprep.subr.bf16.mxu1 %v2839_v13  ;;  %v2851_v13 = vld [vmem:[#allocation8 + $0x30] sm:$0xff]   ;;  %v201_v44 = vpack.c.bf16 %v154_v43, %v153_v42  ;;  %v157_v48 = vld [vmem:[#allocation2 + $0x120] sm:$0xff]  ;;  %v162_v55 = vld [vmem:[#allocation2 + $0x148] sm:$0xff] }
  0x98   :  { %v159_v51 = vld [vmem:[#allocation2 + $0x130] sm:$0xff]  ;;  %v164_v58 = vld [vmem:[#allocation2 + $0x158] sm:$0xff]  ;;  %v2645_v8 = vld.sshfl [vmem:[#allocation7] sm:$0x11 pattern:$0x75316420] }
  0x99   :  { %v163_v57 = vld [vmem:[#allocation2 + $0x150] sm:$0xff] }
  0x9a   :  { %326 = vmatpush1.bf16.msra.mxu0 %v2841_v14  ;;  %2805 = vmatpush1.bf16.msra.mxu1 %v2841_v14  ;;  %v195_v14 = vpack.c.bf16 %v142_v12, %v141_v11  ;;  %v167_v63 = vld [vmem:[#allocation2 + $0x170] sm:$0xff] }
  0x9b   :  { %327 = vmatprep.subr.bf16.mxu0 %v2842_v15  ;;  %2798 = vmatprep.subr.bf16.mxu1 %v2842_v15  ;;  %v2852_v15 = vld [vmem:[#allocation8 + $0x38] sm:$0xff]  }
  0x9e   :  { %328 = vmatpush1.bf16.msra.mxu0 %v2844_v16  ;;  %2806 = vmatpush1.bf16.msra.mxu1 %v2844_v16  ;;  %v183_v16 = vld [vmem:[#allocation2 + $0x1f0] sm:$0xff] }
  0x9f   :  { %1536 = vmatprep.subr.bf16.mxu1 %v3258_v0  ;;  %v216_v20 = vpack.c.bf16 %v184_v17, %v183_v16 }
  0xa1   :  { %346 = vmatmul.mubr.bf16.vlgmr.msra.gmra.mrb[0].mxu0 %v185_v19  ;;  %586 = vmatmul.mubr.bf16.vlgmr.msra.gmra.mrb[0].mxu1 %v209_v33  ;;  %v144_v19 = vld [vmem:[#allocation2 + $0xb8] sm:$0xff]  ;;  %v149_v33 = vld [vmem:[#allocation2 + $0xe0] sm:$0xff] }
  0xa2   :  { %355 = vmatprep.mubr.bf16.mxu0 %v3258_v0  ;;  %595 = vmatprep.mubr.bf16.mxu1 %v3258_v0  ;;  %v196_v21 = vpack.c.bf16 %v144_v19, %v143_v18 }
  0xa3   :  { %1537 = vmatpush1.bf16.msra.mxu1 %v2845_v49  ;;  %v158_v49 = vld [vmem:[#allocation2 + $0x128] sm:$0xff] }
  0xa4   :  { %1538 = vmatprep.subr.bf16.mxu1 %v3258_v0  ;;  %v203_v50 = vpack.c.bf16 %v158_v49, %v157_v48 }
  0xa7   :  { %1539 = vmatpush1.bf16.msra.mxu1 %v2846_v54  ;;  %v161_v54 = vld [vmem:[#allocation2 + $0x140] sm:$0xff] }
  0xa8   :  { %1540 = vmatprep.subr.bf16.mxu1 %v3258_v0  ;;  %v205_v56 = vpack.c.bf16 %v162_v55, %v161_v54 }
  0xa9   :  { %356 = vmatmul.mubr.bf16.gmra.mrb[4].mxu0 %v186_v22  ;;  %596 = vmatmul.mubr.bf16.gmra.mrb[4].mxu1 %v210_v39  ;;  %v2853_v22 = vld [vmem:[#allocation8 + $0x40] sm:$0xff]   ;;  %v152_v39 = vld [vmem:[#allocation2 + $0xf8] sm:$0xff] }
  0xaa   :  { %365 = vmatprep.mubr.bf16.mxu0 %v3258_v0  ;;  %605 = vmatprep.mubr.bf16.mxu1 %v3258_v0  ;;  %v200_v41 = vpack.c.bf16 %v152_v39, %v151_v38 }
  0xab   :  { %1541 = vmatpush1.bf16.msra.mxu1 %v2847_v60  ;;  %v165_v60 = vld [vmem:[#allocation2 + $0x160] sm:$0xff] }
  0xac   :  { %1542 = vmatprep.subr.bf16.mxu1 %v3258_v0 }
  0xaf   :  { %1543 = vmatpush1.bf16.msra.mxu1 %v2848_v1  ;;  %v168_v1 = vld [vmem:[#allocation2 + $0x178] sm:$0xff] }
  0xb0   :  { %1544 = vmatprep.subr.bf16.mxu1 %v3258_v0 }
  0xb1   :  { %366 = vmatmul.mubr.bf16.gmra.mrb[8].mxu0 %v187_v25  ;;  %606 = vmatmul.mubr.bf16.gmra.mrb[8].mxu1 %v211_v45  ;;  %v2854_v25 = vld [vmem:[#allocation8 + $0x48] sm:$0xff]  }
  0xb2   :  { %375 = vmatprep.mubr.bf16.mxu0 %v3258_v0  ;;  %615 = vmatprep.mubr.bf16.mxu1 %v3258_v0  ;;  %v155_v45 = vld [vmem:[#allocation2 + $0x110] sm:$0xff] }
  0xb3   :  { %1545 = vmatpush1.bf16.msra.mxu1 %v2849_v5  ;;  %v743_v5 = vlaneseq }
  0xb4   :  { %1546 = vmatprep.subr.bf16.mxu1 %v3258_v0 }
  0xb5   :  { %v744_v7 = vshrl.u32 %v743_v5, 7 }
  0xb7   :  { %1547 = vmatpush1.bf16.msra.mxu1 %v2850_v9 }
  0xb8   :  { %1548 = vmatprep.subr.bf16.mxu1 %v3258_v0 }
  0xb9   :  { %376 = vmatmul.mubr.bf16.gmra.mrb[12].mxu0 %v188_v28  ;;  %616 = vmatmul.mubr.bf16.gmra.mrb[12].mxu1 %v212_v52  ;;  %v147_v28 = vld [vmem:[#allocation2 + $0xd0] sm:$0xff]  ;;  %v160_v52 = vld [vmem:[#allocation2 + $0x138] sm:$0xff] }
  0xba   :  { %385 = vmatprep.mubr.bf16.mxu0 %v3258_v0  ;;  %625 = vmatprep.mubr.bf16.mxu1 %v3258_v0  ;;  %v198_v31 = vpack.c.bf16 %v148_v29, %v147_v28 }
  0xbb   :  { %1549 = vmatpush1.bf16.msra.mxu1 %v2851_v13 }
  0xbc   :  { %1550 = vmatprep.subr.bf16.mxu1 %v3258_v0 }
  0xbf   :  { %1551 = vmatpush1.bf16.msra.mxu1 %v2852_v15 }
  0xc0   :  { %1552 = vmatprep.subr.bf16.mxu1 %v3258_v0 }
  0xc1   :  { %386 = vmatmul.mubr.bf16.gmra.mrb[16].mxu0 %v189_v34  ;;  %626 = vmatmul.mubr.bf16.gmra.mrb[16].mxu1 %v213_v59  ;;  %v150_v34 = vld [vmem:[#allocation2 + $0xe8] sm:$0xff]  ;;  %v206_v59 = vpack.c.bf16 %v164_v58, %v163_v57 }
  0xc2   :  { %395 = vmatprep.mubr.bf16.mxu0 %v3258_v0  ;;  %635 = vmatprep.mubr.bf16.mxu1 %v3258_v0  ;;  %v199_v36 = vpack.c.bf16 %v150_v34, %v149_v33 }
  0xc3   :  { %1553 = vmatpush1.bf16.msra.mxu1 %v2853_v22 }
  0xc4   :  { %1554 = vmatprep.subr.bf16.mxu1 %v3258_v0 }
  0xc7   :  { %1555 = vmatpush1.bf16.msra.mxu1 %v2854_v25 }
  0xc8   :  { %1556 = vmatprep.subr.bf16.mxu1 %v3258_v0 }
  0xc9   :  { %396 = vmatmul.mubr.bf16.gmra.mrb[20].mxu0 %v190_v40  ;;  %636 = vmatmul.mubr.bf16.gmra.mrb[20].mxu1 %v214_v2  ;;  %v2860_v40 = vld [vmem:[#allocation8 + $0x78] sm:$0xff]   ;;  %v208_v2 = vpack.c.bf16 %v168_v1, %v167_v63 }
  0xca   :  { %405 = vmatprep.mubr.bf16.mxu0 %v3258_v0  ;;  %645 = vmatprep.mubr.bf16.mxu1 %v3258_v0 }
  0xcb   :  { %1557 = vmatpush1.bf16.msra.mxu1 %v2855_v27 }
  0xcc   :  { %1558 = vmatprep.subr.bf16.mxu1 %v3258_v0 }
  0xcf   :  { %1559 = vmatpush1.bf16.msra.mxu1 %v2856_v30 }
  0xd0   :  { %1560 = vmatprep.subr.bf16.mxu1 %v3258_v0 }
  0xd1   :  { %406 = vmatmul.mubr.bf16.gmra.mrb[24].mxu0 %v191_v46  ;;  %646 = vmatmul.mubr.bf16.gmra.mrb[24].mxu1 %v215_v10  ;;  %v156_v46 = vld [vmem:[#allocation2 + $0x118] sm:$0xff]  ;;  %v739_v10 = vcombine.high %v2645_v8, %v2645_v8 }
  0xd2   :  { %415 = vmatprep.mubr.bf16.mxu0 %v3258_v0  ;;  %655 = vmatprep.mubr.bf16.mxu1 %v3258_v0  ;;  %v202_v47 = vpack.c.bf16 %v156_v46, %v155_v45 }
  0xd3   :  { %1561 = vmatpush1.bf16.msra.mxu1 %v2857_v32 }
  0xd4   :  { %1562 = vmatprep.subr.bf16.mxu1 %v3258_v0 }
  0xd7   :  { %1563 = vmatpush1.bf16.msra.mxu1 %v2858_v35 }
  0xd8   :  { %1564 = vmatprep.subr.bf16.mxu1 %v3258_v0 }
  0xd9   :  { %416 = vmatmul.mubr.bf16.gmra.mrb[28].mxu0 %v192_v53  ;;  %656 = vmatmul.mubr.bf16.gmra.mrb[28].mxu1 %v216_v20  ;;  %v204_v53 = vpack.c.bf16 %v160_v52, %v159_v51 }
  0xda   :  { %425 = vmatprep.mubr.bf16.mxu0 %v3258_v0 }
  0xdb   :  { %1565 = vmatpush1.bf16.msra.mxu1 %v2859_v37 }
  0xdc   :  { %1566 = vmatprep.subr.bf16.mxu1 %v3258_v0 }
  0xdf   :  { %1567 = vmatpush1.bf16.msra.mxu1 %v2860_v40 }
  0xe1   :  { %426 = vmatmul.mubr.bf16.gmra.mrb[32].mxu0 %v193_v61  ;;  %v166_v61 = vld [vmem:[#allocation2 + $0x168] sm:$0xff] }
  0xe2   :  { %435 = vmatprep.mubr.bf16.mxu0 %v3258_v0  ;;  %v207_v62 = vpack.c.bf16 %v166_v61, %v165_v60 }
  0xe9   :  { %436 = vmatmul.mubr.bf16.gmra.mrb[36].mxu0 %v194_v6  ;;  %v742_v6 = vunpack.c.0.s8 %v741_v4 }
  0xea   :  { %445 = vmatprep.mubr.bf16.mxu0 %v3258_v0 }
  0xeb   :  { %v745_v9 = vsub.s32 %v742_v6, %v744_v7 }
  0xed   :  { %v746_v11 = vrot.slane %v2645_v8, %v745_v9  ;;  %v753_v12 = vrot.slane %v739_v10, %v745_v9 }
  0xef   :  { %v755_v13 = vpack.i.b16 %v746_v11, %v746_v11  ;;  %v762_v15 = vpack.i.b16 %v753_v12, %v753_v12 }
  0xf1   :  { %446 = vmatmul.mubr.bf16.gmra.mrb[40].mxu0 %v195_v14  ;;  %v3453_v14 = vsub.s32 0, %v744_v7 }
  0xf2   :  { %455 = vmatprep.mubr.bf16.mxu0 %v3258_v0 }
  0xf3   :  { %v3456_v17 = vrot.slane %v755_v13, %v3453_v14  ;;  %v3459_v19 = vrot.slane %v762_v15, %v3453_v14 }
  0xf9   :  { %456 = vmatmul.mubr.bf16.gmra.mrb[44].mxu0 %v196_v21 }
  0xfa   :  { %465 = vmatprep.mubr.bf16.mxu0 %v3258_v0 }
 0x101   :  { %466 = vmatmul.mubr.bf16.gmra.mrb[48].mxu0 %v197_v26 }
 0x102   :  { %475 = vmatprep.mubr.bf16.mxu0 %v3258_v0 }
 0x109   :  { %476 = vmatmul.mubr.bf16.gmra.mrb[52].mxu0 %v198_v31 }
 0x10a   :  { %485 = vmatprep.mubr.bf16.mxu0 %v3258_v0 }
 0x111   :  { %486 = vmatmul.mubr.bf16.gmra.mrb[56].mxu0 %v199_v36 }
 0x112   :  { %495 = vmatprep.mubr.bf16.mxu0 %v3258_v0 }
 0x119   :  { %496 = vmatmul.mubr.bf16.gmra.mrb[60].mxu0 %v200_v41 }
 0x11a   :  { %505 = vmatprep.mubr.bf16.mxu0 %v3258_v0 }
 0x121   :  { %506 = vmatmul.mubr.bf16.gmra.mrb[64].mxu0 %v201_v44 }
 0x122   :  { %515 = vmatprep.mubr.bf16.mxu0 %v3258_v0 }
 0x129   :  { %516 = vmatmul.mubr.bf16.gmra.mrb[68].mxu0 %v202_v47 }
 0x12a   :  { %525 = vmatprep.mubr.bf16.mxu0 %v3258_v0 }
 0x131   :  { %526 = vmatmul.mubr.bf16.gmra.mrb[72].mxu0 %v203_v50 }
 0x132   :  { %535 = vmatprep.mubr.bf16.mxu0 %v3258_v0 }
 0x139   :  { %536 = vmatmul.mubr.bf16.gmra.mrb[76].mxu0 %v204_v53 }
 0x13a   :  { %545 = vmatprep.mubr.bf16.mxu0 %v3258_v0 }
 0x141   :  { %546 = vmatmul.mubr.bf16.gmra.mrb[80].mxu0 %v205_v56 }
 0x142   :  { %555 = vmatprep.mubr.bf16.mxu0 %v3258_v0 }
 0x149   :  { %556 = vmatmul.mubr.bf16.gmra.mrb[84].mxu0 %v206_v59 }
 0x14a   :  { %565 = vmatprep.mubr.bf16.mxu0 %v3258_v0 }
 0x151   :  { %566 = vmatmul.mubr.bf16.gmra.mrb[88].mxu0 %v207_v62 }
 0x152   :  { %575 = vmatprep.mubr.bf16.mxu0 %v3258_v0 }
 0x159   :  { %576 = vmatmul.mubr.bf16.gmra.mrb[92].mxu0 %v208_v2 }
 0x174   :  { %v347_v16 = vpop.f32.mrb[0].mxu0  ;;  %v3497_v13 = vpop.f32.mrb[0].mxu1 }
 0x175   :  { %v349_v0 = vpop.f32.mrb[1].mxu0 }
 0x176   :  { %v351_v18 = vpop.f32.mrb[2].mxu0 }
 0x177   :  { %v666_v20 = vpack.c.bf16 %v351_v18, %v347_v16  ;;  %v353_v21 = vpop.f32.mrb[3].mxu0  ;;  %v3499_v18 = vpop.f32.mrb[1].mxu1 }
 0x178   :  { %v667_v22 = vpack.c.bf16 %v353_v21, %v349_v0 }
 0x179   :  { %v3462_v23 = vadd.bf16 %v3456_v17, %v666_v20 }
 0x17a   :  { %v3465_v24 = vadd.bf16 %v3459_v19, %v667_v22 }
 0x17b   :  { %v832_v25 = vmul.bf16 %v3462_v23, %v3462_v23  ;;  %v896_v32 = vmul.bf16 1061961548, %v3462_v23 }
 0x17c   :  { %v833_v26 = vmul.bf16 %v3465_v24, %v3465_v24  ;;  %v357_v27 = vpop.f32.mrb[4].mxu0  ;;  %v897_v36 = vmul.bf16 1061961548, %v3465_v24 }
 0x17d   :  { %v960_v28 = vmul.bf16 1027030327, %v832_v25  ;;  %v359_v29 = vpop.f32.mrb[5].mxu0  ;;  %v3504_v25 = vpop.f32.mrb[2].mxu1 }
 0x17e   :  { %v961_v30 = vmul.bf16 1027030327, %v833_v26  ;;  %v361_v31 = vpop.f32.mrb[6].mxu0 }
 0x17f   :  { %v1024_v33 = vadd.bf16 1065369472, %v960_v28  ;;  %v668_v34 = vpack.c.bf16 %v361_v31, %v357_v27  ;;  %v363_v35 = vpop.f32.mrb[7].mxu0 }
 0x180   :  { %v1025_v37 = vadd.bf16 1065369472, %v961_v30  ;;  %v669_v38 = vpack.c.bf16 %v363_v35, %v359_v29  ;;  %v3509_v29 = vpop.f32.mrb[3].mxu1 }
 0x181   :  { %v1088_v39 = vmul.bf16 %v1024_v33, %v896_v32  ;;  %v3474_v40 = vadd.bf16 %v3456_v17, %v668_v34 }
 0x182   :  { %v1089_v41 = vmul.bf16 %v1025_v37, %v897_v36  ;;  %v3477_v42 = vadd.bf16 %v3459_v19, %v669_v38 }
 0x183   :  { %2869 = vtanh.bf16 %v1088_v39  ;;  %v834_v43 = vmul.bf16 %v3474_v40, %v3474_v40  ;;  %v898_v50 = vmul.bf16 1061961548, %v3474_v40 }
 0x184   :  { %v835_v44 = vmul.bf16 %v3477_v42, %v3477_v42  ;;  %v367_v45 = vpop.f32.mrb[8].mxu0  ;;  %2871 = vtanh.bf16 %v1089_v41  ;;  %v899_v54 = vmul.bf16 1061961548, %v3477_v42 }
 0x185   :  { %v962_v46 = vmul.bf16 1027030327, %v834_v43  ;;  %v369_v47 = vpop.f32.mrb[9].mxu0 }
 0x186   :  { %v963_v48 = vmul.bf16 1027030327, %v835_v44  ;;  %v371_v49 = vpop.f32.mrb[10].mxu0 }
 0x187   :  { %v1026_v51 = vadd.bf16 1065369472, %v962_v46  ;;  %v670_v52 = vpack.c.bf16 %v371_v49, %v367_v45  ;;  %v373_v53 = vpop.f32.mrb[11].mxu0  ;;  %v3523_v49 = vpop.f32.mrb[4].mxu1 }
 0x188   :  { %v1027_v55 = vadd.bf16 1065369472, %v963_v48  ;;  %v671_v56 = vpack.c.bf16 %v373_v53, %v369_v47  ;;  %v3525_v53 = vpop.f32.mrb[5].mxu1 }
 0x189   :  { %v1090_v57 = vmul.bf16 %v1026_v51, %v898_v50  ;;  %v3486_v58 = vadd.bf16 %v3456_v17, %v670_v52 }
 0x18a   :  { %v1091_v59 = vmul.bf16 %v1027_v55, %v899_v54  ;;  %v3489_v60 = vadd.bf16 %v3459_v19, %v671_v56 }
 0x18b   :  { %v836_v61 = vmul.bf16 %v3486_v58, %v3486_v58  ;;  %2873 = vtanh.bf16 %v1090_v57  ;;  %v900_v1 = vmul.bf16 1061961548, %v3486_v58  ;;  %v3530_v57 = vpop.f32.mrb[6].mxu1 }
 0x18c   :  { %v837_v62 = vmul.bf16 %v3489_v60, %v3489_v60  ;;  %v377_v63 = vpop.f32.mrb[12].mxu0  ;;  %2875 = vtanh.bf16 %v1091_v59  ;;  %v901_v5 = vmul.bf16 1061961548, %v3489_v60 }
 0x18d   :  { %v964_v2 = vmul.bf16 1027030327, %v836_v61  ;;  %v379_v3 = vpop.f32.mrb[13].mxu0 }
 0x18e   :  { %v2870_v4 = vpop.eup %2869  ;;  %v965_v6 = vmul.bf16 1027030327, %v837_v62  ;;  %v381_v7 = vpop.f32.mrb[14].mxu0 }
 0x18f   :  { %v2872_v8 = vpop.eup %2871  ;;  %v1216_v9 = vmul.bf16 1056980736, %v2870_v4  ;;  %v1028_v10 = vadd.bf16 1065369472, %v964_v2  ;;  %v672_v11 = vpack.c.bf16 %v381_v7, %v377_v63  ;;  %v383_v12 = vpop.f32.mrb[15].mxu0 }
 0x190   :  { %v1029_v15 = vadd.bf16 1065369472, %v965_v6  ;;  %v673_v16 = vpack.c.bf16 %v383_v12, %v379_v3  ;;  %v1217_v0 = vmul.bf16 1056980736, %v2872_v8  ;;  %v3535_v63 = vpop.f32.mrb[7].mxu1 }
 0x191   :  { %v1280_v20 = vadd.bf16 1056980736, %v1216_v9  ;;  %v1092_v21 = vmul.bf16 %v1028_v10, %v900_v1  ;;  %v3502_v22 = vadd.bf16 %v3456_v17, %v672_v11 }
 0x192   :  { %v1093_v26 = vmul.bf16 %v1029_v15, %v901_v5  ;;  %v3507_v27 = vadd.bf16 %v3459_v19, %v673_v16  ;;  %v1281_v28 = vadd.bf16 1056980736, %v1217_v0 }
 0x193   :  { %v838_v30 = vmul.bf16 %v3502_v22, %v3502_v22  ;;  %2877 = vtanh.bf16 %v1092_v21  ;;  %v1344_v31 = vmul.bf16 %v1280_v20, %v3462_v23  ;;  %v902_v35 = vmul.bf16 1061961548, %v3502_v22 }
 0x194   :  { %v839_v32 = vmul.bf16 %v3507_v27, %v3507_v27  ;;  %v387_v33 = vpop.f32.mrb[16].mxu0  ;;  %v1345_v34 = vmul.bf16 %v1281_v28, %v3465_v24  ;;  %2879 = vtanh.bf16 %v1093_v26  ;;  %v903_v23 = vmul.bf16 1061961548, %v3507_v27  ;;  %v3548_v26 = vpop.f32.mrb[8].mxu1 }
 0x195   :  { %v966_v36 = vmul.bf16 1027030327, %v838_v30  ;;  %v389_v37 = vpop.f32.mrb[17].mxu0 }
 0x196   :  { %v2874_v41 = vpop.eup %2873  ;;  %v967_v43 = vmul.bf16 1027030327, %v839_v32  ;;  %v391_v44 = vpop.f32.mrb[18].mxu0  ;;  %1568 = vmatprep.mubr.bf16.mxu1 %v1345_v34 }
 0x197   :  { %v2876_v45 = vpop.eup %2875  ;;  %v1030_v46 = vadd.bf16 1065369472, %v966_v36  ;;  %v674_v24 = vpack.c.bf16 %v391_v44, %v387_v33  ;;  %v393_v47 = vpop.f32.mrb[19].mxu0  ;;  %1569 = vmatmul.mubr.bf16.vlgmr.msra.gmra.mrb[32].mxu1 %v1344_v31  ;;  %v1218_v48 = vmul.bf16 1056980736, %v2874_v41 }
 0x198   :  { %v1031_v50 = vadd.bf16 1065369472, %v967_v43  ;;  %v675_v51 = vpack.c.bf16 %v393_v47, %v389_v37  ;;  %v1219_v52 = vmul.bf16 1056980736, %v2876_v45 }
 0x199   :  { %v1094_v54 = vmul.bf16 %v1030_v46, %v902_v35  ;;  %v3528_v55 = vadd.bf16 %v3456_v17, %v674_v24  ;;  %v1282_v56 = vadd.bf16 1056980736, %v1218_v48  ;;  %v3554_v35 = vpop.f32.mrb[9].mxu1 }
 0x19a   :  { %v1095_v59 = vmul.bf16 %v1031_v50, %v903_v23  ;;  %v3533_v61 = vadd.bf16 %v3459_v19, %v675_v51  ;;  %v1283_v62 = vadd.bf16 1056980736, %v1219_v52  ;;  %v3559_v23 = vpop.f32.mrb[10].mxu1 }
 0x19b   :  { %v840_v1 = vmul.bf16 %v3528_v55, %v3528_v55  ;;  %2881 = vtanh.bf16 %v1094_v54  ;;  %v1346_v7 = vmul.bf16 %v1282_v56, %v3474_v40  ;;  %v904_v10 = vmul.bf16 1061961548, %v3528_v55  ;;  %v3563_v44 = vpop.f32.mrb[11].mxu1 }
 0x19c   :  { %v841_v2 = vmul.bf16 %v3533_v61, %v3533_v61  ;;  %v397_v3 = vpop.f32.mrb[20].mxu0  ;;  %v1347_v4 = vmul.bf16 %v1283_v62, %v3477_v42  ;;  %2883 = vtanh.bf16 %v1095_v59  ;;  %v905_v40 = vmul.bf16 1061961548, %v3533_v61 }
 0x19d   :  { %v968_v5 = vmul.bf16 1027030327, %v840_v1  ;;  %v399_v6 = vpop.f32.mrb[21].mxu0 }
 0x19e   :  { %v2878_v9 = vpop.eup %2877  ;;  %v969_v11 = vmul.bf16 1027030327, %v841_v2  ;;  %v401_v12 = vpop.f32.mrb[22].mxu0  ;;  %1576 = vmatprep.mubr.bf16.mxu1 %v1347_v4 }
 0x19f   :  { %v2880_v16 = vpop.eup %2879  ;;  %v1032_v0 = vadd.bf16 1065369472, %v968_v5  ;;  %v676_v42 = vpack.c.bf16 %v401_v12, %v397_v3  ;;  %v403_v20 = vpop.f32.mrb[23].mxu0  ;;  %1577 = vmatmul.mubr.bf16.gmra.mrb[36].mxu1 %v1346_v7  ;;  %v1220_v21 = vmul.bf16 1056980736, %v2878_v9 }
 0x1a0   :  { %v1033_v28 = vadd.bf16 1065369472, %v969_v11  ;;  %v677_v30 = vpack.c.bf16 %v403_v20, %v399_v6  ;;  %v1221_v31 = vmul.bf16 1056980736, %v2880_v16  ;;  %v3574_v5 = vpop.f32.mrb[12].mxu1 }
 0x1a1   :  { %v1096_v32 = vmul.bf16 %v1032_v0, %v904_v10  ;;  %v3552_v33 = vadd.bf16 %v3456_v17, %v676_v42  ;;  %v1284_v34 = vadd.bf16 1056980736, %v1220_v21  ;;  %v3580_v16 = vpop.f32.mrb[13].mxu1 }
 0x1a2   :  { %v1097_v36 = vmul.bf16 %v1033_v28, %v905_v40  ;;  %v3557_v37 = vadd.bf16 %v3459_v19, %v677_v30  ;;  %v1285_v41 = vadd.bf16 1056980736, %v1221_v31  ;;  %v3585_v21 = vpop.f32.mrb[14].mxu1 }
 0x1a3   :  { %v842_v43 = vmul.bf16 %v3552_v33, %v3552_v33  ;;  %2885 = vtanh.bf16 %v1096_v32  ;;  %v1348_v50 = vmul.bf16 %v1284_v34, %v3486_v58  ;;  %v906_v52 = vmul.bf16 1061961548, %v3552_v33  ;;  %v3589_v28 = vpop.f32.mrb[15].mxu1 }
 0x1a4   :  { %v843_v45 = vmul.bf16 %v3557_v37, %v3557_v37  ;;  %v407_v46 = vpop.f32.mrb[24].mxu0  ;;  %v1349_v24 = vmul.bf16 %v1285_v41, %v3489_v60  ;;  %2887 = vtanh.bf16 %v1097_v36  ;;  %v907_v58 = vmul.bf16 1061961548, %v3557_v37 }
 0x1a5   :  { %v970_v47 = vmul.bf16 1027030327, %v842_v43  ;;  %v409_v48 = vpop.f32.mrb[25].mxu0 }
 0x1a6   :  { %v2882_v51 = vpop.eup %2881  ;;  %v971_v54 = vmul.bf16 1027030327, %v843_v45  ;;  %v411_v56 = vpop.f32.mrb[26].mxu0  ;;  %1584 = vmatprep.mubr.bf16.mxu1 %v1349_v24 }
 0x1a7   :  { %v2884_v1 = vpop.eup %2883  ;;  %v1034_v2 = vadd.bf16 1065369472, %v970_v47  ;;  %v678_v60 = vpack.c.bf16 %v411_v56, %v407_v46  ;;  %v413_v3 = vpop.f32.mrb[27].mxu0  ;;  %1585 = vmatmul.mubr.bf16.gmra.mrb[40].mxu1 %v1348_v50  ;;  %v1222_v4 = vmul.bf16 1056980736, %v2882_v51 }
 0x1a8   :  { %v1035_v6 = vadd.bf16 1065369472, %v971_v54  ;;  %v679_v7 = vpack.c.bf16 %v413_v3, %v409_v48  ;;  %v1223_v9 = vmul.bf16 1056980736, %v2884_v1  ;;  %v3598_v54 = vpop.f32.mrb[16].mxu1 }
 0x1a9   :  { %v1098_v10 = vmul.bf16 %v1034_v2, %v906_v52  ;;  %v3578_v11 = vadd.bf16 %v3456_v17, %v678_v60  ;;  %v1286_v12 = vadd.bf16 1056980736, %v1222_v4 }
 0x1aa   :  { %v1099_v0 = vmul.bf16 %v1035_v6, %v907_v58  ;;  %v3583_v42 = vadd.bf16 %v3459_v19, %v679_v7  ;;  %v1287_v20 = vadd.bf16 1056980736, %v1223_v9  ;;  %v3604_v58 = vpop.f32.mrb[17].mxu1 }
 0x1ab   :  { %v844_v40 = vmul.bf16 %v3578_v11, %v3578_v11  ;;  %2889 = vtanh.bf16 %v1098_v10  ;;  %v1350_v41 = vmul.bf16 %v1286_v12, %v3502_v22  ;;  %v908_v45 = vmul.bf16 1061961548, %v3578_v11  ;;  %v3609_v10 = vpop.f32.mrb[18].mxu1 }
 0x1ac   :  { %v845_v30 = vmul.bf16 %v3583_v42, %v3583_v42  ;;  %v417_v31 = vpop.f32.mrb[28].mxu0  ;;  %v1351_v32 = vmul.bf16 %v1287_v20, %v3507_v27  ;;  %2891 = vtanh.bf16 %v1099_v0  ;;  %v909_v56 = vmul.bf16 1061961548, %v3583_v42  ;;  %v3613_v0 = vpop.f32.mrb[19].mxu1 }
 0x1ad   :  { %v972_v34 = vmul.bf16 1027030327, %v844_v40  ;;  %v419_v36 = vpop.f32.mrb[29].mxu0 }
 0x1ae   :  { %v2886_v43 = vpop.eup %2885  ;;  %v973_v46 = vmul.bf16 1027030327, %v845_v30  ;;  %v421_v24 = vpop.f32.mrb[30].mxu0  ;;  %1592 = vmatprep.mubr.bf16.mxu1 %v1351_v32 }
 0x1af   :  { %v2888_v48 = vpop.eup %2887  ;;  %v1036_v50 = vadd.bf16 1065369472, %v972_v34  ;;  %v680_v51 = vpack.c.bf16 %v421_v24, %v417_v31  ;;  %v423_v52 = vpop.f32.mrb[31].mxu0  ;;  %1593 = vmatmul.mubr.bf16.gmra.mrb[44].mxu1 %v1350_v41  ;;  %v1224_v27 = vmul.bf16 1056980736, %v2886_v43 }
 0x1b0   :  { %v1037_v22 = vadd.bf16 1065369472, %v973_v46  ;;  %v681_v1 = vpack.c.bf16 %v423_v52, %v419_v36  ;;  %v1225_v2 = vmul.bf16 1056980736, %v2888_v48 }
 0x1b1   :  { %v1100_v60 = vmul.bf16 %v1036_v50, %v908_v45  ;;  %v3602_v3 = vadd.bf16 %v3456_v17, %v680_v51  ;;  %v1288_v4 = vadd.bf16 1056980736, %v1224_v27  ;;  %v3624_v27 = vpop.f32.mrb[20].mxu1 }
 0x1b2   :  { %v1101_v6 = vmul.bf16 %v1037_v22, %v909_v56  ;;  %v3607_v7 = vadd.bf16 %v3459_v19, %v681_v1  ;;  %v1289_v9 = vadd.bf16 1056980736, %v1225_v2 }
 0x1b3   :  { %v846_v12 = vmul.bf16 %v3602_v3, %v3602_v3  ;;  %2893 = vtanh.bf16 %v1100_v60  ;;  %v1352_v34 = vmul.bf16 %v1288_v4, %v3528_v55  ;;  %v910_v41 = vmul.bf16 1061961548, %v3602_v3 }
 0x1b4   :  { %v847_v20 = vmul.bf16 %v3607_v7, %v3607_v7  ;;  %v427_v40 = vpop.f32.mrb[32].mxu0  ;;  %v1353_v30 = vmul.bf16 %v1289_v9, %v3533_v61  ;;  %2895 = vtanh.bf16 %v1101_v6  ;;  %v911_v55 = vmul.bf16 1061961548, %v3607_v7  ;;  %v3630_v6 = vpop.f32.mrb[21].mxu1 }
 0x1b5   :  { %v974_v31 = vmul.bf16 1027030327, %v846_v12  ;;  %v429_v32 = vpop.f32.mrb[33].mxu0 }
 0x1b6   :  { %v2890_v36 = vpop.eup %2889  ;;  %v975_v43 = vmul.bf16 1027030327, %v847_v20  ;;  %v431_v45 = vpop.f32.mrb[34].mxu0  ;;  %1600 = vmatprep.mubr.bf16.mxu1 %v1353_v30 }
 0x1b7   :  { %v2892_v48 = vpop.eup %2891  ;;  %v1038_v50 = vadd.bf16 1065369472, %v974_v31  ;;  %v682_v61 = vpack.c.bf16 %v431_v45, %v427_v40  ;;  %v433_v51 = vpop.f32.mrb[35].mxu0  ;;  %1601 = vmatmul.mubr.bf16.gmra.mrb[48].mxu1 %v1352_v34  ;;  %v1226_v52 = vmul.bf16 1056980736, %v2890_v36 }
 0x1b8   :  { %v1039_v56 = vadd.bf16 1065369472, %v975_v43  ;;  %v683_v22 = vpack.c.bf16 %v433_v51, %v429_v32  ;;  %v1227_v1 = vmul.bf16 1056980736, %v2892_v48  ;;  %v3635_v40 = vpop.f32.mrb[22].mxu1 }
 0x1b9   :  { %v1102_v2 = vmul.bf16 %v1038_v50, %v910_v41  ;;  %v3628_v60 = vadd.bf16 %v3456_v17, %v682_v61  ;;  %v1290_v4 = vadd.bf16 1056980736, %v1226_v52  ;;  %v3639_v31 = vpop.f32.mrb[23].mxu1 }
 0x1ba   :  { %v1103_v9 = vmul.bf16 %v1039_v56, %v911_v55  ;;  %v3633_v12 = vadd.bf16 %v3459_v19, %v683_v22  ;;  %v1291_v20 = vadd.bf16 1056980736, %v1227_v1 }
 0x1bb   :  { %v848_v30 = vmul.bf16 %v3628_v60, %v3628_v60  ;;  %2897 = vtanh.bf16 %v1102_v2  ;;  %v1354_v45 = vmul.bf16 %v1290_v4, %v3552_v33  ;;  %v912_v50 = vmul.bf16 1061961548, %v3628_v60 }
 0x1bc   :  { %v849_v32 = vmul.bf16 %v3633_v12, %v3633_v12  ;;  %v437_v34 = vpop.f32.mrb[36].mxu0  ;;  %v1355_v36 = vmul.bf16 %v1291_v20, %v3557_v37  ;;  %2899 = vtanh.bf16 %v1103_v9  ;;  %v3650_v9 = vpop.f32.mrb[24].mxu1  ;;  %v913_v33 = vmul.bf16 1061961548, %v3633_v12 }
 0x1bd   :  { %v976_v41 = vmul.bf16 1027030327, %v848_v30  ;;  %v439_v43 = vpop.f32.mrb[37].mxu0  ;;  %v3656_v52 = vpop.f32.mrb[25].mxu1 }
 0x1be   :  { %v2894_v48 = vpop.eup %2893  ;;  %v977_v61 = vmul.bf16 1027030327, %v849_v32  ;;  %v441_v51 = vpop.f32.mrb[38].mxu0  ;;  %1608 = vmatprep.mubr.bf16.mxu1 %v1355_v36 }
 0x1bf   :  { %v2896_v56 = vpop.eup %2895  ;;  %v1040_v22 = vadd.bf16 1065369472, %v976_v41  ;;  %v684_v37 = vpack.c.bf16 %v441_v51, %v437_v34  ;;  %v443_v1 = vpop.f32.mrb[39].mxu0  ;;  %1609 = vmatmul.mubr.bf16.gmra.mrb[52].mxu1 %v1354_v45  ;;  %v1228_v2 = vmul.bf16 1056980736, %v2894_v48 }
 0x1c0   :  { %v1041_v4 = vadd.bf16 1065369472, %v977_v61  ;;  %v685_v20 = vpack.c.bf16 %v443_v1, %v439_v43  ;;  %v1229_v30 = vmul.bf16 1056980736, %v2896_v56  ;;  %v3661_v45 = vpop.f32.mrb[26].mxu1 }
 0x1c1   :  { %v1104_v32 = vmul.bf16 %v1040_v22, %v912_v50  ;;  %v3654_v36 = vadd.bf16 %v3456_v17, %v684_v37  ;;  %v1292_v24 = vadd.bf16 1056980736, %v1228_v2  ;;  %v3665_v43 = vpop.f32.mrb[27].mxu1 }
 0x1c2   :  { %v1105_v55 = vmul.bf16 %v1041_v4, %v913_v33  ;;  %v3659_v34 = vadd.bf16 %v3459_v19, %v685_v20  ;;  %v1293_v41 = vadd.bf16 1056980736, %v1229_v30 }
 0x1c3   :  { %v850_v48 = vmul.bf16 %v3654_v36, %v3654_v36  ;;  %2901 = vtanh.bf16 %v1104_v32  ;;  %v1356_v37 = vmul.bf16 %v1292_v24, %v3578_v11  ;;  %v914_v2 = vmul.bf16 1061961548, %v3654_v36 }
 0x1c4   :  { %v851_v50 = vmul.bf16 %v3659_v34, %v3659_v34  ;;  %v447_v61 = vpop.f32.mrb[40].mxu0  ;;  %v1357_v51 = vmul.bf16 %v1293_v41, %v3583_v42  ;;  %2903 = vtanh.bf16 %v1105_v55  ;;  %v3674_v55 = vpop.f32.mrb[28].mxu1  ;;  %v915_v41 = vmul.bf16 1061961548, %v3659_v34 }
 0x1c5   :  { %v978_v56 = vmul.bf16 1027030327, %v850_v48  ;;  %v449_v22 = vpop.f32.mrb[41].mxu0 }
 0x1c6   :  { %v2898_v1 = vpop.eup %2897  ;;  %v979_v33 = vmul.bf16 1027030327, %v851_v50  ;;  %v451_v4 = vpop.f32.mrb[42].mxu0  ;;  %1616 = vmatprep.mubr.bf16.mxu1 %v1357_v51 }
 0x1c7   :  { %v2900_v20 = vpop.eup %2899  ;;  %v1042_v30 = vadd.bf16 1065369472, %v978_v56  ;;  %v686_v32 = vpack.c.bf16 %v451_v4, %v447_v61  ;;  %v453_v47 = vpop.f32.mrb[43].mxu0  ;;  %1617 = vmatmul.mubr.bf16.gmra.mrb[56].mxu1 %v1356_v37  ;;  %v1230_v46 = vmul.bf16 1056980736, %v2898_v1  ;;  %v2861_v61 = vld [vmem:[#allocation11] sm:$0xff]  }
 0x1c8   :  { %v1043_v11 = vadd.bf16 1065369472, %v979_v33  ;;  %v687_v24 = vpack.c.bf16 %v453_v47, %v449_v22  ;;  %v1231_v48 = vmul.bf16 1056980736, %v2900_v20  ;;  %v3680_v56 = vpop.f32.mrb[29].mxu1  ;;  %2711 = vmatprep.subr.bf16.mxu0 %v2861_v61 }
 0x1c9   :  { %v1106_v59 = vmul.bf16 %v1042_v30, %v914_v2  ;;  %v3678_v50 = vadd.bf16 %v3456_v17, %v686_v32  ;;  %v1294_v51 = vadd.bf16 1056980736, %v1230_v46  ;;  %v3685_v42 = vpop.f32.mrb[30].mxu1  ;;  %2712 = vmatpush3.bf16.msra.mxu0 %v2861_v61 }
 0x1ca   :  { %v1107_v37 = vmul.bf16 %v1043_v11, %v915_v41  ;;  %v3683_v1 = vadd.bf16 %v3459_v19, %v687_v24  ;;  %v1295_v4 = vadd.bf16 1056980736, %v1231_v48  ;;  %v3689_v47 = vpop.f32.mrb[31].mxu1 }
 0x1cb   :  { %v852_v33 = vmul.bf16 %v3678_v50, %v3678_v50  ;;  %2905 = vtanh.bf16 %v1106_v59  ;;  %v1358_v32 = vmul.bf16 %v1294_v51, %v3602_v3  ;;  %v916_v11 = vmul.bf16 1061961548, %v3678_v50 }
 0x1cc   :  { %v853_v46 = vmul.bf16 %v3683_v1, %v3683_v1  ;;  %v457_v22 = vpop.f32.mrb[44].mxu0  ;;  %v1359_v2 = vmul.bf16 %v1295_v4, %v3607_v7  ;;  %2907 = vtanh.bf16 %v1107_v37  ;;  %v917_v3 = vmul.bf16 1061961548, %v3683_v1 }
 0x1cd   :  { %v980_v20 = vmul.bf16 1027030327, %v852_v33  ;;  %v459_v30 = vpop.f32.mrb[45].mxu0 }
 0x1ce   :  { %v2902_v41 = vpop.eup %2901  ;;  %v981_v24 = vmul.bf16 1027030327, %v853_v46  ;;  %v461_v59 = vpop.f32.mrb[46].mxu0  ;;  %1624 = vmatprep.mubr.bf16.mxu1 %v1359_v2 }
 0x1cf   :  { %v2904_v62 = vpop.eup %2903  ;;  %v1044_v8 = vadd.bf16 1065369472, %v980_v20  ;;  %v688_v15 = vpack.c.bf16 %v461_v59, %v457_v22  ;;  %v463_v38 = vpop.f32.mrb[47].mxu0  ;;  %1625 = vmatmul.mubr.bf16.gmra.mrb[60].mxu1 %v1358_v32  ;;  %v1232_v7 = vmul.bf16 1056980736, %v2902_v41 }
 0x1d0   :  { %v1045_v51 = vadd.bf16 1065369472, %v981_v24  ;;  %v689_v37 = vpack.c.bf16 %v463_v38, %v459_v30  ;;  %v1233_v4 = vmul.bf16 1056980736, %v2904_v62 }
 0x1d1   :  { %v1108_v33 = vmul.bf16 %v1044_v8, %v916_v11  ;;  %v3702_v46 = vadd.bf16 %v3456_v17, %v688_v15  ;;  %v1296_v2 = vadd.bf16 1056980736, %v1232_v7 }
 0x1d2   :  { %v1109_v48 = vmul.bf16 %v1045_v51, %v917_v3  ;;  %v3705_v20 = vadd.bf16 %v3459_v19, %v689_v37  ;;  %v1297_v22 = vadd.bf16 1056980736, %v1233_v4 }
 0x1d3   :  { %v854_v32 = vmul.bf16 %v3702_v46, %v3702_v46  ;;  %2909 = vtanh.bf16 %v1108_v33  ;;  %v1360_v62 = vmul.bf16 %v1296_v2, %v3628_v60  ;;  %v918_v11 = vmul.bf16 1061961548, %v3702_v46 }
 0x1d4   :  { %v855_v41 = vmul.bf16 %v3705_v20, %v3705_v20  ;;  %v467_v24 = vpop.f32.mrb[48].mxu0  ;;  %v1361_v38 = vmul.bf16 %v1297_v22, %v3633_v12  ;;  %2911 = vtanh.bf16 %v1109_v48  ;;  %v919_v48 = vmul.bf16 1061961548, %v3705_v20 }
 0x1d5   :  { %v982_v8 = vmul.bf16 1027030327, %v854_v32  ;;  %v469_v15 = vpop.f32.mrb[49].mxu0 }
 0x1d6   :  { %v2906_v30 = vpop.eup %2905  ;;  %v983_v59 = vmul.bf16 1027030327, %v855_v41  ;;  %v471_v7 = vpop.f32.mrb[50].mxu0  ;;  %1632 = vmatprep.mubr.bf16.mxu1 %v1361_v38 }
 0x1d7   :  { %v2908_v51 = vpop.eup %2907  ;;  %v1046_v37 = vadd.bf16 1065369472, %v982_v8  ;;  %v690_v4 = vpack.c.bf16 %v471_v7, %v467_v24  ;;  %v473_v33 = vpop.f32.mrb[51].mxu0  ;;  %1633 = vmatmul.mubr.bf16.gmra.mrb[64].mxu1 %v1360_v62  ;;  %v1234_v12 = vmul.bf16 1056980736, %v2906_v30 }
 0x1d8   :  { %v1047_v22 = vadd.bf16 1065369472, %v983_v59  ;;  %v691_v32 = vpack.c.bf16 %v473_v33, %v469_v15  ;;  %v1235_v60 = vmul.bf16 1056980736, %v2908_v51 }
 0x1d9   :  { %v1110_v2 = vmul.bf16 %v1046_v37, %v918_v11  ;;  %v3718_v61 = vadd.bf16 %v3456_v17, %v690_v4  ;;  %v1298_v41 = vadd.bf16 1056980736, %v1234_v12 }
 0x1da   :  { %v1111_v38 = vmul.bf16 %v1047_v22, %v919_v48  ;;  %v3721_v39 = vadd.bf16 %v3459_v19, %v691_v32  ;;  %v1299_v3 = vadd.bf16 1056980736, %v1235_v60 }
 0x1db   :  { %v856_v24 = vmul.bf16 %v3718_v61, %v3718_v61  ;;  %2913 = vtanh.bf16 %v1110_v2  ;;  %v1362_v59 = vmul.bf16 %v1298_v41, %v3654_v36  ;;  %v920_v51 = vmul.bf16 1061961548, %v3718_v61 }
 0x1dc   :  { %v857_v8 = vmul.bf16 %v3721_v39, %v3721_v39  ;;  %v477_v62 = vpop.f32.mrb[52].mxu0  ;;  %v1363_v15 = vmul.bf16 %v1299_v3, %v3659_v34  ;;  %2915 = vtanh.bf16 %v1111_v38  ;;  %v921_v3 = vmul.bf16 1061961548, %v3721_v39 }
 0x1dd   :  { %v984_v30 = vmul.bf16 1027030327, %v856_v24  ;;  %v479_v11 = vpop.f32.mrb[53].mxu0 }
 0x1de   :  { %v2910_v7 = vpop.eup %2909  ;;  %v985_v37 = vmul.bf16 1027030327, %v857_v8  ;;  %v481_v4 = vpop.f32.mrb[54].mxu0  ;;  %1640 = vmatprep.mubr.bf16.mxu1 %v1363_v15  ;;  %v2862_v8 = vld [vmem:[#allocation11 + $0x8] sm:$0xff]  }
 0x1df   :  { %v2912_v33 = vpop.eup %2911  ;;  %v1048_v12 = vadd.bf16 1065369472, %v984_v30  ;;  %v692_v48 = vpack.c.bf16 %v481_v4, %v477_v62  ;;  %v483_v22 = vpop.f32.mrb[55].mxu0  ;;  %1641 = vmatmul.mubr.bf16.gmra.mrb[68].mxu1 %v1362_v59  ;;  %v1236_v32 = vmul.bf16 1056980736, %v2910_v7  ;;  %2713 = vmatprep.subr.bf16.mxu0 %v2862_v8 }
 0x1e0   :  { %v1049_v60 = vadd.bf16 1065369472, %v985_v37  ;;  %v693_v2 = vpack.c.bf16 %v483_v22, %v479_v11  ;;  %v1237_v36 = vmul.bf16 1056980736, %v2912_v33  ;;  %2714 = vmatpush3.bf16.msra.mxu0 %v2862_v8 }
 0x1e1   :  { %v1112_v41 = vmul.bf16 %v1048_v12, %v920_v51  ;;  %v3734_v38 = vadd.bf16 %v3456_v17, %v692_v48  ;;  %v1300_v24 = vadd.bf16 1056980736, %v1236_v32 }
 0x1e2   :  { %v1113_v15 = vmul.bf16 %v1049_v60, %v921_v3  ;;  %v3737_v62 = vadd.bf16 %v3459_v19, %v693_v2  ;;  %v1301_v30 = vadd.bf16 1056980736, %v1237_v36 }
 0x1e3   :  { %v858_v59 = vmul.bf16 %v3734_v38, %v3734_v38  ;;  %2917 = vtanh.bf16 %v1112_v41  ;;  %v1364_v33 = vmul.bf16 %v1300_v24, %v3678_v50  ;;  %v922_v48 = vmul.bf16 1061961548, %v3734_v38 }
 0x1e4   :  { %v859_v11 = vmul.bf16 %v3737_v62, %v3737_v62  ;;  %v487_v7 = vpop.f32.mrb[56].mxu0  ;;  %v1365_v51 = vmul.bf16 %v1301_v30, %v3683_v1  ;;  %2919 = vtanh.bf16 %v1113_v15  ;;  %v923_v1 = vmul.bf16 1061961548, %v3737_v62 }
 0x1e5   :  { %v986_v37 = vmul.bf16 1027030327, %v858_v59  ;;  %v489_v4 = vpop.f32.mrb[57].mxu0 }
 0x1e6   :  { %v2914_v12 = vpop.eup %2913  ;;  %v987_v22 = vmul.bf16 1027030327, %v859_v11  ;;  %v491_v32 = vpop.f32.mrb[58].mxu0  ;;  %1648 = vmatprep.mubr.bf16.mxu1 %v1365_v51 }
 0x1e7   :  { %v2916_v3 = vpop.eup %2915  ;;  %v1050_v60 = vadd.bf16 1065369472, %v986_v37  ;;  %v694_v2 = vpack.c.bf16 %v491_v32, %v487_v7  ;;  %v493_v36 = vpop.f32.mrb[59].mxu0  ;;  %1649 = vmatmul.mubr.bf16.gmra.mrb[72].mxu1 %v1364_v33  ;;  %v1238_v41 = vmul.bf16 1056980736, %v2914_v12 }
 0x1e8   :  { %v1051_v15 = vadd.bf16 1065369472, %v987_v22  ;;  %v695_v8 = vpack.c.bf16 %v493_v36, %v489_v4  ;;  %v1239_v30 = vmul.bf16 1056980736, %v2916_v3 }
 0x1e9   :  { %v1114_v59 = vmul.bf16 %v1050_v60, %v922_v48  ;;  %v3748_v50 = vadd.bf16 %v3456_v17, %v694_v2  ;;  %v1302_v24 = vadd.bf16 1056980736, %v1238_v41 }
 0x1ea   :  { %v1115_v34 = vmul.bf16 %v1051_v15, %v923_v1  ;;  %v3751_v11 = vadd.bf16 %v3459_v19, %v695_v8  ;;  %v1303_v51 = vadd.bf16 1056980736, %v1239_v30 }
 0x1eb   :  { %v860_v7 = vmul.bf16 %v3748_v50, %v3748_v50  ;;  %2921 = vtanh.bf16 %v1114_v59  ;;  %v1366_v22 = vmul.bf16 %v1302_v24, %v3702_v46  ;;  %v924_v3 = vmul.bf16 1061961548, %v3748_v50 }
 0x1ec   :  { %v861_v37 = vmul.bf16 %v3751_v11, %v3751_v11  ;;  %v497_v33 = vpop.f32.mrb[60].mxu0  ;;  %v1367_v4 = vmul.bf16 %v1303_v51, %v3705_v20  ;;  %2923 = vtanh.bf16 %v1115_v34  ;;  %v925_v30 = vmul.bf16 1061961548, %v3751_v11 }
 0x1ed   :  { %v988_v12 = vmul.bf16 1027030327, %v860_v7  ;;  %v499_v48 = vpop.f32.mrb[61].mxu0 }
 0x1ee   :  { %v2918_v32 = vpop.eup %2917  ;;  %v989_v60 = vmul.bf16 1027030327, %v861_v37  ;;  %v501_v2 = vpop.f32.mrb[62].mxu0  ;;  %1656 = vmatprep.mubr.bf16.mxu1 %v1367_v4 }
 0x1ef   :  { %v2920_v36 = vpop.eup %2919  ;;  %v1052_v41 = vadd.bf16 1065369472, %v988_v12  ;;  %v696_v1 = vpack.c.bf16 %v501_v2, %v497_v33  ;;  %v503_v15 = vpop.f32.mrb[63].mxu0  ;;  %1657 = vmatmul.mubr.bf16.gmra.mrb[76].mxu1 %v1366_v22  ;;  %v1240_v8 = vmul.bf16 1056980736, %v2918_v32 }
 0x1f0   :  { %v1053_v20 = vadd.bf16 1065369472, %v989_v60  ;;  %v697_v34 = vpack.c.bf16 %v503_v15, %v499_v48  ;;  %v1241_v59 = vmul.bf16 1056980736, %v2920_v36 }
 0x1f1   :  { %v1116_v51 = vmul.bf16 %v1052_v41, %v924_v3  ;;  %v3762_v46 = vadd.bf16 %v3456_v17, %v696_v1  ;;  %v1304_v24 = vadd.bf16 1056980736, %v1240_v8 }
 0x1f2   :  { %v1117_v7 = vmul.bf16 %v1053_v20, %v925_v30  ;;  %v3765_v37 = vadd.bf16 %v3459_v19, %v697_v34  ;;  %v1305_v4 = vadd.bf16 1056980736, %v1241_v59 }
 0x1f3   :  { %v862_v33 = vmul.bf16 %v3762_v46, %v3762_v46  ;;  %2925 = vtanh.bf16 %v1116_v51  ;;  %v1368_v60 = vmul.bf16 %v1304_v24, %v3718_v61  ;;  %v926_v36 = vmul.bf16 1061961548, %v3762_v46 }
 0x1f4   :  { %v863_v12 = vmul.bf16 %v3765_v37, %v3765_v37  ;;  %v507_v22 = vpop.f32.mrb[64].mxu0  ;;  %v1369_v48 = vmul.bf16 %v1305_v4, %v3721_v39  ;;  %2927 = vtanh.bf16 %v1117_v7  ;;  %v927_v59 = vmul.bf16 1061961548, %v3765_v37 }
 0x1f5   :  { %v990_v32 = vmul.bf16 1027030327, %v862_v33  ;;  %v509_v3 = vpop.f32.mrb[65].mxu0  ;;  %v2863_v33 = vld [vmem:[#allocation11 + $0x10] sm:$0xff]  }
 0x1f6   :  { %v2922_v2 = vpop.eup %2921  ;;  %v991_v41 = vmul.bf16 1027030327, %v863_v12  ;;  %v511_v1 = vpop.f32.mrb[66].mxu0  ;;  %1664 = vmatprep.mubr.bf16.mxu1 %v1369_v48  ;;  %2715 = vmatprep.subr.bf16.mxu0 %v2863_v33 }
 0x1f7   :  { %v2924_v15 = vpop.eup %2923  ;;  %v1054_v8 = vadd.bf16 1065369472, %v990_v32  ;;  %v698_v30 = vpack.c.bf16 %v511_v1, %v507_v22  ;;  %v513_v20 = vpop.f32.mrb[67].mxu0  ;;  %1665 = vmatmul.mubr.bf16.gmra.mrb[80].mxu1 %v1368_v60  ;;  %v1242_v34 = vmul.bf16 1056980736, %v2922_v2  ;;  %2716 = vmatpush3.bf16.msra.mxu0 %v2863_v33 }
 0x1f8   :  { %v1055_v39 = vadd.bf16 1065369472, %v991_v41  ;;  %v699_v51 = vpack.c.bf16 %v513_v20, %v509_v3  ;;  %v1243_v7 = vmul.bf16 1056980736, %v2924_v15  ;;  %v2864_v15 = vld [vmem:[#allocation11 + $0x18] sm:$0xff]  }
 0x1f9   :  { %v1118_v4 = vmul.bf16 %v1054_v8, %v926_v36  ;;  %v3776_v61 = vadd.bf16 %v3456_v17, %v698_v30  ;;  %v1306_v24 = vadd.bf16 1056980736, %v1242_v34  ;;  %2717 = vmatprep.subr.bf16.mxu0 %v2864_v15 }
 0x1fa   :  { %v1119_v12 = vmul.bf16 %v1055_v39, %v927_v59  ;;  %v3779_v48 = vadd.bf16 %v3459_v19, %v699_v51  ;;  %v1307_v32 = vadd.bf16 1056980736, %v1243_v7 }
 0x1fb   :  { %v864_v22 = vmul.bf16 %v3776_v61, %v3776_v61  ;;  %2929 = vtanh.bf16 %v1118_v4  ;;  %v1370_v1 = vmul.bf16 %v1306_v24, %v3734_v38  ;;  %v928_v30 = vmul.bf16 1061961548, %v3776_v61  ;;  %2718 = vmatpush3.bf16.msra.mxu0 %v2864_v15 }
 0x1fc   :  { %v865_v3 = vmul.bf16 %v3779_v48, %v3779_v48  ;;  %v517_v60 = vpop.f32.mrb[68].mxu0  ;;  %v1371_v2 = vmul.bf16 %v1307_v32, %v3737_v62  ;;  %2931 = vtanh.bf16 %v1119_v12  ;;  %v929_v62 = vmul.bf16 1061961548, %v3779_v48 }
 0x1fd   :  { %v992_v36 = vmul.bf16 1027030327, %v864_v22  ;;  %v519_v41 = vpop.f32.mrb[69].mxu0 }
 0x1fe   :  { %v2926_v8 = vpop.eup %2925  ;;  %v993_v20 = vmul.bf16 1027030327, %v865_v3  ;;  %v521_v34 = vpop.f32.mrb[70].mxu0  ;;  %1672 = vmatprep.mubr.bf16.mxu1 %v1371_v2  ;;  %v2865_v3 = vld [vmem:[#allocation11 + $0x20] sm:$0xff]  }
 0x1ff   :  { %v2928_v59 = vpop.eup %2927  ;;  %v1056_v39 = vadd.bf16 1065369472, %v992_v36  ;;  %v700_v51 = vpack.c.bf16 %v521_v34, %v517_v60  ;;  %v523_v7 = vpop.f32.mrb[71].mxu0  ;;  %1673 = vmatmul.mubr.bf16.gmra.mrb[84].mxu1 %v1370_v1  ;;  %v1244_v4 = vmul.bf16 1056980736, %v2926_v8  ;;  %2719 = vmatprep.subr.bf16.mxu0 %v2865_v3 }
 0x200   :  { %v1057_v33 = vadd.bf16 1065369472, %v993_v20  ;;  %v701_v12 = vpack.c.bf16 %v523_v7, %v519_v41  ;;  %v1245_v32 = vmul.bf16 1056980736, %v2928_v59  ;;  %2720 = vmatpush3.bf16.msra.mxu0 %v2865_v3  ;;  %v2866_v59 = vld [vmem:[#allocation11 + $0x28] sm:$0xff]  }
 0x201   :  { %v1120_v38 = vmul.bf16 %v1056_v39, %v928_v30  ;;  %v3790_v24 = vadd.bf16 %v3456_v17, %v700_v51  ;;  %v1308_v22 = vadd.bf16 1056980736, %v1244_v4  ;;  %2721 = vmatprep.subr.bf16.mxu0 %v2866_v59 }
 0x202   :  { %v1121_v2 = vmul.bf16 %v1057_v33, %v929_v62  ;;  %v3793_v36 = vadd.bf16 %v3459_v19, %v701_v12  ;;  %v1309_v60 = vadd.bf16 1056980736, %v1245_v32 }
 0x203   :  { %v866_v1 = vmul.bf16 %v3790_v24, %v3790_v24  ;;  %2933 = vtanh.bf16 %v1120_v38  ;;  %v1372_v34 = vmul.bf16 %v1308_v22, %v3748_v50  ;;  %v930_v51 = vmul.bf16 1061961548, %v3790_v24 }
 0x204   :  { %v867_v41 = vmul.bf16 %v3793_v36, %v3793_v36  ;;  %v527_v15 = vpop.f32.mrb[72].mxu0  ;;  %v1373_v8 = vmul.bf16 %v1309_v60, %v3751_v11  ;;  %2935 = vtanh.bf16 %v1121_v2  ;;  %v931_v11 = vmul.bf16 1061961548, %v3793_v36  ;;  %2722 = vmatpush3.bf16.msra.mxu0 %v2866_v59 }
 0x205   :  { %v994_v30 = vmul.bf16 1027030327, %v866_v1  ;;  %v529_v20 = vpop.f32.mrb[73].mxu0 }
 0x206   :  { %v2930_v39 = vpop.eup %2929  ;;  %v995_v7 = vmul.bf16 1027030327, %v867_v41  ;;  %v531_v4 = vpop.f32.mrb[74].mxu0  ;;  %1680 = vmatprep.mubr.bf16.mxu1 %v1373_v8  ;;  %v2867_v41 = vld [vmem:[#allocation11 + $0x30] sm:$0xff]  }
 0x207   :  { %v2932_v62 = vpop.eup %2931  ;;  %v1058_v33 = vadd.bf16 1065369472, %v994_v30  ;;  %v702_v12 = vpack.c.bf16 %v531_v4, %v527_v15  ;;  %v533_v32 = vpop.f32.mrb[75].mxu0  ;;  %1681 = vmatmul.mubr.bf16.gmra.mrb[88].mxu1 %v1372_v34  ;;  %v1246_v38 = vmul.bf16 1056980736, %v2930_v39  ;;  %2723 = vmatprep.subr.bf16.mxu0 %v2867_v41 }
 0x208   :  { %v1059_v3 = vadd.bf16 1065369472, %v995_v7  ;;  %v703_v2 = vpack.c.bf16 %v533_v32, %v529_v20  ;;  %v1247_v60 = vmul.bf16 1056980736, %v2932_v62  ;;  %2724 = vmatpush3.bf16.msra.mxu0 %v2867_v41  ;;  %v2868_v62 = vld [vmem:[#allocation11 + $0x38] sm:$0xff]  }
 0x209   :  { %v1122_v50 = vmul.bf16 %v1058_v33, %v930_v51  ;;  %v3804_v22 = vadd.bf16 %v3456_v17, %v702_v12  ;;  %v1310_v1 = vadd.bf16 1056980736, %v1246_v38  ;;  %2725 = vmatprep.subr.bf16.mxu0 %v2868_v62 }
 0x20a   :  { %v1123_v8 = vmul.bf16 %v1059_v3, %v931_v11  ;;  %v3807_v30 = vadd.bf16 %v3459_v19, %v703_v2  ;;  %v1311_v15 = vadd.bf16 1056980736, %v1247_v60 }
 0x20b   :  { %v868_v34 = vmul.bf16 %v3804_v22, %v3804_v22  ;;  %2937 = vtanh.bf16 %v1122_v50  ;;  %v1374_v4 = vmul.bf16 %v1310_v1, %v3762_v46  ;;  %v932_v12 = vmul.bf16 1061961548, %v3804_v22 }
 0x20c   :  { %v869_v20 = vmul.bf16 %v3807_v30, %v3807_v30  ;;  %v537_v59 = vpop.f32.mrb[76].mxu0  ;;  %v1375_v39 = vmul.bf16 %v1311_v15, %v3765_v37  ;;  %2939 = vtanh.bf16 %v1123_v8  ;;  %v933_v37 = vmul.bf16 1061961548, %v3807_v30  ;;  %2726 = vmatpush3.bf16.msra.mxu0 %v2868_v62 }
 0x20d   :  { %v996_v51 = vmul.bf16 1027030327, %v868_v34  ;;  %v539_v7 = vpop.f32.mrb[77].mxu0 }
 0x20e   :  { %v2934_v33 = vpop.eup %2933  ;;  %v997_v32 = vmul.bf16 1027030327, %v869_v20  ;;  %v541_v38 = vpop.f32.mrb[78].mxu0  ;;  %1688 = vmatprep.mubr.bf16.mxu1 %v1375_v39 }
 0x20f   :  { %v2936_v11 = vpop.eup %2935  ;;  %v1060_v3 = vadd.bf16 1065369472, %v996_v51  ;;  %v704_v2 = vpack.c.bf16 %v541_v38, %v537_v59  ;;  %v543_v60 = vpop.f32.mrb[79].mxu0  ;;  %1689 = vmatmul.mubr.bf16.gmra.mrb[92].mxu1 %v1374_v4  ;;  %v1248_v50 = vmul.bf16 1056980736, %v2934_v33 }
 0x210   :  { %v1061_v41 = vadd.bf16 1065369472, %v997_v32  ;;  %v705_v8 = vpack.c.bf16 %v543_v60, %v539_v7  ;;  %v1249_v15 = vmul.bf16 1056980736, %v2936_v11 }
 0x211   :  { %v1124_v46 = vmul.bf16 %v1060_v3, %v932_v12  ;;  %v3818_v1 = vadd.bf16 %v3456_v17, %v704_v2  ;;  %v1312_v34 = vadd.bf16 1056980736, %v1248_v50 }
 0x212   :  { %v1125_v20 = vmul.bf16 %v1061_v41, %v933_v37  ;;  %v3821_v39 = vadd.bf16 %v3459_v19, %v705_v8  ;;  %v1313_v59 = vadd.bf16 1056980736, %v1249_v15 }
 0x213   :  { %v870_v51 = vmul.bf16 %v3818_v1, %v3818_v1  ;;  %2941 = vtanh.bf16 %v1124_v46  ;;  %v1376_v32 = vmul.bf16 %v1312_v34, %v3776_v61  ;;  %v934_v11 = vmul.bf16 1061961548, %v3818_v1 }
 0x214   :  { %v871_v4 = vmul.bf16 %v3821_v39, %v3821_v39  ;;  %v547_v7 = vpop.f32.mrb[80].mxu0  ;;  %v1377_v62 = vmul.bf16 %v1313_v59, %v3779_v48  ;;  %2943 = vtanh.bf16 %v1125_v20  ;;  %v935_v15 = vmul.bf16 1061961548, %v3821_v39 }
 0x215   :  { %v998_v33 = vmul.bf16 1027030327, %v870_v51  ;;  %v549_v12 = vpop.f32.mrb[81].mxu0 }
 0x216   :  { %v2938_v38 = vpop.eup %2937  ;;  %v999_v3 = vmul.bf16 1027030327, %v871_v4  ;;  %v551_v2 = vpop.f32.mrb[82].mxu0  ;;  %1696 = vmatprep.mubr.bf16.mxu1 %v1377_v62 }
 0x217   :  { %v2940_v60 = vpop.eup %2939  ;;  %v1062_v50 = vadd.bf16 1065369472, %v998_v33  ;;  %v706_v37 = vpack.c.bf16 %v551_v2, %v547_v7  ;;  %v553_v41 = vpop.f32.mrb[83].mxu0  ;;  %1697 = vmatmul.mubr.bf16.gmra.mrb[96].mxu1 %v1376_v32  ;;  %v1250_v8 = vmul.bf16 1056980736, %v2938_v38 }
 0x218   :  { %v1063_v48 = vadd.bf16 1065369472, %v999_v3  ;;  %v707_v46 = vpack.c.bf16 %v553_v41, %v549_v12  ;;  %v1251_v20 = vmul.bf16 1056980736, %v2940_v60 }
 0x219   :  { %v1126_v59 = vmul.bf16 %v1062_v50, %v934_v11  ;;  %v3832_v61 = vadd.bf16 %v3456_v17, %v706_v37  ;;  %v1314_v34 = vadd.bf16 1056980736, %v1250_v8 }
 0x21a   :  { %v1127_v51 = vmul.bf16 %v1063_v48, %v935_v15  ;;  %v3835_v4 = vadd.bf16 %v3459_v19, %v707_v46  ;;  %v1315_v62 = vadd.bf16 1056980736, %v1251_v20 }
 0x21b   :  { %v872_v7 = vmul.bf16 %v3832_v61, %v3832_v61  ;;  %2945 = vtanh.bf16 %v1126_v59  ;;  %v1378_v3 = vmul.bf16 %v1314_v34, %v3790_v24  ;;  %v936_v60 = vmul.bf16 1061961548, %v3832_v61 }
 0x21c   :  { %v873_v33 = vmul.bf16 %v3835_v4, %v3835_v4  ;;  %v557_v32 = vpop.f32.mrb[84].mxu0  ;;  %v1379_v12 = vmul.bf16 %v1315_v62, %v3793_v36  ;;  %2947 = vtanh.bf16 %v1127_v51  ;;  %v937_v20 = vmul.bf16 1061961548, %v3835_v4 }
 0x21d   :  { %v1000_v38 = vmul.bf16 1027030327, %v872_v7  ;;  %v559_v11 = vpop.f32.mrb[85].mxu0  ;;  %v4216_v24 = vpack.c.bf16 %v3509_v29, %v3499_v18 }
 0x21e   :  { %v2942_v2 = vpop.eup %2941  ;;  %v1001_v50 = vmul.bf16 1027030327, %v873_v33  ;;  %v561_v37 = vpop.f32.mrb[86].mxu0  ;;  %1704 = vmatprep.mubr.bf16.mxu1 %v1379_v12 }
 0x21f   :  { %v2944_v41 = vpop.eup %2943  ;;  %v1064_v8 = vadd.bf16 1065369472, %v1000_v38  ;;  %v708_v15 = vpack.c.bf16 %v561_v37, %v557_v32  ;;  %v563_v48 = vpop.f32.mrb[87].mxu0  ;;  %1705 = vmatmul.mubr.bf16.gmra.mrb[100].mxu1 %v1378_v3  ;;  %v1252_v46 = vmul.bf16 1056980736, %v2942_v2  ;;  %v3849_v34 = vadd.bf16 %v3459_v19, %v4216_v24 }
 0x220   :  { %v1065_v36 = vadd.bf16 1065369472, %v1001_v50  ;;  %v709_v59 = vpack.c.bf16 %v563_v48, %v559_v11  ;;  %v1253_v51 = vmul.bf16 1056980736, %v2944_v41  ;;  %v4217_v11 = vpack.c.bf16 %v3504_v25, %v3497_v13 }
 0x221   :  { %v1128_v62 = vmul.bf16 %v1064_v8, %v936_v60  ;;  %v3852_v7 = vadd.bf16 %v3456_v17, %v708_v15  ;;  %v1316_v33 = vadd.bf16 1056980736, %v1252_v46  ;;  %v881_v50 = vmul.bf16 %v3849_v34, %v3849_v34 }
 0x222   :  { %v1129_v32 = vmul.bf16 %v1065_v36, %v937_v20  ;;  %v3855_v12 = vadd.bf16 %v3459_v19, %v709_v59  ;;  %v1317_v38 = vadd.bf16 1056980736, %v1253_v51  ;;  %v3861_v3 = vadd.bf16 %v3456_v17, %v4217_v11 }
 0x223   :  { %v874_v18 = vmul.bf16 %v3852_v7, %v3852_v7  ;;  %2949 = vtanh.bf16 %v1128_v62  ;;  %v1380_v13 = vmul.bf16 %v1316_v33, %v3804_v22  ;;  %v938_v8 = vmul.bf16 1061961548, %v3852_v7 }
 0x224   :  { %v875_v29 = vmul.bf16 %v3855_v12, %v3855_v12  ;;  %v567_v2 = vpop.f32.mrb[88].mxu0  ;;  %v1381_v60 = vmul.bf16 %v1317_v38, %v3807_v30  ;;  %2951 = vtanh.bf16 %v1129_v32  ;;  %v880_v20 = vmul.bf16 %v3861_v3, %v3861_v3 }
 0x225   :  { %v1002_v37 = vmul.bf16 1027030327, %v874_v18  ;;  %v569_v41 = vpop.f32.mrb[89].mxu0  ;;  %v939_v24 = vmul.bf16 1061961548, %v3855_v12 }
 0x226   :  { %v2946_v25 = vpop.eup %2945  ;;  %v1003_v15 = vmul.bf16 1027030327, %v875_v29  ;;  %v571_v48 = vpop.f32.mrb[90].mxu0  ;;  %1712 = vmatprep.mubr.bf16.mxu1 %v1381_v60  ;;  %v1009_v33 = vmul.bf16 1027030327, %v881_v50  ;;  %v4218_v29 = vpack.c.bf16 %v3535_v63, %v3525_v53 }
 0x227   :  { %v2948_v46 = vpop.eup %2947  ;;  %v1066_v36 = vadd.bf16 1065369472, %v1002_v37  ;;  %v710_v30 = vpack.c.bf16 %v571_v48, %v567_v2  ;;  %v573_v59 = vpop.f32.mrb[91].mxu0  ;;  %1713 = vmatmul.mubr.bf16.gmra.mrb[104].mxu1 %v1380_v13  ;;  %v1254_v51 = vmul.bf16 1056980736, %v2946_v25 }
 0x228   :  { %v1067_v62 = vadd.bf16 1065369472, %v1003_v15  ;;  %v711_v32 = vpack.c.bf16 %v573_v59, %v569_v41  ;;  %v1255_v22 = vmul.bf16 1056980736, %v2948_v46  ;;  %v3882_v60 = vadd.bf16 %v3459_v19, %v4218_v29 }
 0x229   :  { %v1130_v38 = vmul.bf16 %v1066_v36, %v938_v8  ;;  %v3876_v11 = vadd.bf16 %v3456_v17, %v710_v30  ;;  %v1318_v18 = vadd.bf16 1056980736, %v1254_v51  ;;  %v3887_v25 = vmul.bf16 1027030327, %v880_v20 }
 0x22a   :  { %v1131_v2 = vmul.bf16 %v1067_v62, %v939_v24  ;;  %v3885_v37 = vadd.bf16 %v3459_v19, %v711_v32  ;;  %v1319_v13 = vadd.bf16 1056980736, %v1255_v22  ;;  %v945_v41 = vmul.bf16 1061961548, %v3849_v34 }
 0x22b   :  { %v876_v50 = vmul.bf16 %v3876_v11, %v3876_v11  ;;  %2953 = vtanh.bf16 %v1130_v38  ;;  %v1073_v15 = vadd.bf16 1065369472, %v1009_v33  ;;  %v1382_v36 = vmul.bf16 %v1318_v18, %v3818_v1 }
 0x22c   :  { %v877_v8 = vmul.bf16 %v3885_v37, %v3885_v37  ;;  %v577_v53 = vpop.f32.mrb[92].mxu0  ;;  %v1383_v63 = vmul.bf16 %v1319_v13, %v3821_v39  ;;  %2955 = vtanh.bf16 %v1131_v2  ;;  %v883_v30 = vmul.bf16 %v3882_v60, %v3882_v60 }
 0x22d   :  { %v1004_v48 = vmul.bf16 1027030327, %v876_v50  ;;  %v579_v46 = vpop.f32.mrb[93].mxu0  ;;  %v940_v59 = vmul.bf16 1061961548, %v3876_v11  ;;  %v4219_v18 = vpack.c.bf16 %v3530_v57, %v3523_v49  ;;  %v1137_v57 = vmul.bf16 %v1073_v15, %v945_v41 }
 0x22e   :  { %v2950_v20 = vpop.eup %2949  ;;  %v1005_v51 = vmul.bf16 1027030327, %v877_v8  ;;  %v581_v24 = vpop.f32.mrb[94].mxu0  ;;  %1720 = vmatprep.mubr.bf16.mxu1 %v1383_v63  ;;  %v941_v33 = vmul.bf16 1061961548, %v3885_v37 }
 0x22f   :  { %v2952_v62 = vpop.eup %2951  ;;  %v1068_v32 = vadd.bf16 1065369472, %v1004_v48  ;;  %v712_v22 = vpack.c.bf16 %v581_v24, %v577_v53  ;;  %v583_v38 = vpop.f32.mrb[95].mxu0  ;;  %1721 = vmatmul.mubr.bf16.gmra.mrb[108].mxu1 %v1382_v36  ;;  %v1256_v39 = vmul.bf16 1056980736, %v2950_v20  ;;  %v3904_v13 = vadd.bf16 %v3456_v17, %v4219_v18 }
 0x230   :  { %v1069_v29 = vadd.bf16 1065369472, %v1005_v51  ;;  %v713_v2 = vpack.c.bf16 %v583_v38, %v579_v46  ;;  %v1257_v1 = vmul.bf16 1056980736, %v2952_v62  ;;  %v1011_v53 = vmul.bf16 1027030327, %v883_v30 }
 0x231   :  { %v1132_v50 = vmul.bf16 %v1068_v32, %v940_v59  ;;  %v3907_v8 = vadd.bf16 %v3456_v17, %v712_v22  ;;  %v1320_v63 = vadd.bf16 1056980736, %v1256_v39  ;;  %v4220_v46 = vpack.c.bf16 %v3563_v44, %v3554_v35 }
 0x232   :  { %v1133_v48 = vmul.bf16 %v1069_v29, %v941_v33  ;;  %v3910_v36 = vadd.bf16 %v3459_v19, %v713_v2  ;;  %v1321_v20 = vadd.bf16 1056980736, %v1257_v1  ;;  %v944_v24 = vmul.bf16 1061961548, %v3861_v3 }
 0x233   :  { %v3916_v51 = vadd.bf16 %v3459_v19, %v4220_v46  ;;  %v878_v49 = vmul.bf16 %v3907_v8, %v3907_v8  ;;  %2957 = vtanh.bf16 %v1132_v50  ;;  %v1072_v62 = vadd.bf16 1065369472, %v3887_v25 }
 0x234   :  { %v879_v59 = vmul.bf16 %v3910_v36, %v3910_v36  ;;  %v1385_v30 = vmul.bf16 %v1321_v20, %v3835_v4  ;;  %2959 = vtanh.bf16 %v1133_v48  ;;  %v1384_v35 = vmul.bf16 %v1320_v63, %v3832_v61 }
 0x235   :  { %v1006_v32 = vmul.bf16 1027030327, %v878_v49  ;;  %v882_v22 = vmul.bf16 %v3904_v13, %v3904_v13  ;;  %v947_v38 = vmul.bf16 1061961548, %v3882_v60  ;;  %v1075_v41 = vadd.bf16 1065369472, %v1011_v53 }
 0x236   :  { %v2954_v44 = vpop.eup %2953  ;;  %v1007_v15 = vmul.bf16 1027030327, %v879_v59  ;;  %1728 = vmatprep.mubr.bf16.mxu1 %v1385_v30  ;;  %v885_v4 = vmul.bf16 %v3916_v51, %v3916_v51  ;;  %v942_v33 = vmul.bf16 1061961548, %v3907_v8  ;;  %v943_v61 = vmul.bf16 1061961548, %v3910_v36 }
 0x237   :  { %v2956_v39 = vpop.eup %2955  ;;  %v1070_v29 = vadd.bf16 1065369472, %v1006_v32  ;;  %1729 = vmatmul.mubr.bf16.gmra.mrb[112].mxu1 %v1384_v35  ;;  %v1258_v25 = vmul.bf16 1056980736, %v2954_v44  ;;  %2961 = vtanh.bf16 %v1137_v57  ;;  %v1010_v63 = vmul.bf16 1027030327, %v882_v22 }
 0x238   :  { %v1071_v2 = vadd.bf16 1065369472, %v1007_v15  ;;  %v1259_v1 = vmul.bf16 1056980736, %v2956_v39  ;;  %v1136_v20 = vmul.bf16 %v1072_v62, %v944_v24  ;;  %v1139_v46 = vmul.bf16 %v1075_v41, %v947_v38 }
 0x239   :  { %v1134_v18 = vmul.bf16 %v1070_v29, %v942_v33  ;;  %v1322_v50 = vadd.bf16 1056980736, %v1258_v25  ;;  %v4221_v49 = vpack.c.bf16 %v3559_v23, %v3548_v26  ;;  %v1013_v30 = vmul.bf16 1027030327, %v885_v4 }
 0x23a   :  { %v1135_v53 = vmul.bf16 %v1071_v2, %v943_v61  ;;  %v1323_v48 = vadd.bf16 1056980736, %v1259_v1  ;;  %v4222_v32 = vpack.c.bf16 %v3589_v28, %v3580_v16  ;;  %v946_v44 = vmul.bf16 1061961548, %v3904_v13 }
 0x23b   :  { %v3937_v59 = vadd.bf16 %v3456_v17, %v4221_v49  ;;  %2963 = vtanh.bf16 %v1134_v18  ;;  %v1386_v24 = vmul.bf16 %v1322_v50, %v3852_v7  ;;  %v1074_v26 = vadd.bf16 1065369472, %v1010_v63 }
 0x23c   :  { %v3943_v57 = vadd.bf16 %v3459_v19, %v4222_v32  ;;  %v1387_v35 = vmul.bf16 %v1323_v48, %v3855_v12  ;;  %2965 = vtanh.bf16 %v1135_v53  ;;  %v949_v38 = vmul.bf16 1061961548, %v3916_v51 }
 0x23d   :  { %v884_v22 = vmul.bf16 %v3937_v59, %v3937_v59  ;;  %2967 = vtanh.bf16 %v1136_v20  ;;  %v1077_v28 = vadd.bf16 1065369472, %v1013_v30  ;;  %v4223_v15 = vpack.c.bf16 %v3585_v21, %v3574_v5 }
 0x23e   :  { %v2958_v62 = vpop.eup %2957  ;;  %1736 = vmatprep.mubr.bf16.mxu1 %v1387_v35  ;;  %v887_v12 = vmul.bf16 %v3943_v57, %v3943_v57  ;;  %2969 = vtanh.bf16 %v1139_v46  ;;  %v1138_v29 = vmul.bf16 %v1074_v26, %v946_v44  ;;  %v4224_v1 = vpack.c.bf16 %v3613_v0, %v3604_v58 }
 0x23f   :  { %v2960_v23 = vpop.eup %2959  ;;  %1737 = vmatmul.mubr.bf16.gmra.mrb[116].mxu1 %v1386_v24  ;;  %v1260_v16 = vmul.bf16 1056980736, %v2958_v62  ;;  %v3957_v39 = vadd.bf16 %v3456_v17, %v4223_v15  ;;  %v1012_v25 = vmul.bf16 1027030327, %v884_v22  ;;  %v1141_v61 = vmul.bf16 %v1077_v28, %v949_v38 }
 0x240   :  { %v1261_v41 = vmul.bf16 1056980736, %v2960_v23  ;;  %v1015_v2 = vmul.bf16 1027030327, %v887_v12  ;;  %v3963_v18 = vadd.bf16 %v3459_v19, %v4224_v1  ;;  %v948_v21 = vmul.bf16 1061961548, %v3937_v59 }
 0x241   :  { %v1324_v7 = vadd.bf16 1056980736, %v1260_v16  ;;  %v886_v53 = vmul.bf16 %v3957_v39, %v3957_v39  ;;  %v1076_v46 = vadd.bf16 1065369472, %v1012_v25  ;;  %v951_v49 = vmul.bf16 1061961548, %v3943_v57 }
 0x242   :  { %v1325_v4 = vadd.bf16 1056980736, %v1261_v41  ;;  %v2962_v33 = vpop.eup %2961  ;;  %2971 = vtanh.bf16 %v1138_v29  ;;  %v1079_v0 = vadd.bf16 1065369472, %v1015_v2  ;;  %v4225_v23 = vpack.c.bf16 %v3609_v10, %v3598_v54 }
 0x243   :  { %v1388_v63 = vmul.bf16 %v1324_v7, %v3876_v11  ;;  %v1265_v48 = vmul.bf16 1056980736, %v2962_v33  ;;  %2973 = vtanh.bf16 %v1141_v61  ;;  %v1140_v44 = vmul.bf16 %v1076_v46, %v948_v21 }
 0x244   :  { %v1389_v50 = vmul.bf16 %v1325_v4, %v3885_v37  ;;  %v889_v37 = vmul.bf16 %v3963_v18, %v3963_v18  ;;  %v1014_v26 = vmul.bf16 1027030327, %v886_v53  ;;  %v3977_v22 = vadd.bf16 %v3456_v17, %v4225_v23 }
 0x245   :  { %v1329_v24 = vadd.bf16 1056980736, %v1265_v48  ;;  %v1143_v38 = vmul.bf16 %v1079_v0, %v951_v49  ;;  %v4226_v28 = vpack.c.bf16 %v3639_v31, %v3630_v6  ;;  %v950_v10 = vmul.bf16 1061961548, %v3957_v39 }
 0x246   :  { %v2964_v5 = vpop.eup %2963  ;;  %1744 = vmatprep.mubr.bf16.mxu1 %v1389_v50  ;;  %v1017_v16 = vmul.bf16 1027030327, %v889_v37  ;;  %v1078_v33 = vadd.bf16 1065369472, %v1014_v26  ;;  %v888_v29 = vmul.bf16 %v3977_v22, %v3977_v22  ;;  %2975 = vtanh.bf16 %v1140_v44 }
 0x247   :  { %v2966_v20 = vpop.eup %2965  ;;  %1745 = vmatmul.mubr.bf16.gmra.mrb[120].mxu1 %v1388_v63  ;;  %v1262_v58 = vmul.bf16 1056980736, %v2964_v5  ;;  %v3983_v12 = vadd.bf16 %v3459_v19, %v4226_v28  ;;  %v1393_v4 = vmul.bf16 %v1329_v24, %v3849_v34  ;;  %v953_v6 = vmul.bf16 1061961548, %v3963_v18 }
 0x248   :  { %v1263_v11 = vmul.bf16 1056980736, %v2966_v20  ;;  %v2968_v32 = vpop.eup %2967  ;;  %v1081_v31 = vadd.bf16 1065369472, %v1017_v16  ;;  %2977 = vtanh.bf16 %v1143_v38  ;;  %v4227_v34 = vpack.c.bf16 %v3635_v40, %v3624_v27 }
 0x249   :  { %v1326_v30 = vadd.bf16 1056980736, %v1262_v58  ;;  %v2970_v62 = vpop.eup %2969  ;;  %v1264_v15 = vmul.bf16 1056980736, %v2968_v32  ;;  %v1142_v50 = vmul.bf16 %v1078_v33, %v950_v10  ;;  %v1016_v63 = vmul.bf16 1027030327, %v888_v29 }
 0x24a   :  { %v1327_v35 = vadd.bf16 1056980736, %v1263_v11  ;;  %v1267_v54 = vmul.bf16 1056980736, %v2970_v62  ;;  %v3998_v61 = vadd.bf16 %v3456_v17, %v4227_v34  ;;  %v1145_v5 = vmul.bf16 %v1081_v31, %v953_v6 }
 0x24b   :  { %v1390_v7 = vmul.bf16 %v1326_v30, %v3907_v8  ;;  %v1328_v8 = vadd.bf16 1056980736, %v1264_v15  ;;  %v4228_v53 = vpack.c.bf16 %v3665_v43, %v3656_v52  ;;  %v952_v58 = vmul.bf16 1061961548, %v3977_v22 }
 0x24c   :  { %v1391_v41 = vmul.bf16 %v1327_v35, %v3910_v36  ;;  %v891_v36 = vmul.bf16 %v3983_v12, %v3983_v12  ;;  %v1331_v2 = vadd.bf16 1056980736, %v1267_v54  ;;  %v890_v27 = vmul.bf16 %v3998_v61, %v3998_v61 }
 0x24d   :  { %v2972_v25 = vpop.eup %2971  ;;  %v4004_v48 = vadd.bf16 %v3459_v19, %v4228_v53  ;;  %v1392_v20 = vmul.bf16 %v1328_v8, %v3861_v3  ;;  %v1080_v0 = vadd.bf16 1065369472, %v1016_v63  ;;  %2979 = vtanh.bf16 %v1142_v50  ;;  %v1857_v8 = vld [vmem:[#allocation10] sm:$0x1] }
 0x24e   :  { %1752 = vmatprep.mubr.bf16.mxu1 %v1391_v41  ;;  %v2974_v1 = vpop.eup %2973  ;;  %v1019_v21 = vmul.bf16 1027030327, %v891_v36  ;;  %v1266_v46 = vmul.bf16 1056980736, %v2972_v25  ;;  %v1395_v40 = vmul.bf16 %v1331_v2, %v3882_v60  ;;  %v955_v37 = vmul.bf16 1061961548, %v3983_v12 }
 0x24f   :  { %1753 = vmatmul.mubr.bf16.gmra.mrb[124].mxu1 %v1390_v7  ;;  %v1269_v49 = vmul.bf16 1056980736, %v2974_v1  ;;  %v893_v43 = vmul.bf16 %v4004_v48, %v4004_v48  ;;  %2981 = vtanh.bf16 %v1145_v5  ;;  %v4229_v3 = vpack.c.bf16 %v3661_v45, %v3650_v9 }
 0x250   :  { %1760 = vmatprep.mubr.bf16.mxu1 %v1393_v4  ;;  %v1083_v52 = vadd.bf16 1065369472, %v1019_v21  ;;  %v1330_v60 = vadd.bf16 1056980736, %v1266_v46  ;;  %v1018_v32 = vmul.bf16 1027030327, %v890_v27  ;;  %v1144_v62 = vmul.bf16 %v1080_v0, %v952_v58 }
 0x251   :  { %v4018_v11 = vadd.bf16 %v3456_v17, %v4229_v3  ;;  %v2976_v30 = vpop.eup %2975  ;;  %v1333_v35 = vadd.bf16 1056980736, %v1269_v49  ;;  %v1021_v26 = vmul.bf16 1027030327, %v893_v43  ;;  %v4230_v23 = vpack.c.bf16 %v3689_v47, %v3680_v56 }
 0x252   :  { %v1147_v44 = vmul.bf16 %v1083_v52, %v955_v37  ;;  %v1394_v45 = vmul.bf16 %v1330_v60, %v3904_v13  ;;  %v1268_v16 = vmul.bf16 1056980736, %v2976_v30  ;;  %v954_v28 = vmul.bf16 1061961548, %v3998_v61 }
 0x253   :  { %v2978_v24 = vpop.eup %2977  ;;  %v4024_v38 = vadd.bf16 %v3459_v19, %v4230_v23  ;;  %v892_v9 = vmul.bf16 %v4018_v11, %v4018_v11  ;;  %v1082_v41 = vadd.bf16 1065369472, %v1018_v32  ;;  %v1397_v7 = vmul.bf16 %v1333_v35, %v3916_v51 }
 0x254   :  { %v1271_v15 = vmul.bf16 1056980736, %v2978_v24  ;;  %2983 = vtanh.bf16 %v1144_v62  ;;  %v957_v4 = vmul.bf16 1061961548, %v4004_v48  ;;  %v1085_v56 = vadd.bf16 1065369472, %v1021_v26 }
 0x255   :  { %v895_v19 = vmul.bf16 %v4024_v38, %v4024_v38  ;;  %2985 = vtanh.bf16 %v1147_v44  ;;  %v1020_v47 = vmul.bf16 1027030327, %v892_v9  ;;  %v1332_v54 = vadd.bf16 1056980736, %v1268_v16 }
 0x256   :  { %v1146_v10 = vmul.bf16 %v1082_v41, %v954_v28  ;;  %v4231_v33 = vpack.c.bf16 %v3685_v42, %v3674_v55  ;;  %v1335_v29 = vadd.bf16 1056980736, %v1271_v15  ;;  %v1149_v31 = vmul.bf16 %v1085_v56, %v957_v4 }
 0x257   :  { %1761 = vmatmul.mubr.bf16.gmra.mrb[128].mxu1 %v1392_v20  ;;  %v1023_v36 = vmul.bf16 1027030327, %v895_v19  ;;  %v956_v25 = vmul.bf16 1061961548, %v4018_v11  ;;  %v1084_v34 = vadd.bf16 1065369472, %v1020_v47  ;;  %v1396_v2 = vmul.bf16 %v1332_v54, %v3937_v59 }
 0x258   :  { %1768 = vmatprep.mubr.bf16.mxu1 %v1395_v40  ;;  %v2980_v13 = vpop.eup %2979  ;;  %v4038_v51 = vadd.bf16 %v3456_v17, %v4231_v33  ;;  %v1399_v63 = vmul.bf16 %v1335_v29, %v3943_v57  ;;  %2987 = vtanh.bf16 %v1146_v10  ;;  %v1859_v17 = vpack.i.b16 %v1857_v8, %v1857_v8 }
 0x259   :  { %v1270_v1 = vmul.bf16 1056980736, %v2980_v13  ;;  %v959_v55 = vmul.bf16 1061961548, %v4024_v38  ;;  %v1087_v5 = vadd.bf16 1065369472, %v1023_v36  ;;  %2989 = vtanh.bf16 %v1149_v31 }
 0x25a   :  { %v2982_v6 = vpop.eup %2981  ;;  %v894_v50 = vmul.bf16 %v4038_v51, %v4038_v51  ;;  %v1148_v20 = vmul.bf16 %v1084_v34, %v956_v25  ;;  %v4047_v58 = vrot.slane %v1859_v17, %v3453_v14  ;;  %v958_v37 = vmul.bf16 1061961548, %v4038_v51 }
 0x25b   :  { %v1273_v42 = vmul.bf16 1056980736, %v2982_v6  ;;  %v1334_v21 = vadd.bf16 1056980736, %v1270_v1  ;;  %v1151_v57 = vmul.bf16 %v1087_v5, %v959_v55 }
 0x25c   :  { %v1022_v46 = vmul.bf16 1027030327, %v894_v50  ;;  %2991 = vtanh.bf16 %v1148_v20 }
 0x25d   :  { %v1337_v27 = vadd.bf16 1056980736, %v1273_v42  ;;  %v1398_v3 = vmul.bf16 %v1334_v21, %v3957_v39  ;;  %2993 = vtanh.bf16 %v1151_v57 }
 0x25e   :  { %v1086_v30 = vadd.bf16 1065369472, %v1022_v46 }
 0x25f   :  { %1769 = vmatmul.mubr.bf16.gmra.mrb[132].mxu1 %v1394_v45  ;;  %v2984_v53 = vpop.eup %2983  ;;  %v1401_v32 = vmul.bf16 %v1337_v27, %v3963_v18 }
 0x260   :  { %1776 = vmatprep.mubr.bf16.mxu1 %v1397_v7  ;;  %v2986_v40 = vpop.eup %2985  ;;  %v1272_v60 = vmul.bf16 1056980736, %v2984_v53  ;;  %v1150_v26 = vmul.bf16 %v1086_v30, %v958_v37 }
 0x261   :  { %v1275_v35 = vmul.bf16 1056980736, %v2986_v40 }
 0x262   :  { %v1336_v44 = vadd.bf16 1056980736, %v1272_v60  ;;  %2995 = vtanh.bf16 %v1150_v26 }
 0x263   :  { %v2988_v14 = vpop.eup %2987  ;;  %v1339_v39 = vadd.bf16 1056980736, %v1275_v35 }
 0x264   :  { %v2990_v9 = vpop.eup %2989  ;;  %v1274_v28 = vmul.bf16 1056980736, %v2988_v14  ;;  %v1400_v56 = vmul.bf16 %v1336_v44, %v3977_v22 }
 0x265   :  { %v1403_v19 = vmul.bf16 %v1339_v39, %v3983_v12  ;;  %v1277_v47 = vmul.bf16 1056980736, %v2990_v9 }
 0x266   :  { %v1338_v29 = vadd.bf16 1056980736, %v1274_v28 }
 0x267   :  { %1777 = vmatmul.mubr.bf16.gmra.mrb[136].mxu1 %v1396_v2  ;;  %v2992_v10 = vpop.eup %2991  ;;  %v1341_v31 = vadd.bf16 1056980736, %v1277_v47 }
 0x268   :  { %1784 = vmatprep.mubr.bf16.mxu1 %v1399_v63  ;;  %v2994_v36 = vpop.eup %2993  ;;  %v1276_v25 = vmul.bf16 1056980736, %v2992_v10  ;;  %v1402_v63 = vmul.bf16 %v1338_v29, %v3998_v61 }
 0x269   :  { %v1405_v42 = vmul.bf16 %v1341_v31, %v4004_v48  ;;  %v1279_v17 = vmul.bf16 1056980736, %v2994_v36 }
 0x26a   :  { %v1570_v59 = vpop.f32.mrb[32].mxu1  ;;  %v1340_v20 = vadd.bf16 1056980736, %v1276_v25 }
 0x26b   :  { %v1572_v49 = vpop.f32.mrb[33].mxu1 }
 0x26c   :  { %v1573_v0 = vpop.f32.mrb[34].mxu1 }
 0x26d   :  { %v1825_v52 = vpack.c.bf16 %v1573_v0, %v1570_v59  ;;  %v1575_v43 = vpop.f32.mrb[35].mxu1  ;;  %v2996_v21 = vpop.eup %2995  ;;  %v1343_v59 = vadd.bf16 1056980736, %v1279_v17 }
 0x26e   :  { %v1278_v57 = vmul.bf16 1056980736, %v2996_v21  ;;  %v1404_v43 = vmul.bf16 %v1340_v20, %v4018_v11 }
 0x26f   :  { %v4053_v24 = vadd.bf16 %v4047_v58, %v1825_v52  ;;  %1785 = vmatmul.mubr.bf16.gmra.mrb[140].mxu1 %v1398_v3  ;;  %v1407_v60 = vmul.bf16 %v1343_v59, %v4024_v38 }
 0x270   :  { %1792 = vmatprep.mubr.bf16.mxu1 %v1401_v32  ;;  %v1342_v44 = vadd.bf16 1056980736, %v1278_v57 }
 0x271   :  { %v1897_v62 = vmul.bf16 %v4053_v24, %v4053_v24  ;;  %v1929_v41 = vmul.bf16 1061961548, %v4053_v24 }
 0x272   :  { %v1578_v23 = vpop.f32.mrb[36].mxu1 }
 0x273   :  { %v1961_v45 = vmul.bf16 1027030327, %v1897_v62  ;;  %v1580_v16 = vpop.f32.mrb[37].mxu1 }
 0x274   :  { %v1581_v18 = vpop.f32.mrb[38].mxu1 }
 0x275   :  { %v1993_v7 = vadd.bf16 1065369472, %v1961_v45  ;;  %v1826_v15 = vpack.c.bf16 %v1581_v18, %v1578_v23  ;;  %v1583_v4 = vpop.f32.mrb[39].mxu1 }
 0x277   :  { %v2025_v54 = vmul.bf16 %v1993_v7, %v1929_v41  ;;  %v4061_v13 = vadd.bf16 %v4047_v58, %v1826_v15  ;;  %1793 = vmatmul.mubr.bf16.gmra.mrb[144].mxu1 %v1400_v56  ;;  %v1406_v41 = vmul.bf16 %v1342_v44, %v4038_v51 }
 0x278   :  { %1800 = vmatprep.mubr.bf16.mxu1 %v1403_v19 }
 0x279   :  { %v1898_v33 = vmul.bf16 %v4061_v13, %v4061_v13  ;;  %2997 = vtanh.bf16 %v2025_v54  ;;  %v1930_v34 = vmul.bf16 1061961548, %v4061_v13 }
 0x27a   :  { %v1586_v6 = vpop.f32.mrb[40].mxu1 }
 0x27b   :  { %v1962_v22 = vmul.bf16 1027030327, %v1898_v33  ;;  %v1588_v8 = vpop.f32.mrb[41].mxu1 }
 0x27c   :  { %v1589_v12 = vpop.f32.mrb[42].mxu1 }
 0x27d   :  { %v1994_v2 = vadd.bf16 1065369472, %v1962_v22  ;;  %v1827_v1 = vpack.c.bf16 %v1589_v12, %v1586_v6  ;;  %v1591_v50 = vpop.f32.mrb[43].mxu1 }
 0x27f   :  { %v2026_v55 = vmul.bf16 %v1994_v2, %v1930_v34  ;;  %v4069_v5 = vadd.bf16 %v4047_v58, %v1827_v1  ;;  %1801 = vmatmul.mubr.bf16.gmra.mrb[148].mxu1 %v1402_v63 }
 0x280   :  { %1808 = vmatprep.mubr.bf16.mxu1 %v1405_v42 }
 0x281   :  { %2999 = vtanh.bf16 %v2026_v55  ;;  %v1899_v53 = vmul.bf16 %v4069_v5, %v4069_v5  ;;  %v1931_v48 = vmul.bf16 1061961548, %v4069_v5 }
 0x282   :  { %v1594_v46 = vpop.f32.mrb[44].mxu1 }
 0x283   :  { %v1963_v27 = vmul.bf16 1027030327, %v1899_v53  ;;  %v1596_v40 = vpop.f32.mrb[45].mxu1 }
 0x284   :  { %v2998_v61 = vpop.eup %2997  ;;  %v1597_v49 = vpop.f32.mrb[46].mxu1 }
 0x285   :  { %v1995_v0 = vadd.bf16 1065369472, %v1963_v27  ;;  %v1828_v37 = vpack.c.bf16 %v1597_v49, %v1594_v46  ;;  %v1599_v52 = vpop.f32.mrb[47].mxu1  ;;  %v2089_v3 = vmul.bf16 1056980736, %v2998_v61 }
 0x287   :  { %v2027_v30 = vmul.bf16 %v1995_v0, %v1931_v48  ;;  %v4077_v32 = vadd.bf16 %v4047_v58, %v1828_v37  ;;  %1809 = vmatmul.mubr.bf16.gmra.mrb[152].mxu1 %v1404_v43  ;;  %v2121_v35 = vadd.bf16 1056980736, %v2089_v3 }
 0x288   :  { %1816 = vmatprep.mubr.bf16.mxu1 %v1407_v60 }
 0x289   :  { %v1900_v14 = vmul.bf16 %v4077_v32, %v4077_v32  ;;  %v2153_v62 = vmul.bf16 %v2121_v35, %v4053_v24  ;;  %3001 = vtanh.bf16 %v2027_v30  ;;  %v1932_v38 = vmul.bf16 1061961548, %v4077_v32 }
 0x28a   :  { %v1602_v26 = vpop.f32.mrb[48].mxu1 }
 0x28b   :  { %v1964_v23 = vmul.bf16 1027030327, %v1900_v14  ;;  %v1604_v11 = vpop.f32.mrb[49].mxu1  ;;  %2727 = vmatprep.mubr.bf16.mxu0 %v2153_v62 }
 0x28c   :  { %v3000_v39 = vpop.eup %2999  ;;  %v1605_v9 = vpop.f32.mrb[50].mxu1 }
 0x28d   :  { %v2090_v45 = vmul.bf16 1056980736, %v3000_v39  ;;  %v1996_v16 = vadd.bf16 1065369472, %v1964_v23  ;;  %v1829_v18 = vpack.c.bf16 %v1605_v9, %v1602_v26  ;;  %v1607_v28 = vpop.f32.mrb[51].mxu1 }
 0x28f   :  { %v2122_v7 = vadd.bf16 1056980736, %v2090_v45  ;;  %v2028_v15 = vmul.bf16 %v1996_v16, %v1932_v38  ;;  %v1869_v24 = vadd.bf16 %v4047_v58, %v1829_v18  ;;  %1817 = vmatmul.mubr.bf16.gmra.mrb[156].mxu1 %v1406_v41 }
 0x291   :  { %v2154_v4 = vmul.bf16 %v2122_v7, %v4061_v13  ;;  %v1901_v56 = vmul.bf16 %v1869_v24, %v1869_v24  ;;  %3003 = vtanh.bf16 %v2028_v15  ;;  %v1933_v33 = vmul.bf16 1061961548, %v1869_v24 }
 0x292   :  { %v1610_v19 = vpop.f32.mrb[52].mxu1 }
 0x293   :  { %v1965_v47 = vmul.bf16 1027030327, %v1901_v56  ;;  %v1612_v54 = vpop.f32.mrb[53].mxu1  ;;  %2728 = vmatmul.mubr.bf16.vlgmr.msra.gmra.mrb[96].mxu0 %v2154_v4 }
 0x294   :  { %v3002_v10 = vpop.eup %3001  ;;  %v1613_v29 = vpop.f32.mrb[54].mxu1 }
 0x295   :  { %v1997_v6 = vadd.bf16 1065369472, %v1965_v47  ;;  %v1830_v31 = vpack.c.bf16 %v1613_v29, %v1610_v19  ;;  %v1615_v36 = vpop.f32.mrb[55].mxu1  ;;  %v2091_v51 = vmul.bf16 1056980736, %v3002_v10 }
 0x297   :  { %v2029_v22 = vmul.bf16 %v1997_v6, %v1933_v33  ;;  %v1870_v8 = vadd.bf16 %v4047_v58, %v1830_v31  ;;  %v2123_v12 = vadd.bf16 1056980736, %v2091_v51 }
 0x299   :  { %v1902_v25 = vmul.bf16 %v1870_v8, %v1870_v8  ;;  %v2155_v13 = vmul.bf16 %v2123_v12, %v4069_v5  ;;  %3005 = vtanh.bf16 %v2029_v22  ;;  %v1934_v63 = vmul.bf16 1061961548, %v1870_v8 }
 0x29a   :  { %v1618_v34 = vpop.f32.mrb[56].mxu1 }
 0x29b   :  { %v1966_v2 = vmul.bf16 1027030327, %v1902_v25  ;;  %v1620_v1 = vpop.f32.mrb[57].mxu1  ;;  %2731 = vmatprep.mubr.bf16.mxu0 %v2155_v13 }
 0x29c   :  { %v3004_v50 = vpop.eup %3003  ;;  %v1621_v42 = vpop.f32.mrb[58].mxu1 }
 0x29d   :  { %v1998_v17 = vadd.bf16 1065369472, %v1966_v2  ;;  %v1831_v55 = vpack.c.bf16 %v1621_v42, %v1618_v34  ;;  %v1623_v21 = vpop.f32.mrb[59].mxu1  ;;  %v2092_v53 = vmul.bf16 1056980736, %v3004_v50 }
 0x29f   :  { %v2030_v20 = vmul.bf16 %v1998_v17, %v1934_v63  ;;  %v1871_v46 = vadd.bf16 %v4047_v58, %v1831_v55  ;;  %v2124_v59 = vadd.bf16 1056980736, %v2092_v53 }
 0x2a1   :  { %v1903_v27 = vmul.bf16 %v1871_v46, %v1871_v46  ;;  %v2156_v40 = vmul.bf16 %v2124_v59, %v4077_v32  ;;  %3007 = vtanh.bf16 %v2030_v20  ;;  %v1935_v57 = vmul.bf16 1061961548, %v1871_v46 }
 0x2a2   :  { %v1626_v5 = vpop.f32.mrb[60].mxu1 }
 0x2a3   :  { %v1967_v61 = vmul.bf16 1027030327, %v1903_v27  ;;  %v1628_v48 = vpop.f32.mrb[61].mxu1  ;;  %2732 = vmatmul.mubr.bf16.gmra.mrb[100].mxu0 %v2156_v40 }
 0x2a4   :  { %v3006_v49 = vpop.eup %3005  ;;  %v1629_v0 = vpop.f32.mrb[62].mxu1 }
 0x2a5   :  { %v1999_v37 = vadd.bf16 1065369472, %v1967_v61  ;;  %v1832_v52 = vpack.c.bf16 %v1629_v0, %v1626_v5  ;;  %v1631_v43 = vpop.f32.mrb[63].mxu1  ;;  %v2093_v3 = vmul.bf16 1056980736, %v3006_v49 }
 0x2a7   :  { %v2031_v60 = vmul.bf16 %v1999_v37, %v1935_v57  ;;  %v1872_v30 = vadd.bf16 %v4047_v58, %v1832_v52  ;;  %v2125_v35 = vadd.bf16 1056980736, %v2093_v3 }
 0x2a9   :  { %v1904_v14 = vmul.bf16 %v1872_v30, %v1872_v30  ;;  %v2157_v62 = vmul.bf16 %v2125_v35, %v1869_v24  ;;  %3009 = vtanh.bf16 %v2031_v60  ;;  %v1936_v11 = vmul.bf16 1061961548, %v1872_v30 }
 0x2aa   :  { %v1634_v32 = vpop.f32.mrb[64].mxu1 }
 0x2ab   :  { %v1968_v44 = vmul.bf16 1027030327, %v1904_v14  ;;  %v1636_v26 = vpop.f32.mrb[65].mxu1  ;;  %2735 = vmatprep.mubr.bf16.mxu0 %v2157_v62 }
 0x2ac   :  { %v3008_v23 = vpop.eup %3007  ;;  %v1637_v39 = vpop.f32.mrb[66].mxu1 }
 0x2ad   :  { %v2000_v38 = vadd.bf16 1065369472, %v1968_v44  ;;  %v1833_v9 = vpack.c.bf16 %v1637_v39, %v1634_v32  ;;  %v1639_v45 = vpop.f32.mrb[67].mxu1  ;;  %v2094_v16 = vmul.bf16 1056980736, %v3008_v23 }
 0x2af   :  { %v2032_v18 = vmul.bf16 %v2000_v38, %v1936_v11  ;;  %v1873_v28 = vadd.bf16 %v4047_v58, %v1833_v9  ;;  %v2126_v41 = vadd.bf16 1056980736, %v2094_v16 }
 0x2b1   :  { %v1905_v7 = vmul.bf16 %v1873_v28, %v1873_v28  ;;  %v2158_v15 = vmul.bf16 %v2126_v41, %v1870_v8  ;;  %3011 = vtanh.bf16 %v2032_v18  ;;  %v1937_v47 = vmul.bf16 1061961548, %v1873_v28 }
 0x2b2   :  { %v1642_v24 = vpop.f32.mrb[68].mxu1 }
 0x2b3   :  { %v1969_v4 = vmul.bf16 1027030327, %v1905_v7  ;;  %v1644_v56 = vpop.f32.mrb[69].mxu1  ;;  %2736 = vmatmul.mubr.bf16.gmra.mrb[104].mxu0 %v2158_v15 }
 0x2b4   :  { %v3010_v19 = vpop.eup %3009  ;;  %v1645_v54 = vpop.f32.mrb[70].mxu1 }
 0x2b5   :  { %v2001_v10 = vadd.bf16 1065369472, %v1969_v4  ;;  %v1834_v33 = vpack.c.bf16 %v1645_v54, %v1642_v24  ;;  %v1647_v29 = vpop.f32.mrb[71].mxu1  ;;  %v2095_v6 = vmul.bf16 1056980736, %v3010_v19 }
 0x2b7   :  { %v2033_v31 = vmul.bf16 %v2001_v10, %v1937_v47  ;;  %v1874_v36 = vadd.bf16 %v4047_v58, %v1834_v33  ;;  %v2127_v51 = vadd.bf16 1056980736, %v2095_v6 }
 0x2b9   :  { %v1906_v22 = vmul.bf16 %v1874_v36, %v1874_v36  ;;  %v2159_v12 = vmul.bf16 %v2127_v51, %v1871_v46  ;;  %3013 = vtanh.bf16 %v2033_v31  ;;  %v1938_v2 = vmul.bf16 1061961548, %v1874_v36 }
 0x2ba   :  { %v1650_v8 = vpop.f32.mrb[72].mxu1 }
 0x2bb   :  { %v1970_v25 = vmul.bf16 1027030327, %v1906_v22  ;;  %v1652_v13 = vpop.f32.mrb[73].mxu1  ;;  %2739 = vmatprep.mubr.bf16.mxu0 %v2159_v12 }
 0x2bc   :  { %v3012_v34 = vpop.eup %3011  ;;  %v1653_v1 = vpop.f32.mrb[74].mxu1 }
 0x2bd   :  { %v2002_v50 = vadd.bf16 1065369472, %v1970_v25  ;;  %v1835_v63 = vpack.c.bf16 %v1653_v1, %v1650_v8  ;;  %v1655_v42 = vpop.f32.mrb[75].mxu1  ;;  %v2096_v17 = vmul.bf16 1056980736, %v3012_v34 }
 0x2bf   :  { %v2034_v55 = vmul.bf16 %v2002_v50, %v1938_v2  ;;  %v1875_v21 = vadd.bf16 %v4047_v58, %v1835_v63  ;;  %v2128_v53 = vadd.bf16 1056980736, %v2096_v17 }
 0x2c1   :  { %v1907_v20 = vmul.bf16 %v1875_v21, %v1875_v21  ;;  %v2160_v59 = vmul.bf16 %v2128_v53, %v1872_v30  ;;  %3015 = vtanh.bf16 %v2034_v55  ;;  %v1939_v61 = vmul.bf16 1061961548, %v1875_v21 }
 0x2c2   :  { %v1658_v46 = vpop.f32.mrb[76].mxu1 }
 0x2c3   :  { %v1971_v27 = vmul.bf16 1027030327, %v1907_v20  ;;  %v1660_v40 = vpop.f32.mrb[77].mxu1  ;;  %2740 = vmatmul.mubr.bf16.gmra.mrb[108].mxu0 %v2160_v59 }
 0x2c4   :  { %v3014_v5 = vpop.eup %3013  ;;  %v1661_v48 = vpop.f32.mrb[78].mxu1 }
 0x2c5   :  { %v2003_v49 = vadd.bf16 1065369472, %v1971_v27  ;;  %v1836_v57 = vpack.c.bf16 %v1661_v48, %v1658_v46  ;;  %v1663_v0 = vpop.f32.mrb[79].mxu1  ;;  %v2097_v37 = vmul.bf16 1056980736, %v3014_v5 }
 0x2c7   :  { %v2035_v52 = vmul.bf16 %v2003_v49, %v1939_v61  ;;  %v1876_v43 = vadd.bf16 %v4047_v58, %v1836_v57  ;;  %v2129_v3 = vadd.bf16 1056980736, %v2097_v37 }
 0x2c9   :  { %v1908_v60 = vmul.bf16 %v1876_v43, %v1876_v43  ;;  %v2161_v35 = vmul.bf16 %v2129_v3, %v1873_v28  ;;  %3017 = vtanh.bf16 %v2035_v52  ;;  %v1940_v44 = vmul.bf16 1061961548, %v1876_v43 }
 0x2ca   :  { %v1666_v30 = vpop.f32.mrb[80].mxu1 }
 0x2cb   :  { %v1972_v14 = vmul.bf16 1027030327, %v1908_v60  ;;  %v1668_v62 = vpop.f32.mrb[81].mxu1  ;;  %2743 = vmatprep.mubr.bf16.mxu0 %v2161_v35 }
 0x2cc   :  { %v3016_v32 = vpop.eup %3015  ;;  %v1669_v26 = vpop.f32.mrb[82].mxu1 }
 0x2cd   :  { %v2004_v23 = vadd.bf16 1065369472, %v1972_v14  ;;  %v1837_v11 = vpack.c.bf16 %v1669_v26, %v1666_v30  ;;  %v1671_v39 = vpop.f32.mrb[83].mxu1  ;;  %v2098_v38 = vmul.bf16 1056980736, %v3016_v32 }
 0x2cf   :  { %v2036_v9 = vmul.bf16 %v2004_v23, %v1940_v44  ;;  %v1877_v45 = vadd.bf16 %v4047_v58, %v1837_v11  ;;  %v2130_v16 = vadd.bf16 1056980736, %v2098_v38 }
 0x2d1   :  { %v1909_v18 = vmul.bf16 %v1877_v45, %v1877_v45  ;;  %v2162_v41 = vmul.bf16 %v2130_v16, %v1874_v36  ;;  %3019 = vtanh.bf16 %v2036_v9  ;;  %v1941_v4 = vmul.bf16 1061961548, %v1877_v45 }
 0x2d2   :  { %v1674_v28 = vpop.f32.mrb[84].mxu1 }
 0x2d3   :  { %v1973_v7 = vmul.bf16 1027030327, %v1909_v18  ;;  %v1676_v15 = vpop.f32.mrb[85].mxu1  ;;  %2744 = vmatmul.mubr.bf16.gmra.mrb[112].mxu0 %v2162_v41 }
 0x2d4   :  { %v3018_v24 = vpop.eup %3017  ;;  %v1677_v56 = vpop.f32.mrb[86].mxu1 }
 0x2d5   :  { %v2005_v19 = vadd.bf16 1065369472, %v1973_v7  ;;  %v1838_v47 = vpack.c.bf16 %v1677_v56, %v1674_v28  ;;  %v1679_v54 = vpop.f32.mrb[87].mxu1  ;;  %v2099_v10 = vmul.bf16 1056980736, %v3018_v24 }
 0x2d7   :  { %v2037_v33 = vmul.bf16 %v2005_v19, %v1941_v4  ;;  %v1878_v29 = vadd.bf16 %v4047_v58, %v1838_v47  ;;  %v2131_v6 = vadd.bf16 1056980736, %v2099_v10 }
 0x2d9   :  { %v1910_v31 = vmul.bf16 %v1878_v29, %v1878_v29  ;;  %v2163_v51 = vmul.bf16 %v2131_v6, %v1875_v21  ;;  %3021 = vtanh.bf16 %v2037_v33  ;;  %v1942_v25 = vmul.bf16 1061961548, %v1878_v29 }
 0x2da   :  { %v1682_v36 = vpop.f32.mrb[88].mxu1 }
 0x2db   :  { %v1974_v22 = vmul.bf16 1027030327, %v1910_v31  ;;  %v1684_v12 = vpop.f32.mrb[89].mxu1  ;;  %2747 = vmatprep.mubr.bf16.mxu0 %v2163_v51 }
 0x2dc   :  { %v3020_v8 = vpop.eup %3019  ;;  %v1685_v13 = vpop.f32.mrb[90].mxu1 }
 0x2dd   :  { %v2006_v34 = vadd.bf16 1065369472, %v1974_v22  ;;  %v1839_v2 = vpack.c.bf16 %v1685_v13, %v1682_v36  ;;  %v1687_v1 = vpop.f32.mrb[91].mxu1  ;;  %v2100_v50 = vmul.bf16 1056980736, %v3020_v8 }
 0x2df   :  { %v2038_v63 = vmul.bf16 %v2006_v34, %v1942_v25  ;;  %v1879_v42 = vadd.bf16 %v4047_v58, %v1839_v2  ;;  %v2132_v17 = vadd.bf16 1056980736, %v2100_v50 }
 0x2e1   :  { %v1911_v55 = vmul.bf16 %v1879_v42, %v1879_v42  ;;  %v2164_v53 = vmul.bf16 %v2132_v17, %v1876_v43  ;;  %3023 = vtanh.bf16 %v2038_v63  ;;  %v1943_v27 = vmul.bf16 1061961548, %v1879_v42 }
 0x2e2   :  { %v1690_v21 = vpop.f32.mrb[92].mxu1 }
 0x2e3   :  { %v1975_v20 = vmul.bf16 1027030327, %v1911_v55  ;;  %v1692_v59 = vpop.f32.mrb[93].mxu1  ;;  %2748 = vmatmul.mubr.bf16.gmra.mrb[116].mxu0 %v2164_v53 }
 0x2e4   :  { %v3022_v46 = vpop.eup %3021  ;;  %v1693_v40 = vpop.f32.mrb[94].mxu1 }
 0x2e5   :  { %v2007_v5 = vadd.bf16 1065369472, %v1975_v20  ;;  %v1840_v61 = vpack.c.bf16 %v1693_v40, %v1690_v21  ;;  %v1695_v48 = vpop.f32.mrb[95].mxu1  ;;  %v2101_v49 = vmul.bf16 1056980736, %v3022_v46 }
 0x2e7   :  { %v2039_v57 = vmul.bf16 %v2007_v5, %v1943_v27  ;;  %v1880_v0 = vadd.bf16 %v4047_v58, %v1840_v61  ;;  %v2133_v37 = vadd.bf16 1056980736, %v2101_v49 }
 0x2e9   :  { %v1912_v52 = vmul.bf16 %v1880_v0, %v1880_v0  ;;  %v2165_v3 = vmul.bf16 %v2133_v37, %v1877_v45  ;;  %3025 = vtanh.bf16 %v2039_v57  ;;  %v1944_v14 = vmul.bf16 1061961548, %v1880_v0 }
 0x2ea   :  { %v1698_v43 = vpop.f32.mrb[96].mxu1 }
 0x2eb   :  { %v1976_v60 = vmul.bf16 1027030327, %v1912_v52  ;;  %v1700_v35 = vpop.f32.mrb[97].mxu1  ;;  %2751 = vmatprep.mubr.bf16.mxu0 %v2165_v3 }
 0x2ec   :  { %v3024_v30 = vpop.eup %3023  ;;  %v1701_v62 = vpop.f32.mrb[98].mxu1 }
 0x2ed   :  { %v2008_v32 = vadd.bf16 1065369472, %v1976_v60  ;;  %v1841_v44 = vpack.c.bf16 %v1701_v62, %v1698_v43  ;;  %v1703_v26 = vpop.f32.mrb[99].mxu1  ;;  %v2102_v23 = vmul.bf16 1056980736, %v3024_v30 }
 0x2ef   :  { %v2040_v11 = vmul.bf16 %v2008_v32, %v1944_v14  ;;  %v1881_v39 = vadd.bf16 %v4047_v58, %v1841_v44  ;;  %v2134_v38 = vadd.bf16 1056980736, %v2102_v23 }
 0x2f1   :  { %v1913_v9 = vmul.bf16 %v1881_v39, %v1881_v39  ;;  %v2166_v16 = vmul.bf16 %v2134_v38, %v1878_v29  ;;  %3027 = vtanh.bf16 %v2040_v11  ;;  %v1945_v7 = vmul.bf16 1061961548, %v1881_v39 }
 0x2f2   :  { %v1706_v45 = vpop.f32.mrb[100].mxu1 }
 0x2f3   :  { %v1977_v18 = vmul.bf16 1027030327, %v1913_v9  ;;  %v1708_v41 = vpop.f32.mrb[101].mxu1  ;;  %2752 = vmatmul.mubr.bf16.gmra.mrb[120].mxu0 %v2166_v16 }
 0x2f4   :  { %v3026_v28 = vpop.eup %3025  ;;  %v1709_v15 = vpop.f32.mrb[102].mxu1 }
 0x2f5   :  { %v2009_v24 = vadd.bf16 1065369472, %v1977_v18  ;;  %v1842_v4 = vpack.c.bf16 %v1709_v15, %v1706_v45  ;;  %v1711_v56 = vpop.f32.mrb[103].mxu1  ;;  %v2103_v19 = vmul.bf16 1056980736, %v3026_v28 }
 0x2f7   :  { %v2041_v47 = vmul.bf16 %v2009_v24, %v1945_v7  ;;  %v1882_v54 = vadd.bf16 %v4047_v58, %v1842_v4  ;;  %v2135_v10 = vadd.bf16 1056980736, %v2103_v19 }
 0x2f9   :  { %v1914_v33 = vmul.bf16 %v1882_v54, %v1882_v54  ;;  %v2167_v6 = vmul.bf16 %v2135_v10, %v1879_v42  ;;  %3029 = vtanh.bf16 %v2041_v47  ;;  %v1946_v22 = vmul.bf16 1061961548, %v1882_v54 }
 0x2fa   :  { %v1714_v29 = vpop.f32.mrb[104].mxu1 }
 0x2fb   :  { %v1978_v31 = vmul.bf16 1027030327, %v1914_v33  ;;  %v1716_v51 = vpop.f32.mrb[105].mxu1  ;;  %2755 = vmatprep.mubr.bf16.mxu0 %v2167_v6 }
 0x2fc   :  { %v3028_v36 = vpop.eup %3027  ;;  %v1717_v12 = vpop.f32.mrb[106].mxu1 }
 0x2fd   :  { %v2010_v8 = vadd.bf16 1065369472, %v1978_v31  ;;  %v1843_v25 = vpack.c.bf16 %v1717_v12, %v1714_v29  ;;  %v1719_v13 = vpop.f32.mrb[107].mxu1  ;;  %v2104_v34 = vmul.bf16 1056980736, %v3028_v36 }
 0x2ff   :  { %v2042_v2 = vmul.bf16 %v2010_v8, %v1946_v22  ;;  %v1883_v1 = vadd.bf16 %v4047_v58, %v1843_v25  ;;  %v2136_v50 = vadd.bf16 1056980736, %v2104_v34 }
 0x301   :  { %v1915_v63 = vmul.bf16 %v1883_v1, %v1883_v1  ;;  %v2168_v17 = vmul.bf16 %v2136_v50, %v1880_v0  ;;  %3031 = vtanh.bf16 %v2042_v2  ;;  %v1947_v20 = vmul.bf16 1061961548, %v1883_v1 }
 0x302   :  { %v1722_v42 = vpop.f32.mrb[108].mxu1 }
 0x303   :  { %v1979_v55 = vmul.bf16 1027030327, %v1915_v63  ;;  %v1724_v53 = vpop.f32.mrb[109].mxu1  ;;  %2756 = vmatmul.mubr.bf16.gmra.mrb[124].mxu0 %v2168_v17 }
 0x304   :  { %v3030_v21 = vpop.eup %3029  ;;  %v1725_v59 = vpop.f32.mrb[110].mxu1 }
 0x305   :  { %v2011_v46 = vadd.bf16 1065369472, %v1979_v55  ;;  %v1844_v27 = vpack.c.bf16 %v1725_v59, %v1722_v42  ;;  %v1727_v40 = vpop.f32.mrb[111].mxu1  ;;  %v2105_v5 = vmul.bf16 1056980736, %v3030_v21 }
 0x307   :  { %v2043_v61 = vmul.bf16 %v2011_v46, %v1947_v20  ;;  %v1884_v48 = vadd.bf16 %v4047_v58, %v1844_v27  ;;  %v2137_v49 = vadd.bf16 1056980736, %v2105_v5 }
 0x309   :  { %v1916_v57 = vmul.bf16 %v1884_v48, %v1884_v48  ;;  %v2169_v37 = vmul.bf16 %v2137_v49, %v1881_v39  ;;  %3033 = vtanh.bf16 %v2043_v61  ;;  %v1948_v60 = vmul.bf16 1061961548, %v1884_v48 }
 0x30a   :  { %v1730_v0 = vpop.f32.mrb[112].mxu1 }
 0x30b   :  { %v1980_v52 = vmul.bf16 1027030327, %v1916_v57  ;;  %v1732_v3 = vpop.f32.mrb[113].mxu1  ;;  %2759 = vmatprep.mubr.bf16.mxu0 %v2169_v37 }
 0x30c   :  { %v3032_v43 = vpop.eup %3031  ;;  %v1733_v35 = vpop.f32.mrb[114].mxu1 }
 0x30d   :  { %v2012_v30 = vadd.bf16 1065369472, %v1980_v52  ;;  %v1845_v14 = vpack.c.bf16 %v1733_v35, %v1730_v0  ;;  %v1735_v62 = vpop.f32.mrb[115].mxu1  ;;  %v2106_v32 = vmul.bf16 1056980736, %v3032_v43 }
 0x30f   :  { %v2044_v44 = vmul.bf16 %v2012_v30, %v1948_v60  ;;  %v1885_v26 = vadd.bf16 %v4047_v58, %v1845_v14  ;;  %v2138_v23 = vadd.bf16 1056980736, %v2106_v32 }
 0x311   :  { %v1917_v11 = vmul.bf16 %v1885_v26, %v1885_v26  ;;  %v2170_v38 = vmul.bf16 %v2138_v23, %v1882_v54  ;;  %3035 = vtanh.bf16 %v2044_v44  ;;  %v1949_v18 = vmul.bf16 1061961548, %v1885_v26 }
 0x312   :  { %v1738_v39 = vpop.f32.mrb[116].mxu1 }
 0x313   :  { %v1981_v9 = vmul.bf16 1027030327, %v1917_v11  ;;  %v1740_v16 = vpop.f32.mrb[117].mxu1  ;;  %2760 = vmatmul.mubr.bf16.gmra.mrb[128].mxu0 %v2170_v38 }
 0x314   :  { %v3034_v45 = vpop.eup %3033  ;;  %v1741_v41 = vpop.f32.mrb[118].mxu1 }
 0x315   :  { %v2013_v28 = vadd.bf16 1065369472, %v1981_v9  ;;  %v1846_v7 = vpack.c.bf16 %v1741_v41, %v1738_v39  ;;  %v1743_v15 = vpop.f32.mrb[119].mxu1  ;;  %v2107_v24 = vmul.bf16 1056980736, %v3034_v45 }
 0x317   :  { %v2045_v4 = vmul.bf16 %v2013_v28, %v1949_v18  ;;  %v1886_v56 = vadd.bf16 %v4047_v58, %v1846_v7  ;;  %v2139_v19 = vadd.bf16 1056980736, %v2107_v24 }
 0x319   :  { %v1918_v47 = vmul.bf16 %v1886_v56, %v1886_v56  ;;  %v2171_v10 = vmul.bf16 %v2139_v19, %v1883_v1  ;;  %3037 = vtanh.bf16 %v2045_v4  ;;  %v1950_v31 = vmul.bf16 1061961548, %v1886_v56 }
 0x31a   :  { %v1746_v54 = vpop.f32.mrb[120].mxu1 }
 0x31b   :  { %v1982_v33 = vmul.bf16 1027030327, %v1918_v47  ;;  %v1748_v6 = vpop.f32.mrb[121].mxu1  ;;  %2763 = vmatprep.mubr.bf16.mxu0 %v2171_v10 }
 0x31c   :  { %v3036_v29 = vpop.eup %3035  ;;  %v1749_v51 = vpop.f32.mrb[122].mxu1 }
 0x31d   :  { %v2014_v36 = vadd.bf16 1065369472, %v1982_v33  ;;  %v1847_v22 = vpack.c.bf16 %v1749_v51, %v1746_v54  ;;  %v1751_v12 = vpop.f32.mrb[123].mxu1  ;;  %v2108_v8 = vmul.bf16 1056980736, %v3036_v29 }
 0x31f   :  { %v2046_v25 = vmul.bf16 %v2014_v36, %v1950_v31  ;;  %v1887_v13 = vadd.bf16 %v4047_v58, %v1847_v22  ;;  %v2140_v34 = vadd.bf16 1056980736, %v2108_v8 }
 0x321   :  { %v1919_v2 = vmul.bf16 %v1887_v13, %v1887_v13  ;;  %v2172_v50 = vmul.bf16 %v2140_v34, %v1884_v48  ;;  %3039 = vtanh.bf16 %v2046_v25  ;;  %v1951_v55 = vmul.bf16 1061961548, %v1887_v13 }
 0x322   :  { %v1754_v1 = vpop.f32.mrb[124].mxu1 }
 0x323   :  { %v1983_v63 = vmul.bf16 1027030327, %v1919_v2  ;;  %v1756_v17 = vpop.f32.mrb[125].mxu1  ;;  %2764 = vmatmul.mubr.bf16.gmra.mrb[132].mxu0 %v2172_v50 }
 0x324   :  { %v3038_v42 = vpop.eup %3037  ;;  %v1757_v53 = vpop.f32.mrb[126].mxu1 }
 0x325   :  { %v2015_v21 = vadd.bf16 1065369472, %v1983_v63  ;;  %v1848_v20 = vpack.c.bf16 %v1757_v53, %v1754_v1  ;;  %v1759_v59 = vpop.f32.mrb[127].mxu1  ;;  %v2109_v46 = vmul.bf16 1056980736, %v3038_v42 }
 0x327   :  { %v2047_v27 = vmul.bf16 %v2015_v21, %v1951_v55  ;;  %v1888_v40 = vadd.bf16 %v4047_v58, %v1848_v20  ;;  %v2141_v5 = vadd.bf16 1056980736, %v2109_v46 }
 0x329   :  { %v1920_v61 = vmul.bf16 %v1888_v40, %v1888_v40  ;;  %v2173_v49 = vmul.bf16 %v2141_v5, %v1885_v26  ;;  %3041 = vtanh.bf16 %v2047_v27  ;;  %v1952_v52 = vmul.bf16 1061961548, %v1888_v40 }
 0x32a   :  { %v1762_v48 = vpop.f32.mrb[128].mxu1 }
 0x32b   :  { %v1984_v57 = vmul.bf16 1027030327, %v1920_v61  ;;  %v1764_v37 = vpop.f32.mrb[129].mxu1  ;;  %2767 = vmatprep.mubr.bf16.mxu0 %v2173_v49 }
 0x32c   :  { %v3040_v0 = vpop.eup %3039  ;;  %v1765_v3 = vpop.f32.mrb[130].mxu1 }
 0x32d   :  { %v2016_v43 = vadd.bf16 1065369472, %v1984_v57  ;;  %v1849_v60 = vpack.c.bf16 %v1765_v3, %v1762_v48  ;;  %v1767_v35 = vpop.f32.mrb[131].mxu1  ;;  %v2110_v30 = vmul.bf16 1056980736, %v3040_v0 }
 0x32f   :  { %v2048_v14 = vmul.bf16 %v2016_v43, %v1952_v52  ;;  %v1889_v62 = vadd.bf16 %v4047_v58, %v1849_v60  ;;  %v2142_v32 = vadd.bf16 1056980736, %v2110_v30 }
 0x331   :  { %v1921_v44 = vmul.bf16 %v1889_v62, %v1889_v62  ;;  %v2174_v23 = vmul.bf16 %v2142_v32, %v1886_v56  ;;  %3043 = vtanh.bf16 %v2048_v14  ;;  %v1953_v9 = vmul.bf16 1061961548, %v1889_v62 }
 0x332   :  { %v1770_v26 = vpop.f32.mrb[132].mxu1 }
 0x333   :  { %v1985_v11 = vmul.bf16 1027030327, %v1921_v44  ;;  %v1772_v38 = vpop.f32.mrb[133].mxu1  ;;  %2768 = vmatmul.mubr.bf16.gmra.mrb[136].mxu0 %v2174_v23 }
 0x334   :  { %v3042_v39 = vpop.eup %3041  ;;  %v1773_v16 = vpop.f32.mrb[134].mxu1 }
 0x335   :  { %v2017_v45 = vadd.bf16 1065369472, %v1985_v11  ;;  %v1850_v18 = vpack.c.bf16 %v1773_v16, %v1770_v26  ;;  %v1775_v41 = vpop.f32.mrb[135].mxu1  ;;  %v2111_v28 = vmul.bf16 1056980736, %v3042_v39 }
 0x337   :  { %v2049_v7 = vmul.bf16 %v2017_v45, %v1953_v9  ;;  %v1890_v15 = vadd.bf16 %v4047_v58, %v1850_v18  ;;  %v2143_v24 = vadd.bf16 1056980736, %v2111_v28 }
 0x339   :  { %v1922_v4 = vmul.bf16 %v1890_v15, %v1890_v15  ;;  %v2175_v19 = vmul.bf16 %v2143_v24, %v1887_v13  ;;  %3045 = vtanh.bf16 %v2049_v7  ;;  %v1954_v33 = vmul.bf16 1061961548, %v1890_v15 }
 0x33a   :  { %v1778_v56 = vpop.f32.mrb[136].mxu1 }
 0x33b   :  { %v1986_v47 = vmul.bf16 1027030327, %v1922_v4  ;;  %v1780_v10 = vpop.f32.mrb[137].mxu1  ;;  %2771 = vmatprep.mubr.bf16.mxu0 %v2175_v19 }
 0x33c   :  { %v3044_v54 = vpop.eup %3043  ;;  %v1781_v6 = vpop.f32.mrb[138].mxu1 }
 0x33d   :  { %v2018_v29 = vadd.bf16 1065369472, %v1986_v47  ;;  %v1851_v31 = vpack.c.bf16 %v1781_v6, %v1778_v56  ;;  %v1783_v51 = vpop.f32.mrb[139].mxu1  ;;  %v2112_v36 = vmul.bf16 1056980736, %v3044_v54 }
 0x33f   :  { %v2050_v22 = vmul.bf16 %v2018_v29, %v1954_v33  ;;  %v1891_v12 = vadd.bf16 %v4047_v58, %v1851_v31  ;;  %v2144_v8 = vadd.bf16 1056980736, %v2112_v36 }
 0x341   :  { %v1923_v25 = vmul.bf16 %v1891_v12, %v1891_v12  ;;  %v2176_v34 = vmul.bf16 %v2144_v8, %v1888_v40  ;;  %3047 = vtanh.bf16 %v2050_v22  ;;  %v1955_v63 = vmul.bf16 1061961548, %v1891_v12 }
 0x342   :  { %v1786_v13 = vpop.f32.mrb[140].mxu1 }
 0x343   :  { %v1987_v2 = vmul.bf16 1027030327, %v1923_v25  ;;  %v1788_v50 = vpop.f32.mrb[141].mxu1  ;;  %2772 = vmatmul.mubr.bf16.gmra.mrb[140].mxu0 %v2176_v34 }
 0x344   :  { %v3046_v1 = vpop.eup %3045  ;;  %v1789_v17 = vpop.f32.mrb[142].mxu1 }
 0x345   :  { %v2019_v42 = vadd.bf16 1065369472, %v1987_v2  ;;  %v1852_v55 = vpack.c.bf16 %v1789_v17, %v1786_v13  ;;  %v1791_v53 = vpop.f32.mrb[143].mxu1  ;;  %v2113_v21 = vmul.bf16 1056980736, %v3046_v1 }
 0x346   :  { %v4124_v1 = vld [vmem:[#allocation13] ss:$0 sm:$0xff] }
 0x347   :  { %v2051_v20 = vmul.bf16 %v2019_v42, %v1955_v63  ;;  %v1892_v59 = vadd.bf16 %v4047_v58, %v1852_v55  ;;  %v2145_v46 = vadd.bf16 1056980736, %v2113_v21 }
 0x349   :  { %v1924_v27 = vmul.bf16 %v1892_v59, %v1892_v59  ;;  %v2177_v5 = vmul.bf16 %v2145_v46, %v1889_v62  ;;  %3049 = vtanh.bf16 %v2051_v20  ;;  %v1956_v57 = vmul.bf16 1061961548, %v1892_v59 }
 0x34a   :  { %v1794_v40 = vpop.f32.mrb[144].mxu1 }
 0x34b   :  { %v1988_v61 = vmul.bf16 1027030327, %v1924_v27  ;;  %v1796_v49 = vpop.f32.mrb[145].mxu1  ;;  %2775 = vmatprep.mubr.bf16.mxu0 %v2177_v5 }
 0x34c   :  { %v3048_v48 = vpop.eup %3047  ;;  %v1797_v37 = vpop.f32.mrb[146].mxu1 }
 0x34d   :  { %v2020_v0 = vadd.bf16 1065369472, %v1988_v61  ;;  %v1853_v52 = vpack.c.bf16 %v1797_v37, %v1794_v40  ;;  %v1799_v3 = vpop.f32.mrb[147].mxu1  ;;  %v2114_v43 = vmul.bf16 1056980736, %v3048_v48 }
 0x34f   :  { %v2052_v60 = vmul.bf16 %v2020_v0, %v1956_v57  ;;  %v4112_v35 = vadd.bf16 %v4047_v58, %v1853_v52  ;;  %v2146_v30 = vadd.bf16 1056980736, %v2114_v43 }
 0x351   :  { %v1925_v14 = vmul.bf16 %v4112_v35, %v4112_v35  ;;  %v2178_v62 = vmul.bf16 %v2146_v30, %v1890_v15  ;;  %3051 = vtanh.bf16 %v2052_v60  ;;  %v1957_v11 = vmul.bf16 1061961548, %v4112_v35 }
 0x352   :  { %v1802_v32 = vpop.f32.mrb[148].mxu1 }
 0x353   :  { %v1989_v44 = vmul.bf16 1027030327, %v1925_v14  ;;  %v1804_v23 = vpop.f32.mrb[149].mxu1  ;;  %2776 = vmatmul.mubr.bf16.gmra.mrb[144].mxu0 %v2178_v62 }
 0x354   :  { %v3050_v26 = vpop.eup %3049  ;;  %v1805_v38 = vpop.f32.mrb[150].mxu1 }
 0x355   :  { %v2021_v39 = vadd.bf16 1065369472, %v1989_v44  ;;  %v1854_v9 = vpack.c.bf16 %v1805_v38, %v1802_v32  ;;  %v1807_v16 = vpop.f32.mrb[151].mxu1  ;;  %v2115_v45 = vmul.bf16 1056980736, %v3050_v26 }
 0x357   :  { %v2053_v18 = vmul.bf16 %v2021_v39, %v1957_v11  ;;  %v1894_v41 = vadd.bf16 %v4047_v58, %v1854_v9  ;;  %v2147_v28 = vadd.bf16 1056980736, %v2115_v45 }
 0x359   :  { %v1926_v7 = vmul.bf16 %v1894_v41, %v1894_v41  ;;  %v2179_v24 = vmul.bf16 %v2147_v28, %v1891_v12  ;;  %3053 = vtanh.bf16 %v2053_v18  ;;  %v1958_v47 = vmul.bf16 1061961548, %v1894_v41 }
 0x35a   :  { %v1810_v15 = vpop.f32.mrb[152].mxu1 }
 0x35b   :  { %v1990_v4 = vmul.bf16 1027030327, %v1926_v7  ;;  %v1812_v19 = vpop.f32.mrb[153].mxu1  ;;  %2779 = vmatprep.mubr.bf16.mxu0 %v2179_v24 }
 0x35c   :  { %v3052_v56 = vpop.eup %3051  ;;  %v1813_v10 = vpop.f32.mrb[154].mxu1 }
 0x35d   :  { %v2022_v54 = vadd.bf16 1065369472, %v1990_v4  ;;  %v1855_v33 = vpack.c.bf16 %v1813_v10, %v1810_v15  ;;  %v1815_v6 = vpop.f32.mrb[155].mxu1  ;;  %v2116_v29 = vmul.bf16 1056980736, %v3052_v56 }
 0x35f   :  { %v2054_v31 = vmul.bf16 %v2022_v54, %v1958_v47  ;;  %v4119_v51 = vadd.bf16 %v4047_v58, %v1855_v33  ;;  %v2148_v36 = vadd.bf16 1056980736, %v2116_v29 }
 0x361   :  { %v1927_v22 = vmul.bf16 %v4119_v51, %v4119_v51  ;;  %v2180_v12 = vmul.bf16 %v2148_v36, %v1892_v59  ;;  %3055 = vtanh.bf16 %v2054_v31  ;;  %v1959_v2 = vmul.bf16 1061961548, %v4119_v51 }
 0x362   :  { %v1818_v8 = vpop.f32.mrb[156].mxu1 }
 0x363   :  { %v1991_v25 = vmul.bf16 1027030327, %v1927_v22  ;;  %v1820_v34 = vpop.f32.mrb[157].mxu1  ;;  %2780 = vmatmul.mubr.bf16.gmra.mrb[148].mxu0 %v2180_v12 }
 0x364   :  { %v3054_v13 = vpop.eup %3053  ;;  %v1821_v50 = vpop.f32.mrb[158].mxu1 }
 0x365   :  { %v2023_v63 = vadd.bf16 1065369472, %v1991_v25  ;;  %v1856_v17 = vpack.c.bf16 %v1821_v50, %v1818_v8  ;;  %v1823_v42 = vpop.f32.mrb[159].mxu1  ;;  %v2117_v55 = vmul.bf16 1056980736, %v3054_v13 }
 0x366   :  { %v2729_v53 = vpop.f32.mrb[96].mxu0 }
 0x367   :  { %v2055_v21 = vmul.bf16 %v2023_v63, %v1959_v2  ;;  %v1896_v20 = vadd.bf16 %v4047_v58, %v1856_v17  ;;  %v2299_v59 = vadd.f32 %v2729_v53, %v4124_v1  ;;  %v2290_v46 = vpop.f32.mrb[97].mxu0  ;;  %v2149_v27 = vadd.bf16 1056980736, %v2117_v55 }
 0x368   :  { %v2291_v5 = vadd.f32 %v4124_v1, %v2290_v46  ;;  %v2730_v40 = vpop.f32.mrb[98].mxu0 }
 0x369   :  { %v1928_v61 = vmul.bf16 %v1896_v20, %v1896_v20  ;;  %2547 = vst [vmem:[#allocation14 + $0x10] sm:$0xff] %v2299_v59  ;;  %v2302_v49 = vadd.f32 %v2730_v40, %v4124_v1  ;;  %v2293_v48 = vpop.f32.mrb[99].mxu0  ;;  %v2181_v57 = vmul.bf16 %v2149_v27, %v4112_v35  ;;  %3057 = vtanh.bf16 %v2055_v21 }
 0x36a   :  { %2545 = vst [vmem:[#allocation14] sm:$0xff] %v2291_v5  ;;  %v2294_v37 = vadd.f32 %v4124_v1, %v2293_v48  ;;  %v1960_v52 = vmul.bf16 1061961548, %v1896_v20 }
 0x36b   :  { %v1992_v0 = vmul.bf16 1027030327, %v1928_v61  ;;  %2548 = vst [vmem:[#allocation14 + $0x18] sm:$0xff] %v2302_v49  ;;  %2783 = vmatprep.mubr.bf16.mxu0 %v2181_v57 }
 0x36c   :  { %v3056_v58 = vpop.eup %3055  ;;  %2546 = vst [vmem:[#allocation14 + $0x8] sm:$0xff] %v2294_v37 }
 0x36d   :  { %v2024_v3 = vadd.bf16 1065369472, %v1992_v0  ;;  %v2118_v43 = vmul.bf16 1056980736, %v3056_v58 }
 0x36f   :  { %v2056_v60 = vmul.bf16 %v2024_v3, %v1960_v52  ;;  %v2150_v30 = vadd.bf16 1056980736, %v2118_v43 }
 0x371   :  { %v2182_v14 = vmul.bf16 %v2150_v30, %v1894_v41  ;;  %3059 = vtanh.bf16 %v2056_v60 }
 0x373   :  { %2784 = vmatmul.mubr.bf16.gmra.mrb[152].mxu0 %v2182_v14 }
 0x374   :  { %v3058_v62 = vpop.eup %3057 }
 0x375   :  { %v2119_v35 = vmul.bf16 1056980736, %v3058_v62 }
 0x376   :  { %v2733_v32 = vpop.f32.mrb[100].mxu0 }
 0x377   :  { %v2315_v44 = vadd.f32 %v2733_v32, %v4124_v1  ;;  %v2306_v23 = vpop.f32.mrb[101].mxu0  ;;  %v2151_v38 = vadd.bf16 1056980736, %v2119_v35 }
 0x378   :  { %v2307_v26 = vadd.f32 %v4124_v1, %v2306_v23  ;;  %v2734_v11 = vpop.f32.mrb[102].mxu0 }
 0x379   :  { %2551 = vst [vmem:[#allocation14 + $0x30] sm:$0xff] %v2315_v44  ;;  %v2318_v39 = vadd.f32 %v2734_v11, %v4124_v1  ;;  %v2309_v9 = vpop.f32.mrb[103].mxu0  ;;  %v2183_v45 = vmul.bf16 %v2151_v38, %v4119_v51 }
 0x37a   :  { %2549 = vst [vmem:[#allocation14 + $0x20] sm:$0xff] %v2307_v26  ;;  %v2310_v16 = vadd.f32 %v4124_v1, %v2309_v9 }
 0x37b   :  { %2552 = vst [vmem:[#allocation14 + $0x38] sm:$0xff] %v2318_v39  ;;  %2787 = vmatprep.mubr.bf16.mxu0 %v2183_v45 }
 0x37c   :  { %v3060_v18 = vpop.eup %3059  ;;  %2550 = vst [vmem:[#allocation14 + $0x28] sm:$0xff] %v2310_v16 }
 0x37d   :  { %v2120_v41 = vmul.bf16 1056980736, %v3060_v18 }
 0x37f   :  { %v2152_v28 = vadd.bf16 1056980736, %v2120_v41 }
 0x381   :  { %v2184_v7 = vmul.bf16 %v2152_v28, %v1896_v20 }
 0x383   :  { %2788 = vmatmul.mubr.bf16.gmra.mrb[156].mxu0 %v2184_v7 }
 0x386   :  { %v2737_v24 = vpop.f32.mrb[104].mxu0 }
 0x387   :  { %v2331_v15 = vadd.f32 %v2737_v24, %v4124_v1  ;;  %v2322_v4 = vpop.f32.mrb[105].mxu0 }
 0x388   :  { %v2323_v19 = vadd.f32 %v4124_v1, %v2322_v4  ;;  %v2738_v56 = vpop.f32.mrb[106].mxu0 }
 0x389   :  { %2555 = vst [vmem:[#allocation14 + $0x50] sm:$0xff] %v2331_v15  ;;  %v2334_v47 = vadd.f32 %v2738_v56, %v4124_v1  ;;  %v2325_v10 = vpop.f32.mrb[107].mxu0 }
 0x38a   :  { %2553 = vst [vmem:[#allocation14 + $0x40] sm:$0xff] %v2323_v19  ;;  %v2326_v54 = vadd.f32 %v4124_v1, %v2325_v10 }
 0x38b   :  { %2556 = vst [vmem:[#allocation14 + $0x58] sm:$0xff] %v2334_v47 }
 0x38c   :  { %2554 = vst [vmem:[#allocation14 + $0x48] sm:$0xff] %v2326_v54 }
 0x396   :  { %v2741_v33 = vpop.f32.mrb[108].mxu0 }
 0x397   :  { %v2347_v6 = vadd.f32 %v2741_v33, %v4124_v1  ;;  %v2338_v29 = vpop.f32.mrb[109].mxu0 }
 0x398   :  { %v2339_v31 = vadd.f32 %v4124_v1, %v2338_v29  ;;  %v2742_v51 = vpop.f32.mrb[110].mxu0 }
 0x399   :  { %2559 = vst [vmem:[#allocation14 + $0x70] sm:$0xff] %v2347_v6  ;;  %v2350_v36 = vadd.f32 %v2742_v51, %v4124_v1  ;;  %v2341_v22 = vpop.f32.mrb[111].mxu0 }
 0x39a   :  { %2557 = vst [vmem:[#allocation14 + $0x60] sm:$0xff] %v2339_v31  ;;  %v2342_v12 = vadd.f32 %v4124_v1, %v2341_v22 }
 0x39b   :  { %2560 = vst [vmem:[#allocation14 + $0x78] sm:$0xff] %v2350_v36 }
 0x39c   :  { %2558 = vst [vmem:[#allocation14 + $0x68] sm:$0xff] %v2342_v12 }
 0x3a6   :  { %v2745_v8 = vpop.f32.mrb[112].mxu0 }
 0x3a7   :  { %v2363_v25 = vadd.f32 %v2745_v8, %v4124_v1  ;;  %v2354_v34 = vpop.f32.mrb[113].mxu0 }
 0x3a8   :  { %v2355_v13 = vadd.f32 %v4124_v1, %v2354_v34  ;;  %v2746_v2 = vpop.f32.mrb[114].mxu0 }
 0x3a9   :  { %2563 = vst [vmem:[#allocation14 + $0x90] sm:$0xff] %v2363_v25  ;;  %v2366_v50 = vadd.f32 %v2746_v2, %v4124_v1  ;;  %v2357_v63 = vpop.f32.mrb[115].mxu0 }
 0x3aa   :  { %2561 = vst [vmem:[#allocation14 + $0x80] sm:$0xff] %v2355_v13  ;;  %v2358_v17 = vadd.f32 %v4124_v1, %v2357_v63 }
 0x3ab   :  { %2564 = vst [vmem:[#allocation14 + $0x98] sm:$0xff] %v2366_v50 }
 0x3ac   :  { %2562 = vst [vmem:[#allocation14 + $0x88] sm:$0xff] %v2358_v17 }
 0x3b6   :  { %v2749_v42 = vpop.f32.mrb[116].mxu0 }
 0x3b7   :  { %v2379_v55 = vadd.f32 %v2749_v42, %v4124_v1  ;;  %v2370_v53 = vpop.f32.mrb[117].mxu0 }
 0x3b8   :  { %v2371_v21 = vadd.f32 %v4124_v1, %v2370_v53  ;;  %v2750_v20 = vpop.f32.mrb[118].mxu0 }
 0x3b9   :  { %2567 = vst [vmem:[#allocation14 + $0xb0] sm:$0xff] %v2379_v55  ;;  %v2382_v59 = vadd.f32 %v2750_v20, %v4124_v1  ;;  %v2373_v46 = vpop.f32.mrb[119].mxu0 }
 0x3ba   :  { %2565 = vst [vmem:[#allocation14 + $0xa0] sm:$0xff] %v2371_v21  ;;  %v2374_v27 = vadd.f32 %v4124_v1, %v2373_v46 }
 0x3bb   :  { %2568 = vst [vmem:[#allocation14 + $0xb8] sm:$0xff] %v2382_v59 }
 0x3bc   :  { %2566 = vst [vmem:[#allocation14 + $0xa8] sm:$0xff] %v2374_v27 }
 0x3c6   :  { %v2753_v5 = vpop.f32.mrb[120].mxu0 }
 0x3c7   :  { %v2395_v40 = vadd.f32 %v2753_v5, %v4124_v1  ;;  %v2386_v61 = vpop.f32.mrb[121].mxu0 }
 0x3c8   :  { %v2387_v49 = vadd.f32 %v4124_v1, %v2386_v61  ;;  %v2754_v48 = vpop.f32.mrb[122].mxu0 }
 0x3c9   :  { %2571 = vst [vmem:[#allocation14 + $0xd0] sm:$0xff] %v2395_v40  ;;  %v2398_v57 = vadd.f32 %v2754_v48, %v4124_v1  ;;  %v2389_v37 = vpop.f32.mrb[123].mxu0 }
 0x3ca   :  { %2569 = vst [vmem:[#allocation14 + $0xc0] sm:$0xff] %v2387_v49  ;;  %v2390_v0 = vadd.f32 %v4124_v1, %v2389_v37 }
 0x3cb   :  { %2572 = vst [vmem:[#allocation14 + $0xd8] sm:$0xff] %v2398_v57 }
 0x3cc   :  { %2570 = vst [vmem:[#allocation14 + $0xc8] sm:$0xff] %v2390_v0 }
 0x3d6   :  { %v2757_v58 = vpop.f32.mrb[124].mxu0 }
 0x3d7   :  { %v2411_v52 = vadd.f32 %v2757_v58, %v4124_v1  ;;  %v2402_v3 = vpop.f32.mrb[125].mxu0 }
 0x3d8   :  { %v2403_v43 = vadd.f32 %v4124_v1, %v2402_v3  ;;  %v2758_v60 = vpop.f32.mrb[126].mxu0 }
 0x3d9   :  { %2575 = vst [vmem:[#allocation14 + $0xf0] sm:$0xff] %v2411_v52  ;;  %v2414_v30 = vadd.f32 %v2758_v60, %v4124_v1  ;;  %v2405_v14 = vpop.f32.mrb[127].mxu0 }
 0x3da   :  { %2573 = vst [vmem:[#allocation14 + $0xe0] sm:$0xff] %v2403_v43  ;;  %v2406_v62 = vadd.f32 %v4124_v1, %v2405_v14 }
 0x3db   :  { %2576 = vst [vmem:[#allocation14 + $0xf8] sm:$0xff] %v2414_v30 }
 0x3dc   :  { %2574 = vst [vmem:[#allocation14 + $0xe8] sm:$0xff] %v2406_v62 }
 0x3e6   :  { %v2761_v32 = vpop.f32.mrb[128].mxu0 }
 0x3e7   :  { %v2427_v35 = vadd.f32 %v2761_v32, %v4124_v1  ;;  %v2418_v44 = vpop.f32.mrb[129].mxu0 }
 0x3e8   :  { %v2419_v23 = vadd.f32 %v4124_v1, %v2418_v44  ;;  %v2762_v26 = vpop.f32.mrb[130].mxu0 }
 0x3e9   :  { %2579 = vst [vmem:[#allocation14 + $0x110] sm:$0xff] %v2427_v35  ;;  %v2430_v11 = vadd.f32 %v2762_v26, %v4124_v1  ;;  %v2421_v38 = vpop.f32.mrb[131].mxu0 }
 0x3ea   :  { %2577 = vst [vmem:[#allocation14 + $0x100] sm:$0xff] %v2419_v23  ;;  %v2422_v39 = vadd.f32 %v4124_v1, %v2421_v38 }
 0x3eb   :  { %2580 = vst [vmem:[#allocation14 + $0x118] sm:$0xff] %v2430_v11 }
 0x3ec   :  { %2578 = vst [vmem:[#allocation14 + $0x108] sm:$0xff] %v2422_v39 }
 0x3f6   :  { %v2765_v9 = vpop.f32.mrb[132].mxu0 }
 0x3f7   :  { %v2443_v16 = vadd.f32 %v2765_v9, %v4124_v1  ;;  %v2434_v45 = vpop.f32.mrb[133].mxu0 }
 0x3f8   :  { %v2435_v18 = vadd.f32 %v4124_v1, %v2434_v45  ;;  %v2766_v41 = vpop.f32.mrb[134].mxu0 }
 0x3f9   :  { %2583 = vst [vmem:[#allocation14 + $0x130] sm:$0xff] %v2443_v16  ;;  %v2446_v28 = vadd.f32 %v2766_v41, %v4124_v1  ;;  %v2437_v7 = vpop.f32.mrb[135].mxu0 }
 0x3fa   :  { %2581 = vst [vmem:[#allocation14 + $0x120] sm:$0xff] %v2435_v18  ;;  %v2438_v24 = vadd.f32 %v4124_v1, %v2437_v7 }
 0x3fb   :  { %2584 = vst [vmem:[#allocation14 + $0x138] sm:$0xff] %v2446_v28 }
 0x3fc   :  { %2582 = vst [vmem:[#allocation14 + $0x128] sm:$0xff] %v2438_v24 }
 0x406   :  { %v2769_v15 = vpop.f32.mrb[136].mxu0 }
 0x407   :  { %v2459_v4 = vadd.f32 %v2769_v15, %v4124_v1  ;;  %v2450_v19 = vpop.f32.mrb[137].mxu0 }
 0x408   :  { %v2451_v56 = vadd.f32 %v4124_v1, %v2450_v19  ;;  %v2770_v47 = vpop.f32.mrb[138].mxu0 }
 0x409   :  { %2587 = vst [vmem:[#allocation14 + $0x150] sm:$0xff] %v2459_v4  ;;  %v2462_v10 = vadd.f32 %v2770_v47, %v4124_v1  ;;  %v2453_v54 = vpop.f32.mrb[139].mxu0 }
 0x40a   :  { %2585 = vst [vmem:[#allocation14 + $0x140] sm:$0xff] %v2451_v56  ;;  %v2454_v33 = vadd.f32 %v4124_v1, %v2453_v54 }
 0x40b   :  { %2588 = vst [vmem:[#allocation14 + $0x158] sm:$0xff] %v2462_v10 }
 0x40c   :  { %2586 = vst [vmem:[#allocation14 + $0x148] sm:$0xff] %v2454_v33 }
 0x416   :  { %v2773_v6 = vpop.f32.mrb[140].mxu0 }
 0x417   :  { %v2475_v29 = vadd.f32 %v2773_v6, %v4124_v1  ;;  %v2466_v31 = vpop.f32.mrb[141].mxu0 }
 0x418   :  { %v2467_v51 = vadd.f32 %v4124_v1, %v2466_v31  ;;  %v2774_v36 = vpop.f32.mrb[142].mxu0 }
 0x419   :  { %2591 = vst [vmem:[#allocation14 + $0x170] sm:$0xff] %v2475_v29  ;;  %v2478_v22 = vadd.f32 %v2774_v36, %v4124_v1  ;;  %v2469_v12 = vpop.f32.mrb[143].mxu0 }
 0x41a   :  { %2589 = vst [vmem:[#allocation14 + $0x160] sm:$0xff] %v2467_v51  ;;  %v2470_v8 = vadd.f32 %v4124_v1, %v2469_v12 }
 0x41b   :  { %2592 = vst [vmem:[#allocation14 + $0x178] sm:$0xff] %v2478_v22 }
 0x41c   :  { %2590 = vst [vmem:[#allocation14 + $0x168] sm:$0xff] %v2470_v8 }
 0x426   :  { %v2777_v25 = vpop.f32.mrb[144].mxu0 }
 0x427   :  { %v2491_v34 = vadd.f32 %v2777_v25, %v4124_v1  ;;  %v2482_v13 = vpop.f32.mrb[145].mxu0 }
 0x428   :  { %v2483_v2 = vadd.f32 %v4124_v1, %v2482_v13  ;;  %v2778_v50 = vpop.f32.mrb[146].mxu0 }
 0x429   :  { %2595 = vst [vmem:[#allocation14 + $0x190] sm:$0xff] %v2491_v34  ;;  %v2494_v63 = vadd.f32 %v2778_v50, %v4124_v1  ;;  %v2485_v17 = vpop.f32.mrb[147].mxu0 }
 0x42a   :  { %2593 = vst [vmem:[#allocation14 + $0x180] sm:$0xff] %v2483_v2  ;;  %v2486_v42 = vadd.f32 %v4124_v1, %v2485_v17 }
 0x42b   :  { %2596 = vst [vmem:[#allocation14 + $0x198] sm:$0xff] %v2494_v63 }
 0x42c   :  { %2594 = vst [vmem:[#allocation14 + $0x188] sm:$0xff] %v2486_v42 }
 0x436   :  { %v2781_v55 = vpop.f32.mrb[148].mxu0 }
 0x437   :  { %v2507_v53 = vadd.f32 %v2781_v55, %v4124_v1  ;;  %v2498_v21 = vpop.f32.mrb[149].mxu0 }
 0x438   :  { %v2499_v20 = vadd.f32 %v4124_v1, %v2498_v21  ;;  %v2782_v59 = vpop.f32.mrb[150].mxu0 }
 0x439   :  { %2599 = vst [vmem:[#allocation14 + $0x1b0] sm:$0xff] %v2507_v53  ;;  %v2510_v46 = vadd.f32 %v2782_v59, %v4124_v1  ;;  %v2501_v27 = vpop.f32.mrb[151].mxu0 }
 0x43a   :  { %2597 = vst [vmem:[#allocation14 + $0x1a0] sm:$0xff] %v2499_v20  ;;  %v2502_v5 = vadd.f32 %v4124_v1, %v2501_v27 }
 0x43b   :  { %2600 = vst [vmem:[#allocation14 + $0x1b8] sm:$0xff] %v2510_v46 }
 0x43c   :  { %2598 = vst [vmem:[#allocation14 + $0x1a8] sm:$0xff] %v2502_v5 }
 0x446   :  { %v2785_v40 = vpop.f32.mrb[152].mxu0 }
 0x447   :  { %v2523_v61 = vadd.f32 %v2785_v40, %v4124_v1  ;;  %v2514_v49 = vpop.f32.mrb[153].mxu0 }
 0x448   :  { %v2515_v48 = vadd.f32 %v4124_v1, %v2514_v49  ;;  %v2786_v57 = vpop.f32.mrb[154].mxu0 }
 0x449   :  { %2603 = vst [vmem:[#allocation14 + $0x1d0] sm:$0xff] %v2523_v61  ;;  %v2526_v37 = vadd.f32 %v2786_v57, %v4124_v1  ;;  %v2517_v0 = vpop.f32.mrb[155].mxu0 }
 0x44a   :  { %2601 = vst [vmem:[#allocation14 + $0x1c0] sm:$0xff] %v2515_v48  ;;  %v2518_v58 = vadd.f32 %v4124_v1, %v2517_v0 }
 0x44b   :  { %2604 = vst [vmem:[#allocation14 + $0x1d8] sm:$0xff] %v2526_v37 }
 0x44c   :  { %2602 = vst [vmem:[#allocation14 + $0x1c8] sm:$0xff] %v2518_v58 }
 0x456   :  { %v2789_v52 = vpop.f32.mrb[156].mxu0 }
 0x457   :  { %v2539_v3 = vadd.f32 %v2789_v52, %v4124_v1  ;;  %v2530_v43 = vpop.f32.mrb[157].mxu0 }
 0x458   :  { %v2531_v60 = vadd.f32 %v4124_v1, %v2530_v43  ;;  %v2790_v30 = vpop.f32.mrb[158].mxu0 }
 0x459   :  { %2607 = vst [vmem:[#allocation14 + $0x1f0] sm:$0xff] %v2539_v3  ;;  %v2542_v14 = vadd.f32 %v2790_v30, %v4124_v1  ;;  %v2533_v62 = vpop.f32.mrb[159].mxu0 }
 0x45a   :  { %2605 = vst [vmem:[#allocation14 + $0x1e0] sm:$0xff] %v2531_v60  ;;  %v2534_v32 = vadd.f32 %v4124_v1, %v2533_v62 }
 0x45b   :  { %2608 = vst [vmem:[#allocation14 + $0x1f8] sm:$0xff] %v2542_v14 }
 0x45c   :  { %2606 = vst [vmem:[#allocation14 + $0x1e8] sm:$0xff] %v2534_v32 }
 0x45d   :  { %3226 = shalt.err (!%p3223_p4)
}
 0x45e   :  { %s3227_s20 = scalar_lea.hbm %s4215_s7, 8192 }
 0x45f   :  { %p3228_p5 = scmp.ne.s32.totalorder %s4215_s7, %s3227_s20  ;;  %p3231_p6 = scmp.lt.u32.totalorder %s3227_s20, %s4215_s7 }
 0x461   :  { %p3233_p7 = pnand %p3231_p6, %p3228_p5 }
 0x463   :  { %3236 = shalt.err (!%p3233_p7)
}
 0x464   :  { %2620 = dma.vmem_to_hbm [thread:$0]  %s2615_s0, 8192, %s4215_s7, [#allocation4], %s3249_s13, %s3249_s13, %s3250_s14  }
 0x465   :  { %3245 = dma.done.wait [#allocation4], 8192  }
 0x466   :  { %3246 = vsyncadd [#allocation4], 4294959104 }
 0x467   :  { %2624 = vsyncpa [#allocation3], 1 }
 0x468   :  { %2625 = vsyncpa [#allocation6], 1 }
 0x469   :  { %2626 = vsyncpa [#allocation9], 1 }
 0x46a   :  { %2627 = vsyncpa [#allocation12], 1 }
 0x46b   :  { %2628 = vsyncpa [#allocation4], 1 }

// kernel: tpu_custom_call.1
= control target key start
LH: loop header
LB: loop body
LE: loop exit
PB: predicated region body
PF: predicated region fallthrough
CT: control target
= control target key end

     0   :  { %12 = vsyncpa [#allocation3], 0  ;;  %s4208_s0 = inlined_call_operand.hbm [shape: f32[512,128], index: 0, kind: input, shape index: {}]   ;;  %s4209_s1 = inlined_call_operand.hbm [shape: bf16[128,256], index: 1, kind: input, shape index: {}]   ;;  %s4210_s2 = inlined_call_operand.hbm [shape: bf16[1,256], index: 2, kind: input, shape index: {}]   ;;  %s4211_s3 = inlined_call_operand.hbm [shape: bf16[256,128], index: 3, kind: input, shape index: {}]   ;;  %s4212_s4 = inlined_call_operand.hbm [shape: bf16[1,128], index: 4, kind: input, shape index: {}]   ;;  %s4213_s5 = inlined_call_operand.hbm [shape: bf16[128,128], index: 5, kind: input, shape index: {}]   ;;  %s4214_s6 = inlined_call_operand.hbm [shape: f32[1,128], index: 6, kind: input, shape index: {}]   ;;  %s4215_s7 = inlined_call_operand.hbm [shape: f32[512,128], index: 7, kind: output, shape index: {}]  }
   0x1   :  { %13 = vsyncpa [#allocation6], 0 }
   0x2   :  { %14 = vsyncpa [#allocation9], 0 }
   0x3   :  { %15 = vsyncpa [#allocation12], 0 }
   0x4   :  { %16 = vsyncpa [#allocation4], 0  ;;  %s3247_s24 = smov [#allocation5]   ;;  %s3248_s26 = smov [#allocation8]  }
   0x5   :  { %s34_s25 = sshll.u32 %s3247_s24, 4  ;;  %s56_s27 = sshll.u32 %s3248_s26, 4  ;;  %s35_s25 = int_to_ptr.vmem [resolvable:$true] %s34_s25  ;;  %s3301_s27 = int_to_ptr.vmem [resolvable:$true] %s56_s27 }
   0x6   :  { %s3061_s30 = scalar_lea.hbm %s4209_s1, 2048 }
   0x7   :  { %p3062_p0 = scmp.ne.s32.totalorder %s4209_s1, %s3061_s30  ;;  %p3065_p1 = scmp.lt.u32.totalorder %s3061_s30, %s4209_s1 }
   0x9   :  { %p3067_p2 = pnand %p3065_p1, %p3062_p0 }
   0xb   :  { %3070 = shalt.err (!%p3067_p2)
}
   0xc   :  { %s3071_s12 = scalar_lea.vmem %s35_s25, 2048  ;;  %p3076_p4 = scmp.lt.s32.totalorder %s35_s25, %s35_s25 }
   0xd   :  { %p3072_p3 = scmp.ne.s32.totalorder %s35_s25, %s3071_s12  ;;  %p3077_p5 = scmp.lt.s32.totalorder %s3071_s12, %s3071_s12 }
   0xf   :  { %p3078_p6 = por %p3077_p5, %p3076_p4 }
  0x11   :  { %p3079_p7 = pnand %p3078_p6, %p3072_p3 }
  0x13   :  { %3082 = shalt.err (!%p3079_p7)
}
  0x14   :  { %s3249_s13 = smov 128   ;;  %s3250_s14 = smov 8  }
  0x15   :  { %40 = dma.hbm_to_vmem [thread:$0]  %s4209_s1, 2048, %s35_s25, [#allocation6], %s3249_s13, %s3249_s13, %s3250_s14  }
  0x16   :  { %s3083_s19 = scalar_lea.hbm %s4211_s3, 2048 }
  0x17   :  { %p3084_p8 = scmp.ne.s32.totalorder %s4211_s3, %s3083_s19  ;;  %p3087_p9 = scmp.lt.u32.totalorder %s3083_s19, %s4211_s3 }
  0x19   :  { %p3089_p10 = pnand %p3087_p9, %p3084_p8 }
  0x1b   :  { %3092 = shalt.err (!%p3089_p10)
}
  0x1c   :  { %s3093_s24 = scalar_lea.vmem %s3301_s27, 2048  ;;  %p3098_p12 = scmp.lt.s32.totalorder %s3301_s27, %s3301_s27 }
  0x1d   :  { %p3094_p11 = scmp.ne.s32.totalorder %s3301_s27, %s3093_s24  ;;  %p3099_p13 = scmp.lt.s32.totalorder %s3093_s24, %s3093_s24 }
  0x1f   :  { %p3100_p0 = por %p3099_p13, %p3098_p12 }
  0x21   :  { %p3101_p1 = pnand %p3100_p0, %p3094_p11 }
  0x23   :  { %3104 = shalt.err (!%p3101_p1)
}
  0x24   :  { %s3251_s1 = smov 64   ;;  %s3252_s25 = smov 4  }
  0x25   :  { %62 = dma.hbm_to_vmem [thread:$0]  %s4211_s3, 2048, %s3301_s27, [#allocation9], %s3251_s1, %s3251_s1, %s3252_s25  }
  0x26   :  { %s3253_s29 = smov [#allocation11]   ;;  %s3254_s8 = smov [#allocation2]  }
  0x27   :  { %s78_s30 = sshll.u32 %s3253_s29, 4  ;;  %s22_s9 = sshll.u32 %s3254_s8, 4  ;;  %s79_s30 = int_to_ptr.vmem [resolvable:$true] %s78_s30  ;;  %s3335_s9 = int_to_ptr.vmem [resolvable:$true] %s22_s9 }
  0x28   :  { %s3105_s12 = scalar_lea.hbm %s4213_s5, 1024 }
  0x29   :  { %p3106_p2 = scmp.ne.s32.totalorder %s4213_s5, %s3105_s12  ;;  %p3109_p3 = scmp.lt.u32.totalorder %s3105_s12, %s4213_s5 }
  0x2b   :  { %p3111_p4 = pnand %p3109_p3, %p3106_p2 }
  0x2d   :  { %3114 = shalt.err (!%p3111_p4)
}
  0x2e   :  { %s3115_s3 = scalar_lea.vmem %s79_s30, 1024  ;;  %p3120_p6 = scmp.lt.s32.totalorder %s79_s30, %s79_s30 }
  0x2f   :  { %p3116_p5 = scmp.ne.s32.totalorder %s79_s30, %s3115_s3  ;;  %p3121_p7 = scmp.lt.s32.totalorder %s3115_s3, %s3115_s3 }
  0x31   :  { %p3122_p8 = por %p3121_p7, %p3120_p6 }
  0x33   :  { %p3123_p9 = pnand %p3122_p8, %p3116_p5 }
  0x35   :  { %3126 = shalt.err (!%p3123_p9)
}
  0x36   :  { %84 = dma.hbm_to_vmem [thread:$0]  %s4213_s5, 1024, %s79_s30, [#allocation12], %s3251_s1, %s3251_s1, %s3252_s25  }
  0x37   :  { %s3127_s22 = scalar_lea.hbm %s4208_s0, 8192 }
  0x38   :  { %p3128_p10 = scmp.ne.s32.totalorder %s4208_s0, %s3127_s22  ;;  %p3131_p11 = scmp.lt.u32.totalorder %s3127_s22, %s4208_s0 }
  0x3a   :  { %p3133_p12 = pnand %p3131_p11, %p3128_p10 }
  0x3c   :  { %3136 = shalt.err (!%p3133_p12)
}
  0x3d   :  { %s3137_s29 = scalar_lea.vmem %s3335_s9, 8192  ;;  %p3142_p0 = scmp.lt.s32.totalorder %s3335_s9, %s3335_s9 }
  0x3e   :  { %p3138_p13 = scmp.ne.s32.totalorder %s3335_s9, %s3137_s29  ;;  %p3143_p1 = scmp.lt.s32.totalorder %s3137_s29, %s3137_s29 }
  0x40   :  { %p3144_p2 = por %p3143_p1, %p3142_p0 }
  0x42   :  { %p3145_p3 = pnand %p3144_p2, %p3138_p13 }
  0x44   :  { %3148 = shalt.err (!%p3145_p3)
}
  0x45   :  { %28 = dma.hbm_to_vmem [thread:$0]  %s4208_s0, 8192, %s3335_s9, [#allocation3], %s3249_s13, %s3249_s13, %s3250_s14  }
  0x46   :  { %s3255_s25 = smov [#allocation7]   ;;  %s3256_s8 = smov [#allocation10]  }
  0x47   :  { %s47_s30 = sshll.u32 %s3255_s25, 4  ;;  %s69_s10 = sshll.u32 %s3256_s8, 4  ;;  %s48_s30 = int_to_ptr.vmem [resolvable:$true] %s47_s30  ;;  %s70_s10 = int_to_ptr.vmem [resolvable:$true] %s69_s10 }
  0x48   :  { %s3149_s15 = scalar_lea.hbm %s4210_s2, 32 }
  0x49   :  { %p3150_p4 = scmp.ne.s32.totalorder %s4210_s2, %s3149_s15  ;;  %p3153_p5 = scmp.lt.u32.totalorder %s3149_s15, %s4210_s2 }
  0x4b   :  { %p3155_p6 = pnand %p3153_p5, %p3150_p4 }
  0x4d   :  { %3158 = shalt.err (!%p3155_p6)
}
  0x4e   :  { %s3159_s0 = scalar_lea.vmem %s48_s30, 32  ;;  %p3164_p8 = scmp.lt.s32.totalorder %s48_s30, %s48_s30 }
  0x4f   :  { %p3160_p7 = scmp.ne.s32.totalorder %s48_s30, %s3159_s0  ;;  %p3165_p9 = scmp.lt.s32.totalorder %s3159_s0, %s3159_s0 }
  0x51   :  { %p3166_p10 = por %p3165_p9, %p3164_p8 }
  0x53   :  { %p3167_p11 = pnand %p3166_p10, %p3160_p7 }
  0x55   :  { %3170 = shalt.err (!%p3167_p11)
}
  0x56   :  { %50 = dma.hbm_to_vmem [thread:$0]  %s4210_s2, 32, %s48_s30, [#allocation6]  }
  0x57   :  { %s3171_s21 = scalar_lea.hbm %s4212_s4, 16 }
  0x58   :  { %p3172_p12 = scmp.ne.s32.totalorder %s4212_s4, %s3171_s21  ;;  %p3175_p13 = scmp.lt.u32.totalorder %s3171_s21, %s4212_s4 }
  0x5a   :  { %p3177_p0 = pnand %p3175_p13, %p3172_p12 }
  0x5c   :  { %3180 = shalt.err (!%p3177_p0)
}
  0x5d   :  { %s3181_s28 = scalar_lea.vmem %s70_s10, 16  ;;  %s3185_s29 = scalar_lea.vmem %s70_s10, 32 }
  0x5e   :  { %p3182_p1 = scmp.ne.s32.totalorder %s70_s10, %s3181_s28  ;;  %p3186_p2 = scmp.lt.s32.totalorder %s70_s10, %s70_s10 }
  0x5f   :  { %p3187_p3 = scmp.lt.s32.totalorder %s3185_s29, %s3181_s28 }
  0x61   :  { %p3188_p4 = por %p3187_p3, %p3186_p2 }
  0x63   :  { %p3189_p5 = pnand %p3188_p4, %p3182_p1 }
  0x65   :  { %3192 = shalt.err (!%p3189_p5)
}
  0x66   :  { %72 = dma.hbm_to_vmem [thread:$0]  %s4212_s4, 16, %s70_s10, [#allocation9]  }
  0x67   :  { %s3257_s1 = smov [#allocation13]   ;;  %s3193_s11 = scalar_lea.hbm %s4214_s6, 16 }
  0x68   :  { %s91_s25 = sshll.u32 %s3257_s1, 4  ;;  %p3194_p6 = scmp.ne.s32.totalorder %s4214_s6, %s3193_s11  ;;  %s92_s25 = int_to_ptr.vmem [resolvable:$true] %s91_s25 }
  0x69   :  { %p3197_p7 = scmp.lt.u32.totalorder %s3193_s11, %s4214_s6 }
  0x6b   :  { %p3199_p8 = pnand %p3197_p7, %p3194_p6 }
  0x6d   :  { %3202 = shalt.err (!%p3199_p8)
}
  0x6e   :  { %s3203_s18 = scalar_lea.vmem %s92_s25, 16  ;;  %s3207_s4 = scalar_lea.vmem %s92_s25, 32 }
  0x6f   :  { %p3204_p9 = scmp.ne.s32.totalorder %s92_s25, %s3203_s18  ;;  %p3208_p10 = scmp.lt.s32.totalorder %s92_s25, %s92_s25 }
  0x70   :  { %p3209_p11 = scmp.lt.s32.totalorder %s3207_s4, %s3203_s18 }
  0x72   :  { %p3210_p12 = por %p3209_p11, %p3208_p10 }
  0x74   :  { %p3211_p13 = pnand %p3210_p12, %p3204_p9 }
  0x76   :  { %3214 = shalt.err (!%p3211_p13)
}
  0x77   :  { %94 = dma.hbm_to_vmem [thread:$0]  %s4214_s6, 16, %s92_s25, [#allocation12]  }
  0x78   :  { %3237 = dma.done.wait [#allocation3], 8192  }
  0x79   :  { %3238 = vsyncadd [#allocation3], 4294959104 }
  0x7a   :  { %3239 = dma.done.wait [#allocation6], 2080  }
  0x7b   :  { %3240 = vsyncadd [#allocation6], 4294965216 }
  0x7c   :  { %3241 = dma.done.wait [#allocation9], 2064  }
  0x7d   :  { %3242 = vsyncadd [#allocation9], 4294965232 }
  0x7e   :  { %3243 = dma.done.wait [#allocation12], 1040  }
  0x7f   :  { %3244 = vsyncadd [#allocation12], 4294966256  ;;  %v3258_v0 = vmov 0   ;;  %v2821_v1 = vld [vmem:[#allocation5 + $0x4] ss:$8 sps:$4 sm:$0xff]   ;;  %v123_v20 = vld [vmem:[#allocation2 + $0x10] sm:$0xff] }
  0x80   :  { %345 = vmatprep.mubr.bf16.mxu0 %v3258_v0  ;;  %585 = vmatprep.mubr.bf16.mxu1 %v3258_v0  ;;  %v2823_v2 = vld [vmem:[#allocation5] ss:$8 sps:$4 sm:$0xff]   ;;  %v2824_v3 = vld [vmem:[#allocation5 + $0x14] ss:$8 sps:$4 sm:$0xff]   ;;  %v2826_v4 = vld [vmem:[#allocation5 + $0x10] ss:$8 sps:$4 sm:$0xff]  }
  0x81   :  { %313 = vmatprep.subr.bf16.mxu0 %v2821_v1  ;;  %2791 = vmatprep.subr.bf16.mxu1 %v2821_v1  ;;  %v2827_v5 = vld [vmem:[#allocation5 + $0x24] ss:$8 sps:$4 sm:$0xff]   ;;  %v2829_v6 = vld [vmem:[#allocation5 + $0x20] ss:$8 sps:$4 sm:$0xff]   ;;  %v2830_v7 = vld [vmem:[#allocation5 + $0x34] ss:$8 sps:$4 sm:$0xff]  }
  0x82   :  { %314 = vmatpush1.bf16.msra.mxu0 %v2823_v2  ;;  %2799 = vmatpush1.bf16.msra.mxu1 %v2823_v2  ;;  %v2832_v8 = vld [vmem:[#allocation5 + $0x30] ss:$8 sps:$4 sm:$0xff]   ;;  %v2833_v9 = vld [vmem:[#allocation5 + $0x44] ss:$8 sps:$4 sm:$0xff]   ;;  %v2835_v10 = vld [vmem:[#allocation5 + $0x40] ss:$8 sps:$4 sm:$0xff]  }
  0x83   :  { %315 = vmatprep.subr.bf16.mxu0 %v2824_v3  ;;  %2792 = vmatprep.subr.bf16.mxu1 %v2824_v3  ;;  %v2836_v11 = vld [vmem:[#allocation5 + $0x54] ss:$8 sps:$4 sm:$0xff]   ;;  %v2838_v12 = vld [vmem:[#allocation5 + $0x50] ss:$8 sps:$4 sm:$0xff]   ;;  %v2839_v13 = vld [vmem:[#allocation5 + $0x64] ss:$8 sps:$4 sm:$0xff]  }
  0x84   :  { %v2841_v14 = vld [vmem:[#allocation5 + $0x60] ss:$8 sps:$4 sm:$0xff]   ;;  %v2842_v15 = vld [vmem:[#allocation5 + $0x74] ss:$8 sps:$4 sm:$0xff]   ;;  %v2844_v16 = vld [vmem:[#allocation5 + $0x70] ss:$8 sps:$4 sm:$0xff]  }
  0x85   :  { %v121_v17 = vld [vmem:[#allocation2] sm:$0xff]  ;;  %v122_v18 = vld [vmem:[#allocation2 + $0x8] sm:$0xff]  ;;  %v124_v21 = vld [vmem:[#allocation2 + $0x18] sm:$0xff]  ;;  %s3260_s6 = smov [#allocation14]  }
  0x86   :  { %316 = vmatpush1.bf16.msra.mxu0 %v2826_v4  ;;  %2800 = vmatpush1.bf16.msra.mxu1 %v2826_v4  ;;  %v185_v19 = vpack.c.bf16 %v122_v18, %v121_v17  ;;  %v186_v22 = vpack.c.bf16 %v124_v21, %v123_v20  ;;  %v125_v23 = vld [vmem:[#allocation2 + $0x20] sm:$0xff]  ;;  %v126_v24 = vld [vmem:[#allocation2 + $0x28] sm:$0xff]  ;;  %v127_v26 = vld [vmem:[#allocation2 + $0x30] sm:$0xff]  ;;  %s2614_s0 = sshll.u32 %s3260_s6, 4  ;;  %s2615_s0 = int_to_ptr.vmem [resolvable:$true] %s2614_s0 }
  0x87   :  { %317 = vmatprep.subr.bf16.mxu0 %v2827_v5  ;;  %2793 = vmatprep.subr.bf16.mxu1 %v2827_v5  ;;  %v187_v25 = vpack.c.bf16 %v126_v24, %v125_v23  ;;  %v128_v27 = vld [vmem:[#allocation2 + $0x38] sm:$0xff]  ;;  %v169_v29 = vld [vmem:[#allocation2 + $0x180] sm:$0xff]  ;;  %v170_v30 = vld [vmem:[#allocation2 + $0x188] sm:$0xff]  ;;  %s3215_s9 = scalar_lea.vmem %s2615_s0, 8192  ;;  %p3220_p1 = scmp.lt.s32.totalorder %s2615_s0, %s2615_s0 }
  0x88   :  { %v188_v28 = vpack.c.bf16 %v128_v27, %v127_v26  ;;  %v129_v31 = vld [vmem:[#allocation2 + $0x40] sm:$0xff]  ;;  %v130_v32 = vld [vmem:[#allocation2 + $0x48] sm:$0xff]  ;;  %v209_v33 = vpack.c.bf16 %v170_v30, %v169_v29  ;;  %v171_v35 = vld [vmem:[#allocation2 + $0x190] sm:$0xff]  ;;  %p3216_p0 = scmp.ne.s32.totalorder %s2615_s0, %s3215_s9  ;;  %p3221_p2 = scmp.lt.s32.totalorder %s3215_s9, %s3215_s9 }
  0x89   :  { %v189_v34 = vpack.c.bf16 %v130_v32, %v129_v31  ;;  %v172_v36 = vld [vmem:[#allocation2 + $0x198] sm:$0xff]  ;;  %v131_v37 = vld [vmem:[#allocation2 + $0x50] sm:$0xff]  ;;  %v173_v41 = vld [vmem:[#allocation2 + $0x1a0] sm:$0xff] }
  0x8a   :  { %318 = vmatpush1.bf16.msra.mxu0 %v2829_v6  ;;  %2801 = vmatpush1.bf16.msra.mxu1 %v2829_v6  ;;  %v132_v38 = vld [vmem:[#allocation2 + $0x58] sm:$0xff]  ;;  %v210_v39 = vpack.c.bf16 %v172_v36, %v171_v35  ;;  %v174_v42 = vld [vmem:[#allocation2 + $0x1a8] sm:$0xff]  ;;  %v133_v43 = vld [vmem:[#allocation2 + $0x60] sm:$0xff]  ;;  %p3222_p3 = por %p3221_p2, %p3220_p1 }
  0x8b   :  { %319 = vmatprep.subr.bf16.mxu0 %v2830_v7  ;;  %2794 = vmatprep.subr.bf16.mxu1 %v2830_v7  ;;  %v190_v40 = vpack.c.bf16 %v132_v38, %v131_v37  ;;  %v134_v44 = vld [vmem:[#allocation2 + $0x68] sm:$0xff]  ;;  %v211_v45 = vpack.c.bf16 %v174_v42, %v173_v41  ;;  %v175_v47 = vld [vmem:[#allocation2 + $0x1b0] sm:$0xff]  ;;  %v176_v48 = vld [vmem:[#allocation2 + $0x1b8] sm:$0xff] }
  0x8c   :  { %v191_v46 = vpack.c.bf16 %v134_v44, %v133_v43  ;;  %v2845_v49 = vld [vmem:[#allocation8] sm:$0xff]   ;;  %v135_v50 = vld [vmem:[#allocation2 + $0x70] sm:$0xff]  ;;  %v136_v51 = vld [vmem:[#allocation2 + $0x78] sm:$0xff]  ;;  %v212_v52 = vpack.c.bf16 %v176_v48, %v175_v47  ;;  %p3223_p4 = pnand %p3222_p3, %p3216_p0 }
  0x8d   :  { %v192_v53 = vpack.c.bf16 %v136_v51, %v135_v50  ;;  %v2846_v54 = vld [vmem:[#allocation8 + $0x8] sm:$0xff]   ;;  %v177_v55 = vld [vmem:[#allocation2 + $0x1c0] sm:$0xff]  ;;  %v2847_v60 = vld [vmem:[#allocation8 + $0x10] sm:$0xff]  }
  0x8e   :  { %320 = vmatpush1.bf16.msra.mxu0 %v2832_v8  ;;  %2802 = vmatpush1.bf16.msra.mxu1 %v2832_v8  ;;  %v178_v56 = vld [vmem:[#allocation2 + $0x1c8] sm:$0xff]  ;;  %v137_v57 = vld [vmem:[#allocation2 + $0x80] sm:$0xff]  ;;  %v179_v62 = vld [vmem:[#allocation2 + $0x1d0] sm:$0xff] }
  0x8f   :  { %321 = vmatprep.subr.bf16.mxu0 %v2833_v9  ;;  %2795 = vmatprep.subr.bf16.mxu1 %v2833_v9  ;;  %v138_v58 = vld [vmem:[#allocation2 + $0x88] sm:$0xff]  ;;  %v213_v59 = vpack.c.bf16 %v178_v56, %v177_v55  ;;  %v180_v63 = vld [vmem:[#allocation2 + $0x1d8] sm:$0xff]  ;;  %v139_v3 = vld [vmem:[#allocation2 + $0x90] sm:$0xff] }
  0x90   :  { %v193_v61 = vpack.c.bf16 %v138_v58, %v137_v57  ;;  %v2848_v1 = vld [vmem:[#allocation8 + $0x18] sm:$0xff]   ;;  %v214_v2 = vpack.c.bf16 %v180_v63, %v179_v62  ;;  %v2849_v5 = vld [vmem:[#allocation8 + $0x20] sm:$0xff]   ;;  %v2850_v9 = vld [vmem:[#allocation8 + $0x28] sm:$0xff]  }
  0x91   :  { %v140_v4 = vld [vmem:[#allocation2 + $0x98] sm:$0xff]  ;;  %v181_v7 = vld [vmem:[#allocation2 + $0x1e0] sm:$0xff]  ;;  %v182_v8 = vld [vmem:[#allocation2 + $0x1e8] sm:$0xff] }
  0x92   :  { %322 = vmatpush1.bf16.msra.mxu0 %v2835_v10  ;;  %2803 = vmatpush1.bf16.msra.mxu1 %v2835_v10  ;;  %v194_v6 = vpack.c.bf16 %v140_v4, %v139_v3  ;;  %v215_v10 = vpack.c.bf16 %v182_v8, %v181_v7  ;;  %v184_v17 = vld [vmem:[#allocation2 + $0x1f8] sm:$0xff]  ;;  %v143_v18 = vld [vmem:[#allocation2 + $0xb0] sm:$0xff]  ;;  %v145_v23 = vld [vmem:[#allocation2 + $0xc0] sm:$0xff]  ;;  %v3259_v3 = vmov 1966171168  }
  0x93   :  { %323 = vmatprep.subr.bf16.mxu0 %v2836_v11  ;;  %2796 = vmatprep.subr.bf16.mxu1 %v2836_v11  ;;  %v141_v11 = vld [vmem:[#allocation2 + $0xa0] sm:$0xff]  ;;  %v146_v24 = vld [vmem:[#allocation2 + $0xc8] sm:$0xff]  ;;  %v2855_v27 = vld [vmem:[#allocation8 + $0x50] sm:$0xff]   ;;  %v741_v4 = vunpack.c.l.s4 %v3259_v3 }
  0x94   :  { %v197_v26 = vpack.c.bf16 %v146_v24, %v145_v23  ;;  %v148_v29 = vld [vmem:[#allocation2 + $0xd8] sm:$0xff]  ;;  %v2857_v32 = vld [vmem:[#allocation8 + $0x60] sm:$0xff]   ;;  %v2858_v35 = vld [vmem:[#allocation8 + $0x68] sm:$0xff]  }
  0x95   :  { %v2856_v30 = vld [vmem:[#allocation8 + $0x58] sm:$0xff]   ;;  %v2859_v37 = vld [vmem:[#allocation8 + $0x70] sm:$0xff]   ;;  %v154_v43 = vld [vmem:[#allocation2 + $0x108] sm:$0xff] }
  0x96   :  { %324 = vmatpush1.bf16.msra.mxu0 %v2838_v12  ;;  %2804 = vmatpush1.bf16.msra.mxu1 %v2838_v12  ;;  %v142_v12 = vld [vmem:[#allocation2 + $0xa8] sm:$0xff]  ;;  %v151_v38 = vld [vmem:[#allocation2 + $0xf0] sm:$0xff]  ;;  %v153_v42 = vld [vmem:[#allocation2 + $0x100] sm:$0xff] }
  0x97   :  { %325 = vmatprep.subr.bf16.mxu0 %v2839_v13  ;;  %2797 = vmatprep.subr.bf16.mxu1 %v2839_v13  ;;  %v2851_v13 = vld [vmem:[#allocation8 + $0x30] sm:$0xff]   ;;  %v201_v44 = vpack.c.bf16 %v154_v43, %v153_v42  ;;  %v157_v48 = vld [vmem:[#allocation2 + $0x120] sm:$0xff]  ;;  %v162_v55 = vld [vmem:[#allocation2 + $0x148] sm:$0xff] }
  0x98   :  { %v159_v51 = vld [vmem:[#allocation2 + $0x130] sm:$0xff]  ;;  %v164_v58 = vld [vmem:[#allocation2 + $0x158] sm:$0xff]  ;;  %v2645_v8 = vld.sshfl [vmem:[#allocation7] sm:$0x11 pattern:$0x75316420] }
  0x99   :  { %v163_v57 = vld [vmem:[#allocation2 + $0x150] sm:$0xff] }
  0x9a   :  { %326 = vmatpush1.bf16.msra.mxu0 %v2841_v14  ;;  %2805 = vmatpush1.bf16.msra.mxu1 %v2841_v14  ;;  %v195_v14 = vpack.c.bf16 %v142_v12, %v141_v11  ;;  %v167_v63 = vld [vmem:[#allocation2 + $0x170] sm:$0xff] }
  0x9b   :  { %327 = vmatprep.subr.bf16.mxu0 %v2842_v15  ;;  %2798 = vmatprep.subr.bf16.mxu1 %v2842_v15  ;;  %v2852_v15 = vld [vmem:[#allocation8 + $0x38] sm:$0xff]  }
  0x9e   :  { %328 = vmatpush1.bf16.msra.mxu0 %v2844_v16  ;;  %2806 = vmatpush1.bf16.msra.mxu1 %v2844_v16  ;;  %v183_v16 = vld [vmem:[#allocation2 + $0x1f0] sm:$0xff] }
  0x9f   :  { %1536 = vmatprep.subr.bf16.mxu1 %v3258_v0  ;;  %v216_v20 = vpack.c.bf16 %v184_v17, %v183_v16 }
  0xa1   :  { %346 = vmatmul.mubr.bf16.vlgmr.msra.gmra.mrb[0].mxu0 %v185_v19  ;;  %586 = vmatmul.mubr.bf16.vlgmr.msra.gmra.mrb[0].mxu1 %v209_v33  ;;  %v144_v19 = vld [vmem:[#allocation2 + $0xb8] sm:$0xff]  ;;  %v149_v33 = vld [vmem:[#allocation2 + $0xe0] sm:$0xff] }
  0xa2   :  { %355 = vmatprep.mubr.bf16.mxu0 %v3258_v0  ;;  %595 = vmatprep.mubr.bf16.mxu1 %v3258_v0  ;;  %v196_v21 = vpack.c.bf16 %v144_v19, %v143_v18 }
  0xa3   :  { %1537 = vmatpush1.bf16.msra.mxu1 %v2845_v49  ;;  %v158_v49 = vld [vmem:[#allocation2 + $0x128] sm:$0xff] }
  0xa4   :  { %1538 = vmatprep.subr.bf16.mxu1 %v3258_v0  ;;  %v203_v50 = vpack.c.bf16 %v158_v49, %v157_v48 }
  0xa7   :  { %1539 = vmatpush1.bf16.msra.mxu1 %v2846_v54  ;;  %v161_v54 = vld [vmem:[#allocation2 + $0x140] sm:$0xff] }
  0xa8   :  { %1540 = vmatprep.subr.bf16.mxu1 %v3258_v0  ;;  %v205_v56 = vpack.c.bf16 %v162_v55, %v161_v54 }
  0xa9   :  { %356 = vmatmul.mubr.bf16.gmra.mrb[4].mxu0 %v186_v22  ;;  %596 = vmatmul.mubr.bf16.gmra.mrb[4].mxu1 %v210_v39  ;;  %v2853_v22 = vld [vmem:[#allocation8 + $0x40] sm:$0xff]   ;;  %v152_v39 = vld [vmem:[#allocation2 + $0xf8] sm:$0xff] }
  0xaa   :  { %365 = vmatprep.mubr.bf16.mxu0 %v3258_v0  ;;  %605 = vmatprep.mubr.bf16.mxu1 %v3258_v0  ;;  %v200_v41 = vpack.c.bf16 %v152_v39, %v151_v38 }
  0xab   :  { %1541 = vmatpush1.bf16.msra.mxu1 %v2847_v60  ;;  %v165_v60 = vld [vmem:[#allocation2 + $0x160] sm:$0xff] }
  0xac   :  { %1542 = vmatprep.subr.bf16.mxu1 %v3258_v0 }
  0xaf   :  { %1543 = vmatpush1.bf16.msra.mxu1 %v2848_v1  ;;  %v168_v1 = vld [vmem:[#allocation2 + $0x178] sm:$0xff] }
  0xb0   :  { %1544 = vmatprep.subr.bf16.mxu1 %v3258_v0 }
  0xb1   :  { %366 = vmatmul.mubr.bf16.gmra.mrb[8].mxu0 %v187_v25  ;;  %606 = vmatmul.mubr.bf16.gmra.mrb[8].mxu1 %v211_v45  ;;  %v2854_v25 = vld [vmem:[#allocation8 + $0x48] sm:$0xff]  }
  0xb2   :  { %375 = vmatprep.mubr.bf16.mxu0 %v3258_v0  ;;  %615 = vmatprep.mubr.bf16.mxu1 %v3258_v0  ;;  %v155_v45 = vld [vmem:[#allocation2 + $0x110] sm:$0xff] }
  0xb3   :  { %1545 = vmatpush1.bf16.msra.mxu1 %v2849_v5  ;;  %v743_v5 = vlaneseq }
  0xb4   :  { %1546 = vmatprep.subr.bf16.mxu1 %v3258_v0 }
  0xb5   :  { %v744_v7 = vshrl.u32 %v743_v5, 7 }
  0xb7   :  { %1547 = vmatpush1.bf16.msra.mxu1 %v2850_v9 }
  0xb8   :  { %1548 = vmatprep.subr.bf16.mxu1 %v3258_v0 }
  0xb9   :  { %376 = vmatmul.mubr.bf16.gmra.mrb[12].mxu0 %v188_v28  ;;  %616 = vmatmul.mubr.bf16.gmra.mrb[12].mxu1 %v212_v52  ;;  %v147_v28 = vld [vmem:[#allocation2 + $0xd0] sm:$0xff]  ;;  %v160_v52 = vld [vmem:[#allocation2 + $0x138] sm:$0xff] }
  0xba   :  { %385 = vmatprep.mubr.bf16.mxu0 %v3258_v0  ;;  %625 = vmatprep.mubr.bf16.mxu1 %v3258_v0  ;;  %v198_v31 = vpack.c.bf16 %v148_v29, %v147_v28 }
  0xbb   :  { %1549 = vmatpush1.bf16.msra.mxu1 %v2851_v13 }
  0xbc   :  { %1550 = vmatprep.subr.bf16.mxu1 %v3258_v0 }
  0xbf   :  { %1551 = vmatpush1.bf16.msra.mxu1 %v2852_v15 }
  0xc0   :  { %1552 = vmatprep.subr.bf16.mxu1 %v3258_v0 }
  0xc1   :  { %386 = vmatmul.mubr.bf16.gmra.mrb[16].mxu0 %v189_v34  ;;  %626 = vmatmul.mubr.bf16.gmra.mrb[16].mxu1 %v213_v59  ;;  %v150_v34 = vld [vmem:[#allocation2 + $0xe8] sm:$0xff]  ;;  %v206_v59 = vpack.c.bf16 %v164_v58, %v163_v57 }
  0xc2   :  { %395 = vmatprep.mubr.bf16.mxu0 %v3258_v0  ;;  %635 = vmatprep.mubr.bf16.mxu1 %v3258_v0  ;;  %v199_v36 = vpack.c.bf16 %v150_v34, %v149_v33 }
  0xc3   :  { %1553 = vmatpush1.bf16.msra.mxu1 %v2853_v22 }
  0xc4   :  { %1554 = vmatprep.subr.bf16.mxu1 %v3258_v0 }
  0xc7   :  { %1555 = vmatpush1.bf16.msra.mxu1 %v2854_v25 }
  0xc8   :  { %1556 = vmatprep.subr.bf16.mxu1 %v3258_v0 }
  0xc9   :  { %396 = vmatmul.mubr.bf16.gmra.mrb[20].mxu0 %v190_v40  ;;  %636 = vmatmul.mubr.bf16.gmra.mrb[20].mxu1 %v214_v2  ;;  %v2860_v40 = vld [vmem:[#allocation8 + $0x78] sm:$0xff]   ;;  %v208_v2 = vpack.c.bf16 %v168_v1, %v167_v63 }
  0xca   :  { %405 = vmatprep.mubr.bf16.mxu0 %v3258_v0  ;;  %645 = vmatprep.mubr.bf16.mxu1 %v3258_v0 }
  0xcb   :  { %1557 = vmatpush1.bf16.msra.mxu1 %v2855_v27 }
  0xcc   :  { %1558 = vmatprep.subr.bf16.mxu1 %v3258_v0 }
  0xcf   :  { %1559 = vmatpush1.bf16.msra.mxu1 %v2856_v30 }
  0xd0   :  { %1560 = vmatprep.subr.bf16.mxu1 %v3258_v0 }
  0xd1   :  { %406 = vmatmul.mubr.bf16.gmra.mrb[24].mxu0 %v191_v46  ;;  %646 = vmatmul.mubr.bf16.gmra.mrb[24].mxu1 %v215_v10  ;;  %v156_v46 = vld [vmem:[#allocation2 + $0x118] sm:$0xff]  ;;  %v739_v10 = vcombine.high %v2645_v8, %v2645_v8 }
  0xd2   :  { %415 = vmatprep.mubr.bf16.mxu0 %v3258_v0  ;;  %655 = vmatprep.mubr.bf16.mxu1 %v3258_v0  ;;  %v202_v47 = vpack.c.bf16 %v156_v46, %v155_v45 }
  0xd3   :  { %1561 = vmatpush1.bf16.msra.mxu1 %v2857_v32 }
  0xd4   :  { %1562 = vmatprep.subr.bf16.mxu1 %v3258_v0 }
  0xd7   :  { %1563 = vmatpush1.bf16.msra.mxu1 %v2858_v35 }
  0xd8   :  { %1564 = vmatprep.subr.bf16.mxu1 %v3258_v0 }
  0xd9   :  { %416 = vmatmul.mubr.bf16.gmra.mrb[28].mxu0 %v192_v53  ;;  %656 = vmatmul.mubr.bf16.gmra.mrb[28].mxu1 %v216_v20  ;;  %v204_v53 = vpack.c.bf16 %v160_v52, %v159_v51 }
  0xda   :  { %425 = vmatprep.mubr.bf16.mxu0 %v3258_v0 }
  0xdb   :  { %1565 = vmatpush1.bf16.msra.mxu1 %v2859_v37 }
  0xdc   :  { %1566 = vmatprep.subr.bf16.mxu1 %v3258_v0 }
  0xdf   :  { %1567 = vmatpush1.bf16.msra.mxu1 %v2860_v40 }
  0xe1   :  { %426 = vmatmul.mubr.bf16.gmra.mrb[32].mxu0 %v193_v61  ;;  %v166_v61 = vld [vmem:[#allocation2 + $0x168] sm:$0xff] }
  0xe2   :  { %435 = vmatprep.mubr.bf16.mxu0 %v3258_v0  ;;  %v207_v62 = vpack.c.bf16 %v166_v61, %v165_v60 }
  0xe9   :  { %436 = vmatmul.mubr.bf16.gmra.mrb[36].mxu0 %v194_v6  ;;  %v742_v6 = vunpack.c.0.s8 %v741_v4 }
  0xea   :  { %445 = vmatprep.mubr.bf16.mxu0 %v3258_v0 }
  0xeb   :  { %v745_v9 = vsub.s32 %v742_v6, %v744_v7 }
  0xed   :  { %v746_v11 = vrot.slane %v2645_v8, %v745_v9  ;;  %v753_v12 = vrot.slane %v739_v10, %v745_v9 }
  0xef   :  { %v755_v13 = vpack.i.b16 %v746_v11, %v746_v11  ;;  %v762_v15 = vpack.i.b16 %v753_v12, %v753_v12 }
  0xf1   :  { %446 = vmatmul.mubr.bf16.gmra.mrb[40].mxu0 %v195_v14  ;;  %v3453_v14 = vsub.s32 0, %v744_v7 }
  0xf2   :  { %455 = vmatprep.mubr.bf16.mxu0 %v3258_v0 }
  0xf3   :  { %v3456_v17 = vrot.slane %v755_v13, %v3453_v14  ;;  %v3459_v19 = vrot.slane %v762_v15, %v3453_v14 }
  0xf9   :  { %456 = vmatmul.mubr.bf16.gmra.mrb[44].mxu0 %v196_v21 }
  0xfa   :  { %465 = vmatprep.mubr.bf16.mxu0 %v3258_v0 }
 0x101   :  { %466 = vmatmul.mubr.bf16.gmra.mrb[48].mxu0 %v197_v26 }
 0x102   :  { %475 = vmatprep.mubr.bf16.mxu0 %v3258_v0 }
 0x109   :  { %476 = vmatmul.mubr.bf16.gmra.mrb[52].mxu0 %v198_v31 }
 0x10a   :  { %485 = vmatprep.mubr.bf16.mxu0 %v3258_v0 }
 0x111   :  { %486 = vmatmul.mubr.bf16.gmra.mrb[56].mxu0 %v199_v36 }
 0x112   :  { %495 = vmatprep.mubr.bf16.mxu0 %v3258_v0 }
 0x119   :  { %496 = vmatmul.mubr.bf16.gmra.mrb[60].mxu0 %v200_v41 }
 0x11a   :  { %505 = vmatprep.mubr.bf16.mxu0 %v3258_v0 }
 0x121   :  { %506 = vmatmul.mubr.bf16.gmra.mrb[64].mxu0 %v201_v44 }
 0x122   :  { %515 = vmatprep.mubr.bf16.mxu0 %v3258_v0 }
 0x129   :  { %516 = vmatmul.mubr.bf16.gmra.mrb[68].mxu0 %v202_v47 }
 0x12a   :  { %525 = vmatprep.mubr.bf16.mxu0 %v3258_v0 }
 0x131   :  { %526 = vmatmul.mubr.bf16.gmra.mrb[72].mxu0 %v203_v50 }
 0x132   :  { %535 = vmatprep.mubr.bf16.mxu0 %v3258_v0 }
 0x139   :  { %536 = vmatmul.mubr.bf16.gmra.mrb[76].mxu0 %v204_v53 }
 0x13a   :  { %545 = vmatprep.mubr.bf16.mxu0 %v3258_v0 }
 0x141   :  { %546 = vmatmul.mubr.bf16.gmra.mrb[80].mxu0 %v205_v56 }
 0x142   :  { %555 = vmatprep.mubr.bf16.mxu0 %v3258_v0 }
 0x149   :  { %556 = vmatmul.mubr.bf16.gmra.mrb[84].mxu0 %v206_v59 }
 0x14a   :  { %565 = vmatprep.mubr.bf16.mxu0 %v3258_v0 }
 0x151   :  { %566 = vmatmul.mubr.bf16.gmra.mrb[88].mxu0 %v207_v62 }
 0x152   :  { %575 = vmatprep.mubr.bf16.mxu0 %v3258_v0 }
 0x159   :  { %576 = vmatmul.mubr.bf16.gmra.mrb[92].mxu0 %v208_v2 }
 0x174   :  { %v347_v16 = vpop.f32.mrb[0].mxu0  ;;  %v3497_v13 = vpop.f32.mrb[0].mxu1 }
 0x175   :  { %v349_v0 = vpop.f32.mrb[1].mxu0 }
 0x176   :  { %v351_v18 = vpop.f32.mrb[2].mxu0 }
 0x177   :  { %v666_v20 = vpack.c.bf16 %v351_v18, %v347_v16  ;;  %v353_v21 = vpop.f32.mrb[3].mxu0  ;;  %v3499_v18 = vpop.f32.mrb[1].mxu1 }
 0x178   :  { %v667_v22 = vpack.c.bf16 %v353_v21, %v349_v0 }
 0x179   :  { %v3462_v23 = vadd.bf16 %v3456_v17, %v666_v20 }
 0x17a   :  { %v3465_v24 = vadd.bf16 %v3459_v19, %v667_v22 }
 0x17b   :  { %v832_v25 = vmul.bf16 %v3462_v23, %v3462_v23  ;;  %v896_v32 = vmul.bf16 1061961548, %v3462_v23 }
 0x17c   :  { %v833_v26 = vmul.bf16 %v3465_v24, %v3465_v24  ;;  %v357_v27 = vpop.f32.mrb[4].mxu0  ;;  %v897_v36 = vmul.bf16 1061961548, %v3465_v24 }
 0x17d   :  { %v960_v28 = vmul.bf16 1027030327, %v832_v25  ;;  %v359_v29 = vpop.f32.mrb[5].mxu0  ;;  %v3504_v25 = vpop.f32.mrb[2].mxu1 }
 0x17e   :  { %v961_v30 = vmul.bf16 1027030327, %v833_v26  ;;  %v361_v31 = vpop.f32.mrb[6].mxu0 }
 0x17f   :  { %v1024_v33 = vadd.bf16 1065369472, %v960_v28  ;;  %v668_v34 = vpack.c.bf16 %v361_v31, %v357_v27  ;;  %v363_v35 = vpop.f32.mrb[7].mxu0 }
 0x180   :  { %v1025_v37 = vadd.bf16 1065369472, %v961_v30  ;;  %v669_v38 = vpack.c.bf16 %v363_v35, %v359_v29  ;;  %v3509_v29 = vpop.f32.mrb[3].mxu1 }
 0x181   :  { %v1088_v39 = vmul.bf16 %v1024_v33, %v896_v32  ;;  %v3474_v40 = vadd.bf16 %v3456_v17, %v668_v34 }
 0x182   :  { %v1089_v41 = vmul.bf16 %v1025_v37, %v897_v36  ;;  %v3477_v42 = vadd.bf16 %v3459_v19, %v669_v38 }
 0x183   :  { %2869 = vtanh.bf16 %v1088_v39  ;;  %v834_v43 = vmul.bf16 %v3474_v40, %v3474_v40  ;;  %v898_v50 = vmul.bf16 1061961548, %v3474_v40 }
 0x184   :  { %v835_v44 = vmul.bf16 %v3477_v42, %v3477_v42  ;;  %v367_v45 = vpop.f32.mrb[8].mxu0  ;;  %2871 = vtanh.bf16 %v1089_v41  ;;  %v899_v54 = vmul.bf16 1061961548, %v3477_v42 }
 0x185   :  { %v962_v46 = vmul.bf16 1027030327, %v834_v43  ;;  %v369_v47 = vpop.f32.mrb[9].mxu0 }
 0x186   :  { %v963_v48 = vmul.bf16 1027030327, %v835_v44  ;;  %v371_v49 = vpop.f32.mrb[10].mxu0 }
 0x187   :  { %v1026_v51 = vadd.bf16 1065369472, %v962_v46  ;;  %v670_v52 = vpack.c.bf16 %v371_v49, %v367_v45  ;;  %v373_v53 = vpop.f32.mrb[11].mxu0  ;;  %v3523_v49 = vpop.f32.mrb[4].mxu1 }
 0x188   :  { %v1027_v55 = vadd.bf16 1065369472, %v963_v48  ;;  %v671_v56 = vpack.c.bf16 %v373_v53, %v369_v47  ;;  %v3525_v53 = vpop.f32.mrb[5].mxu1 }
 0x189   :  { %v1090_v57 = vmul.bf16 %v1026_v51, %v898_v50  ;;  %v3486_v58 = vadd.bf16 %v3456_v17, %v670_v52 }
 0x18a   :  { %v1091_v59 = vmul.bf16 %v1027_v55, %v899_v54  ;;  %v3489_v60 = vadd.bf16 %v3459_v19, %v671_v56 }
 0x18b   :  { %v836_v61 = vmul.bf16 %v3486_v58, %v3486_v58  ;;  %2873 = vtanh.bf16 %v1090_v57  ;;  %v900_v1 = vmul.bf16 1061961548, %v3486_v58  ;;  %v3530_v57 = vpop.f32.mrb[6].mxu1 }
 0x18c   :  { %v837_v62 = vmul.bf16 %v3489_v60, %v3489_v60  ;;  %v377_v63 = vpop.f32.mrb[12].mxu0  ;;  %2875 = vtanh.bf16 %v1091_v59  ;;  %v901_v5 = vmul.bf16 1061961548, %v3489_v60 }
 0x18d   :  { %v964_v2 = vmul.bf16 1027030327, %v836_v61  ;;  %v379_v3 = vpop.f32.mrb[13].mxu0 }
 0x18e   :  { %v2870_v4 = vpop.eup %2869  ;;  %v965_v6 = vmul.bf16 1027030327, %v837_v62  ;;  %v381_v7 = vpop.f32.mrb[14].mxu0 }
 0x18f   :  { %v2872_v8 = vpop.eup %2871  ;;  %v1216_v9 = vmul.bf16 1056980736, %v2870_v4  ;;  %v1028_v10 = vadd.bf16 1065369472, %v964_v2  ;;  %v672_v11 = vpack.c.bf16 %v381_v7, %v377_v63  ;;  %v383_v12 = vpop.f32.mrb[15].mxu0 }
 0x190   :  { %v1029_v15 = vadd.bf16 1065369472, %v965_v6  ;;  %v673_v16 = vpack.c.bf16 %v383_v12, %v379_v3  ;;  %v1217_v0 = vmul.bf16 1056980736, %v2872_v8  ;;  %v3535_v63 = vpop.f32.mrb[7].mxu1 }
 0x191   :  { %v1280_v20 = vadd.bf16 1056980736, %v1216_v9  ;;  %v1092_v21 = vmul.bf16 %v1028_v10, %v900_v1  ;;  %v3502_v22 = vadd.bf16 %v3456_v17, %v672_v11 }
 0x192   :  { %v1093_v26 = vmul.bf16 %v1029_v15, %v901_v5  ;;  %v3507_v27 = vadd.bf16 %v3459_v19, %v673_v16  ;;  %v1281_v28 = vadd.bf16 1056980736, %v1217_v0 }
 0x193   :  { %v838_v30 = vmul.bf16 %v3502_v22, %v3502_v22  ;;  %2877 = vtanh.bf16 %v1092_v21  ;;  %v1344_v31 = vmul.bf16 %v1280_v20, %v3462_v23  ;;  %v902_v35 = vmul.bf16 1061961548, %v3502_v22 }
 0x194   :  { %v839_v32 = vmul.bf16 %v3507_v27, %v3507_v27  ;;  %v387_v33 = vpop.f32.mrb[16].mxu0  ;;  %v1345_v34 = vmul.bf16 %v1281_v28, %v3465_v24  ;;  %2879 = vtanh.bf16 %v1093_v26  ;;  %v903_v23 = vmul.bf16 1061961548, %v3507_v27  ;;  %v3548_v26 = vpop.f32.mrb[8].mxu1 }
 0x195   :  { %v966_v36 = vmul.bf16 1027030327, %v838_v30  ;;  %v389_v37 = vpop.f32.mrb[17].mxu0 }
 0x196   :  { %v2874_v41 = vpop.eup %2873  ;;  %v967_v43 = vmul.bf16 1027030327, %v839_v32  ;;  %v391_v44 = vpop.f32.mrb[18].mxu0  ;;  %1568 = vmatprep.mubr.bf16.mxu1 %v1345_v34 }
 0x197   :  { %v2876_v45 = vpop.eup %2875  ;;  %v1030_v46 = vadd.bf16 1065369472, %v966_v36  ;;  %v674_v24 = vpack.c.bf16 %v391_v44, %v387_v33  ;;  %v393_v47 = vpop.f32.mrb[19].mxu0  ;;  %1569 = vmatmul.mubr.bf16.vlgmr.msra.gmra.mrb[32].mxu1 %v1344_v31  ;;  %v1218_v48 = vmul.bf16 1056980736, %v2874_v41 }
 0x198   :  { %v1031_v50 = vadd.bf16 1065369472, %v967_v43  ;;  %v675_v51 = vpack.c.bf16 %v393_v47, %v389_v37  ;;  %v1219_v52 = vmul.bf16 1056980736, %v2876_v45 }
 0x199   :  { %v1094_v54 = vmul.bf16 %v1030_v46, %v902_v35  ;;  %v3528_v55 = vadd.bf16 %v3456_v17, %v674_v24  ;;  %v1282_v56 = vadd.bf16 1056980736, %v1218_v48  ;;  %v3554_v35 = vpop.f32.mrb[9].mxu1 }
 0x19a   :  { %v1095_v59 = vmul.bf16 %v1031_v50, %v903_v23  ;;  %v3533_v61 = vadd.bf16 %v3459_v19, %v675_v51  ;;  %v1283_v62 = vadd.bf16 1056980736, %v1219_v52  ;;  %v3559_v23 = vpop.f32.mrb[10].mxu1 }
 0x19b   :  { %v840_v1 = vmul.bf16 %v3528_v55, %v3528_v55  ;;  %2881 = vtanh.bf16 %v1094_v54  ;;  %v1346_v7 = vmul.bf16 %v1282_v56, %v3474_v40  ;;  %v904_v10 = vmul.bf16 1061961548, %v3528_v55  ;;  %v3563_v44 = vpop.f32.mrb[11].mxu1 }
 0x19c   :  { %v841_v2 = vmul.bf16 %v3533_v61, %v3533_v61  ;;  %v397_v3 = vpop.f32.mrb[20].mxu0  ;;  %v1347_v4 = vmul.bf16 %v1283_v62, %v3477_v42  ;;  %2883 = vtanh.bf16 %v1095_v59  ;;  %v905_v40 = vmul.bf16 1061961548, %v3533_v61 }
 0x19d   :  { %v968_v5 = vmul.bf16 1027030327, %v840_v1  ;;  %v399_v6 = vpop.f32.mrb[21].mxu0 }
 0x19e   :  { %v2878_v9 = vpop.eup %2877  ;;  %v969_v11 = vmul.bf16 1027030327, %v841_v2  ;;  %v401_v12 = vpop.f32.mrb[22].mxu0  ;;  %1576 = vmatprep.mubr.bf16.mxu1 %v1347_v4 }
 0x19f   :  { %v2880_v16 = vpop.eup %2879  ;;  %v1032_v0 = vadd.bf16 1065369472, %v968_v5  ;;  %v676_v42 = vpack.c.bf16 %v401_v12, %v397_v3  ;;  %v403_v20 = vpop.f32.mrb[23].mxu0  ;;  %1577 = vmatmul.mubr.bf16.gmra.mrb[36].mxu1 %v1346_v7  ;;  %v1220_v21 = vmul.bf16 1056980736, %v2878_v9 }
 0x1a0   :  { %v1033_v28 = vadd.bf16 1065369472, %v969_v11  ;;  %v677_v30 = vpack.c.bf16 %v403_v20, %v399_v6  ;;  %v1221_v31 = vmul.bf16 1056980736, %v2880_v16  ;;  %v3574_v5 = vpop.f32.mrb[12].mxu1 }
 0x1a1   :  { %v1096_v32 = vmul.bf16 %v1032_v0, %v904_v10  ;;  %v3552_v33 = vadd.bf16 %v3456_v17, %v676_v42  ;;  %v1284_v34 = vadd.bf16 1056980736, %v1220_v21  ;;  %v3580_v16 = vpop.f32.mrb[13].mxu1 }
 0x1a2   :  { %v1097_v36 = vmul.bf16 %v1033_v28, %v905_v40  ;;  %v3557_v37 = vadd.bf16 %v3459_v19, %v677_v30  ;;  %v1285_v41 = vadd.bf16 1056980736, %v1221_v31  ;;  %v3585_v21 = vpop.f32.mrb[14].mxu1 }
 0x1a3   :  { %v842_v43 = vmul.bf16 %v3552_v33, %v3552_v33  ;;  %2885 = vtanh.bf16 %v1096_v32  ;;  %v1348_v50 = vmul.bf16 %v1284_v34, %v3486_v58  ;;  %v906_v52 = vmul.bf16 1061961548, %v3552_v33  ;;  %v3589_v28 = vpop.f32.mrb[15].mxu1 }
 0x1a4   :  { %v843_v45 = vmul.bf16 %v3557_v37, %v3557_v37  ;;  %v407_v46 = vpop.f32.mrb[24].mxu0  ;;  %v1349_v24 = vmul.bf16 %v1285_v41, %v3489_v60  ;;  %2887 = vtanh.bf16 %v1097_v36  ;;  %v907_v58 = vmul.bf16 1061961548, %v3557_v37 }
 0x1a5   :  { %v970_v47 = vmul.bf16 1027030327, %v842_v43  ;;  %v409_v48 = vpop.f32.mrb[25].mxu0 }
 0x1a6   :  { %v2882_v51 = vpop.eup %2881  ;;  %v971_v54 = vmul.bf16 1027030327, %v843_v45  ;;  %v411_v56 = vpop.f32.mrb[26].mxu0  ;;  %1584 = vmatprep.mubr.bf16.mxu1 %v1349_v24 }
 0x1a7   :  { %v2884_v1 = vpop.eup %2883  ;;  %v1034_v2 = vadd.bf16 1065369472, %v970_v47  ;;  %v678_v60 = vpack.c.bf16 %v411_v56, %v407_v46  ;;  %v413_v3 = vpop.f32.mrb[27].mxu0  ;;  %1585 = vmatmul.mubr.bf16.gmra.mrb[40].mxu1 %v1348_v50  ;;  %v1222_v4 = vmul.bf16 1056980736, %v2882_v51 }
 0x1a8   :  { %v1035_v6 = vadd.bf16 1065369472, %v971_v54  ;;  %v679_v7 = vpack.c.bf16 %v413_v3, %v409_v48  ;;  %v1223_v9 = vmul.bf16 1056980736, %v2884_v1  ;;  %v3598_v54 = vpop.f32.mrb[16].mxu1 }
 0x1a9   :  { %v1098_v10 = vmul.bf16 %v1034_v2, %v906_v52  ;;  %v3578_v11 = vadd.bf16 %v3456_v17, %v678_v60  ;;  %v1286_v12 = vadd.bf16 1056980736, %v1222_v4 }
 0x1aa   :  { %v1099_v0 = vmul.bf16 %v1035_v6, %v907_v58  ;;  %v3583_v42 = vadd.bf16 %v3459_v19, %v679_v7  ;;  %v1287_v20 = vadd.bf16 1056980736, %v1223_v9  ;;  %v3604_v58 = vpop.f32.mrb[17].mxu1 }
 0x1ab   :  { %v844_v40 = vmul.bf16 %v3578_v11, %v3578_v11  ;;  %2889 = vtanh.bf16 %v1098_v10  ;;  %v1350_v41 = vmul.bf16 %v1286_v12, %v3502_v22  ;;  %v908_v45 = vmul.bf16 1061961548, %v3578_v11  ;;  %v3609_v10 = vpop.f32.mrb[18].mxu1 }
 0x1ac   :  { %v845_v30 = vmul.bf16 %v3583_v42, %v3583_v42  ;;  %v417_v31 = vpop.f32.mrb[28].mxu0  ;;  %v1351_v32 = vmul.bf16 %v1287_v20, %v3507_v27  ;;  %2891 = vtanh.bf16 %v1099_v0  ;;  %v909_v56 = vmul.bf16 1061961548, %v3583_v42  ;;  %v3613_v0 = vpop.f32.mrb[19].mxu1 }
 0x1ad   :  { %v972_v34 = vmul.bf16 1027030327, %v844_v40  ;;  %v419_v36 = vpop.f32.mrb[29].mxu0 }
 0x1ae   :  { %v2886_v43 = vpop.eup %2885  ;;  %v973_v46 = vmul.bf16 1027030327, %v845_v30  ;;  %v421_v24 = vpop.f32.mrb[30].mxu0  ;;  %1592 = vmatprep.mubr.bf16.mxu1 %v1351_v32 }
 0x1af   :  { %v2888_v48 = vpop.eup %2887  ;;  %v1036_v50 = vadd.bf16 1065369472, %v972_v34  ;;  %v680_v51 = vpack.c.bf16 %v421_v24, %v417_v31  ;;  %v423_v52 = vpop.f32.mrb[31].mxu0  ;;  %1593 = vmatmul.mubr.bf16.gmra.mrb[44].mxu1 %v1350_v41  ;;  %v1224_v27 = vmul.bf16 1056980736, %v2886_v43 }
 0x1b0   :  { %v1037_v22 = vadd.bf16 1065369472, %v973_v46  ;;  %v681_v1 = vpack.c.bf16 %v423_v52, %v419_v36  ;;  %v1225_v2 = vmul.bf16 1056980736, %v2888_v48 }
 0x1b1   :  { %v1100_v60 = vmul.bf16 %v1036_v50, %v908_v45  ;;  %v3602_v3 = vadd.bf16 %v3456_v17, %v680_v51  ;;  %v1288_v4 = vadd.bf16 1056980736, %v1224_v27  ;;  %v3624_v27 = vpop.f32.mrb[20].mxu1 }
 0x1b2   :  { %v1101_v6 = vmul.bf16 %v1037_v22, %v909_v56  ;;  %v3607_v7 = vadd.bf16 %v3459_v19, %v681_v1  ;;  %v1289_v9 = vadd.bf16 1056980736, %v1225_v2 }
 0x1b3   :  { %v846_v12 = vmul.bf16 %v3602_v3, %v3602_v3  ;;  %2893 = vtanh.bf16 %v1100_v60  ;;  %v1352_v34 = vmul.bf16 %v1288_v4, %v3528_v55  ;;  %v910_v41 = vmul.bf16 1061961548, %v3602_v3 }
 0x1b4   :  { %v847_v20 = vmul.bf16 %v3607_v7, %v3607_v7  ;;  %v427_v40 = vpop.f32.mrb[32].mxu0  ;;  %v1353_v30 = vmul.bf16 %v1289_v9, %v3533_v61  ;;  %2895 = vtanh.bf16 %v1101_v6  ;;  %v911_v55 = vmul.bf16 1061961548, %v3607_v7  ;;  %v3630_v6 = vpop.f32.mrb[21].mxu1 }
 0x1b5   :  { %v974_v31 = vmul.bf16 1027030327, %v846_v12  ;;  %v429_v32 = vpop.f32.mrb[33].mxu0 }
 0x1b6   :  { %v2890_v36 = vpop.eup %2889  ;;  %v975_v43 = vmul.bf16 1027030327, %v847_v20  ;;  %v431_v45 = vpop.f32.mrb[34].mxu0  ;;  %1600 = vmatprep.mubr.bf16.mxu1 %v1353_v30 }
 0x1b7   :  { %v2892_v48 = vpop.eup %2891  ;;  %v1038_v50 = vadd.bf16 1065369472, %v974_v31  ;;  %v682_v61 = vpack.c.bf16 %v431_v45, %v427_v40  ;;  %v433_v51 = vpop.f32.mrb[35].mxu0  ;;  %1601 = vmatmul.mubr.bf16.gmra.mrb[48].mxu1 %v1352_v34  ;;  %v1226_v52 = vmul.bf16 1056980736, %v2890_v36 }
 0x1b8   :  { %v1039_v56 = vadd.bf16 1065369472, %v975_v43  ;;  %v683_v22 = vpack.c.bf16 %v433_v51, %v429_v32  ;;  %v1227_v1 = vmul.bf16 1056980736, %v2892_v48  ;;  %v3635_v40 = vpop.f32.mrb[22].mxu1 }
 0x1b9   :  { %v1102_v2 = vmul.bf16 %v1038_v50, %v910_v41  ;;  %v3628_v60 = vadd.bf16 %v3456_v17, %v682_v61  ;;  %v1290_v4 = vadd.bf16 1056980736, %v1226_v52  ;;  %v3639_v31 = vpop.f32.mrb[23].mxu1 }
 0x1ba   :  { %v1103_v9 = vmul.bf16 %v1039_v56, %v911_v55  ;;  %v3633_v12 = vadd.bf16 %v3459_v19, %v683_v22  ;;  %v1291_v20 = vadd.bf16 1056980736, %v1227_v1 }
 0x1bb   :  { %v848_v30 = vmul.bf16 %v3628_v60, %v3628_v60  ;;  %2897 = vtanh.bf16 %v1102_v2  ;;  %v1354_v45 = vmul.bf16 %v1290_v4, %v3552_v33  ;;  %v912_v50 = vmul.bf16 1061961548, %v3628_v60 }
 0x1bc   :  { %v849_v32 = vmul.bf16 %v3633_v12, %v3633_v12  ;;  %v437_v34 = vpop.f32.mrb[36].mxu0  ;;  %v1355_v36 = vmul.bf16 %v1291_v20, %v3557_v37  ;;  %2899 = vtanh.bf16 %v1103_v9  ;;  %v3650_v9 = vpop.f32.mrb[24].mxu1  ;;  %v913_v33 = vmul.bf16 1061961548, %v3633_v12 }
 0x1bd   :  { %v976_v41 = vmul.bf16 1027030327, %v848_v30  ;;  %v439_v43 = vpop.f32.mrb[37].mxu0  ;;  %v3656_v52 = vpop.f32.mrb[25].mxu1 }
 0x1be   :  { %v2894_v48 = vpop.eup %2893  ;;  %v977_v61 = vmul.bf16 1027030327, %v849_v32  ;;  %v441_v51 = vpop.f32.mrb[38].mxu0  ;;  %1608 = vmatprep.mubr.bf16.mxu1 %v1355_v36 }
 0x1bf   :  { %v2896_v56 = vpop.eup %2895  ;;  %v1040_v22 = vadd.bf16 1065369472, %v976_v41  ;;  %v684_v37 = vpack.c.bf16 %v441_v51, %v437_v34  ;;  %v443_v1 = vpop.f32.mrb[39].mxu0  ;;  %1609 = vmatmul.mubr.bf16.gmra.mrb[52].mxu1 %v1354_v45  ;;  %v1228_v2 = vmul.bf16 1056980736, %v2894_v48 }
 0x1c0   :  { %v1041_v4 = vadd.bf16 1065369472, %v977_v61  ;;  %v685_v20 = vpack.c.bf16 %v443_v1, %v439_v43  ;;  %v1229_v30 = vmul.bf16 1056980736, %v2896_v56  ;;  %v3661_v45 = vpop.f32.mrb[26].mxu1 }
 0x1c1   :  { %v1104_v32 = vmul.bf16 %v1040_v22, %v912_v50  ;;  %v3654_v36 = vadd.bf16 %v3456_v17, %v684_v37  ;;  %v1292_v24 = vadd.bf16 1056980736, %v1228_v2  ;;  %v3665_v43 = vpop.f32.mrb[27].mxu1 }
 0x1c2   :  { %v1105_v55 = vmul.bf16 %v1041_v4, %v913_v33  ;;  %v3659_v34 = vadd.bf16 %v3459_v19, %v685_v20  ;;  %v1293_v41 = vadd.bf16 1056980736, %v1229_v30 }
 0x1c3   :  { %v850_v48 = vmul.bf16 %v3654_v36, %v3654_v36  ;;  %2901 = vtanh.bf16 %v1104_v32  ;;  %v1356_v37 = vmul.bf16 %v1292_v24, %v3578_v11  ;;  %v914_v2 = vmul.bf16 1061961548, %v3654_v36 }
 0x1c4   :  { %v851_v50 = vmul.bf16 %v3659_v34, %v3659_v34  ;;  %v447_v61 = vpop.f32.mrb[40].mxu0  ;;  %v1357_v51 = vmul.bf16 %v1293_v41, %v3583_v42  ;;  %2903 = vtanh.bf16 %v1105_v55  ;;  %v3674_v55 = vpop.f32.mrb[28].mxu1  ;;  %v915_v41 = vmul.bf16 1061961548, %v3659_v34 }
 0x1c5   :  { %v978_v56 = vmul.bf16 1027030327, %v850_v48  ;;  %v449_v22 = vpop.f32.mrb[41].mxu0 }
 0x1c6   :  { %v2898_v1 = vpop.eup %2897  ;;  %v979_v33 = vmul.bf16 1027030327, %v851_v50  ;;  %v451_v4 = vpop.f32.mrb[42].mxu0  ;;  %1616 = vmatprep.mubr.bf16.mxu1 %v1357_v51 }
 0x1c7   :  { %v2900_v20 = vpop.eup %2899  ;;  %v1042_v30 = vadd.bf16 1065369472, %v978_v56  ;;  %v686_v32 = vpack.c.bf16 %v451_v4, %v447_v61  ;;  %v453_v47 = vpop.f32.mrb[43].mxu0  ;;  %1617 = vmatmul.mubr.bf16.gmra.mrb[56].mxu1 %v1356_v37  ;;  %v1230_v46 = vmul.bf16 1056980736, %v2898_v1  ;;  %v2861_v61 = vld [vmem:[#allocation11] sm:$0xff]  }
 0x1c8   :  { %v1043_v11 = vadd.bf16 1065369472, %v979_v33  ;;  %v687_v24 = vpack.c.bf16 %v453_v47, %v449_v22  ;;  %v1231_v48 = vmul.bf16 1056980736, %v2900_v20  ;;  %v3680_v56 = vpop.f32.mrb[29].mxu1  ;;  %2711 = vmatprep.subr.bf16.mxu0 %v2861_v61 }
 0x1c9   :  { %v1106_v59 = vmul.bf16 %v1042_v30, %v914_v2  ;;  %v3678_v50 = vadd.bf16 %v3456_v17, %v686_v32  ;;  %v1294_v51 = vadd.bf16 1056980736, %v1230_v46  ;;  %v3685_v42 = vpop.f32.mrb[30].mxu1  ;;  %2712 = vmatpush3.bf16.msra.mxu0 %v2861_v61 }
 0x1ca   :  { %v1107_v37 = vmul.bf16 %v1043_v11, %v915_v41  ;;  %v3683_v1 = vadd.bf16 %v3459_v19, %v687_v24  ;;  %v1295_v4 = vadd.bf16 1056980736, %v1231_v48  ;;  %v3689_v47 = vpop.f32.mrb[31].mxu1 }
 0x1cb   :  { %v852_v33 = vmul.bf16 %v3678_v50, %v3678_v50  ;;  %2905 = vtanh.bf16 %v1106_v59  ;;  %v1358_v32 = vmul.bf16 %v1294_v51, %v3602_v3  ;;  %v916_v11 = vmul.bf16 1061961548, %v3678_v50 }
 0x1cc   :  { %v853_v46 = vmul.bf16 %v3683_v1, %v3683_v1  ;;  %v457_v22 = vpop.f32.mrb[44].mxu0  ;;  %v1359_v2 = vmul.bf16 %v1295_v4, %v3607_v7  ;;  %2907 = vtanh.bf16 %v1107_v37  ;;  %v917_v3 = vmul.bf16 1061961548, %v3683_v1 }
 0x1cd   :  { %v980_v20 = vmul.bf16 1027030327, %v852_v33  ;;  %v459_v30 = vpop.f32.mrb[45].mxu0 }
 0x1ce   :  { %v2902_v41 = vpop.eup %2901  ;;  %v981_v24 = vmul.bf16 1027030327, %v853_v46  ;;  %v461_v59 = vpop.f32.mrb[46].mxu0  ;;  %1624 = vmatprep.mubr.bf16.mxu1 %v1359_v2 }
 0x1cf   :  { %v2904_v62 = vpop.eup %2903  ;;  %v1044_v8 = vadd.bf16 1065369472, %v980_v20  ;;  %v688_v15 = vpack.c.bf16 %v461_v59, %v457_v22  ;;  %v463_v38 = vpop.f32.mrb[47].mxu0  ;;  %1625 = vmatmul.mubr.bf16.gmra.mrb[60].mxu1 %v1358_v32  ;;  %v1232_v7 = vmul.bf16 1056980736, %v2902_v41 }
 0x1d0   :  { %v1045_v51 = vadd.bf16 1065369472, %v981_v24  ;;  %v689_v37 = vpack.c.bf16 %v463_v38, %v459_v30  ;;  %v1233_v4 = vmul.bf16 1056980736, %v2904_v62 }
 0x1d1   :  { %v1108_v33 = vmul.bf16 %v1044_v8, %v916_v11  ;;  %v3702_v46 = vadd.bf16 %v3456_v17, %v688_v15  ;;  %v1296_v2 = vadd.bf16 1056980736, %v1232_v7 }
 0x1d2   :  { %v1109_v48 = vmul.bf16 %v1045_v51, %v917_v3  ;;  %v3705_v20 = vadd.bf16 %v3459_v19, %v689_v37  ;;  %v1297_v22 = vadd.bf16 1056980736, %v1233_v4 }
 0x1d3   :  { %v854_v32 = vmul.bf16 %v3702_v46, %v3702_v46  ;;  %2909 = vtanh.bf16 %v1108_v33  ;;  %v1360_v62 = vmul.bf16 %v1296_v2, %v3628_v60  ;;  %v918_v11 = vmul.bf16 1061961548, %v3702_v46 }
 0x1d4   :  { %v855_v41 = vmul.bf16 %v3705_v20, %v3705_v20  ;;  %v467_v24 = vpop.f32.mrb[48].mxu0  ;;  %v1361_v38 = vmul.bf16 %v1297_v22, %v3633_v12  ;;  %2911 = vtanh.bf16 %v1109_v48  ;;  %v919_v48 = vmul.bf16 1061961548, %v3705_v20 }
 0x1d5   :  { %v982_v8 = vmul.bf16 1027030327, %v854_v32  ;;  %v469_v15 = vpop.f32.mrb[49].mxu0 }
 0x1d6   :  { %v2906_v30 = vpop.eup %2905  ;;  %v983_v59 = vmul.bf16 1027030327, %v855_v41  ;;  %v471_v7 = vpop.f32.mrb[50].mxu0  ;;  %1632 = vmatprep.mubr.bf16.mxu1 %v1361_v38 }
 0x1d7   :  { %v2908_v51 = vpop.eup %2907  ;;  %v1046_v37 = vadd.bf16 1065369472, %v982_v8  ;;  %v690_v4 = vpack.c.bf16 %v471_v7, %v467_v24  ;;  %v473_v33 = vpop.f32.mrb[51].mxu0  ;;  %1633 = vmatmul.mubr.bf16.gmra.mrb[64].mxu1 %v1360_v62  ;;  %v1234_v12 = vmul.bf16 1056980736, %v2906_v30 }
 0x1d8   :  { %v1047_v22 = vadd.bf16 1065369472, %v983_v59  ;;  %v691_v32 = vpack.c.bf16 %v473_v33, %v469_v15  ;;  %v1235_v60 = vmul.bf16 1056980736, %v2908_v51 }
 0x1d9   :  { %v1110_v2 = vmul.bf16 %v1046_v37, %v918_v11  ;;  %v3718_v61 = vadd.bf16 %v3456_v17, %v690_v4  ;;  %v1298_v41 = vadd.bf16 1056980736, %v1234_v12 }
 0x1da   :  { %v1111_v38 = vmul.bf16 %v1047_v22, %v919_v48  ;;  %v3721_v39 = vadd.bf16 %v3459_v19, %v691_v32  ;;  %v1299_v3 = vadd.bf16 1056980736, %v1235_v60 }
 0x1db   :  { %v856_v24 = vmul.bf16 %v3718_v61, %v3718_v61  ;;  %2913 = vtanh.bf16 %v1110_v2  ;;  %v1362_v59 = vmul.bf16 %v1298_v41, %v3654_v36  ;;  %v920_v51 = vmul.bf16 1061961548, %v3718_v61 }
 0x1dc   :  { %v857_v8 = vmul.bf16 %v3721_v39, %v3721_v39  ;;  %v477_v62 = vpop.f32.mrb[52].mxu0  ;;  %v1363_v15 = vmul.bf16 %v1299_v3, %v3659_v34  ;;  %2915 = vtanh.bf16 %v1111_v38  ;;  %v921_v3 = vmul.bf16 1061961548, %v3721_v39 }
 0x1dd   :  { %v984_v30 = vmul.bf16 1027030327, %v856_v24  ;;  %v479_v11 = vpop.f32.mrb[53].mxu0 }
 0x1de   :  { %v2910_v7 = vpop.eup %2909  ;;  %v985_v37 = vmul.bf16 1027030327, %v857_v8  ;;  %v481_v4 = vpop.f32.mrb[54].mxu0  ;;  %1640 = vmatprep.mubr.bf16.mxu1 %v1363_v15  ;;  %v2862_v8 = vld [vmem:[#allocation11 + $0x8] sm:$0xff]  }
 0x1df   :  { %v2912_v33 = vpop.eup %2911  ;;  %v1048_v12 = vadd.bf16 1065369472, %v984_v30  ;;  %v692_v48 = vpack.c.bf16 %v481_v4, %v477_v62  ;;  %v483_v22 = vpop.f32.mrb[55].mxu0  ;;  %1641 = vmatmul.mubr.bf16.gmra.mrb[68].mxu1 %v1362_v59  ;;  %v1236_v32 = vmul.bf16 1056980736, %v2910_v7  ;;  %2713 = vmatprep.subr.bf16.mxu0 %v2862_v8 }
 0x1e0   :  { %v1049_v60 = vadd.bf16 1065369472, %v985_v37  ;;  %v693_v2 = vpack.c.bf16 %v483_v22, %v479_v11  ;;  %v1237_v36 = vmul.bf16 1056980736, %v2912_v33  ;;  %2714 = vmatpush3.bf16.msra.mxu0 %v2862_v8 }
 0x1e1   :  { %v1112_v41 = vmul.bf16 %v1048_v12, %v920_v51  ;;  %v3734_v38 = vadd.bf16 %v3456_v17, %v692_v48  ;;  %v1300_v24 = vadd.bf16 1056980736, %v1236_v32 }
 0x1e2   :  { %v1113_v15 = vmul.bf16 %v1049_v60, %v921_v3  ;;  %v3737_v62 = vadd.bf16 %v3459_v19, %v693_v2  ;;  %v1301_v30 = vadd.bf16 1056980736, %v1237_v36 }
 0x1e3   :  { %v858_v59 = vmul.bf16 %v3734_v38, %v3734_v38  ;;  %2917 = vtanh.bf16 %v1112_v41  ;;  %v1364_v33 = vmul.bf16 %v1300_v24, %v3678_v50  ;;  %v922_v48 = vmul.bf16 1061961548, %v3734_v38 }
 0x1e4   :  { %v859_v11 = vmul.bf16 %v3737_v62, %v3737_v62  ;;  %v487_v7 = vpop.f32.mrb[56].mxu0  ;;  %v1365_v51 = vmul.bf16 %v1301_v30, %v3683_v1  ;;  %2919 = vtanh.bf16 %v1113_v15  ;;  %v923_v1 = vmul.bf16 1061961548, %v3737_v62 }
 0x1e5   :  { %v986_v37 = vmul.bf16 1027030327, %v858_v59  ;;  %v489_v4 = vpop.f32.mrb[57].mxu0 }
 0x1e6   :  { %v2914_v12 = vpop.eup %2913  ;;  %v987_v22 = vmul.bf16 1027030327, %v859_v11  ;;  %v491_v32 = vpop.f32.mrb[58].mxu0  ;;  %1648 = vmatprep.mubr.bf16.mxu1 %v1365_v51 }
 0x1e7   :  { %v2916_v3 = vpop.eup %2915  ;;  %v1050_v60 = vadd.bf16 1065369472, %v986_v37  ;;  %v694_v2 = vpack.c.bf16 %v491_v32, %v487_v7  ;;  %v493_v36 = vpop.f32.mrb[59].mxu0  ;;  %1649 = vmatmul.mubr.bf16.gmra.mrb[72].mxu1 %v1364_v33  ;;  %v1238_v41 = vmul.bf16 1056980736, %v2914_v12 }
 0x1e8   :  { %v1051_v15 = vadd.bf16 1065369472, %v987_v22  ;;  %v695_v8 = vpack.c.bf16 %v493_v36, %v489_v4  ;;  %v1239_v30 = vmul.bf16 1056980736, %v2916_v3 }
 0x1e9   :  { %v1114_v59 = vmul.bf16 %v1050_v60, %v922_v48  ;;  %v3748_v50 = vadd.bf16 %v3456_v17, %v694_v2  ;;  %v1302_v24 = vadd.bf16 1056980736, %v1238_v41 }
 0x1ea   :  { %v1115_v34 = vmul.bf16 %v1051_v15, %v923_v1  ;;  %v3751_v11 = vadd.bf16 %v3459_v19, %v695_v8  ;;  %v1303_v51 = vadd.bf16 1056980736, %v1239_v30 }
 0x1eb   :  { %v860_v7 = vmul.bf16 %v3748_v50, %v3748_v50  ;;  %2921 = vtanh.bf16 %v1114_v59  ;;  %v1366_v22 = vmul.bf16 %v1302_v24, %v3702_v46  ;;  %v924_v3 = vmul.bf16 1061961548, %v3748_v50 }
 0x1ec   :  { %v861_v37 = vmul.bf16 %v3751_v11, %v3751_v11  ;;  %v497_v33 = vpop.f32.mrb[60].mxu0  ;;  %v1367_v4 = vmul.bf16 %v1303_v51, %v3705_v20  ;;  %2923 = vtanh.bf16 %v1115_v34  ;;  %v925_v30 = vmul.bf16 1061961548, %v3751_v11 }
 0x1ed   :  { %v988_v12 = vmul.bf16 1027030327, %v860_v7  ;;  %v499_v48 = vpop.f32.mrb[61].mxu0 }
 0x1ee   :  { %v2918_v32 = vpop.eup %2917  ;;  %v989_v60 = vmul.bf16 1027030327, %v861_v37  ;;  %v501_v2 = vpop.f32.mrb[62].mxu0  ;;  %1656 = vmatprep.mubr.bf16.mxu1 %v1367_v4 }
 0x1ef   :  { %v2920_v36 = vpop.eup %2919  ;;  %v1052_v41 = vadd.bf16 1065369472, %v988_v12  ;;  %v696_v1 = vpack.c.bf16 %v501_v2, %v497_v33  ;;  %v503_v15 = vpop.f32.mrb[63].mxu0  ;;  %1657 = vmatmul.mubr.bf16.gmra.mrb[76].mxu1 %v1366_v22  ;;  %v1240_v8 = vmul.bf16 1056980736, %v2918_v32 }
 0x1f0   :  { %v1053_v20 = vadd.bf16 1065369472, %v989_v60  ;;  %v697_v34 = vpack.c.bf16 %v503_v15, %v499_v48  ;;  %v1241_v59 = vmul.bf16 1056980736, %v2920_v36 }
 0x1f1   :  { %v1116_v51 = vmul.bf16 %v1052_v41, %v924_v3  ;;  %v3762_v46 = vadd.bf16 %v3456_v17, %v696_v1  ;;  %v1304_v24 = vadd.bf16 1056980736, %v1240_v8 }
 0x1f2   :  { %v1117_v7 = vmul.bf16 %v1053_v20, %v925_v30  ;;  %v3765_v37 = vadd.bf16 %v3459_v19, %v697_v34  ;;  %v1305_v4 = vadd.bf16 1056980736, %v1241_v59 }
 0x1f3   :  { %v862_v33 = vmul.bf16 %v3762_v46, %v3762_v46  ;;  %2925 = vtanh.bf16 %v1116_v51  ;;  %v1368_v60 = vmul.bf16 %v1304_v24, %v3718_v61  ;;  %v926_v36 = vmul.bf16 1061961548, %v3762_v46 }
 0x1f4   :  { %v863_v12 = vmul.bf16 %v3765_v37, %v3765_v37  ;;  %v507_v22 = vpop.f32.mrb[64].mxu0  ;;  %v1369_v48 = vmul.bf16 %v1305_v4, %v3721_v39  ;;  %2927 = vtanh.bf16 %v1117_v7  ;;  %v927_v59 = vmul.bf16 1061961548, %v3765_v37 }
 0x1f5   :  { %v990_v32 = vmul.bf16 1027030327, %v862_v33  ;;  %v509_v3 = vpop.f32.mrb[65].mxu0  ;;  %v2863_v33 = vld [vmem:[#allocation11 + $0x10] sm:$0xff]  }
 0x1f6   :  { %v2922_v2 = vpop.eup %2921  ;;  %v991_v41 = vmul.bf16 1027030327, %v863_v12  ;;  %v511_v1 = vpop.f32.mrb[66].mxu0  ;;  %1664 = vmatprep.mubr.bf16.mxu1 %v1369_v48  ;;  %2715 = vmatprep.subr.bf16.mxu0 %v2863_v33 }
 0x1f7   :  { %v2924_v15 = vpop.eup %2923  ;;  %v1054_v8 = vadd.bf16 1065369472, %v990_v32  ;;  %v698_v30 = vpack.c.bf16 %v511_v1, %v507_v22  ;;  %v513_v20 = vpop.f32.mrb[67].mxu0  ;;  %1665 = vmatmul.mubr.bf16.gmra.mrb[80].mxu1 %v1368_v60  ;;  %v1242_v34 = vmul.bf16 1056980736, %v2922_v2  ;;  %2716 = vmatpush3.bf16.msra.mxu0 %v2863_v33 }
 0x1f8   :  { %v1055_v39 = vadd.bf16 1065369472, %v991_v41  ;;  %v699_v51 = vpack.c.bf16 %v513_v20, %v509_v3  ;;  %v1243_v7 = vmul.bf16 1056980736, %v2924_v15  ;;  %v2864_v15 = vld [vmem:[#allocation11 + $0x18] sm:$0xff]  }
 0x1f9   :  { %v1118_v4 = vmul.bf16 %v1054_v8, %v926_v36  ;;  %v3776_v61 = vadd.bf16 %v3456_v17, %v698_v30  ;;  %v1306_v24 = vadd.bf16 1056980736, %v1242_v34  ;;  %2717 = vmatprep.subr.bf16.mxu0 %v2864_v15 }
 0x1fa   :  { %v1119_v12 = vmul.bf16 %v1055_v39, %v927_v59  ;;  %v3779_v48 = vadd.bf16 %v3459_v19, %v699_v51  ;;  %v1307_v32 = vadd.bf16 1056980736, %v1243_v7 }
 0x1fb   :  { %v864_v22 = vmul.bf16 %v3776_v61, %v3776_v61  ;;  %2929 = vtanh.bf16 %v1118_v4  ;;  %v1370_v1 = vmul.bf16 %v1306_v24, %v3734_v38  ;;  %v928_v30 = vmul.bf16 1061961548, %v3776_v61  ;;  %2718 = vmatpush3.bf16.msra.mxu0 %v2864_v15 }
 0x1fc   :  { %v865_v3 = vmul.bf16 %v3779_v48, %v3779_v48  ;;  %v517_v60 = vpop.f32.mrb[68].mxu0  ;;  %v1371_v2 = vmul.bf16 %v1307_v32, %v3737_v62  ;;  %2931 = vtanh.bf16 %v1119_v12  ;;  %v929_v62 = vmul.bf16 1061961548, %v3779_v48 }
 0x1fd   :  { %v992_v36 = vmul.bf16 1027030327, %v864_v22  ;;  %v519_v41 = vpop.f32.mrb[69].mxu0 }
 0x1fe   :  { %v2926_v8 = vpop.eup %2925  ;;  %v993_v20 = vmul.bf16 1027030327, %v865_v3  ;;  %v521_v34 = vpop.f32.mrb[70].mxu0  ;;  %1672 = vmatprep.mubr.bf16.mxu1 %v1371_v2  ;;  %v2865_v3 = vld [vmem:[#allocation11 + $0x20] sm:$0xff]  }
 0x1ff   :  { %v2928_v59 = vpop.eup %2927  ;;  %v1056_v39 = vadd.bf16 1065369472, %v992_v36  ;;  %v700_v51 = vpack.c.bf16 %v521_v34, %v517_v60  ;;  %v523_v7 = vpop.f32.mrb[71].mxu0  ;;  %1673 = vmatmul.mubr.bf16.gmra.mrb[84].mxu1 %v1370_v1  ;;  %v1244_v4 = vmul.bf16 1056980736, %v2926_v8  ;;  %2719 = vmatprep.subr.bf16.mxu0 %v2865_v3 }
 0x200   :  { %v1057_v33 = vadd.bf16 1065369472, %v993_v20  ;;  %v701_v12 = vpack.c.bf16 %v523_v7, %v519_v41  ;;  %v1245_v32 = vmul.bf16 1056980736, %v2928_v59  ;;  %2720 = vmatpush3.bf16.msra.mxu0 %v2865_v3  ;;  %v2866_v59 = vld [vmem:[#allocation11 + $0x28] sm:$0xff]  }
 0x201   :  { %v1120_v38 = vmul.bf16 %v1056_v39, %v928_v30  ;;  %v3790_v24 = vadd.bf16 %v3456_v17, %v700_v51  ;;  %v1308_v22 = vadd.bf16 1056980736, %v1244_v4  ;;  %2721 = vmatprep.subr.bf16.mxu0 %v2866_v59 }
 0x202   :  { %v1121_v2 = vmul.bf16 %v1057_v33, %v929_v62  ;;  %v3793_v36 = vadd.bf16 %v3459_v19, %v701_v12  ;;  %v1309_v60 = vadd.bf16 1056980736, %v1245_v32 }
 0x203   :  { %v866_v1 = vmul.bf16 %v3790_v24, %v3790_v24  ;;  %2933 = vtanh.bf16 %v1120_v38  ;;  %v1372_v34 = vmul.bf16 %v1308_v22, %v3748_v50  ;;  %v930_v51 = vmul.bf16 1061961548, %v3790_v24 }
 0x204   :  { %v867_v41 = vmul.bf16 %v3793_v36, %v3793_v36  ;;  %v527_v15 = vpop.f32.mrb[72].mxu0  ;;  %v1373_v8 = vmul.bf16 %v1309_v60, %v3751_v11  ;;  %2935 = vtanh.bf16 %v1121_v2  ;;  %v931_v11 = vmul.bf16 1061961548, %v3793_v36  ;;  %2722 = vmatpush3.bf16.msra.mxu0 %v2866_v59 }
 0x205   :  { %v994_v30 = vmul.bf16 1027030327, %v866_v1  ;;  %v529_v20 = vpop.f32.mrb[73].mxu0 }
 0x206   :  { %v2930_v39 = vpop.eup %2929  ;;  %v995_v7 = vmul.bf16 1027030327, %v867_v41  ;;  %v531_v4 = vpop.f32.mrb[74].mxu0  ;;  %1680 = vmatprep.mubr.bf16.mxu1 %v1373_v8  ;;  %v2867_v41 = vld [vmem:[#allocation11 + $0x30] sm:$0xff]  }
 0x207   :  { %v2932_v62 = vpop.eup %2931  ;;  %v1058_v33 = vadd.bf16 1065369472, %v994_v30  ;;  %v702_v12 = vpack.c.bf16 %v531_v4, %v527_v15  ;;  %v533_v32 = vpop.f32.mrb[75].mxu0  ;;  %1681 = vmatmul.mubr.bf16.gmra.mrb[88].mxu1 %v1372_v34  ;;  %v1246_v38 = vmul.bf16 1056980736, %v2930_v39  ;;  %2723 = vmatprep.subr.bf16.mxu0 %v2867_v41 }
 0x208   :  { %v1059_v3 = vadd.bf16 1065369472, %v995_v7  ;;  %v703_v2 = vpack.c.bf16 %v533_v32, %v529_v20  ;;  %v1247_v60 = vmul.bf16 1056980736, %v2932_v62  ;;  %2724 = vmatpush3.bf16.msra.mxu0 %v2867_v41  ;;  %v2868_v62 = vld [vmem:[#allocation11 + $0x38] sm:$0xff]  }
 0x209   :  { %v1122_v50 = vmul.bf16 %v1058_v33, %v930_v51  ;;  %v3804_v22 = vadd.bf16 %v3456_v17, %v702_v12  ;;  %v1310_v1 = vadd.bf16 1056980736, %v1246_v38  ;;  %2725 = vmatprep.subr.bf16.mxu0 %v2868_v62 }
 0x20a   :  { %v1123_v8 = vmul.bf16 %v1059_v3, %v931_v11  ;;  %v3807_v30 = vadd.bf16 %v3459_v19, %v703_v2  ;;  %v1311_v15 = vadd.bf16 1056980736, %v1247_v60 }
 0x20b   :  { %v868_v34 = vmul.bf16 %v3804_v22, %v3804_v22  ;;  %2937 = vtanh.bf16 %v1122_v50  ;;  %v1374_v4 = vmul.bf16 %v1310_v1, %v3762_v46  ;;  %v932_v12 = vmul.bf16 1061961548, %v3804_v22 }
 0x20c   :  { %v869_v20 = vmul.bf16 %v3807_v30, %v3807_v30  ;;  %v537_v59 = vpop.f32.mrb[76].mxu0  ;;  %v1375_v39 = vmul.bf16 %v1311_v15, %v3765_v37  ;;  %2939 = vtanh.bf16 %v1123_v8  ;;  %v933_v37 = vmul.bf16 1061961548, %v3807_v30  ;;  %2726 = vmatpush3.bf16.msra.mxu0 %v2868_v62 }
 0x20d   :  { %v996_v51 = vmul.bf16 1027030327, %v868_v34  ;;  %v539_v7 = vpop.f32.mrb[77].mxu0 }
 0x20e   :  { %v2934_v33 = vpop.eup %2933  ;;  %v997_v32 = vmul.bf16 1027030327, %v869_v20  ;;  %v541_v38 = vpop.f32.mrb[78].mxu0  ;;  %1688 = vmatprep.mubr.bf16.mxu1 %v1375_v39 }
 0x20f   :  { %v2936_v11 = vpop.eup %2935  ;;  %v1060_v3 = vadd.bf16 1065369472, %v996_v51  ;;  %v704_v2 = vpack.c.bf16 %v541_v38, %v537_v59  ;;  %v543_v60 = vpop.f32.mrb[79].mxu0  ;;  %1689 = vmatmul.mubr.bf16.gmra.mrb[92].mxu1 %v1374_v4  ;;  %v1248_v50 = vmul.bf16 1056980736, %v2934_v33 }
 0x210   :  { %v1061_v41 = vadd.bf16 1065369472, %v997_v32  ;;  %v705_v8 = vpack.c.bf16 %v543_v60, %v539_v7  ;;  %v1249_v15 = vmul.bf16 1056980736, %v2936_v11 }
 0x211   :  { %v1124_v46 = vmul.bf16 %v1060_v3, %v932_v12  ;;  %v3818_v1 = vadd.bf16 %v3456_v17, %v704_v2  ;;  %v1312_v34 = vadd.bf16 1056980736, %v1248_v50 }
 0x212   :  { %v1125_v20 = vmul.bf16 %v1061_v41, %v933_v37  ;;  %v3821_v39 = vadd.bf16 %v3459_v19, %v705_v8  ;;  %v1313_v59 = vadd.bf16 1056980736, %v1249_v15 }
 0x213   :  { %v870_v51 = vmul.bf16 %v3818_v1, %v3818_v1  ;;  %2941 = vtanh.bf16 %v1124_v46  ;;  %v1376_v32 = vmul.bf16 %v1312_v34, %v3776_v61  ;;  %v934_v11 = vmul.bf16 1061961548, %v3818_v1 }
 0x214   :  { %v871_v4 = vmul.bf16 %v3821_v39, %v3821_v39  ;;  %v547_v7 = vpop.f32.mrb[80].mxu0  ;;  %v1377_v62 = vmul.bf16 %v1313_v59, %v3779_v48  ;;  %2943 = vtanh.bf16 %v1125_v20  ;;  %v935_v15 = vmul.bf16 1061961548, %v3821_v39 }
 0x215   :  { %v998_v33 = vmul.bf16 1027030327, %v870_v51  ;;  %v549_v12 = vpop.f32.mrb[81].mxu0 }
 0x216   :  { %v2938_v38 = vpop.eup %2937  ;;  %v999_v3 = vmul.bf16 1027030327, %v871_v4  ;;  %v551_v2 = vpop.f32.mrb[82].mxu0  ;;  %1696 = vmatprep.mubr.bf16.mxu1 %v1377_v62 }
 0x217   :  { %v2940_v60 = vpop.eup %2939  ;;  %v1062_v50 = vadd.bf16 1065369472, %v998_v33  ;;  %v706_v37 = vpack.c.bf16 %v551_v2, %v547_v7  ;;  %v553_v41 = vpop.f32.mrb[83].mxu0  ;;  %1697 = vmatmul.mubr.bf16.gmra.mrb[96].mxu1 %v1376_v32  ;;  %v1250_v8 = vmul.bf16 1056980736, %v2938_v38 }
 0x218   :  { %v1063_v48 = vadd.bf16 1065369472, %v999_v3  ;;  %v707_v46 = vpack.c.bf16 %v553_v41, %v549_v12  ;;  %v1251_v20 = vmul.bf16 1056980736, %v2940_v60 }
 0x219   :  { %v1126_v59 = vmul.bf16 %v1062_v50, %v934_v11  ;;  %v3832_v61 = vadd.bf16 %v3456_v17, %v706_v37  ;;  %v1314_v34 = vadd.bf16 1056980736, %v1250_v8 }
 0x21a   :  { %v1127_v51 = vmul.bf16 %v1063_v48, %v935_v15  ;;  %v3835_v4 = vadd.bf16 %v3459_v19, %v707_v46  ;;  %v1315_v62 = vadd.bf16 1056980736, %v1251_v20 }
 0x21b   :  { %v872_v7 = vmul.bf16 %v3832_v61, %v3832_v61  ;;  %2945 = vtanh.bf16 %v1126_v59  ;;  %v1378_v3 = vmul.bf16 %v1314_v34, %v3790_v24  ;;  %v936_v60 = vmul.bf16 1061961548, %v3832_v61 }
 0x21c   :  { %v873_v33 = vmul.bf16 %v3835_v4, %v3835_v4  ;;  %v557_v32 = vpop.f32.mrb[84].mxu0  ;;  %v1379_v12 = vmul.bf16 %v1315_v62, %v3793_v36  ;;  %2947 = vtanh.bf16 %v1127_v51  ;;  %v937_v20 = vmul.bf16 1061961548, %v3835_v4 }
 0x21d   :  { %v1000_v38 = vmul.bf16 1027030327, %v872_v7  ;;  %v559_v11 = vpop.f32.mrb[85].mxu0  ;;  %v4216_v24 = vpack.c.bf16 %v3509_v29, %v3499_v18 }
 0x21e   :  { %v2942_v2 = vpop.eup %2941  ;;  %v1001_v50 = vmul.bf16 1027030327, %v873_v33  ;;  %v561_v37 = vpop.f32.mrb[86].mxu0  ;;  %1704 = vmatprep.mubr.bf16.mxu1 %v1379_v12 }
 0x21f   :  { %v2944_v41 = vpop.eup %2943  ;;  %v1064_v8 = vadd.bf16 1065369472, %v1000_v38  ;;  %v708_v15 = vpack.c.bf16 %v561_v37, %v557_v32  ;;  %v563_v48 = vpop.f32.mrb[87].mxu0  ;;  %1705 = vmatmul.mubr.bf16.gmra.mrb[100].mxu1 %v1378_v3  ;;  %v1252_v46 = vmul.bf16 1056980736, %v2942_v2  ;;  %v3849_v34 = vadd.bf16 %v3459_v19, %v4216_v24 }
 0x220   :  { %v1065_v36 = vadd.bf16 1065369472, %v1001_v50  ;;  %v709_v59 = vpack.c.bf16 %v563_v48, %v559_v11  ;;  %v1253_v51 = vmul.bf16 1056980736, %v2944_v41  ;;  %v4217_v11 = vpack.c.bf16 %v3504_v25, %v3497_v13 }
 0x221   :  { %v1128_v62 = vmul.bf16 %v1064_v8, %v936_v60  ;;  %v3852_v7 = vadd.bf16 %v3456_v17, %v708_v15  ;;  %v1316_v33 = vadd.bf16 1056980736, %v1252_v46  ;;  %v881_v50 = vmul.bf16 %v3849_v34, %v3849_v34 }
 0x222   :  { %v1129_v32 = vmul.bf16 %v1065_v36, %v937_v20  ;;  %v3855_v12 = vadd.bf16 %v3459_v19, %v709_v59  ;;  %v1317_v38 = vadd.bf16 1056980736, %v1253_v51  ;;  %v3861_v3 = vadd.bf16 %v3456_v17, %v4217_v11 }
 0x223   :  { %v874_v18 = vmul.bf16 %v3852_v7, %v3852_v7  ;;  %2949 = vtanh.bf16 %v1128_v62  ;;  %v1380_v13 = vmul.bf16 %v1316_v33, %v3804_v22  ;;  %v938_v8 = vmul.bf16 1061961548, %v3852_v7 }
 0x224   :  { %v875_v29 = vmul.bf16 %v3855_v12, %v3855_v12  ;;  %v567_v2 = vpop.f32.mrb[88].mxu0  ;;  %v1381_v60 = vmul.bf16 %v1317_v38, %v3807_v30  ;;  %2951 = vtanh.bf16 %v1129_v32  ;;  %v880_v20 = vmul.bf16 %v3861_v3, %v3861_v3 }
 0x225   :  { %v1002_v37 = vmul.bf16 1027030327, %v874_v18  ;;  %v569_v41 = vpop.f32.mrb[89].mxu0  ;;  %v939_v24 = vmul.bf16 1061961548, %v3855_v12 }
 0x226   :  { %v2946_v25 = vpop.eup %2945  ;;  %v1003_v15 = vmul.bf16 1027030327, %v875_v29  ;;  %v571_v48 = vpop.f32.mrb[90].mxu0  ;;  %1712 = vmatprep.mubr.bf16.mxu1 %v1381_v60  ;;  %v1009_v33 = vmul.bf16 1027030327, %v881_v50  ;;  %v4218_v29 = vpack.c.bf16 %v3535_v63, %v3525_v53 }
 0x227   :  { %v2948_v46 = vpop.eup %2947  ;;  %v1066_v36 = vadd.bf16 1065369472, %v1002_v37  ;;  %v710_v30 = vpack.c.bf16 %v571_v48, %v567_v2  ;;  %v573_v59 = vpop.f32.mrb[91].mxu0  ;;  %1713 = vmatmul.mubr.bf16.gmra.mrb[104].mxu1 %v1380_v13  ;;  %v1254_v51 = vmul.bf16 1056980736, %v2946_v25 }
 0x228   :  { %v1067_v62 = vadd.bf16 1065369472, %v1003_v15  ;;  %v711_v32 = vpack.c.bf16 %v573_v59, %v569_v41  ;;  %v1255_v22 = vmul.bf16 1056980736, %v2948_v46  ;;  %v3882_v60 = vadd.bf16 %v3459_v19, %v4218_v29 }
 0x229   :  { %v1130_v38 = vmul.bf16 %v1066_v36, %v938_v8  ;;  %v3876_v11 = vadd.bf16 %v3456_v17, %v710_v30  ;;  %v1318_v18 = vadd.bf16 1056980736, %v1254_v51  ;;  %v3887_v25 = vmul.bf16 1027030327, %v880_v20 }
 0x22a   :  { %v1131_v2 = vmul.bf16 %v1067_v62, %v939_v24  ;;  %v3885_v37 = vadd.bf16 %v3459_v19, %v711_v32  ;;  %v1319_v13 = vadd.bf16 1056980736, %v1255_v22  ;;  %v945_v41 = vmul.bf16 1061961548, %v3849_v34 }
 0x22b   :  { %v876_v50 = vmul.bf16 %v3876_v11, %v3876_v11  ;;  %2953 = vtanh.bf16 %v1130_v38  ;;  %v1073_v15 = vadd.bf16 1065369472, %v1009_v33  ;;  %v1382_v36 = vmul.bf16 %v1318_v18, %v3818_v1 }
 0x22c   :  { %v877_v8 = vmul.bf16 %v3885_v37, %v3885_v37  ;;  %v577_v53 = vpop.f32.mrb[92].mxu0  ;;  %v1383_v63 = vmul.bf16 %v1319_v13, %v3821_v39  ;;  %2955 = vtanh.bf16 %v1131_v2  ;;  %v883_v30 = vmul.bf16 %v3882_v60, %v3882_v60 }
 0x22d   :  { %v1004_v48 = vmul.bf16 1027030327, %v876_v50  ;;  %v579_v46 = vpop.f32.mrb[93].mxu0  ;;  %v940_v59 = vmul.bf16 1061961548, %v3876_v11  ;;  %v4219_v18 = vpack.c.bf16 %v3530_v57, %v3523_v49  ;;  %v1137_v57 = vmul.bf16 %v1073_v15, %v945_v41 }
 0x22e   :  { %v2950_v20 = vpop.eup %2949  ;;  %v1005_v51 = vmul.bf16 1027030327, %v877_v8  ;;  %v581_v24 = vpop.f32.mrb[94].mxu0  ;;  %1720 = vmatprep.mubr.bf16.mxu1 %v1383_v63  ;;  %v941_v33 = vmul.bf16 1061961548, %v3885_v37 }
 0x22f   :  { %v2952_v62 = vpop.eup %2951  ;;  %v1068_v32 = vadd.bf16 1065369472, %v1004_v48  ;;  %v712_v22 = vpack.c.bf16 %v581_v24, %v577_v53  ;;  %v583_v38 = vpop.f32.mrb[95].mxu0  ;;  %1721 = vmatmul.mubr.bf16.gmra.mrb[108].mxu1 %v1382_v36  ;;  %v1256_v39 = vmul.bf16 1056980736, %v2950_v20  ;;  %v3904_v13 = vadd.bf16 %v3456_v17, %v4219_v18 }
 0x230   :  { %v1069_v29 = vadd.bf16 1065369472, %v1005_v51  ;;  %v713_v2 = vpack.c.bf16 %v583_v38, %v579_v46  ;;  %v1257_v1 = vmul.bf16 1056980736, %v2952_v62  ;;  %v1011_v53 = vmul.bf16 1027030327, %v883_v30 }
 0x231   :  { %v1132_v50 = vmul.bf16 %v1068_v32, %v940_v59  ;;  %v3907_v8 = vadd.bf16 %v3456_v17, %v712_v22  ;;  %v1320_v63 = vadd.bf16 1056980736, %v1256_v39  ;;  %v4220_v46 = vpack.c.bf16 %v3563_v44, %v3554_v35 }
 0x232   :  { %v1133_v48 = vmul.bf16 %v1069_v29, %v941_v33  ;;  %v3910_v36 = vadd.bf16 %v3459_v19, %v713_v2  ;;  %v1321_v20 = vadd.bf16 1056980736, %v1257_v1  ;;  %v944_v24 = vmul.bf16 1061961548, %v3861_v3 }
 0x233   :  { %v3916_v51 = vadd.bf16 %v3459_v19, %v4220_v46  ;;  %v878_v49 = vmul.bf16 %v3907_v8, %v3907_v8  ;;  %2957 = vtanh.bf16 %v1132_v50  ;;  %v1072_v62 = vadd.bf16 1065369472, %v3887_v25 }
 0x234   :  { %v879_v59 = vmul.bf16 %v3910_v36, %v3910_v36  ;;  %v1385_v30 = vmul.bf16 %v1321_v20, %v3835_v4  ;;  %2959 = vtanh.bf16 %v1133_v48  ;;  %v1384_v35 = vmul.bf16 %v1320_v63, %v3832_v61 }
 0x235   :  { %v1006_v32 = vmul.bf16 1027030327, %v878_v49  ;;  %v882_v22 = vmul.bf16 %v3904_v13, %v3904_v13  ;;  %v947_v38 = vmul.bf16 1061961548, %v3882_v60  ;;  %v1075_v41 = vadd.bf16 1065369472, %v1011_v53 }
 0x236   :  { %v2954_v44 = vpop.eup %2953  ;;  %v1007_v15 = vmul.bf16 1027030327, %v879_v59  ;;  %1728 = vmatprep.mubr.bf16.mxu1 %v1385_v30  ;;  %v885_v4 = vmul.bf16 %v3916_v51, %v3916_v51  ;;  %v942_v33 = vmul.bf16 1061961548, %v3907_v8  ;;  %v943_v61 = vmul.bf16 1061961548, %v3910_v36 }
 0x237   :  { %v2956_v39 = vpop.eup %2955  ;;  %v1070_v29 = vadd.bf16 1065369472, %v1006_v32  ;;  %1729 = vmatmul.mubr.bf16.gmra.mrb[112].mxu1 %v1384_v35  ;;  %v1258_v25 = vmul.bf16 1056980736, %v2954_v44  ;;  %2961 = vtanh.bf16 %v1137_v57  ;;  %v1010_v63 = vmul.bf16 1027030327, %v882_v22 }
 0x238   :  { %v1071_v2 = vadd.bf16 1065369472, %v1007_v15  ;;  %v1259_v1 = vmul.bf16 1056980736, %v2956_v39  ;;  %v1136_v20 = vmul.bf16 %v1072_v62, %v944_v24  ;;  %v1139_v46 = vmul.bf16 %v1075_v41, %v947_v38 }
 0x239   :  { %v1134_v18 = vmul.bf16 %v1070_v29, %v942_v33  ;;  %v1322_v50 = vadd.bf16 1056980736, %v1258_v25  ;;  %v4221_v49 = vpack.c.bf16 %v3559_v23, %v3548_v26  ;;  %v1013_v30 = vmul.bf16 1027030327, %v885_v4 }
 0x23a   :  { %v1135_v53 = vmul.bf16 %v1071_v2, %v943_v61  ;;  %v1323_v48 = vadd.bf16 1056980736, %v1259_v1  ;;  %v4222_v32 = vpack.c.bf16 %v3589_v28, %v3580_v16  ;;  %v946_v44 = vmul.bf16 1061961548, %v3904_v13 }
 0x23b   :  { %v3937_v59 = vadd.bf16 %v3456_v17, %v4221_v49  ;;  %2963 = vtanh.bf16 %v1134_v18  ;;  %v1386_v24 = vmul.bf16 %v1322_v50, %v3852_v7  ;;  %v1074_v26 = vadd.bf16 1065369472, %v1010_v63 }
 0x23c   :  { %v3943_v57 = vadd.bf16 %v3459_v19, %v4222_v32  ;;  %v1387_v35 = vmul.bf16 %v1323_v48, %v3855_v12  ;;  %2965 = vtanh.bf16 %v1135_v53  ;;  %v949_v38 = vmul.bf16 1061961548, %v3916_v51 }
 0x23d   :  { %v884_v22 = vmul.bf16 %v3937_v59, %v3937_v59  ;;  %2967 = vtanh.bf16 %v1136_v20  ;;  %v1077_v28 = vadd.bf16 1065369472, %v1013_v30  ;;  %v4223_v15 = vpack.c.bf16 %v3585_v21, %v3574_v5 }
 0x23e   :  { %v2958_v62 = vpop.eup %2957  ;;  %1736 = vmatprep.mubr.bf16.mxu1 %v1387_v35  ;;  %v887_v12 = vmul.bf16 %v3943_v57, %v3943_v57  ;;  %2969 = vtanh.bf16 %v1139_v46  ;;  %v1138_v29 = vmul.bf16 %v1074_v26, %v946_v44  ;;  %v4224_v1 = vpack.c.bf16 %v3613_v0, %v3604_v58 }
 0x23f   :  { %v2960_v23 = vpop.eup %2959  ;;  %1737 = vmatmul.mubr.bf16.gmra.mrb[116].mxu1 %v1386_v24  ;;  %v1260_v16 = vmul.bf16 1056980736, %v2958_v62  ;;  %v3957_v39 = vadd.bf16 %v3456_v17, %v4223_v15  ;;  %v1012_v25 = vmul.bf16 1027030327, %v884_v22  ;;  %v1141_v61 = vmul.bf16 %v1077_v28, %v949_v38 }
 0x240   :  { %v1261_v41 = vmul.bf16 1056980736, %v2960_v23  ;;  %v1015_v2 = vmul.bf16 1027030327, %v887_v12  ;;  %v3963_v18 = vadd.bf16 %v3459_v19, %v4224_v1  ;;  %v948_v21 = vmul.bf16 1061961548, %v3937_v59 }
 0x241   :  { %v1324_v7 = vadd.bf16 1056980736, %v1260_v16  ;;  %v886_v53 = vmul.bf16 %v3957_v39, %v3957_v39  ;;  %v1076_v46 = vadd.bf16 1065369472, %v1012_v25  ;;  %v951_v49 = vmul.bf16 1061961548, %v3943_v57 }
 0x242   :  { %v1325_v4 = vadd.bf16 1056980736, %v1261_v41  ;;  %v2962_v33 = vpop.eup %2961  ;;  %2971 = vtanh.bf16 %v1138_v29  ;;  %v1079_v0 = vadd.bf16 1065369472, %v1015_v2  ;;  %v4225_v23 = vpack.c.bf16 %v3609_v10, %v3598_v54 }
 0x243   :  { %v1388_v63 = vmul.bf16 %v1324_v7, %v3876_v11  ;;  %v1265_v48 = vmul.bf16 1056980736, %v2962_v33  ;;  %2973 = vtanh.bf16 %v1141_v61  ;;  %v1140_v44 = vmul.bf16 %v1076_v46, %v948_v21 }
 0x244   :  { %v1389_v50 = vmul.bf16 %v1325_v4, %v3885_v37  ;;  %v889_v37 = vmul.bf16 %v3963_v18, %v3963_v18  ;;  %v1014_v26 = vmul.bf16 1027030327, %v886_v53  ;;  %v3977_v22 = vadd.bf16 %v3456_v17, %v4225_v23 }
 0x245   :  { %v1329_v24 = vadd.bf16 1056980736, %v1265_v48  ;;  %v1143_v38 = vmul.bf16 %v1079_v0, %v951_v49  ;;  %v4226_v28 = vpack.c.bf16 %v3639_v31, %v3630_v6  ;;  %v950_v10 = vmul.bf16 1061961548, %v3957_v39 }
 0x246   :  { %v2964_v5 = vpop.eup %2963  ;;  %1744 = vmatprep.mubr.bf16.mxu1 %v1389_v50  ;;  %v1017_v16 = vmul.bf16 1027030327, %v889_v37  ;;  %v1078_v33 = vadd.bf16 1065369472, %v1014_v26  ;;  %v888_v29 = vmul.bf16 %v3977_v22, %v3977_v22  ;;  %2975 = vtanh.bf16 %v1140_v44 }
 0x247   :  { %v2966_v20 = vpop.eup %2965  ;;  %1745 = vmatmul.mubr.bf16.gmra.mrb[120].mxu1 %v1388_v63  ;;  %v1262_v58 = vmul.bf16 1056980736, %v2964_v5  ;;  %v3983_v12 = vadd.bf16 %v3459_v19, %v4226_v28  ;;  %v1393_v4 = vmul.bf16 %v1329_v24, %v3849_v34  ;;  %v953_v6 = vmul.bf16 1061961548, %v3963_v18 }
 0x248   :  { %v1263_v11 = vmul.bf16 1056980736, %v2966_v20  ;;  %v2968_v32 = vpop.eup %2967  ;;  %v1081_v31 = vadd.bf16 1065369472, %v1017_v16  ;;  %2977 = vtanh.bf16 %v1143_v38  ;;  %v4227_v34 = vpack.c.bf16 %v3635_v40, %v3624_v27 }
 0x249   :  { %v1326_v30 = vadd.bf16 1056980736, %v1262_v58  ;;  %v2970_v62 = vpop.eup %2969  ;;  %v1264_v15 = vmul.bf16 1056980736, %v2968_v32  ;;  %v1142_v50 = vmul.bf16 %v1078_v33, %v950_v10  ;;  %v1016_v63 = vmul.bf16 1027030327, %v888_v29 }
 0x24a   :  { %v1327_v35 = vadd.bf16 1056980736, %v1263_v11  ;;  %v1267_v54 = vmul.bf16 1056980736, %v2970_v62  ;;  %v3998_v61 = vadd.bf16 %v3456_v17, %v4227_v34  ;;  %v1145_v5 = vmul.bf16 %v1081_v31, %v953_v6 }
 0x24b   :  { %v1390_v7 = vmul.bf16 %v1326_v30, %v3907_v8  ;;  %v1328_v8 = vadd.bf16 1056980736, %v1264_v15  ;;  %v4228_v53 = vpack.c.bf16 %v3665_v43, %v3656_v52  ;;  %v952_v58 = vmul.bf16 1061961548, %v3977_v22 }
 0x24c   :  { %v1391_v41 = vmul.bf16 %v1327_v35, %v3910_v36  ;;  %v891_v36 = vmul.bf16 %v3983_v12, %v3983_v12  ;;  %v1331_v2 = vadd.bf16 1056980736, %v1267_v54  ;;  %v890_v27 = vmul.bf16 %v3998_v61, %v3998_v61 }
 0x24d   :  { %v2972_v25 = vpop.eup %2971  ;;  %v4004_v48 = vadd.bf16 %v3459_v19, %v4228_v53  ;;  %v1392_v20 = vmul.bf16 %v1328_v8, %v3861_v3  ;;  %v1080_v0 = vadd.bf16 1065369472, %v1016_v63  ;;  %2979 = vtanh.bf16 %v1142_v50  ;;  %v1857_v8 = vld [vmem:[#allocation10] sm:$0x1] }
 0x24e   :  { %1752 = vmatprep.mubr.bf16.mxu1 %v1391_v41  ;;  %v2974_v1 = vpop.eup %2973  ;;  %v1019_v21 = vmul.bf16 1027030327, %v891_v36  ;;  %v1266_v46 = vmul.bf16 1056980736, %v2972_v25  ;;  %v1395_v40 = vmul.bf16 %v1331_v2, %v3882_v60  ;;  %v955_v37 = vmul.bf16 1061961548, %v3983_v12 }
 0x24f   :  { %1753 = vmatmul.mubr.bf16.gmra.mrb[124].mxu1 %v1390_v7  ;;  %v1269_v49 = vmul.bf16 1056980736, %v2974_v1  ;;  %v893_v43 = vmul.bf16 %v4004_v48, %v4004_v48  ;;  %2981 = vtanh.bf16 %v1145_v5  ;;  %v4229_v3 = vpack.c.bf16 %v3661_v45, %v3650_v9 }
 0x250   :  { %1760 = vmatprep.mubr.bf16.mxu1 %v1393_v4  ;;  %v1083_v52 = vadd.bf16 1065369472, %v1019_v21  ;;  %v1330_v60 = vadd.bf16 1056980736, %v1266_v46  ;;  %v1018_v32 = vmul.bf16 1027030327, %v890_v27  ;;  %v1144_v62 = vmul.bf16 %v1080_v0, %v952_v58 }
 0x251   :  { %v4018_v11 = vadd.bf16 %v3456_v17, %v4229_v3  ;;  %v2976_v30 = vpop.eup %2975  ;;  %v1333_v35 = vadd.bf16 1056980736, %v1269_v49  ;;  %v1021_v26 = vmul.bf16 1027030327, %v893_v43  ;;  %v4230_v23 = vpack.c.bf16 %v3689_v47, %v3680_v56 }
 0x252   :  { %v1147_v44 = vmul.bf16 %v1083_v52, %v955_v37  ;;  %v1394_v45 = vmul.bf16 %v1330_v60, %v3904_v13  ;;  %v1268_v16 = vmul.bf16 1056980736, %v2976_v30  ;;  %v954_v28 = vmul.bf16 1061961548, %v3998_v61 }
 0x253   :  { %v2978_v24 = vpop.eup %2977  ;;  %v4024_v38 = vadd.bf16 %v3459_v19, %v4230_v23  ;;  %v892_v9 = vmul.bf16 %v4018_v11, %v4018_v11  ;;  %v1082_v41 = vadd.bf16 1065369472, %v1018_v32  ;;  %v1397_v7 = vmul.bf16 %v1333_v35, %v3916_v51 }
 0x254   :  { %v1271_v15 = vmul.bf16 1056980736, %v2978_v24  ;;  %2983 = vtanh.bf16 %v1144_v62  ;;  %v957_v4 = vmul.bf16 1061961548, %v4004_v48  ;;  %v1085_v56 = vadd.bf16 1065369472, %v1021_v26 }
 0x255   :  { %v895_v19 = vmul.bf16 %v4024_v38, %v4024_v38  ;;  %2985 = vtanh.bf16 %v1147_v44  ;;  %v1020_v47 = vmul.bf16 1027030327, %v892_v9  ;;  %v1332_v54 = vadd.bf16 1056980736, %v1268_v16 }
 0x256   :  { %v1146_v10 = vmul.bf16 %v1082_v41, %v954_v28  ;;  %v4231_v33 = vpack.c.bf16 %v3685_v42, %v3674_v55  ;;  %v1335_v29 = vadd.bf16 1056980736, %v1271_v15  ;;  %v1149_v31 = vmul.bf16 %v1085_v56, %v957_v4 }
 0x257   :  { %1761 = vmatmul.mubr.bf16.gmra.mrb[128].mxu1 %v1392_v20  ;;  %v1023_v36 = vmul.bf16 1027030327, %v895_v19  ;;  %v956_v25 = vmul.bf16 1061961548, %v4018_v11  ;;  %v1084_v34 = vadd.bf16 1065369472, %v1020_v47  ;;  %v1396_v2 = vmul.bf16 %v1332_v54, %v3937_v59 }
 0x258   :  { %1768 = vmatprep.mubr.bf16.mxu1 %v1395_v40  ;;  %v2980_v13 = vpop.eup %2979  ;;  %v4038_v51 = vadd.bf16 %v3456_v17, %v4231_v33  ;;  %v1399_v63 = vmul.bf16 %v1335_v29, %v3943_v57  ;;  %2987 = vtanh.bf16 %v1146_v10  ;;  %v1859_v17 = vpack.i.b16 %v1857_v8, %v1857_v8 }
 0x259   :  { %v1270_v1 = vmul.bf16 1056980736, %v2980_v13  ;;  %v959_v55 = vmul.bf16 1061961548, %v4024_v38  ;;  %v1087_v5 = vadd.bf16 1065369472, %v1023_v36  ;;  %2989 = vtanh.bf16 %v1149_v31 }
 0x25a   :  { %v2982_v6 = vpop.eup %2981  ;;  %v894_v50 = vmul.bf16 %v4038_v51, %v4038_v51  ;;  %v1148_v20 = vmul.bf16 %v1084_v34, %v956_v25  ;;  %v4047_v58 = vrot.slane %v1859_v17, %v3453_v14  ;;  %v958_v37 = vmul.bf16 1061961548, %v4038_v51 }
 0x25b   :  { %v1273_v42 = vmul.bf16 1056980736, %v2982_v6  ;;  %v1334_v21 = vadd.bf16 1056980736, %v1270_v1  ;;  %v1151_v57 = vmul.bf16 %v1087_v5, %v959_v55 }
 0x25c   :  { %v1022_v46 = vmul.bf16 1027030327, %v894_v50  ;;  %2991 = vtanh.bf16 %v1148_v20 }
 0x25d   :  { %v1337_v27 = vadd.bf16 1056980736, %v1273_v42  ;;  %v1398_v3 = vmul.bf16 %v1334_v21, %v3957_v39  ;;  %2993 = vtanh.bf16 %v1151_v57 }
 0x25e   :  { %v1086_v30 = vadd.bf16 1065369472, %v1022_v46 }
 0x25f   :  { %1769 = vmatmul.mubr.bf16.gmra.mrb[132].mxu1 %v1394_v45  ;;  %v2984_v53 = vpop.eup %2983  ;;  %v1401_v32 = vmul.bf16 %v1337_v27, %v3963_v18 }
 0x260   :  { %1776 = vmatprep.mubr.bf16.mxu1 %v1397_v7  ;;  %v2986_v40 = vpop.eup %2985  ;;  %v1272_v60 = vmul.bf16 1056980736, %v2984_v53  ;;  %v1150_v26 = vmul.bf16 %v1086_v30, %v958_v37 }
 0x261   :  { %v1275_v35 = vmul.bf16 1056980736, %v2986_v40 }
 0x262   :  { %v1336_v44 = vadd.bf16 1056980736, %v1272_v60  ;;  %2995 = vtanh.bf16 %v1150_v26 }
 0x263   :  { %v2988_v14 = vpop.eup %2987  ;;  %v1339_v39 = vadd.bf16 1056980736, %v1275_v35 }
 0x264   :  { %v2990_v9 = vpop.eup %2989  ;;  %v1274_v28 = vmul.bf16 1056980736, %v2988_v14  ;;  %v1400_v56 = vmul.bf16 %v1336_v44, %v3977_v22 }
 0x265   :  { %v1403_v19 = vmul.bf16 %v1339_v39, %v3983_v12  ;;  %v1277_v47 = vmul.bf16 1056980736, %v2990_v9 }
 0x266   :  { %v1338_v29 = vadd.bf16 1056980736, %v1274_v28 }
 0x267   :  { %1777 = vmatmul.mubr.bf16.gmra.mrb[136].mxu1 %v1396_v2  ;;  %v2992_v10 = vpop.eup %2991  ;;  %v1341_v31 = vadd.bf16 1056980736, %v1277_v47 }
 0x268   :  { %1784 = vmatprep.mubr.bf16.mxu1 %v1399_v63  ;;  %v2994_v36 = vpop.eup %2993  ;;  %v1276_v25 = vmul.bf16 1056980736, %v2992_v10  ;;  %v1402_v63 = vmul.bf16 %v1338_v29, %v3998_v61 }
 0x269   :  { %v1405_v42 = vmul.bf16 %v1341_v31, %v4004_v48  ;;  %v1279_v17 = vmul.bf16 1056980736, %v2994_v36 }
 0x26a   :  { %v1570_v59 = vpop.f32.mrb[32].mxu1  ;;  %v1340_v20 = vadd.bf16 1056980736, %v1276_v25 }
 0x26b   :  { %v1572_v49 = vpop.f32.mrb[33].mxu1 }
 0x26c   :  { %v1573_v0 = vpop.f32.mrb[34].mxu1 }
 0x26d   :  { %v1825_v52 = vpack.c.bf16 %v1573_v0, %v1570_v59  ;;  %v1575_v43 = vpop.f32.mrb[35].mxu1  ;;  %v2996_v21 = vpop.eup %2995  ;;  %v1343_v59 = vadd.bf16 1056980736, %v1279_v17 }
 0x26e   :  { %v1278_v57 = vmul.bf16 1056980736, %v2996_v21  ;;  %v1404_v43 = vmul.bf16 %v1340_v20, %v4018_v11 }
 0x26f   :  { %v4053_v24 = vadd.bf16 %v4047_v58, %v1825_v52  ;;  %1785 = vmatmul.mubr.bf16.gmra.mrb[140].mxu1 %v1398_v3  ;;  %v1407_v60 = vmul.bf16 %v1343_v59, %v4024_v38 }
 0x270   :  { %1792 = vmatprep.mubr.bf16.mxu1 %v1401_v32  ;;  %v1342_v44 = vadd.bf16 1056980736, %v1278_v57 }
 0x271   :  { %v1897_v62 = vmul.bf16 %v4053_v24, %v4053_v24  ;;  %v1929_v41 = vmul.bf16 1061961548, %v4053_v24 }
 0x272   :  { %v1578_v23 = vpop.f32.mrb[36].mxu1 }
 0x273   :  { %v1961_v45 = vmul.bf16 1027030327, %v1897_v62  ;;  %v1580_v16 = vpop.f32.mrb[37].mxu1 }
 0x274   :  { %v1581_v18 = vpop.f32.mrb[38].mxu1 }
 0x275   :  { %v1993_v7 = vadd.bf16 1065369472, %v1961_v45  ;;  %v1826_v15 = vpack.c.bf16 %v1581_v18, %v1578_v23  ;;  %v1583_v4 = vpop.f32.mrb[39].mxu1 }
 0x277   :  { %v2025_v54 = vmul.bf16 %v1993_v7, %v1929_v41  ;;  %v4061_v13 = vadd.bf16 %v4047_v58, %v1826_v15  ;;  %1793 = vmatmul.mubr.bf16.gmra.mrb[144].mxu1 %v1400_v56  ;;  %v1406_v41 = vmul.bf16 %v1342_v44, %v4038_v51 }
 0x278   :  { %1800 = vmatprep.mubr.bf16.mxu1 %v1403_v19 }
 0x279   :  { %v1898_v33 = vmul.bf16 %v4061_v13, %v4061_v13  ;;  %2997 = vtanh.bf16 %v2025_v54  ;;  %v1930_v34 = vmul.bf16 1061961548, %v4061_v13 }
 0x27a   :  { %v1586_v6 = vpop.f32.mrb[40].mxu1 }
 0x27b   :  { %v1962_v22 = vmul.bf16 1027030327, %v1898_v33  ;;  %v1588_v8 = vpop.f32.mrb[41].mxu1 }
 0x27c   :  { %v1589_v12 = vpop.f32.mrb[42].mxu1 }
 0x27d   :  { %v1994_v2 = vadd.bf16 1065369472, %v1962_v22  ;;  %v1827_v1 = vpack.c.bf16 %v1589_v12, %v1586_v6  ;;  %v1591_v50 = vpop.f32.mrb[43].mxu1 }
 0x27f   :  { %v2026_v55 = vmul.bf16 %v1994_v2, %v1930_v34  ;;  %v4069_v5 = vadd.bf16 %v4047_v58, %v1827_v1  ;;  %1801 = vmatmul.mubr.bf16.gmra.mrb[148].mxu1 %v1402_v63 }
 0x280   :  { %1808 = vmatprep.mubr.bf16.mxu1 %v1405_v42 }
 0x281   :  { %2999 = vtanh.bf16 %v2026_v55  ;;  %v1899_v53 = vmul.bf16 %v4069_v5, %v4069_v5  ;;  %v1931_v48 = vmul.bf16 1061961548, %v4069_v5 }
 0x282   :  { %v1594_v46 = vpop.f32.mrb[44].mxu1 }
 0x283   :  { %v1963_v27 = vmul.bf16 1027030327, %v1899_v53  ;;  %v1596_v40 = vpop.f32.mrb[45].mxu1 }
 0x284   :  { %v2998_v61 = vpop.eup %2997  ;;  %v1597_v49 = vpop.f32.mrb[46].mxu1 }
 0x285   :  { %v1995_v0 = vadd.bf16 1065369472, %v1963_v27  ;;  %v1828_v37 = vpack.c.bf16 %v1597_v49, %v1594_v46  ;;  %v1599_v52 = vpop.f32.mrb[47].mxu1  ;;  %v2089_v3 = vmul.bf16 1056980736, %v2998_v61 }
 0x287   :  { %v2027_v30 = vmul.bf16 %v1995_v0, %v1931_v48  ;;  %v4077_v32 = vadd.bf16 %v4047_v58, %v1828_v37  ;;  %1809 = vmatmul.mubr.bf16.gmra.mrb[152].mxu1 %v1404_v43  ;;  %v2121_v35 = vadd.bf16 1056980736, %v2089_v3 }
 0x288   :  { %1816 = vmatprep.mubr.bf16.mxu1 %v1407_v60 }
 0x289   :  { %v1900_v14 = vmul.bf16 %v4077_v32, %v4077_v32  ;;  %v2153_v62 = vmul.bf16 %v2121_v35, %v4053_v24  ;;  %3001 = vtanh.bf16 %v2027_v30  ;;  %v1932_v38 = vmul.bf16 1061961548, %v4077_v32 }
 0x28a   :  { %v1602_v26 = vpop.f32.mrb[48].mxu1 }
 0x28b   :  { %v1964_v23 = vmul.bf16 1027030327, %v1900_v14  ;;  %v1604_v11 = vpop.f32.mrb[49].mxu1  ;;  %2727 = vmatprep.mubr.bf16.mxu0 %v2153_v62 }
 0x28c   :  { %v3000_v39 = vpop.eup %2999  ;;  %v1605_v9 = vpop.f32.mrb[50].mxu1 }
 0x28d   :  { %v2090_v45 = vmul.bf16 1056980736, %v3000_v39  ;;  %v1996_v16 = vadd.bf16 1065369472, %v1964_v23  ;;  %v1829_v18 = vpack.c.bf16 %v1605_v9, %v1602_v26  ;;  %v1607_v28 = vpop.f32.mrb[51].mxu1 }
 0x28f   :  { %v2122_v7 = vadd.bf16 1056980736, %v2090_v45  ;;  %v2028_v15 = vmul.bf16 %v1996_v16, %v1932_v38  ;;  %v1869_v24 = vadd.bf16 %v4047_v58, %v1829_v18  ;;  %1817 = vmatmul.mubr.bf16.gmra.mrb[156].mxu1 %v1406_v41 }
 0x291   :  { %v2154_v4 = vmul.bf16 %v2122_v7, %v4061_v13  ;;  %v1901_v56 = vmul.bf16 %v1869_v24, %v1869_v24  ;;  %3003 = vtanh.bf16 %v2028_v15  ;;  %v1933_v33 = vmul.bf16 1061961548, %v1869_v24 }
 0x292   :  { %v1610_v19 = vpop.f32.mrb[52].mxu1 }
 0x293   :  { %v1965_v47 = vmul.bf16 1027030327, %v1901_v56  ;;  %v1612_v54 = vpop.f32.mrb[53].mxu1  ;;  %2728 = vmatmul.mubr.bf16.vlgmr.msra.gmra.mrb[96].mxu0 %v2154_v4 }
 0x294   :  { %v3002_v10 = vpop.eup %3001  ;;  %v1613_v29 = vpop.f32.mrb[54].mxu1 }
 0x295   :  { %v1997_v6 = vadd.bf16 1065369472, %v1965_v47  ;;  %v1830_v31 = vpack.c.bf16 %v1613_v29, %v1610_v19  ;;  %v1615_v36 = vpop.f32.mrb[55].mxu1  ;;  %v2091_v51 = vmul.bf16 1056980736, %v3002_v10 }
 0x297   :  { %v2029_v22 = vmul.bf16 %v1997_v6, %v1933_v33  ;;  %v1870_v8 = vadd.bf16 %v4047_v58, %v1830_v31  ;;  %v2123_v12 = vadd.bf16 1056980736, %v2091_v51 }
 0x299   :  { %v1902_v25 = vmul.bf16 %v1870_v8, %v1870_v8  ;;  %v2155_v13 = vmul.bf16 %v2123_v12, %v4069_v5  ;;  %3005 = vtanh.bf16 %v2029_v22  ;;  %v1934_v63 = vmul.bf16 1061961548, %v1870_v8 }
 0x29a   :  { %v1618_v34 = vpop.f32.mrb[56].mxu1 }
 0x29b   :  { %v1966_v2 = vmul.bf16 1027030327, %v1902_v25  ;;  %v1620_v1 = vpop.f32.mrb[57].mxu1  ;;  %2731 = vmatprep.mubr.bf16.mxu0 %v2155_v13 }
 0x29c   :  { %v3004_v50 = vpop.eup %3003  ;;  %v1621_v42 = vpop.f32.mrb[58].mxu1 }
 0x29d   :  { %v1998_v17 = vadd.bf16 1065369472, %v1966_v2  ;;  %v1831_v55 = vpack.c.bf16 %v1621_v42, %v1618_v34  ;;  %v1623_v21 = vpop.f32.mrb[59].mxu1  ;;  %v2092_v53 = vmul.bf16 1056980736, %v3004_v50 }
 0x29f   :  { %v2030_v20 = vmul.bf16 %v1998_v17, %v1934_v63  ;;  %v1871_v46 = vadd.bf16 %v4047_v58, %v1831_v55  ;;  %v2124_v59 = vadd.bf16 1056980736, %v2092_v53 }
 0x2a1   :  { %v1903_v27 = vmul.bf16 %v1871_v46, %v1871_v46  ;;  %v2156_v40 = vmul.bf16 %v2124_v59, %v4077_v32  ;;  %3007 = vtanh.bf16 %v2030_v20  ;;  %v1935_v57 = vmul.bf16 1061961548, %v1871_v46 }
 0x2a2   :  { %v1626_v5 = vpop.f32.mrb[60].mxu1 }
 0x2a3   :  { %v1967_v61 = vmul.bf16 1027030327, %v1903_v27  ;;  %v1628_v48 = vpop.f32.mrb[61].mxu1  ;;  %2732 = vmatmul.mubr.bf16.gmra.mrb[100].mxu0 %v2156_v40 }
 0x2a4   :  { %v3006_v49 = vpop.eup %3005  ;;  %v1629_v0 = vpop.f32.mrb[62].mxu1 }
 0x2a5   :  { %v1999_v37 = vadd.bf16 1065369472, %v1967_v61  ;;  %v1832_v52 = vpack.c.bf16 %v1629_v0, %v1626_v5  ;;  %v1631_v43 = vpop.f32.mrb[63].mxu1  ;;  %v2093_v3 = vmul.bf16 1056980736, %v3006_v49 }
 0x2a7   :  { %v2031_v60 = vmul.bf16 %v1999_v37, %v1935_v57  ;;  %v1872_v30 = vadd.bf16 %v4047_v58, %v1832_v52  ;;  %v2125_v35 = vadd.bf16 1056980736, %v2093_v3 }
 0x2a9   :  { %v1904_v14 = vmul.bf16 %v1872_v30, %v1872_v30  ;;  %v2157_v62 = vmul.bf16 %v2125_v35, %v1869_v24  ;;  %3009 = vtanh.bf16 %v2031_v60  ;;  %v1936_v11 = vmul.bf16 1061961548, %v1872_v30 }
 0x2aa   :  { %v1634_v32 = vpop.f32.mrb[64].mxu1 }
 0x2ab   :  { %v1968_v44 = vmul.bf16 1027030327, %v1904_v14  ;;  %v1636_v26 = vpop.f32.mrb[65].mxu1  ;;  %2735 = vmatprep.mubr.bf16.mxu0 %v2157_v62 }
 0x2ac   :  { %v3008_v23 = vpop.eup %3007  ;;  %v1637_v39 = vpop.f32.mrb[66].mxu1 }
 0x2ad   :  { %v2000_v38 = vadd.bf16 1065369472, %v1968_v44  ;;  %v1833_v9 = vpack.c.bf16 %v1637_v39, %v1634_v32  ;;  %v1639_v45 = vpop.f32.mrb[67].mxu1  ;;  %v2094_v16 = vmul.bf16 1056980736, %v3008_v23 }
 0x2af   :  { %v2032_v18 = vmul.bf16 %v2000_v38, %v1936_v11  ;;  %v1873_v28 = vadd.bf16 %v4047_v58, %v1833_v9  ;;  %v2126_v41 = vadd.bf16 1056980736, %v2094_v16 }
 0x2b1   :  { %v1905_v7 = vmul.bf16 %v1873_v28, %v1873_v28  ;;  %v2158_v15 = vmul.bf16 %v2126_v41, %v1870_v8  ;;  %3011 = vtanh.bf16 %v2032_v18  ;;  %v1937_v47 = vmul.bf16 1061961548, %v1873_v28 }
 0x2b2   :  { %v1642_v24 = vpop.f32.mrb[68].mxu1 }
 0x2b3   :  { %v1969_v4 = vmul.bf16 1027030327, %v1905_v7  ;;  %v1644_v56 = vpop.f32.mrb[69].mxu1  ;;  %2736 = vmatmul.mubr.bf16.gmra.mrb[104].mxu0 %v2158_v15 }
 0x2b4   :  { %v3010_v19 = vpop.eup %3009  ;;  %v1645_v54 = vpop.f32.mrb[70].mxu1 }
 0x2b5   :  { %v2001_v10 = vadd.bf16 1065369472, %v1969_v4  ;;  %v1834_v33 = vpack.c.bf16 %v1645_v54, %v1642_v24  ;;  %v1647_v29 = vpop.f32.mrb[71].mxu1  ;;  %v2095_v6 = vmul.bf16 1056980736, %v3010_v19 }
 0x2b7   :  { %v2033_v31 = vmul.bf16 %v2001_v10, %v1937_v47  ;;  %v1874_v36 = vadd.bf16 %v4047_v58, %v1834_v33  ;;  %v2127_v51 = vadd.bf16 1056980736, %v2095_v6 }
 0x2b9   :  { %v1906_v22 = vmul.bf16 %v1874_v36, %v1874_v36  ;;  %v2159_v12 = vmul.bf16 %v2127_v51, %v1871_v46  ;;  %3013 = vtanh.bf16 %v2033_v31  ;;  %v1938_v2 = vmul.bf16 1061961548, %v1874_v36 }
 0x2ba   :  { %v1650_v8 = vpop.f32.mrb[72].mxu1 }
 0x2bb   :  { %v1970_v25 = vmul.bf16 1027030327, %v1906_v22  ;;  %v1652_v13 = vpop.f32.mrb[73].mxu1  ;;  %2739 = vmatprep.mubr.bf16.mxu0 %v2159_v12 }
 0x2bc   :  { %v3012_v34 = vpop.eup %3011  ;;  %v1653_v1 = vpop.f32.mrb[74].mxu1 }
 0x2bd   :  { %v2002_v50 = vadd.bf16 1065369472, %v1970_v25  ;;  %v1835_v63 = vpack.c.bf16 %v1653_v1, %v1650_v8  ;;  %v1655_v42 = vpop.f32.mrb[75].mxu1  ;;  %v2096_v17 = vmul.bf16 1056980736, %v3012_v34 }
 0x2bf   :  { %v2034_v55 = vmul.bf16 %v2002_v50, %v1938_v2  ;;  %v1875_v21 = vadd.bf16 %v4047_v58, %v1835_v63  ;;  %v2128_v53 = vadd.bf16 1056980736, %v2096_v17 }
 0x2c1   :  { %v1907_v20 = vmul.bf16 %v1875_v21, %v1875_v21  ;;  %v2160_v59 = vmul.bf16 %v2128_v53, %v1872_v30  ;;  %3015 = vtanh.bf16 %v2034_v55  ;;  %v1939_v61 = vmul.bf16 1061961548, %v1875_v21 }
 0x2c2   :  { %v1658_v46 = vpop.f32.mrb[76].mxu1 }
 0x2c3   :  { %v1971_v27 = vmul.bf16 1027030327, %v1907_v20  ;;  %v1660_v40 = vpop.f32.mrb[77].mxu1  ;;  %2740 = vmatmul.mubr.bf16.gmra.mrb[108].mxu0 %v2160_v59 }
 0x2c4   :  { %v3014_v5 = vpop.eup %3013  ;;  %v1661_v48 = vpop.f32.mrb[78].mxu1 }
 0x2c5   :  { %v2003_v49 = vadd.bf16 1065369472, %v1971_v27  ;;  %v1836_v57 = vpack.c.bf16 %v1661_v48, %v1658_v46  ;;  %v1663_v0 = vpop.f32.mrb[79].mxu1  ;;  %v2097_v37 = vmul.bf16 1056980736, %v3014_v5 }
 0x2c7   :  { %v2035_v52 = vmul.bf16 %v2003_v49, %v1939_v61  ;;  %v1876_v43 = vadd.bf16 %v4047_v58, %v1836_v57  ;;  %v2129_v3 = vadd.bf16 1056980736, %v2097_v37 }
 0x2c9   :  { %v1908_v60 = vmul.bf16 %v1876_v43, %v1876_v43  ;;  %v2161_v35 = vmul.bf16 %v2129_v3, %v1873_v28  ;;  %3017 = vtanh.bf16 %v2035_v52  ;;  %v1940_v44 = vmul.bf16 1061961548, %v1876_v43 }
 0x2ca   :  { %v1666_v30 = vpop.f32.mrb[80].mxu1 }
 0x2cb   :  { %v1972_v14 = vmul.bf16 1027030327, %v1908_v60  ;;  %v1668_v62 = vpop.f32.mrb[81].mxu1  ;;  %2743 = vmatprep.mubr.bf16.mxu0 %v2161_v35 }
 0x2cc   :  { %v3016_v32 = vpop.eup %3015  ;;  %v1669_v26 = vpop.f32.mrb[82].mxu1 }
 0x2cd   :  { %v2004_v23 = vadd.bf16 1065369472, %v1972_v14  ;;  %v1837_v11 = vpack.c.bf16 %v1669_v26, %v1666_v30  ;;  %v1671_v39 = vpop.f32.mrb[83].mxu1  ;;  %v2098_v38 = vmul.bf16 1056980736, %v3016_v32 }
 0x2cf   :  { %v2036_v9 = vmul.bf16 %v2004_v23, %v1940_v44  ;;  %v1877_v45 = vadd.bf16 %v4047_v58, %v1837_v11  ;;  %v2130_v16 = vadd.bf16 1056980736, %v2098_v38 }
 0x2d1   :  { %v1909_v18 = vmul.bf16 %v1877_v45, %v1877_v45  ;;  %v2162_v41 = vmul.bf16 %v2130_v16, %v1874_v36  ;;  %3019 = vtanh.bf16 %v2036_v9  ;;  %v1941_v4 = vmul.bf16 1061961548, %v1877_v45 }
 0x2d2   :  { %v1674_v28 = vpop.f32.mrb[84].mxu1 }
 0x2d3   :  { %v1973_v7 = vmul.bf16 1027030327, %v1909_v18  ;;  %v1676_v15 = vpop.f32.mrb[85].mxu1  ;;  %2744 = vmatmul.mubr.bf16.gmra.mrb[112].mxu0 %v2162_v41 }
 0x2d4   :  { %v3018_v24 = vpop.eup %3017  ;;  %v1677_v56 = vpop.f32.mrb[86].mxu1 }
 0x2d5   :  { %v2005_v19 = vadd.bf16 1065369472, %v1973_v7  ;;  %v1838_v47 = vpack.c.bf16 %v1677_v56, %v1674_v28  ;;  %v1679_v54 = vpop.f32.mrb[87].mxu1  ;;  %v2099_v10 = vmul.bf16 1056980736, %v3018_v24 }
 0x2d7   :  { %v2037_v33 = vmul.bf16 %v2005_v19, %v1941_v4  ;;  %v1878_v29 = vadd.bf16 %v4047_v58, %v1838_v47  ;;  %v2131_v6 = vadd.bf16 1056980736, %v2099_v10 }
 0x2d9   :  { %v1910_v31 = vmul.bf16 %v1878_v29, %v1878_v29  ;;  %v2163_v51 = vmul.bf16 %v2131_v6, %v1875_v21  ;;  %3021 = vtanh.bf16 %v2037_v33  ;;  %v1942_v25 = vmul.bf16 1061961548, %v1878_v29 }
 0x2da   :  { %v1682_v36 = vpop.f32.mrb[88].mxu1 }
 0x2db   :  { %v1974_v22 = vmul.bf16 1027030327, %v1910_v31  ;;  %v1684_v12 = vpop.f32.mrb[89].mxu1  ;;  %2747 = vmatprep.mubr.bf16.mxu0 %v2163_v51 }
 0x2dc   :  { %v3020_v8 = vpop.eup %3019  ;;  %v1685_v13 = vpop.f32.mrb[90].mxu1 }
 0x2dd   :  { %v2006_v34 = vadd.bf16 1065369472, %v1974_v22  ;;  %v1839_v2 = vpack.c.bf16 %v1685_v13, %v1682_v36  ;;  %v1687_v1 = vpop.f32.mrb[91].mxu1  ;;  %v2100_v50 = vmul.bf16 1056980736, %v3020_v8 }
 0x2df   :  { %v2038_v63 = vmul.bf16 %v2006_v34, %v1942_v25  ;;  %v1879_v42 = vadd.bf16 %v4047_v58, %v1839_v2  ;;  %v2132_v17 = vadd.bf16 1056980736, %v2100_v50 }
 0x2e1   :  { %v1911_v55 = vmul.bf16 %v1879_v42, %v1879_v42  ;;  %v2164_v53 = vmul.bf16 %v2132_v17, %v1876_v43  ;;  %3023 = vtanh.bf16 %v2038_v63  ;;  %v1943_v27 = vmul.bf16 1061961548, %v1879_v42 }
 0x2e2   :  { %v1690_v21 = vpop.f32.mrb[92].mxu1 }
 0x2e3   :  { %v1975_v20 = vmul.bf16 1027030327, %v1911_v55  ;;  %v1692_v59 = vpop.f32.mrb[93].mxu1  ;;  %2748 = vmatmul.mubr.bf16.gmra.mrb[116].mxu0 %v2164_v53 }
 0x2e4   :  { %v3022_v46 = vpop.eup %3021  ;;  %v1693_v40 = vpop.f32.mrb[94].mxu1 }
 0x2e5   :  { %v2007_v5 = vadd.bf16 1065369472, %v1975_v20  ;;  %v1840_v61 = vpack.c.bf16 %v1693_v40, %v1690_v21  ;;  %v1695_v48 = vpop.f32.mrb[95].mxu1  ;;  %v2101_v49 = vmul.bf16 1056980736, %v3022_v46 }
 0x2e7   :  { %v2039_v57 = vmul.bf16 %v2007_v5, %v1943_v27  ;;  %v1880_v0 = vadd.bf16 %v4047_v58, %v1840_v61  ;;  %v2133_v37 = vadd.bf16 1056980736, %v2101_v49 }
 0x2e9   :  { %v1912_v52 = vmul.bf16 %v1880_v0, %v1880_v0  ;;  %v2165_v3 = vmul.bf16 %v2133_v37, %v1877_v45  ;;  %3025 = vtanh.bf16 %v2039_v57  ;;  %v1944_v14 = vmul.bf16 1061961548, %v1880_v0 }
 0x2ea   :  { %v1698_v43 = vpop.f32.mrb[96].mxu1 }
 0x2eb   :  { %v1976_v60 = vmul.bf16 1027030327, %v1912_v52  ;;  %v1700_v35 = vpop.f32.mrb[97].mxu1  ;;  %2751 = vmatprep.mubr.bf16.mxu0 %v2165_v3 }
 0x2ec   :  { %v3024_v30 = vpop.eup %3023  ;;  %v1701_v62 = vpop.f32.mrb[98].mxu1 }
 0x2ed   :  { %v2008_v32 = vadd.bf16 1065369472, %v1976_v60  ;;  %v1841_v44 = vpack.c.bf16 %v1701_v62, %v1698_v43  ;;  %v1703_v26 = vpop.f32.mrb[99].mxu1  ;;  %v2102_v23 = vmul.bf16 1056980736, %v3024_v30 }
 0x2ef   :  { %v2040_v11 = vmul.bf16 %v2008_v32, %v1944_v14  ;;  %v1881_v39 = vadd.bf16 %v4047_v58, %v1841_v44  ;;  %v2134_v38 = vadd.bf16 1056980736, %v2102_v23 }
 0x2f1   :  { %v1913_v9 = vmul.bf16 %v1881_v39, %v1881_v39  ;;  %v2166_v16 = vmul.bf16 %v2134_v38, %v1878_v29  ;;  %3027 = vtanh.bf16 %v2040_v11  ;;  %v1945_v7 = vmul.bf16 1061961548, %v1881_v39 }
 0x2f2   :  { %v1706_v45 = vpop.f32.mrb[100].mxu1 }
 0x2f3   :  { %v1977_v18 = vmul.bf16 1027030327, %v1913_v9  ;;  %v1708_v41 = vpop.f32.mrb[101].mxu1  ;;  %2752 = vmatmul.mubr.bf16.gmra.mrb[120].mxu0 %v2166_v16 }
 0x2f4   :  { %v3026_v28 = vpop.eup %3025  ;;  %v1709_v15 = vpop.f32.mrb[102].mxu1 }
 0x2f5   :  { %v2009_v24 = vadd.bf16 1065369472, %v1977_v18  ;;  %v1842_v4 = vpack.c.bf16 %v1709_v15, %v1706_v45  ;;  %v1711_v56 = vpop.f32.mrb[103].mxu1  ;;  %v2103_v19 = vmul.bf16 1056980736, %v3026_v28 }
 0x2f7   :  { %v2041_v47 = vmul.bf16 %v2009_v24, %v1945_v7  ;;  %v1882_v54 = vadd.bf16 %v4047_v58, %v1842_v4  ;;  %v2135_v10 = vadd.bf16 1056980736, %v2103_v19 }
 0x2f9   :  { %v1914_v33 = vmul.bf16 %v1882_v54, %v1882_v54  ;;  %v2167_v6 = vmul.bf16 %v2135_v10, %v1879_v42  ;;  %3029 = vtanh.bf16 %v2041_v47  ;;  %v1946_v22 = vmul.bf16 1061961548, %v1882_v54 }
 0x2fa   :  { %v1714_v29 = vpop.f32.mrb[104].mxu1 }
 0x2fb   :  { %v1978_v31 = vmul.bf16 1027030327, %v1914_v33  ;;  %v1716_v51 = vpop.f32.mrb[105].mxu1  ;;  %2755 = vmatprep.mubr.bf16.mxu0 %v2167_v6 }
 0x2fc   :  { %v3028_v36 = vpop.eup %3027  ;;  %v1717_v12 = vpop.f32.mrb[106].mxu1 }
 0x2fd   :  { %v2010_v8 = vadd.bf16 1065369472, %v1978_v31  ;;  %v1843_v25 = vpack.c.bf16 %v1717_v12, %v1714_v29  ;;  %v1719_v13 = vpop.f32.mrb[107].mxu1  ;;  %v2104_v34 = vmul.bf16 1056980736, %v3028_v36 }
 0x2ff   :  { %v2042_v2 = vmul.bf16 %v2010_v8, %v1946_v22  ;;  %v1883_v1 = vadd.bf16 %v4047_v58, %v1843_v25  ;;  %v2136_v50 = vadd.bf16 1056980736, %v2104_v34 }
 0x301   :  { %v1915_v63 = vmul.bf16 %v1883_v1, %v1883_v1  ;;  %v2168_v17 = vmul.bf16 %v2136_v50, %v1880_v0  ;;  %3031 = vtanh.bf16 %v2042_v2  ;;  %v1947_v20 = vmul.bf16 1061961548, %v1883_v1 }
 0x302   :  { %v1722_v42 = vpop.f32.mrb[108].mxu1 }
 0x303   :  { %v1979_v55 = vmul.bf16 1027030327, %v1915_v63  ;;  %v1724_v53 = vpop.f32.mrb[109].mxu1  ;;  %2756 = vmatmul.mubr.bf16.gmra.mrb[124].mxu0 %v2168_v17 }
 0x304   :  { %v3030_v21 = vpop.eup %3029  ;;  %v1725_v59 = vpop.f32.mrb[110].mxu1 }
 0x305   :  { %v2011_v46 = vadd.bf16 1065369472, %v1979_v55  ;;  %v1844_v27 = vpack.c.bf16 %v1725_v59, %v1722_v42  ;;  %v1727_v40 = vpop.f32.mrb[111].mxu1  ;;  %v2105_v5 = vmul.bf16 1056980736, %v3030_v21 }
 0x307   :  { %v2043_v61 = vmul.bf16 %v2011_v46, %v1947_v20  ;;  %v1884_v48 = vadd.bf16 %v4047_v58, %v1844_v27  ;;  %v2137_v49 = vadd.bf16 1056980736, %v2105_v5 }
 0x309   :  { %v1916_v57 = vmul.bf16 %v1884_v48, %v1884_v48  ;;  %v2169_v37 = vmul.bf16 %v2137_v49, %v1881_v39  ;;  %3033 = vtanh.bf16 %v2043_v61  ;;  %v1948_v60 = vmul.bf16 1061961548, %v1884_v48 }
 0x30a   :  { %v1730_v0 = vpop.f32.mrb[112].mxu1 }
 0x30b   :  { %v1980_v52 = vmul.bf16 1027030327, %v1916_v57  ;;  %v1732_v3 = vpop.f32.mrb[113].mxu1  ;;  %2759 = vmatprep.mubr.bf16.mxu0 %v2169_v37 }
 0x30c   :  { %v3032_v43 = vpop.eup %3031  ;;  %v1733_v35 = vpop.f32.mrb[114].mxu1 }
 0x30d   :  { %v2012_v30 = vadd.bf16 1065369472, %v1980_v52  ;;  %v1845_v14 = vpack.c.bf16 %v1733_v35, %v1730_v0  ;;  %v1735_v62 = vpop.f32.mrb[115].mxu1  ;;  %v2106_v32 = vmul.bf16 1056980736, %v3032_v43 }
 0x30f   :  { %v2044_v44 = vmul.bf16 %v2012_v30, %v1948_v60  ;;  %v1885_v26 = vadd.bf16 %v4047_v58, %v1845_v14  ;;  %v2138_v23 = vadd.bf16 1056980736, %v2106_v32 }
 0x311   :  { %v1917_v11 = vmul.bf16 %v1885_v26, %v1885_v26  ;;  %v2170_v38 = vmul.bf16 %v2138_v23, %v1882_v54  ;;  %3035 = vtanh.bf16 %v2044_v44  ;;  %v1949_v18 = vmul.bf16 1061961548, %v1885_v26 }
 0x312   :  { %v1738_v39 = vpop.f32.mrb[116].mxu1 }
 0x313   :  { %v1981_v9 = vmul.bf16 1027030327, %v1917_v11  ;;  %v1740_v16 = vpop.f32.mrb[117].mxu1  ;;  %2760 = vmatmul.mubr.bf16.gmra.mrb[128].mxu0 %v2170_v38 }
 0x314   :  { %v3034_v45 = vpop.eup %3033  ;;  %v1741_v41 = vpop.f32.mrb[118].mxu1 }
 0x315   :  { %v2013_v28 = vadd.bf16 1065369472, %v1981_v9  ;;  %v1846_v7 = vpack.c.bf16 %v1741_v41, %v1738_v39  ;;  %v1743_v15 = vpop.f32.mrb[119].mxu1  ;;  %v2107_v24 = vmul.bf16 1056980736, %v3034_v45 }
 0x317   :  { %v2045_v4 = vmul.bf16 %v2013_v28, %v1949_v18  ;;  %v1886_v56 = vadd.bf16 %v4047_v58, %v1846_v7  ;;  %v2139_v19 = vadd.bf16 1056980736, %v2107_v24 }
 0x319   :  { %v1918_v47 = vmul.bf16 %v1886_v56, %v1886_v56  ;;  %v2171_v10 = vmul.bf16 %v2139_v19, %v1883_v1  ;;  %3037 = vtanh.bf16 %v2045_v4  ;;  %v1950_v31 = vmul.bf16 1061961548, %v1886_v56 }
 0x31a   :  { %v1746_v54 = vpop.f32.mrb[120].mxu1 }
 0x31b   :  { %v1982_v33 = vmul.bf16 1027030327, %v1918_v47  ;;  %v1748_v6 = vpop.f32.mrb[121].mxu1  ;;  %2763 = vmatprep.mubr.bf16.mxu0 %v2171_v10 }
 0x31c   :  { %v3036_v29 = vpop.eup %3035  ;;  %v1749_v51 = vpop.f32.mrb[122].mxu1 }
 0x31d   :  { %v2014_v36 = vadd.bf16 1065369472, %v1982_v33  ;;  %v1847_v22 = vpack.c.bf16 %v1749_v51, %v1746_v54  ;;  %v1751_v12 = vpop.f32.mrb[123].mxu1  ;;  %v2108_v8 = vmul.bf16 1056980736, %v3036_v29 }
 0x31f   :  { %v2046_v25 = vmul.bf16 %v2014_v36, %v1950_v31  ;;  %v1887_v13 = vadd.bf16 %v4047_v58, %v1847_v22  ;;  %v2140_v34 = vadd.bf16 1056980736, %v2108_v8 }
 0x321   :  { %v1919_v2 = vmul.bf16 %v1887_v13, %v1887_v13  ;;  %v2172_v50 = vmul.bf16 %v2140_v34, %v1884_v48  ;;  %3039 = vtanh.bf16 %v2046_v25  ;;  %v1951_v55 = vmul.bf16 1061961548, %v1887_v13 }
 0x322   :  { %v1754_v1 = vpop.f32.mrb[124].mxu1 }
 0x323   :  { %v1983_v63 = vmul.bf16 1027030327, %v1919_v2  ;;  %v1756_v17 = vpop.f32.mrb[125].mxu1  ;;  %2764 = vmatmul.mubr.bf16.gmra.mrb[132].mxu0 %v2172_v50 }
 0x324   :  { %v3038_v42 = vpop.eup %3037  ;;  %v1757_v53 = vpop.f32.mrb[126].mxu1 }
 0x325   :  { %v2015_v21 = vadd.bf16 1065369472, %v1983_v63  ;;  %v1848_v20 = vpack.c.bf16 %v1757_v53, %v1754_v1  ;;  %v1759_v59 = vpop.f32.mrb[127].mxu1  ;;  %v2109_v46 = vmul.bf16 1056980736, %v3038_v42 }
 0x327   :  { %v2047_v27 = vmul.bf16 %v2015_v21, %v1951_v55  ;;  %v1888_v40 = vadd.bf16 %v4047_v58, %v1848_v20  ;;  %v2141_v5 = vadd.bf16 1056980736, %v2109_v46 }
 0x329   :  { %v1920_v61 = vmul.bf16 %v1888_v40, %v1888_v40  ;;  %v2173_v49 = vmul.bf16 %v2141_v5, %v1885_v26  ;;  %3041 = vtanh.bf16 %v2047_v27  ;;  %v1952_v52 = vmul.bf16 1061961548, %v1888_v40 }
 0x32a   :  { %v1762_v48 = vpop.f32.mrb[128].mxu1 }
 0x32b   :  { %v1984_v57 = vmul.bf16 1027030327, %v1920_v61  ;;  %v1764_v37 = vpop.f32.mrb[129].mxu1  ;;  %2767 = vmatprep.mubr.bf16.mxu0 %v2173_v49 }
 0x32c   :  { %v3040_v0 = vpop.eup %3039  ;;  %v1765_v3 = vpop.f32.mrb[130].mxu1 }
 0x32d   :  { %v2016_v43 = vadd.bf16 1065369472, %v1984_v57  ;;  %v1849_v60 = vpack.c.bf16 %v1765_v3, %v1762_v48  ;;  %v1767_v35 = vpop.f32.mrb[131].mxu1  ;;  %v2110_v30 = vmul.bf16 1056980736, %v3040_v0 }
 0x32f   :  { %v2048_v14 = vmul.bf16 %v2016_v43, %v1952_v52  ;;  %v1889_v62 = vadd.bf16 %v4047_v58, %v1849_v60  ;;  %v2142_v32 = vadd.bf16 1056980736, %v2110_v30 }
 0x331   :  { %v1921_v44 = vmul.bf16 %v1889_v62, %v1889_v62  ;;  %v2174_v23 = vmul.bf16 %v2142_v32, %v1886_v56  ;;  %3043 = vtanh.bf16 %v2048_v14  ;;  %v1953_v9 = vmul.bf16 1061961548, %v1889_v62 }
 0x332   :  { %v1770_v26 = vpop.f32.mrb[132].mxu1 }
 0x333   :  { %v1985_v11 = vmul.bf16 1027030327, %v1921_v44  ;;  %v1772_v38 = vpop.f32.mrb[133].mxu1  ;;  %2768 = vmatmul.mubr.bf16.gmra.mrb[136].mxu0 %v2174_v23 }
 0x334   :  { %v3042_v39 = vpop.eup %3041  ;;  %v1773_v16 = vpop.f32.mrb[134].mxu1 }
 0x335   :  { %v2017_v45 = vadd.bf16 1065369472, %v1985_v11  ;;  %v1850_v18 = vpack.c.bf16 %v1773_v16, %v1770_v26  ;;  %v1775_v41 = vpop.f32.mrb[135].mxu1  ;;  %v2111_v28 = vmul.bf16 1056980736, %v3042_v39 }
 0x337   :  { %v2049_v7 = vmul.bf16 %v2017_v45, %v1953_v9  ;;  %v1890_v15 = vadd.bf16 %v4047_v58, %v1850_v18  ;;  %v2143_v24 = vadd.bf16 1056980736, %v2111_v28 }
 0x339   :  { %v1922_v4 = vmul.bf16 %v1890_v15, %v1890_v15  ;;  %v2175_v19 = vmul.bf16 %v2143_v24, %v1887_v13  ;;  %3045 = vtanh.bf16 %v2049_v7  ;;  %v1954_v33 = vmul.bf16 1061961548, %v1890_v15 }
 0x33a   :  { %v1778_v56 = vpop.f32.mrb[136].mxu1 }
 0x33b   :  { %v1986_v47 = vmul.bf16 1027030327, %v1922_v4  ;;  %v1780_v10 = vpop.f32.mrb[137].mxu1  ;;  %2771 = vmatprep.mubr.bf16.mxu0 %v2175_v19 }
 0x33c   :  { %v3044_v54 = vpop.eup %3043  ;;  %v1781_v6 = vpop.f32.mrb[138].mxu1 }
 0x33d   :  { %v2018_v29 = vadd.bf16 1065369472, %v1986_v47  ;;  %v1851_v31 = vpack.c.bf16 %v1781_v6, %v1778_v56  ;;  %v1783_v51 = vpop.f32.mrb[139].mxu1  ;;  %v2112_v36 = vmul.bf16 1056980736, %v3044_v54 }
 0x33f   :  { %v2050_v22 = vmul.bf16 %v2018_v29, %v1954_v33  ;;  %v1891_v12 = vadd.bf16 %v4047_v58, %v1851_v31  ;;  %v2144_v8 = vadd.bf16 1056980736, %v2112_v36 }
 0x341   :  { %v1923_v25 = vmul.bf16 %v1891_v12, %v1891_v12  ;;  %v2176_v34 = vmul.bf16 %v2144_v8, %v1888_v40  ;;  %3047 = vtanh.bf16 %v2050_v22  ;;  %v1955_v63 = vmul.bf16 1061961548, %v1891_v12 }
 0x342   :  { %v1786_v13 = vpop.f32.mrb[140].mxu1 }
 0x343   :  { %v1987_v2 = vmul.bf16 1027030327, %v1923_v25  ;;  %v1788_v50 = vpop.f32.mrb[141].mxu1  ;;  %2772 = vmatmul.mubr.bf16.gmra.mrb[140].mxu0 %v2176_v34 }
 0x344   :  { %v3046_v1 = vpop.eup %3045  ;;  %v1789_v17 = vpop.f32.mrb[142].mxu1 }
 0x345   :  { %v2019_v42 = vadd.bf16 1065369472, %v1987_v2  ;;  %v1852_v55 = vpack.c.bf16 %v1789_v17, %v1786_v13  ;;  %v1791_v53 = vpop.f32.mrb[143].mxu1  ;;  %v2113_v21 = vmul.bf16 1056980736, %v3046_v1 }
 0x346   :  { %v4124_v1 = vld [vmem:[#allocation13] ss:$0 sm:$0xff] }
 0x347   :  { %v2051_v20 = vmul.bf16 %v2019_v42, %v1955_v63  ;;  %v1892_v59 = vadd.bf16 %v4047_v58, %v1852_v55  ;;  %v2145_v46 = vadd.bf16 1056980736, %v2113_v21 }
 0x349   :  { %v1924_v27 = vmul.bf16 %v1892_v59, %v1892_v59  ;;  %v2177_v5 = vmul.bf16 %v2145_v46, %v1889_v62  ;;  %3049 = vtanh.bf16 %v2051_v20  ;;  %v1956_v57 = vmul.bf16 1061961548, %v1892_v59 }
 0x34a   :  { %v1794_v40 = vpop.f32.mrb[144].mxu1 }
 0x34b   :  { %v1988_v61 = vmul.bf16 1027030327, %v1924_v27  ;;  %v1796_v49 = vpop.f32.mrb[145].mxu1  ;;  %2775 = vmatprep.mubr.bf16.mxu0 %v2177_v5 }
 0x34c   :  { %v3048_v48 = vpop.eup %3047  ;;  %v1797_v37 = vpop.f32.mrb[146].mxu1 }
 0x34d   :  { %v2020_v0 = vadd.bf16 1065369472, %v1988_v61  ;;  %v1853_v52 = vpack.c.bf16 %v1797_v37, %v1794_v40  ;;  %v1799_v3 = vpop.f32.mrb[147].mxu1  ;;  %v2114_v43 = vmul.bf16 1056980736, %v3048_v48 }
 0x34f   :  { %v2052_v60 = vmul.bf16 %v2020_v0, %v1956_v57  ;;  %v4112_v35 = vadd.bf16 %v4047_v58, %v1853_v52  ;;  %v2146_v30 = vadd.bf16 1056980736, %v2114_v43 }
 0x351   :  { %v1925_v14 = vmul.bf16 %v4112_v35, %v4112_v35  ;;  %v2178_v62 = vmul.bf16 %v2146_v30, %v1890_v15  ;;  %3051 = vtanh.bf16 %v2052_v60  ;;  %v1957_v11 = vmul.bf16 1061961548, %v4112_v35 }
 0x352   :  { %v1802_v32 = vpop.f32.mrb[148].mxu1 }
 0x353   :  { %v1989_v44 = vmul.bf16 1027030327, %v1925_v14  ;;  %v1804_v23 = vpop.f32.mrb[149].mxu1  ;;  %2776 = vmatmul.mubr.bf16.gmra.mrb[144].mxu0 %v2178_v62 }
 0x354   :  { %v3050_v26 = vpop.eup %3049  ;;  %v1805_v38 = vpop.f32.mrb[150].mxu1 }
 0x355   :  { %v2021_v39 = vadd.bf16 1065369472, %v1989_v44  ;;  %v1854_v9 = vpack.c.bf16 %v1805_v38, %v1802_v32  ;;  %v1807_v16 = vpop.f32.mrb[151].mxu1  ;;  %v2115_v45 = vmul.bf16 1056980736, %v3050_v26 }
 0x357   :  { %v2053_v18 = vmul.bf16 %v2021_v39, %v1957_v11  ;;  %v1894_v41 = vadd.bf16 %v4047_v58, %v1854_v9  ;;  %v2147_v28 = vadd.bf16 1056980736, %v2115_v45 }
 0x359   :  { %v1926_v7 = vmul.bf16 %v1894_v41, %v1894_v41  ;;  %v2179_v24 = vmul.bf16 %v2147_v28, %v1891_v12  ;;  %3053 = vtanh.bf16 %v2053_v18  ;;  %v1958_v47 = vmul.bf16 1061961548, %v1894_v41 }
 0x35a   :  { %v1810_v15 = vpop.f32.mrb[152].mxu1 }
 0x35b   :  { %v1990_v4 = vmul.bf16 1027030327, %v1926_v7  ;;  %v1812_v19 = vpop.f32.mrb[153].mxu1  ;;  %2779 = vmatprep.mubr.bf16.mxu0 %v2179_v24 }
 0x35c   :  { %v3052_v56 = vpop.eup %3051  ;;  %v1813_v10 = vpop.f32.mrb[154].mxu1 }
 0x35d   :  { %v2022_v54 = vadd.bf16 1065369472, %v1990_v4  ;;  %v1855_v33 = vpack.c.bf16 %v1813_v10, %v1810_v15  ;;  %v1815_v6 = vpop.f32.mrb[155].mxu1  ;;  %v2116_v29 = vmul.bf16 1056980736, %v3052_v56 }
 0x35f   :  { %v2054_v31 = vmul.bf16 %v2022_v54, %v1958_v47  ;;  %v4119_v51 = vadd.bf16 %v4047_v58, %v1855_v33  ;;  %v2148_v36 = vadd.bf16 1056980736, %v2116_v29 }
 0x361   :  { %v1927_v22 = vmul.bf16 %v4119_v51, %v4119_v51  ;;  %v2180_v12 = vmul.bf16 %v2148_v36, %v1892_v59  ;;  %3055 = vtanh.bf16 %v2054_v31  ;;  %v1959_v2 = vmul.bf16 1061961548, %v4119_v51 }
 0x362   :  { %v1818_v8 = vpop.f32.mrb[156].mxu1 }
 0x363   :  { %v1991_v25 = vmul.bf16 1027030327, %v1927_v22  ;;  %v1820_v34 = vpop.f32.mrb[157].mxu1  ;;  %2780 = vmatmul.mubr.bf16.gmra.mrb[148].mxu0 %v2180_v12 }
 0x364   :  { %v3054_v13 = vpop.eup %3053  ;;  %v1821_v50 = vpop.f32.mrb[158].mxu1 }
 0x365   :  { %v2023_v63 = vadd.bf16 1065369472, %v1991_v25  ;;  %v1856_v17 = vpack.c.bf16 %v1821_v50, %v1818_v8  ;;  %v1823_v42 = vpop.f32.mrb[159].mxu1  ;;  %v2117_v55 = vmul.bf16 1056980736, %v3054_v13 }
 0x366   :  { %v2729_v53 = vpop.f32.mrb[96].mxu0 }
 0x367   :  { %v2055_v21 = vmul.bf16 %v2023_v63, %v1959_v2  ;;  %v1896_v20 = vadd.bf16 %v4047_v58, %v1856_v17  ;;  %v2299_v59 = vadd.f32 %v2729_v53, %v4124_v1  ;;  %v2290_v46 = vpop.f32.mrb[97].mxu0  ;;  %v2149_v27 = vadd.bf16 1056980736, %v2117_v55 }
 0x368   :  { %v2291_v5 = vadd.f32 %v4124_v1, %v2290_v46  ;;  %v2730_v40 = vpop.f32.mrb[98].mxu0 }
 0x369   :  { %v1928_v61 = vmul.bf16 %v1896_v20, %v1896_v20  ;;  %2547 = vst [vmem:[#allocation14 + $0x10] sm:$0xff] %v2299_v59  ;;  %v2302_v49 = vadd.f32 %v2730_v40, %v4124_v1  ;;  %v2293_v48 = vpop.f32.mrb[99].mxu0  ;;  %v2181_v57 = vmul.bf16 %v2149_v27, %v4112_v35  ;;  %3057 = vtanh.bf16 %v2055_v21 }
 0x36a   :  { %2545 = vst [vmem:[#allocation14] sm:$0xff] %v2291_v5  ;;  %v2294_v37 = vadd.f32 %v4124_v1, %v2293_v48  ;;  %v1960_v52 = vmul.bf16 1061961548, %v1896_v20 }
 0x36b   :  { %v1992_v0 = vmul.bf16 1027030327, %v1928_v61  ;;  %2548 = vst [vmem:[#allocation14 + $0x18] sm:$0xff] %v2302_v49  ;;  %2783 = vmatprep.mubr.bf16.mxu0 %v2181_v57 }
 0x36c   :  { %v3056_v58 = vpop.eup %3055  ;;  %2546 = vst [vmem:[#allocation14 + $0x8] sm:$0xff] %v2294_v37 }
 0x36d   :  { %v2024_v3 = vadd.bf16 1065369472, %v1992_v0  ;;  %v2118_v43 = vmul.bf16 1056980736, %v3056_v58 }
 0x36f   :  { %v2056_v60 = vmul.bf16 %v2024_v3, %v1960_v52  ;;  %v2150_v30 = vadd.bf16 1056980736, %v2118_v43 }
 0x371   :  { %v2182_v14 = vmul.bf16 %v2150_v30, %v1894_v41  ;;  %3059 = vtanh.bf16 %v2056_v60 }
 0x373   :  { %2784 = vmatmul.mubr.bf16.gmra.mrb[152].mxu0 %v2182_v14 }
 0x374   :  { %v3058_v62 = vpop.eup %3057 }
 0x375   :  { %v2119_v35 = vmul.bf16 1056980736, %v3058_v62 }
 0x376   :  { %v2733_v32 = vpop.f32.mrb[100].mxu0 }
 0x377   :  { %v2315_v44 = vadd.f32 %v2733_v32, %v4124_v1  ;;  %v2306_v23 = vpop.f32.mrb[101].mxu0  ;;  %v2151_v38 = vadd.bf16 1056980736, %v2119_v35 }
 0x378   :  { %v2307_v26 = vadd.f32 %v4124_v1, %v2306_v23  ;;  %v2734_v11 = vpop.f32.mrb[102].mxu0 }
 0x379   :  { %2551 = vst [vmem:[#allocation14 + $0x30] sm:$0xff] %v2315_v44  ;;  %v2318_v39 = vadd.f32 %v2734_v11, %v4124_v1  ;;  %v2309_v9 = vpop.f32.mrb[103].mxu0  ;;  %v2183_v45 = vmul.bf16 %v2151_v38, %v4119_v51 }
 0x37a   :  { %2549 = vst [vmem:[#allocation14 + $0x20] sm:$0xff] %v2307_v26  ;;  %v2310_v16 = vadd.f32 %v4124_v1, %v2309_v9 }
 0x37b   :  { %2552 = vst [vmem:[#allocation14 + $0x38] sm:$0xff] %v2318_v39  ;;  %2787 = vmatprep.mubr.bf16.mxu0 %v2183_v45 }
 0x37c   :  { %v3060_v18 = vpop.eup %3059  ;;  %2550 = vst [vmem:[#allocation14 + $0x28] sm:$0xff] %v2310_v16 }
 0x37d   :  { %v2120_v41 = vmul.bf16 1056980736, %v3060_v18 }
 0x37f   :  { %v2152_v28 = vadd.bf16 1056980736, %v2120_v41 }
 0x381   :  { %v2184_v7 = vmul.bf16 %v2152_v28, %v1896_v20 }
 0x383   :  { %2788 = vmatmul.mubr.bf16.gmra.mrb[156].mxu0 %v2184_v7 }
 0x386   :  { %v2737_v24 = vpop.f32.mrb[104].mxu0 }
 0x387   :  { %v2331_v15 = vadd.f32 %v2737_v24, %v4124_v1  ;;  %v2322_v4 = vpop.f32.mrb[105].mxu0 }
 0x388   :  { %v2323_v19 = vadd.f32 %v4124_v1, %v2322_v4  ;;  %v2738_v56 = vpop.f32.mrb[106].mxu0 }
 0x389   :  { %2555 = vst [vmem:[#allocation14 + $0x50] sm:$0xff] %v2331_v15  ;;  %v2334_v47 = vadd.f32 %v2738_v56, %v4124_v1  ;;  %v2325_v10 = vpop.f32.mrb[107].mxu0 }
 0x38a   :  { %2553 = vst [vmem:[#allocation14 + $0x40] sm:$0xff] %v2323_v19  ;;  %v2326_v54 = vadd.f32 %v4124_v1, %v2325_v10 }
 0x38b   :  { %2556 = vst [vmem:[#allocation14 + $0x58] sm:$0xff] %v2334_v47 }
 0x38c   :  { %2554 = vst [vmem:[#allocation14 + $0x48] sm:$0xff] %v2326_v54 }
 0x396   :  { %v2741_v33 = vpop.f32.mrb[108].mxu0 }
 0x397   :  { %v2347_v6 = vadd.f32 %v2741_v33, %v4124_v1  ;;  %v2338_v29 = vpop.f32.mrb[109].mxu0 }
 0x398   :  { %v2339_v31 = vadd.f32 %v4124_v1, %v2338_v29  ;;  %v2742_v51 = vpop.f32.mrb[110].mxu0 }
 0x399   :  { %2559 = vst [vmem:[#allocation14 + $0x70] sm:$0xff] %v2347_v6  ;;  %v2350_v36 = vadd.f32 %v2742_v51, %v4124_v1  ;;  %v2341_v22 = vpop.f32.mrb[111].mxu0 }
 0x39a   :  { %2557 = vst [vmem:[#allocation14 + $0x60] sm:$0xff] %v2339_v31  ;;  %v2342_v12 = vadd.f32 %v4124_v1, %v2341_v22 }
 0x39b   :  { %2560 = vst [vmem:[#allocation14 + $0x78] sm:$0xff] %v2350_v36 }
 0x39c   :  { %2558 = vst [vmem:[#allocation14 + $0x68] sm:$0xff] %v2342_v12 }
 0x3a6   :  { %v2745_v8 = vpop.f32.mrb[112].mxu0 }
 0x3a7   :  { %v2363_v25 = vadd.f32 %v2745_v8, %v4124_v1  ;;  %v2354_v34 = vpop.f32.mrb[113].mxu0 }
 0x3a8   :  { %v2355_v13 = vadd.f32 %v4124_v1, %v2354_v34  ;;  %v2746_v2 = vpop.f32.mrb[114].mxu0 }
 0x3a9   :  { %2563 = vst [vmem:[#allocation14 + $0x90] sm:$0xff] %v2363_v25  ;;  %v2366_v50 = vadd.f32 %v2746_v2, %v4124_v1  ;;  %v2357_v63 = vpop.f32.mrb[115].mxu0 }
 0x3aa   :  { %2561 = vst [vmem:[#allocation14 + $0x80] sm:$0xff] %v2355_v13  ;;  %v2358_v17 = vadd.f32 %v4124_v1, %v2357_v63 }
 0x3ab   :  { %2564 = vst [vmem:[#allocation14 + $0x98] sm:$0xff] %v2366_v50 }
 0x3ac   :  { %2562 = vst [vmem:[#allocation14 + $0x88] sm:$0xff] %v2358_v17 }
 0x3b6   :  { %v2749_v42 = vpop.f32.mrb[116].mxu0 }
 0x3b7   :  { %v2379_v55 = vadd.f32 %v2749_v42, %v4124_v1  ;;  %v2370_v53 = vpop.f32.mrb[117].mxu0 }
 0x3b8   :  { %v2371_v21 = vadd.f32 %v4124_v1, %v2370_v53  ;;  %v2750_v20 = vpop.f32.mrb[118].mxu0 }
 0x3b9   :  { %2567 = vst [vmem:[#allocation14 + $0xb0] sm:$0xff] %v2379_v55  ;;  %v2382_v59 = vadd.f32 %v2750_v20, %v4124_v1  ;;  %v2373_v46 = vpop.f32.mrb[119].mxu0 }
 0x3ba   :  { %2565 = vst [vmem:[#allocation14 + $0xa0] sm:$0xff] %v2371_v21  ;;  %v2374_v27 = vadd.f32 %v4124_v1, %v2373_v46 }
 0x3bb   :  { %2568 = vst [vmem:[#allocation14 + $0xb8] sm:$0xff] %v2382_v59 }
 0x3bc   :  { %2566 = vst [vmem:[#allocation14 + $0xa8] sm:$0xff] %v2374_v27 }
 0x3c6   :  { %v2753_v5 = vpop.f32.mrb[120].mxu0 }
 0x3c7   :  { %v2395_v40 = vadd.f32 %v2753_v5, %v4124_v1  ;;  %v2386_v61 = vpop.f32.mrb[121].mxu0 }
 0x3c8   :  { %v2387_v49 = vadd.f32 %v4124_v1, %v2386_v61  ;;  %v2754_v48 = vpop.f32.mrb[122].mxu0 }
 0x3c9   :  { %2571 = vst [vmem:[#allocation14 + $0xd0] sm:$0xff] %v2395_v40  ;;  %v2398_v57 = vadd.f32 %v2754_v48, %v4124_v1  ;;  %v2389_v37 = vpop.f32.mrb[123].mxu0 }
 0x3ca   :  { %2569 = vst [vmem:[#allocation14 + $0xc0] sm:$0xff] %v2387_v49  ;;  %v2390_v0 = vadd.f32 %v4124_v1, %v2389_v37 }
 0x3cb   :  { %2572 = vst [vmem:[#allocation14 + $0xd8] sm:$0xff] %v2398_v57 }
 0x3cc   :  { %2570 = vst [vmem:[#allocation14 + $0xc8] sm:$0xff] %v2390_v0 }
 0x3d6   :  { %v2757_v58 = vpop.f32.mrb[124].mxu0 }
 0x3d7   :  { %v2411_v52 = vadd.f32 %v2757_v58, %v4124_v1  ;;  %v2402_v3 = vpop.f32.mrb[125].mxu0 }
 0x3d8   :  { %v2403_v43 = vadd.f32 %v4124_v1, %v2402_v3  ;;  %v2758_v60 = vpop.f32.mrb[126].mxu0 }
 0x3d9   :  { %2575 = vst [vmem:[#allocation14 + $0xf0] sm:$0xff] %v2411_v52  ;;  %v2414_v30 = vadd.f32 %v2758_v60, %v4124_v1  ;;  %v2405_v14 = vpop.f32.mrb[127].mxu0 }
 0x3da   :  { %2573 = vst [vmem:[#allocation14 + $0xe0] sm:$0xff] %v2403_v43  ;;  %v2406_v62 = vadd.f32 %v4124_v1, %v2405_v14 }
 0x3db   :  { %2576 = vst [vmem:[#allocation14 + $0xf8] sm:$0xff] %v2414_v30 }
 0x3dc   :  { %2574 = vst [vmem:[#allocation14 + $0xe8] sm:$0xff] %v2406_v62 }
 0x3e6   :  { %v2761_v32 = vpop.f32.mrb[128].mxu0 }
 0x3e7   :  { %v2427_v35 = vadd.f32 %v2761_v32, %v4124_v1  ;;  %v2418_v44 = vpop.f32.mrb[129].mxu0 }
 0x3e8   :  { %v2419_v23 = vadd.f32 %v4124_v1, %v2418_v44  ;;  %v2762_v26 = vpop.f32.mrb[130].mxu0 }
 0x3e9   :  { %2579 = vst [vmem:[#allocation14 + $0x110] sm:$0xff] %v2427_v35  ;;  %v2430_v11 = vadd.f32 %v2762_v26, %v4124_v1  ;;  %v2421_v38 = vpop.f32.mrb[131].mxu0 }
 0x3ea   :  { %2577 = vst [vmem:[#allocation14 + $0x100] sm:$0xff] %v2419_v23  ;;  %v2422_v39 = vadd.f32 %v4124_v1, %v2421_v38 }
 0x3eb   :  { %2580 = vst [vmem:[#allocation14 + $0x118] sm:$0xff] %v2430_v11 }
 0x3ec   :  { %2578 = vst [vmem:[#allocation14 + $0x108] sm:$0xff] %v2422_v39 }
 0x3f6   :  { %v2765_v9 = vpop.f32.mrb[132].mxu0 }
 0x3f7   :  { %v2443_v16 = vadd.f32 %v2765_v9, %v4124_v1  ;;  %v2434_v45 = vpop.f32.mrb[133].mxu0 }
 0x3f8   :  { %v2435_v18 = vadd.f32 %v4124_v1, %v2434_v45  ;;  %v2766_v41 = vpop.f32.mrb[134].mxu0 }
 0x3f9   :  { %2583 = vst [vmem:[#allocation14 + $0x130] sm:$0xff] %v2443_v16  ;;  %v2446_v28 = vadd.f32 %v2766_v41, %v4124_v1  ;;  %v2437_v7 = vpop.f32.mrb[135].mxu0 }
 0x3fa   :  { %2581 = vst [vmem:[#allocation14 + $0x120] sm:$0xff] %v2435_v18  ;;  %v2438_v24 = vadd.f32 %v4124_v1, %v2437_v7 }
 0x3fb   :  { %2584 = vst [vmem:[#allocation14 + $0x138] sm:$0xff] %v2446_v28 }
 0x3fc   :  { %2582 = vst [vmem:[#allocation14 + $0x128] sm:$0xff] %v2438_v24 }
 0x406   :  { %v2769_v15 = vpop.f32.mrb[136].mxu0 }
 0x407   :  { %v2459_v4 = vadd.f32 %v2769_v15, %v4124_v1  ;;  %v2450_v19 = vpop.f32.mrb[137].mxu0 }
 0x408   :  { %v2451_v56 = vadd.f32 %v4124_v1, %v2450_v19  ;;  %v2770_v47 = vpop.f32.mrb[138].mxu0 }
 0x409   :  { %2587 = vst [vmem:[#allocation14 + $0x150] sm:$0xff] %v2459_v4  ;;  %v2462_v10 = vadd.f32 %v2770_v47, %v4124_v1  ;;  %v2453_v54 = vpop.f32.mrb[139].mxu0 }
 0x40a   :  { %2585 = vst [vmem:[#allocation14 + $0x140] sm:$0xff] %v2451_v56  ;;  %v2454_v33 = vadd.f32 %v4124_v1, %v2453_v54 }
 0x40b   :  { %2588 = vst [vmem:[#allocation14 + $0x158] sm:$0xff] %v2462_v10 }
 0x40c   :  { %2586 = vst [vmem:[#allocation14 + $0x148] sm:$0xff] %v2454_v33 }
 0x416   :  { %v2773_v6 = vpop.f32.mrb[140].mxu0 }
 0x417   :  { %v2475_v29 = vadd.f32 %v2773_v6, %v4124_v1  ;;  %v2466_v31 = vpop.f32.mrb[141].mxu0 }
 0x418   :  { %v2467_v51 = vadd.f32 %v4124_v1, %v2466_v31  ;;  %v2774_v36 = vpop.f32.mrb[142].mxu0 }
 0x419   :  { %2591 = vst [vmem:[#allocation14 + $0x170] sm:$0xff] %v2475_v29  ;;  %v2478_v22 = vadd.f32 %v2774_v36, %v4124_v1  ;;  %v2469_v12 = vpop.f32.mrb[143].mxu0 }
 0x41a   :  { %2589 = vst [vmem:[#allocation14 + $0x160] sm:$0xff] %v2467_v51  ;;  %v2470_v8 = vadd.f32 %v4124_v1, %v2469_v12 }
 0x41b   :  { %2592 = vst [vmem:[#allocation14 + $0x178] sm:$0xff] %v2478_v22 }
 0x41c   :  { %2590 = vst [vmem:[#allocation14 + $0x168] sm:$0xff] %v2470_v8 }
 0x426   :  { %v2777_v25 = vpop.f32.mrb[144].mxu0 }
 0x427   :  { %v2491_v34 = vadd.f32 %v2777_v25, %v4124_v1  ;;  %v2482_v13 = vpop.f32.mrb[145].mxu0 }
 0x428   :  { %v2483_v2 = vadd.f32 %v4124_v1, %v2482_v13  ;;  %v2778_v50 = vpop.f32.mrb[146].mxu0 }
 0x429   :  { %2595 = vst [vmem:[#allocation14 + $0x190] sm:$0xff] %v2491_v34  ;;  %v2494_v63 = vadd.f32 %v2778_v50, %v4124_v1  ;;  %v2485_v17 = vpop.f32.mrb[147].mxu0 }
 0x42a   :  { %2593 = vst [vmem:[#allocation14 + $0x180] sm:$0xff] %v2483_v2  ;;  %v2486_v42 = vadd.f32 %v4124_v1, %v2485_v17 }
 0x42b   :  { %2596 = vst [vmem:[#allocation14 + $0x198] sm:$0xff] %v2494_v63 }
 0x42c   :  { %2594 = vst [vmem:[#allocation14 + $0x188] sm:$0xff] %v2486_v42 }
 0x436   :  { %v2781_v55 = vpop.f32.mrb[148].mxu0 }
 0x437   :  { %v2507_v53 = vadd.f32 %v2781_v55, %v4124_v1  ;;  %v2498_v21 = vpop.f32.mrb[149].mxu0 }
 0x438   :  { %v2499_v20 = vadd.f32 %v4124_v1, %v2498_v21  ;;  %v2782_v59 = vpop.f32.mrb[150].mxu0 }
 0x439   :  { %2599 = vst [vmem:[#allocation14 + $0x1b0] sm:$0xff] %v2507_v53  ;;  %v2510_v46 = vadd.f32 %v2782_v59, %v4124_v1  ;;  %v2501_v27 = vpop.f32.mrb[151].mxu0 }
 0x43a   :  { %2597 = vst [vmem:[#allocation14 + $0x1a0] sm:$0xff] %v2499_v20  ;;  %v2502_v5 = vadd.f32 %v4124_v1, %v2501_v27 }
 0x43b   :  { %2600 = vst [vmem:[#allocation14 + $0x1b8] sm:$0xff] %v2510_v46 }
 0x43c   :  { %2598 = vst [vmem:[#allocation14 + $0x1a8] sm:$0xff] %v2502_v5 }
 0x446   :  { %v2785_v40 = vpop.f32.mrb[152].mxu0 }
 0x447   :  { %v2523_v61 = vadd.f32 %v2785_v40, %v4124_v1  ;;  %v2514_v49 = vpop.f32.mrb[153].mxu0 }
 0x448   :  { %v2515_v48 = vadd.f32 %v4124_v1, %v2514_v49  ;;  %v2786_v57 = vpop.f32.mrb[154].mxu0 }
 0x449   :  { %2603 = vst [vmem:[#allocation14 + $0x1d0] sm:$0xff] %v2523_v61  ;;  %v2526_v37 = vadd.f32 %v2786_v57, %v4124_v1  ;;  %v2517_v0 = vpop.f32.mrb[155].mxu0 }
 0x44a   :  { %2601 = vst [vmem:[#allocation14 + $0x1c0] sm:$0xff] %v2515_v48  ;;  %v2518_v58 = vadd.f32 %v4124_v1, %v2517_v0 }
 0x44b   :  { %2604 = vst [vmem:[#allocation14 + $0x1d8] sm:$0xff] %v2526_v37 }
 0x44c   :  { %2602 = vst [vmem:[#allocation14 + $0x1c8] sm:$0xff] %v2518_v58 }
 0x456   :  { %v2789_v52 = vpop.f32.mrb[156].mxu0 }
 0x457   :  { %v2539_v3 = vadd.f32 %v2789_v52, %v4124_v1  ;;  %v2530_v43 = vpop.f32.mrb[157].mxu0 }
 0x458   :  { %v2531_v60 = vadd.f32 %v4124_v1, %v2530_v43  ;;  %v2790_v30 = vpop.f32.mrb[158].mxu0 }
 0x459   :  { %2607 = vst [vmem:[#allocation14 + $0x1f0] sm:$0xff] %v2539_v3  ;;  %v2542_v14 = vadd.f32 %v2790_v30, %v4124_v1  ;;  %v2533_v62 = vpop.f32.mrb[159].mxu0 }
 0x45a   :  { %2605 = vst [vmem:[#allocation14 + $0x1e0] sm:$0xff] %v2531_v60  ;;  %v2534_v32 = vadd.f32 %v4124_v1, %v2533_v62 }
 0x45b   :  { %2608 = vst [vmem:[#allocation14 + $0x1f8] sm:$0xff] %v2542_v14 }
 0x45c   :  { %2606 = vst [vmem:[#allocation14 + $0x1e8] sm:$0xff] %v2534_v32 }
 0x45d   :  { %3226 = shalt.err (!%p3223_p4)
}
 0x45e   :  { %s3227_s20 = scalar_lea.hbm %s4215_s7, 8192 }
 0x45f   :  { %p3228_p5 = scmp.ne.s32.totalorder %s4215_s7, %s3227_s20  ;;  %p3231_p6 = scmp.lt.u32.totalorder %s3227_s20, %s4215_s7 }
 0x461   :  { %p3233_p7 = pnand %p3231_p6, %p3228_p5 }
 0x463   :  { %3236 = shalt.err (!%p3233_p7)
}
 0x464   :  { %2620 = dma.vmem_to_hbm [thread:$0]  %s2615_s0, 8192, %s4215_s7, [#allocation4], %s3249_s13, %s3249_s13, %s3250_s14  }
 0x465   :  { %3245 = dma.done.wait [#allocation4], 8192  }
 0x466   :  { %3246 = vsyncadd [#allocation4], 4294959104 }
 0x467   :  { %2624 = vsyncpa [#allocation3], 1 }
 0x468   :  { %2625 = vsyncpa [#allocation6], 1 }
 0x469   :  { %2626 = vsyncpa [#allocation9], 1 }
 0x46a   :  { %2627 = vsyncpa [#allocation12], 1 }
 0x46b   :  { %2628 = vsyncpa [#allocation4], 1 }

</bundles_post_ra>
